<compile_context>
chip_gen: v5e
topology: v5e:2x2
jax: 0.10.0
libtpu: 0.0.40
codegen_flags: <defaults>
</compile_context>

<pallas_src>
import numpy as np
import jax
import jax.numpy as jnp
from jax.experimental import pallas as pl
from jax.experimental.pallas import tpu as pltpu

EMB = 48                       # self.emb_dim
POSE_DIM = 15
POSE_PAD = 48                  # pose head padded 45 -> 48 (zero cols); sliced in the wrapper
NUM_JOINTS = 24
NUM_BETAS = 10
# Scaled-down analogue of the HEM mesh coarsening hierarchy (finest -> coarsest).
GRAPH_SIZES = [384, 192, 96, 48, 24]
NUM_VERTS = [GRAPH_SIZES[-i - 1] for i in range(len(GRAPH_SIZES))]   # [24, 48, 96, 192, 384]
V_FULL = GRAPH_SIZES[0]
SKEL_DIM = 3 * (NUM_JOINTS - 1)                                      # 69 = rel_ps|rel_ts|in_ds


# ----------------------------- Pallas kernels ------------------------------

def _pct_fc_kernel(pcd_ref, l1w_ref, l1b_ref, l2w_ref, l2b_ref,
                   pw_ref, pb_ref, fcw_ref, fcb_ref,
                   feat_ref, pose_ref, ori_ref):
    """TODO(synk): PCTv2_SegReg backbone internals unavailable; point-MLP stand-in, fused with
    the global max-pool, the pose head (padded 45->48) and the folded
    fc = Linear(45,1024) o Linear(1024, 24*emb) (no activation -> single affine map)."""
    f32 = jnp.float32
    bf16 = jnp.bfloat16
    x = pcd_ref[0]                                                            # [N, 3]
    h = jnp.maximum(
        jnp.dot(x.astype(bf16), l1w_ref[...], preferred_element_type=f32) + l1b_ref[...], 0.0)
    feat = jnp.dot(h.astype(bf16), l2w_ref[...], preferred_element_type=f32) + l2b_ref[...]
    feat_ref[0] = feat                                                        # [N, EMB]
    gmax = jnp.max(feat, axis=0, keepdims=True)                               # [1, EMB]
    pose = jnp.dot(gmax.astype(bf16), pw_ref[...], preferred_element_type=f32) + pb_ref[...]
    pose_ref[0] = pose                                                        # [1, 48] cols>=45 zero
    ori_ref[0] = (jnp.dot(pose.astype(bf16), fcw_ref[...], preferred_element_type=f32)
                  + fcb_ref[...])                                             # [1, 24*EMB]


def _mesh_refine_kernel(ori_ref, adj0_ref, adj1_ref, adj2_ref, upA_ref, upB_ref,
                        w1_ref, b1_ref, w2_ref, b2_ref, locw_ref, locb_ref,
                        up1w_ref, up1b_ref, up2w_ref, up2b_ref,
                        jd_ref, wsk_ref, wmean_ref, wmax_ref, bbeta_ref, sd_ref, vtm_ref,
                        pose0_ref, pose1_ref, pose2_ref, subp_ref, mesh_ref, vfeat_ref,
                        betas_ref, blend_ref, trans_ref):
    f32 = jnp.float32
    bf16 = jnp.bfloat16

    def decode(x):
        # location_decoder = Linear(48,16) o Linear(16,3), no activation -> folded to [48,3].
        return jnp.dot(x, locw_ref[...], preferred_element_type=f32) + locb_ref[...]

    def graph_block(x, adj, idx):
        # TODO(synk): Graphormer (BERT attention + graph conv) internals unavailable;
        # stand-in = graph-conv + gelu-MLP residual block (num_hidden_layers=2 per stage).
        gx = jnp.dot(adj, x.astype(bf16), preferred_element_type=f32)
        h = jax.nn.gelu(
            jnp.dot(gx.astype(bf16), w1_ref[idx], preferred_element_type=f32) + b1_ref[idx])
        return x + jnp.dot(h.astype(bf16), w2_ref[idx], preferred_element_type=f32) + b2_ref[idx]

    x = ori_ref[0]                                                            # [24, EMB]
    stage_adj = (adj0_ref, adj1_ref, adj2_ref)
    stage_up = (None, upA_ref, upB_ref)
    stage_out = (pose0_ref, pose1_ref, pose2_ref)
    for s in range(3):
        if stage_up[s] is not None:       # nearest vertex upsample as a 0/1 per-batch left matmul
            x = jnp.dot(stage_up[s][...], x.astype(bf16), preferred_element_type=f32)
        adj = stage_adj[s][...]
        for k in range(2):
            x = graph_block(x, adj, 2 * s + k)
        stage_out[s][0] = decode(x)

    # up1 / up2 act along the vertex axis: left matmuls keep the [V, EMB] channels-last layout.
    sub = jnp.dot(up1w_ref[...], x.astype(bf16), preferred_element_type=f32) + up1b_ref[...]
    subp_ref[0] = decode(sub)                                                 # [192, 3]
    fin = jnp.dot(up2w_ref[...], sub.astype(bf16), preferred_element_type=f32) + up2b_ref[...]
    vfeat_ref[0] = fin                                                        # [384, EMB]
    mesh_v = decode(fin)                                                      # [384, 3]
    mesh_ref[0] = mesh_v

    # Beta refinement head (the .detach() in the reference only affects backward; forward
    # values are identical).  Bone-length geometry folded to one matmul: jd = D_bone @ J_reg.
    rel_vec = jnp.dot(jd_ref[...], mesh_v, preferred_element_type=f32)        # [23, 3]
    rel_ps = jnp.sqrt(jnp.sum(rel_vec * rel_vec, axis=-1, keepdims=True))     # [23, 1]
    beta_sk = jnp.sum(rel_ps * wsk_ref[...], axis=0, keepdims=True)           # [1, 10]
    mean_ = jnp.mean(fin, axis=0, keepdims=True)                              # [1, EMB]
    max_ = jnp.max(fin, axis=0, keepdims=True)                                # [1, EMB]
    betas = (beta_sk
             + jnp.dot(mean_, wmean_ref[...], preferred_element_type=f32)
             + jnp.dot(max_, wmax_ref[...], preferred_element_type=f32)
             + bbeta_ref[...])                                                # [1, 10]
    betas_ref[0] = betas
    # TODO(synk): SMPL_layer.meshik (hybrid analytical IK) unavailable; stand-in = linear shape
    # blendshapes + translation toward the predicted mesh (verts assembled in the wrapper).
    blend_ref[0] = jnp.dot(betas, sd_ref[...], preferred_element_type=f32)    # [1, V*3]
    trans_ref[0] = jnp.mean(mesh_v, axis=0, keepdims=True) - vtm_ref[...]     # [1, 3]


# ------------------------------ call wrappers --------------------------------

def _const_spec(arr):
    nd = arr.ndim
    return pl.BlockSpec(arr.shape, lambda b, _n=nd: (0,) * _n)


def _batched_spec(full_shape):
    nd = len(full_shape)
    return pl.BlockSpec((1,) + tuple(full_shape[1:]),
                        lambda b, _n=nd: (b,) + (0,) * (_n - 1))


_PARALLEL_BATCH = pltpu.CompilerParams(dimension_semantics=("parallel",))

K1_WEIGHTS = ('pct_l1_w', 'pct_l1_b', 'pct_l2_w', 'pct_l2_b',
              'pose_w', 'pose_b', 'fc_w', 'fc_b')
K2_WEIGHTS = ('adj24', 'adj48', 'adj96', 'up48', 'up96',
              'blk_w1', 'blk_b1', 'blk_w2', 'blk_b2', 'loc_w', 'loc_b',
              'up1_w', 'up1_b', 'up2_w', 'up2_b',
              'jd', 'beta_w_sk', 'beta_w_mean', 'beta_w_max', 'beta_b',
              'shapedirs', 'vt_mean')


def lidar_hmr_forward(kp, pcd):
    batch, npts, _ = pcd.shape

    # K1: point backbone + pose head + folded fc.
    feat, pose_pad, ori_flat = pl.pallas_call(
        _pct_fc_kernel,
        grid=(batch,),
        in_specs=[_batched_spec(pcd.shape)] + [_const_spec(kp[k]) for k in K1_WEIGHTS],
        out_specs=(_batched_spec((batch, npts, EMB)),
                   _batched_spec((batch, 1, POSE_PAD)),
                   _batched_spec((batch, 1, NUM_JOINTS * EMB))),
        out_shape=(jax.ShapeDtypeStruct((batch, npts, EMB), jnp.float32),
                   jax.ShapeDtypeStruct((batch, 1, POSE_PAD), jnp.float32),
                   jax.ShapeDtypeStruct((batch, 1, NUM_JOINTS * EMB), jnp.float32)),
        compiler_params=_PARALLEL_BATCH,
    )(pcd, *[kp[k] for k in K1_WEIGHTS])

    pose = pose_pad[:, 0, :POSE_DIM * 3].reshape(batch, POSE_DIM, 3)
    ori_feat = ori_flat.reshape(batch, NUM_JOINTS, EMB)       # contiguous -> free reshape

    # K2: graphormer stages + up1/up2 + decoders + geometry + beta + blendshapes.
    (pose0, pose1, pose2, sub_pose, mesh_out, vert_feat,
     betas_r, blend_r, trans_r) = pl.pallas_call(
        _mesh_refine_kernel,
        grid=(batch,),
        in_specs=[_batched_spec(ori_feat.shape)] + [_const_spec(kp[k]) for k in K2_WEIGHTS],
        out_specs=(_batched_spec((batch, NUM_VERTS[0], 3)),
                   _batched_spec((batch, NUM_VERTS[1], 3)),
                   _batched_spec((batch, NUM_VERTS[2], 3)),
                   _batched_spec((batch, NUM_VERTS[3], 3)),
                   _batched_spec((batch, NUM_VERTS[4], 3)),
                   _batched_spec((batch, V_FULL, EMB)),
                   _batched_spec((batch, 1, NUM_BETAS)),
                   _batched_spec((batch, 1, V_FULL * 3)),
                   _batched_spec((batch, 1, 3))),
        out_shape=(jax.ShapeDtypeStruct((batch, NUM_VERTS[0], 3), jnp.float32),
                   jax.ShapeDtypeStruct((batch, NUM_VERTS[1], 3), jnp.float32),
                   jax.ShapeDtypeStruct((batch, NUM_VERTS[2], 3), jnp.float32),
                   jax.ShapeDtypeStruct((batch, NUM_VERTS[3], 3), jnp.float32),
                   jax.ShapeDtypeStruct((batch, NUM_VERTS[4], 3), jnp.float32),
                   jax.ShapeDtypeStruct((batch, V_FULL, EMB), jnp.float32),
                   jax.ShapeDtypeStruct((batch, 1, NUM_BETAS), jnp.float32),
                   jax.ShapeDtypeStruct((batch, 1, V_FULL * 3), jnp.float32),
                   jax.ShapeDtypeStruct((batch, 1, 3), jnp.float32)),
        compiler_params=_PARALLEL_BATCH,
    )(ori_feat, *[kp[k] for k in K2_WEIGHTS])

    betas = betas_r[:, 0]
    trans = trans_r[:, 0]
    blend = blend_r.reshape(batch, V_FULL, 3)
    mesh_refine = kp['v_template'][None] + blend + trans[:, None, :]
    pose_lister = [pose, pose0, pose1, pose2, sub_pose, mesh_out]
    theta = jnp.zeros((batch, NUM_JOINTS * 3), jnp.float32)   # TODO(synk): meshik theta unavailable
    return {'pose': pose, 'feat': feat,
            'pose_lister': pose_lister,
            'mesh_out': mesh_out,
            'vert_feat': vert_feat,
            'mesh_refine': mesh_refine,
            'vert_shift': [mesh_refine - mesh_out],
            'pose_theta': theta,
            'pose_beta': betas,
            'trans': trans}


# ------------------------------ parameters ---------------------------------

def init_linear(key, din, dout, scale=0.02):
    kw, kb = jax.random.split(key)
    return (jax.random.normal(kw, (din, dout), jnp.float32) * scale,
            jax.random.normal(kb, (dout,), jnp.float32) * scale)


def ring_adj(n):
    i = np.arange(n)
    a = np.zeros((n, n), np.float32)
    a[i, i] = 1.0
    a[i, (i + 1) % n] = 1.0
    a[i, (i - 1) % n] = 1.0
    a /= a.sum(axis=1, keepdims=True)
    return a


def _upsample_matrix_np(t_in, factor):
    t_out = t_in * factor
    u = np.zeros((t_out, t_in), np.float32)
    u[np.arange(t_out), np.arange(t_out) // factor] = 1.0    # nearest: out[i] = in[floor(i/f)]
    return u


def init_params(key):
    keys = iter(jax.random.split(key, 64))
    p = {}
    # TODO(synk): PCTv2_SegReg backbone internals not provided; small point-MLP stand-in.
    p['pct_l1'] = init_linear(next(keys), 3, EMB)
    p['pct_l2'] = init_linear(next(keys), EMB, EMB)
    p['pct_pose'] = init_linear(next(keys), EMB, POSE_DIM * 3)
    # self.fc = Sequential(Linear(45, 1024), Linear(1024, 24*emb_dim))  (no activation)
    p['fc1'] = init_linear(next(keys), POSE_DIM * 3, 1024)
    p['fc2'] = init_linear(next(keys), 1024, NUM_JOINTS * EMB)
    # self.location_decoder = Sequential(Linear(48, 16), Linear(16, 3))  (no activation)
    p['loc1'] = init_linear(next(keys), EMB, 16)
    p['loc2'] = init_linear(next(keys), 16, 3)
    # TODO(synk): Graphormer internals not provided; 2 graph-conv residual MLP blocks per stage.
    for name in ('p2m0', 'p2m1', 'mesh_layer'):
        blocks = []
        for _ in range(2):
            w1, b1 = init_linear(next(keys), EMB, 2 * EMB)
            w2, b2 = init_linear(next(keys), 2 * EMB, EMB)
            blocks.append((w1, b1, w2, b2))
        p[name] = blocks
    # self.up1 / self.up2 act along the vertex axis (Linear(1946,3679), Linear(3679,6890) scaled)
    p['up1'] = init_linear(next(keys), NUM_VERTS[2], NUM_VERTS[3])
    p['up2'] = init_linear(next(keys), NUM_VERTS[3], NUM_VERTS[4])
    # self.beta_regressor = Sequential(Linear(165, 96), Linear(96, 24), Linear(24, 10))
    p['beta1'] = init_linear(next(keys), SKEL_DIM + 2 * EMB, 96)
    p['beta2'] = init_linear(next(keys), 96, 24)
    p['beta3'] = init_linear(next(keys), 24, NUM_BETAS)
    # TODO(synk): SMPL assets (J_regressor / v_template / shapedirs / kinematic tree)
    # are synthetic deterministic tensors of the right shapes, not the real SMPL model.
    kJ, kT, kS = jax.random.split(next(keys), 3)
    J = jax.random.uniform(kJ, (NUM_JOINTS, V_FULL), jnp.float32)
    p['J_regressor'] = J / jnp.sum(J, axis=1, keepdims=True)
    p['v_template'] = jax.random.normal(kT, (V_FULL, 3), jnp.float32) * 0.1
    p['shapedirs'] = jax.random.normal(kS, (NUM_BETAS, V_FULL * 3), jnp.float32) * 0.01
    parents = np.zeros(NUM_JOINTS, np.int32)
    parents[1:] = (np.arange(1, NUM_JOINTS) - 1) // 2
    p['parents'] = parents
    p['adjs'] = [ring_adj(n) for n in GRAPH_SIZES]            # finest -> coarsest (numpy)
    return p


def prepare_params(p):
    """One-time (outside jit) repack: fold every activation-free Sequential into a single
    affine map, fold constant template bone lengths into the beta bias, cast matmul-path
    weights to bf16, stack the 6 graph blocks into single arrays."""
    bf16 = jnp.bfloat16

    def row(b):
        return jnp.asarray(b, jnp.float32).reshape(1, -1)

    kp = {}
    # ---- K1: point backbone + pose head (45 -> padded 48) + folded fc ----
    kp['pct_l1_w'] = jnp.asarray(p['pct_l1'][0], bf16)
    kp['pct_l1_b'] = row(p['pct_l1'][1])
    kp['pct_l2_w'] = jnp.asarray(p['pct_l2'][0], bf16)
    kp['pct_l2_b'] = row(p['pct_l2'][1])
    pw, pb = p['pct_pose']
    pad = POSE_PAD - POSE_DIM * 3
    kp['pose_w'] = jnp.pad(pw, ((0, 0), (0, pad))).astype(bf16)
    kp['pose_b'] = jnp.pad(row(pb), ((0, 0), (0, pad)))
    fc_w = p['fc1'][0] @ p['fc2'][0]                                     # [45, 24*EMB]
    fc_b = row(p['fc1'][1]) @ p['fc2'][0] + row(p['fc2'][1])
    kp['fc_w'] = jnp.pad(fc_w, ((0, pad), (0, 0))).astype(bf16)          # [48, 24*EMB]
    kp['fc_b'] = fc_b

    # ---- shared location decoder (folded) ----
    kp['loc_w'] = p['loc1'][0] @ p['loc2'][0]                            # [EMB, 3]  (f32)
    kp['loc_b'] = row(p['loc1'][1]) @ p['loc2'][0] + row(p['loc2'][1])

    # ---- graph stages: per-batch adjacency (no block-diag), stacked block weights ----
    kp['adj24'] = jnp.asarray(p['adjs'][-1], bf16)
    kp['adj48'] = jnp.asarray(p['adjs'][-2], bf16)
    kp['adj96'] = jnp.asarray(p['adjs'][2], bf16)
    kp['up48'] = jnp.asarray(_upsample_matrix_np(NUM_VERTS[0], 2), bf16)   # [48, 24]
    kp['up96'] = jnp.asarray(_upsample_matrix_np(NUM_VERTS[1], 2), bf16)   # [96, 48]
    w1s, b1s, w2s, b2s = [], [], [], []
    for name in ('p2m0', 'p2m1', 'mesh_layer'):
        for (w1, b1, w2, b2) in p[name]:
            w1s.append(w1); b1s.append(b1.reshape(1, -1))
            w2s.append(w2); b2s.append(b2.reshape(1, -1))
    kp['blk_w1'] = jnp.stack(w1s).astype(bf16)                           # [6, EMB, 2*EMB]
    kp['blk_b1'] = jnp.stack(b1s)                                        # [6, 1, 2*EMB]
    kp['blk_w2'] = jnp.stack(w2s).astype(bf16)                           # [6, 2*EMB, EMB]
    kp['blk_b2'] = jnp.stack(b2s)                                        # [6, 1, EMB]

    # ---- up1 / up2 (vertex-axis left matmuls; bias per output vertex) ----
    kp['up1_w'] = jnp.transpose(p['up1'][0]).astype(bf16)                # [192, 96]
    kp['up1_b'] = jnp.asarray(p['up1'][1], jnp.float32).reshape(-1, 1)
    kp['up2_w'] = jnp.transpose(p['up2'][0]).astype(bf16)                # [384, 192]
    kp['up2_b'] = jnp.asarray(p['up2'][1], jnp.float32).reshape(-1, 1)

    # ---- geometry + folded beta regressor ----
    J = p['J_regressor']
    vt = p['v_template']
    parents = np.asarray(p['parents'])
    n = NUM_JOINTS - 1
    D = np.zeros((n, NUM_JOINTS), np.float32)                            # bone difference matrix
    D[np.arange(n), np.arange(1, NUM_JOINTS)] = 1.0
    D[np.arange(n), parents[1:]] -= 1.0
    D = jnp.asarray(D)
    kp['jd'] = D @ J                                                     # [23, V]
    rel_ts = jnp.linalg.norm(D @ (J @ vt), axis=-1).reshape(1, -1)       # [1, 23] constant
    # beta_regressor = 3 Linears, no activation -> fold to one [165,10] affine map; input
    # order is [rel_ps | rel_ts | in_ds | mean | max]; rel_ts is constant -> fold into bias.
    w_b = p['beta1'][0] @ p['beta2'][0] @ p['beta3'][0]                  # [165, 10]
    b_b = ((row(p['beta1'][1]) @ p['beta2'][0] + row(p['beta2'][1])) @ p['beta3'][0]
           + row(p['beta3'][1]))
    kp['beta_w_sk'] = w_b[:n] + w_b[2 * n:3 * n]                         # rel_ps + in_ds rows
    kp['beta_w_mean'] = w_b[3 * n:3 * n + EMB]
    kp['beta_w_max'] = w_b[3 * n + EMB:]
    kp['beta_b'] = b_b + rel_ts @ (w_b[n:2 * n] - w_b[2 * n:3 * n])      # [1, 10]
    kp['shapedirs'] = p['shapedirs']                                     # [10, V*3] (f32)
    kp['vt_mean'] = jnp.mean(vt, axis=0, keepdims=True)                  # [1, 3]
    kp['v_template'] = vt
    return kp


# --------------------------------- main --------------------------------------

if __name__ == "__main__":
    key = jax.random.PRNGKey(0)
    kparam, kx = jax.random.split(key)
    raw_params = init_params(kparam)
    kernel_params = prepare_params(raw_params)
    pcd = jax.random.normal(kx, (2, 64, 3), jnp.float32)      # [B, N_points, 3]

    fwd = jax.jit(lidar_hmr_forward)
    ret = fwd(kernel_params, pcd)
    jax.block_until_ready(ret['mesh_refine'])

    assert ret['pose'].shape == (2, POSE_DIM, 3)
    assert ret['feat'].shape == (2, 64, EMB)
    assert ret['mesh_out'].shape == (2, V_FULL, 3)
    assert ret['vert_feat'].shape == (2, V_FULL, EMB)
    assert ret['mesh_refine'].shape == (2, V_FULL, 3)
    assert ret['pose_beta'].shape == (2, NUM_BETAS)
    assert ret['trans'].shape == (2, 3)
    assert len(ret['pose_lister']) == 6
    for t, v in zip(ret['pose_lister'][1:], NUM_VERTS):
        assert t.shape == (2, v, 3)
    assert bool(jnp.all(jnp.isfinite(ret['mesh_refine'])))
    print("KERNEL_OK")
</pallas_src>

<mosaic_0001>
module attributes {stable_mosaic.version = 11 : i64} {
  func.func @_pct_fc_kernel(%arg0: i32, %arg1: memref<1x64x3xf32, #tpu.memory_space<vmem>>, %arg2: memref<3x48xbf16, #tpu.memory_space<vmem>>, %arg3: memref<1x48xf32, #tpu.memory_space<vmem>>, %arg4: memref<48x48xbf16, #tpu.memory_space<vmem>>, %arg5: memref<1x48xf32, #tpu.memory_space<vmem>>, %arg6: memref<48x48xbf16, #tpu.memory_space<vmem>>, %arg7: memref<1x48xf32, #tpu.memory_space<vmem>>, %arg8: memref<48x1152xbf16, #tpu.memory_space<vmem>>, %arg9: memref<1x1152xf32, #tpu.memory_space<vmem>>, %arg10: memref<1x64x48xf32, #tpu.memory_space<vmem>>, %arg11: memref<1x1x48xf32, #tpu.memory_space<vmem>>, %arg12: memref<1x1x1152xf32, #tpu.memory_space<vmem>>) attributes {dimension_semantics = [#tpu.dimension_semantics<parallel>], iteration_bounds = array<i64: 2>, scalar_prefetch = 0 : i64, scratch_operands = 0 : i64, tpu.core_type = #tpu.core_type<tc>, window_params = [{transform_indices = @transform_0, window_bounds = array<i64: 1, 64, 3>}, {pipeline_mode = #tpu.pipeline_mode<synchronous>, transform_indices = @transform_1, window_bounds = array<i64: 3, 48>}, {pipeline_mode = #tpu.pipeline_mode<synchronous>, transform_indices = @transform_2, window_bounds = array<i64: 1, 48>}, {pipeline_mode = #tpu.pipeline_mode<synchronous>, transform_indices = @transform_3, window_bounds = array<i64: 48, 48>}, {pipeline_mode = #tpu.pipeline_mode<synchronous>, transform_indices = @transform_4, window_bounds = array<i64: 1, 48>}, {pipeline_mode = #tpu.pipeline_mode<synchronous>, transform_indices = @transform_5, window_bounds = array<i64: 48, 48>}, {pipeline_mode = #tpu.pipeline_mode<synchronous>, transform_indices = @transform_6, window_bounds = array<i64: 1, 48>}, {pipeline_mode = #tpu.pipeline_mode<synchronous>, transform_indices = @transform_7, window_bounds = array<i64: 48, 1152>}, {pipeline_mode = #tpu.pipeline_mode<synchronous>, transform_indices = @transform_8, window_bounds = array<i64: 1, 1152>}, {transform_indices = @transform_9, window_bounds = array<i64: 1, 64, 48>}, {transform_indices = @transform_10, window_bounds = array<i64: 1, 1, 48>}, {transform_indices = @transform_11, window_bounds = array<i64: 1, 1, 1152>}]} {
    %c0 = arith.constant 0 : index
    %c0_0 = arith.constant 0 : index
    %c0_1 = arith.constant 0 : index
    %0 = vector.load %arg1[%c0, %c0_0, %c0_1] : memref<1x64x3xf32, #tpu.memory_space<vmem>>, vector<1x64x3xf32>
    %1 = vector.shape_cast %0 : vector<1x64x3xf32> to vector<64x3xf32>
    %2 = arith.truncf %1 : vector<64x3xf32> to vector<64x3xbf16>
    %c0_2 = arith.constant 0 : index
    %c0_3 = arith.constant 0 : index
    %3 = vector.load %arg2[%c0_2, %c0_3] : memref<3x48xbf16, #tpu.memory_space<vmem>>, vector<3x48xbf16>
    %cst = arith.constant dense<0.000000e+00> : vector<64x48xf32>
    %4 = tpu.matmul %2, %3, %cst {dimension_numbers = #tpu.dot_dimension_numbers<[1], [0], [0], [1], [0, 0, 1, 1], [], []>} : vector<64x3xbf16>, vector<3x48xbf16>, vector<64x48xf32> -> vector<64x48xf32>
    %c0_4 = arith.constant 0 : index
    %c0_5 = arith.constant 0 : index
    %5 = vector.load %arg3[%c0_4, %c0_5] : memref<1x48xf32, #tpu.memory_space<vmem>>, vector<1x48xf32>
    %6 = vector.broadcast %5 : vector<1x48xf32> to vector<64x48xf32>
    %7 = arith.addf %4, %6 : vector<64x48xf32>
    %cst_6 = arith.constant 0.000000e+00 : f32
    %8 = vector.broadcast %cst_6 : f32 to vector<64x48xf32>
    %9 = arith.maximumf %7, %8 : vector<64x48xf32>
    %10 = arith.truncf %9 : vector<64x48xf32> to vector<64x48xbf16>
    %c0_7 = arith.constant 0 : index
    %c0_8 = arith.constant 0 : index
    %11 = vector.load %arg4[%c0_7, %c0_8] : memref<48x48xbf16, #tpu.memory_space<vmem>>, vector<48x48xbf16>
    %cst_9 = arith.constant dense<0.000000e+00> : vector<64x48xf32>
    %12 = tpu.matmul %10, %11, %cst_9 {dimension_numbers = #tpu.dot_dimension_numbers<[1], [0], [0], [1], [0, 0, 1, 1], [], []>} : vector<64x48xbf16>, vector<48x48xbf16>, vector<64x48xf32> -> vector<64x48xf32>
    %c0_10 = arith.constant 0 : index
    %c0_11 = arith.constant 0 : index
    %13 = vector.load %arg5[%c0_10, %c0_11] : memref<1x48xf32, #tpu.memory_space<vmem>>, vector<1x48xf32>
    %14 = vector.broadcast %13 : vector<1x48xf32> to vector<64x48xf32>
    %15 = arith.addf %12, %14 : vector<64x48xf32>
    %c0_12 = arith.constant 0 : index
    %c0_13 = arith.constant 0 : index
    %c0_14 = arith.constant 0 : index
    %16 = vector.load %arg10[%c0_12, %c0_13, %c0_14] : memref<1x64x48xf32, #tpu.memory_space<vmem>>, vector<1x64x48xf32>
    %17 = vector.shape_cast %16 : vector<1x64x48xf32> to vector<64x48xf32>
    %18 = vector.shape_cast %15 : vector<64x48xf32> to vector<1x64x48xf32>
    tpu.vector_store %arg10[%c0_12, %c0_13, %c0_14], %18 {strides = array<i32>} : memref<1x64x48xf32, #tpu.memory_space<vmem>>, vector<1x64x48xf32>,
    %cst_15 = arith.constant dense<0xFF800000> : vector<48xf32>
    %19 = vector.multi_reduction <maximumf>, %15, %cst_15 [0] : vector<64x48xf32> to vector<48xf32>
    %20 = vector.shape_cast %19 : vector<48xf32> to vector<1x48xf32>
    %21 = arith.truncf %20 : vector<1x48xf32> to vector<1x48xbf16>
    %c0_16 = arith.constant 0 : index
    %c0_17 = arith.constant 0 : index
    %22 = vector.load %arg6[%c0_16, %c0_17] : memref<48x48xbf16, #tpu.memory_space<vmem>>, vector<48x48xbf16>
    %cst_18 = arith.constant dense<0.000000e+00> : vector<1x48xf32>
    %23 = tpu.matmul %21, %22, %cst_18 {dimension_numbers = #tpu.dot_dimension_numbers<[1], [0], [0], [1], [0, 0, 1, 1], [], []>} : vector<1x48xbf16>, vector<48x48xbf16>, vector<1x48xf32> -> vector<1x48xf32>
    %c0_19 = arith.constant 0 : index
    %c0_20 = arith.constant 0 : index
    %24 = vector.load %arg7[%c0_19, %c0_20] : memref<1x48xf32, #tpu.memory_space<vmem>>, vector<1x48xf32>
    %25 = arith.addf %23, %24 : vector<1x48xf32>
    %c0_21 = arith.constant 0 : index
    %c0_22 = arith.constant 0 : index
    %c0_23 = arith.constant 0 : index
    %26 = vector.load %arg11[%c0_21, %c0_22, %c0_23] : memref<1x1x48xf32, #tpu.memory_space<vmem>>, vector<1x1x48xf32>
    %27 = vector.shape_cast %26 : vector<1x1x48xf32> to vector<1x48xf32>
    %28 = vector.shape_cast %25 : vector<1x48xf32> to vector<1x1x48xf32>
    tpu.vector_store %arg11[%c0_21, %c0_22, %c0_23], %28 {strides = array<i32>} : memref<1x1x48xf32, #tpu.memory_space<vmem>>, vector<1x1x48xf32>,
    %29 = arith.truncf %25 : vector<1x48xf32> to vector<1x48xbf16>
    %c0_24 = arith.constant 0 : index
    %c0_25 = arith.constant 0 : index
    %30 = vector.load %arg8[%c0_24, %c0_25] : memref<48x1152xbf16, #tpu.memory_space<vmem>>, vector<48x1152xbf16>
    %cst_26 = arith.constant dense<0.000000e+00> : vector<1x1152xf32>
    %31 = tpu.matmul %29, %30, %cst_26 {dimension_numbers = #tpu.dot_dimension_numbers<[1], [0], [0], [1], [0, 0, 1, 1], [], []>} : vector<1x48xbf16>, vector<48x1152xbf16>, vector<1x1152xf32> -> vector<1x1152xf32>
    %c0_27 = arith.constant 0 : index
    %c0_28 = arith.constant 0 : index
    %32 = vector.load %arg9[%c0_27, %c0_28] : memref<1x1152xf32, #tpu.memory_space<vmem>>, vector<1x1152xf32>
    %33 = arith.addf %31, %32 : vector<1x1152xf32>
    %c0_29 = arith.constant 0 : index
    %c0_30 = arith.constant 0 : index
    %c0_31 = arith.constant 0 : index
    %34 = vector.load %arg12[%c0_29, %c0_30, %c0_31] : memref<1x1x1152xf32, #tpu.memory_space<vmem>>, vector<1x1x1152xf32>
    %35 = vector.shape_cast %34 : vector<1x1x1152xf32> to vector<1x1152xf32>
    %36 = vector.shape_cast %33 : vector<1x1152xf32> to vector<1x1x1152xf32>
    tpu.vector_store %arg12[%c0_29, %c0_30, %c0_31], %36 {strides = array<i32>} : memref<1x1x1152xf32, #tpu.memory_space<vmem>>, vector<1x1x1152xf32>,
    return
  }
  func.func @transform_0(%arg0: i32) -> (i32, i32, i32) {
    %c0_i32 = arith.constant 0 : i32
    %c0_i32_0 = arith.constant 0 : i32
    %c0_i32_1 = arith.constant 0 : i32
    return %arg0, %c0_i32, %c0_i32_0 : i32, i32, i32
  }
  func.func @transform_1(%arg0: i32) -> (i32, i32) {
    %c0_i32 = arith.constant 0 : i32
    %c0_i32_0 = arith.constant 0 : i32
    %c0_i32_1 = arith.constant 0 : i32
    return %c0_i32, %c0_i32_0 : i32, i32
  }
  func.func @transform_2(%arg0: i32) -> (i32, i32) {
    %c0_i32 = arith.constant 0 : i32
    %c0_i32_0 = arith.constant 0 : i32
    %c0_i32_1 = arith.constant 0 : i32
    return %c0_i32, %c0_i32_0 : i32, i32
  }
  func.func @transform_3(%arg0: i32) -> (i32, i32) {
    %c0_i32 = arith.constant 0 : i32
    %c0_i32_0 = arith.constant 0 : i32
    %c0_i32_1 = arith.constant 0 : i32
    return %c0_i32, %c0_i32_0 : i32, i32
  }
  func.func @transform_4(%arg0: i32) -> (i32, i32) {
    %c0_i32 = arith.constant 0 : i32
    %c0_i32_0 = arith.constant 0 : i32
    %c0_i32_1 = arith.constant 0 : i32
    return %c0_i32, %c0_i32_0 : i32, i32
  }
  func.func @transform_5(%arg0: i32) -> (i32, i32) {
    %c0_i32 = arith.constant 0 : i32
    %c0_i32_0 = arith.constant 0 : i32
    %c0_i32_1 = arith.constant 0 : i32
    return %c0_i32, %c0_i32_0 : i32, i32
  }
  func.func @transform_6(%arg0: i32) -> (i32, i32) {
    %c0_i32 = arith.constant 0 : i32
    %c0_i32_0 = arith.constant 0 : i32
    %c0_i32_1 = arith.constant 0 : i32
    return %c0_i32, %c0_i32_0 : i32, i32
  }
  func.func @transform_7(%arg0: i32) -> (i32, i32) {
    %c0_i32 = arith.constant 0 : i32
    %c0_i32_0 = arith.constant 0 : i32
    %c0_i32_1 = arith.constant 0 : i32
    return %c0_i32, %c0_i32_0 : i32, i32
  }
  func.func @transform_8(%arg0: i32) -> (i32, i32) {
    %c0_i32 = arith.constant 0 : i32
    %c0_i32_0 = arith.constant 0 : i32
    %c0_i32_1 = arith.constant 0 : i32
    return %c0_i32, %c0_i32_0 : i32, i32
  }
  func.func @transform_9(%arg0: i32) -> (i32, i32, i32) {
    %c0_i32 = arith.constant 0 : i32
    %c0_i32_0 = arith.constant 0 : i32
    %c0_i32_1 = arith.constant 0 : i32
    return %arg0, %c0_i32, %c0_i32_0 : i32, i32, i32
  }
  func.func @transform_10(%arg0: i32) -> (i32, i32, i32) {
    %c0_i32 = arith.constant 0 : i32
    %c0_i32_0 = arith.constant 0 : i32
    %c0_i32_1 = arith.constant 0 : i32
    return %arg0, %c0_i32, %c0_i32_0 : i32, i32, i32
  }
  func.func @transform_11(%arg0: i32) -> (i32, i32, i32) {
    %c0_i32 = arith.constant 0 : i32
    %c0_i32_0 = arith.constant 0 : i32
    %c0_i32_1 = arith.constant 0 : i32
    return %arg0, %c0_i32, %c0_i32_0 : i32, i32, i32
  }
}

module attributes {stable_mosaic.version = 11 : i64} {
  func.func @_mesh_refine_kernel(%arg0: i32, %arg1: memref<1x24x48xf32, #tpu.memory_space<vmem>>, %arg2: memref<24x24xbf16, #tpu.memory_space<vmem>>, %arg3: memref<48x48xbf16, #tpu.memory_space<vmem>>, %arg4: memref<96x96xbf16, #tpu.memory_space<vmem>>, %arg5: memref<48x24xbf16, #tpu.memory_space<vmem>>, %arg6: memref<96x48xbf16, #tpu.memory_space<vmem>>, %arg7: memref<6x48x96xbf16, #tpu.memory_space<vmem>>, %arg8: memref<6x1x96xf32, #tpu.memory_space<vmem>>, %arg9: memref<6x96x48xbf16, #tpu.memory_space<vmem>>, %arg10: memref<6x1x48xf32, #tpu.memory_space<vmem>>, %arg11: memref<48x3xf32, #tpu.memory_space<vmem>>, %arg12: memref<1x3xf32, #tpu.memory_space<vmem>>, %arg13: memref<192x96xbf16, #tpu.memory_space<vmem>>, %arg14: memref<192x1xf32, #tpu.memory_space<vmem>>, %arg15: memref<384x192xbf16, #tpu.memory_space<vmem>>, %arg16: memref<384x1xf32, #tpu.memory_space<vmem>>, %arg17: memref<23x384xf32, #tpu.memory_space<vmem>>, %arg18: memref<23x10xf32, #tpu.memory_space<vmem>>, %arg19: memref<48x10xf32, #tpu.memory_space<vmem>>, %arg20: memref<48x10xf32, #tpu.memory_space<vmem>>, %arg21: memref<1x10xf32, #tpu.memory_space<vmem>>, %arg22: memref<10x1152xf32, #tpu.memory_space<vmem>>, %arg23: memref<1x3xf32, #tpu.memory_space<vmem>>, %arg24: memref<1x24x3xf32, #tpu.memory_space<vmem>>, %arg25: memref<1x48x3xf32, #tpu.memory_space<vmem>>, %arg26: memref<1x96x3xf32, #tpu.memory_space<vmem>>, %arg27: memref<1x192x3xf32, #tpu.memory_space<vmem>>, %arg28: memref<1x384x3xf32, #tpu.memory_space<vmem>>, %arg29: memref<1x384x48xf32, #tpu.memory_space<vmem>>, %arg30: memref<1x1x10xf32, #tpu.memory_space<vmem>>, %arg31: memref<1x1x1152xf32, #tpu.memory_space<vmem>>, %arg32: memref<1x1x3xf32, #tpu.memory_space<vmem>>) attributes {dimension_semantics = [#tpu.dimension_semantics<parallel>], iteration_bounds = array<i64: 2>, scalar_prefetch = 0 : i64, scratch_operands = 0 : i64, tpu.core_type = #tpu.core_type<tc>, window_params = [{transform_indices = @transform_0, window_bounds = array<i64: 1, 24, 48>}, {pipeline_mode = #tpu.pipeline_mode<synchronous>, transform_indices = @transform_1, window_bounds = array<i64: 24, 24>}, {pipeline_mode = #tpu.pipeline_mode<synchronous>, transform_indices = @transform_2, window_bounds = array<i64: 48, 48>}, {pipeline_mode = #tpu.pipeline_mode<synchronous>, transform_indices = @transform_3, window_bounds = array<i64: 96, 96>}, {pipeline_mode = #tpu.pipeline_mode<synchronous>, transform_indices = @transform_4, window_bounds = array<i64: 48, 24>}, {pipeline_mode = #tpu.pipeline_mode<synchronous>, transform_indices = @transform_5, window_bounds = array<i64: 96, 48>}, {pipeline_mode = #tpu.pipeline_mode<synchronous>, transform_indices = @transform_6, window_bounds = array<i64: 6, 48, 96>}, {pipeline_mode = #tpu.pipeline_mode<synchronous>, transform_indices = @transform_7, window_bounds = array<i64: 6, 1, 96>}, {pipeline_mode = #tpu.pipeline_mode<synchronous>, transform_indices = @transform_8, window_bounds = array<i64: 6, 96, 48>}, {pipeline_mode = #tpu.pipeline_mode<synchronous>, transform_indices = @transform_9, window_bounds = array<i64: 6, 1, 48>}, {pipeline_mode = #tpu.pipeline_mode<synchronous>, transform_indices = @transform_10, window_bounds = array<i64: 48, 3>}, {pipeline_mode = #tpu.pipeline_mode<synchronous>, transform_indices = @transform_11, window_bounds = array<i64: 1, 3>}, {pipeline_mode = #tpu.pipeline_mode<synchronous>, transform_indices = @transform_12, window_bounds = array<i64: 192, 96>}, {pipeline_mode = #tpu.pipeline_mode<synchronous>, transform_indices = @transform_13, window_bounds = array<i64: 192, 1>}, {pipeline_mode = #tpu.pipeline_mode<synchronous>, transform_indices = @transform_14, window_bounds = array<i64: 384, 192>}, {pipeline_mode = #tpu.pipeline_mode<synchronous>, transform_indices = @transform_15, window_bounds = array<i64: 384, 1>}, {pipeline_mode = #tpu.pipeline_mode<synchronous>, transform_indices = @transform_16, window_bounds = array<i64: 23, 384>}, {pipeline_mode = #tpu.pipeline_mode<synchronous>, transform_indices = @transform_17, window_bounds = array<i64: 23, 10>}, {pipeline_mode = #tpu.pipeline_mode<synchronous>, transform_indices = @transform_18, window_bounds = array<i64: 48, 10>}, {pipeline_mode = #tpu.pipeline_mode<synchronous>, transform_indices = @transform_19, window_bounds = array<i64: 48, 10>}, {pipeline_mode = #tpu.pipeline_mode<synchronous>, transform_indices = @transform_20, window_bounds = array<i64: 1, 10>}, {pipeline_mode = #tpu.pipeline_mode<synchronous>, transform_indices = @transform_21, window_bounds = array<i64: 10, 1152>}, {pipeline_mode = #tpu.pipeline_mode<synchronous>, transform_indices = @transform_22, window_bounds = array<i64: 1, 3>}, {transform_indices = @transform_23, window_bounds = array<i64: 1, 24, 3>}, {transform_indices = @transform_24, window_bounds = array<i64: 1, 48, 3>}, {transform_indices = @transform_25, window_bounds = array<i64: 1, 96, 3>}, {transform_indices = @transform_26, window_bounds = array<i64: 1, 192, 3>}, {transform_indices = @transform_27, window_bounds = array<i64: 1, 384, 3>}, {transform_indices = @transform_28, window_bounds = array<i64: 1, 384, 48>}, {transform_indices = @transform_29, window_bounds = array<i64: 1, 1, 10>}, {transform_indices = @transform_30, window_bounds = array<i64: 1, 1, 1152>}, {transform_indices = @transform_31, window_bounds = array<i64: 1, 1, 3>}]} {
    %c0 = arith.constant 0 : index
    %c0_0 = arith.constant 0 : index
    %c0_1 = arith.constant 0 : index
    %0 = vector.load %arg1[%c0, %c0_0, %c0_1] : memref<1x24x48xf32, #tpu.memory_space<vmem>>, vector<1x24x48xf32>
    %1 = vector.shape_cast %0 : vector<1x24x48xf32> to vector<24x48xf32>
    %c0_2 = arith.constant 0 : index
    %c0_3 = arith.constant 0 : index
    %2 = vector.load %arg2[%c0_2, %c0_3] : memref<24x24xbf16, #tpu.memory_space<vmem>>, vector<24x24xbf16>
    %3 = arith.truncf %1 : vector<24x48xf32> to vector<24x48xbf16>
    %cst = arith.constant dense<0.000000e+00> : vector<24x48xf32>
    %4 = tpu.matmul %2, %3, %cst {dimension_numbers = #tpu.dot_dimension_numbers<[1], [0], [0], [1], [0, 0, 1, 1], [], []>} : vector<24x24xbf16>, vector<24x48xbf16>, vector<24x48xf32> -> vector<24x48xf32>
    %5 = arith.truncf %4 : vector<24x48xf32> to vector<24x48xbf16>
    %c0_4 = arith.constant 0 : index
    %c0_5 = arith.constant 0 : index
    %c0_6 = arith.constant 0 : index
    %6 = vector.load %arg7[%c0_4, %c0_5, %c0_6] : memref<6x48x96xbf16, #tpu.memory_space<vmem>>, vector<1x48x96xbf16>
    %7 = vector.shape_cast %6 : vector<1x48x96xbf16> to vector<48x96xbf16>
    %cst_7 = arith.constant dense<0.000000e+00> : vector<24x96xf32>
    %8 = tpu.matmul %5, %7, %cst_7 {dimension_numbers = #tpu.dot_dimension_numbers<[1], [0], [0], [1], [0, 0, 1, 1], [], []>} : vector<24x48xbf16>, vector<48x96xbf16>, vector<24x96xf32> -> vector<24x96xf32>
    %c0_8 = arith.constant 0 : index
    %c0_9 = arith.constant 0 : index
    %c0_10 = arith.constant 0 : index
    %9 = vector.load %arg8[%c0_8, %c0_9, %c0_10] : memref<6x1x96xf32, #tpu.memory_space<vmem>>, vector<1x1x96xf32>
    %10 = vector.shape_cast %9 : vector<1x1x96xf32> to vector<1x96xf32>
    %11 = vector.broadcast %10 : vector<1x96xf32> to vector<24x96xf32>
    %12 = arith.addf %8, %11 : vector<24x96xf32>
    %13 = arith.mulf %12, %12 : vector<24x96xf32>
    %14 = arith.mulf %12, %13 : vector<24x96xf32>
    %cst_11 = arith.constant 4.471500e-02 : f32
    %15 = vector.broadcast %cst_11 : f32 to vector<24x96xf32>
    %16 = arith.mulf %15, %14 : vector<24x96xf32>
    %17 = arith.addf %12, %16 : vector<24x96xf32>
    %cst_12 = arith.constant 0.797884583 : f32
    %18 = vector.broadcast %cst_12 : f32 to vector<24x96xf32>
    %19 = arith.mulf %18, %17 : vector<24x96xf32>
    %20 = math.tanh %19 : vector<24x96xf32>
    %cst_13 = arith.constant 1.000000e+00 : f32
    %21 = vector.broadcast %cst_13 : f32 to vector<24x96xf32>
    %22 = arith.addf %21, %20 : vector<24x96xf32>
    %cst_14 = arith.constant 5.000000e-01 : f32
    %23 = vector.broadcast %cst_14 : f32 to vector<24x96xf32>
    %24 = arith.mulf %23, %22 : vector<24x96xf32>
    %25 = arith.mulf %12, %24 : vector<24x96xf32>
    %26 = arith.truncf %25 : vector<24x96xf32> to vector<24x96xbf16>
    %c0_15 = arith.constant 0 : index
    %c0_16 = arith.constant 0 : index
    %c0_17 = arith.constant 0 : index
    %27 = vector.load %arg9[%c0_15, %c0_16, %c0_17] : memref<6x96x48xbf16, #tpu.memory_space<vmem>>, vector<1x96x48xbf16>
    %28 = vector.shape_cast %27 : vector<1x96x48xbf16> to vector<96x48xbf16>
    %cst_18 = arith.constant dense<0.000000e+00> : vector<24x48xf32>
    %29 = tpu.matmul %26, %28, %cst_18 {dimension_numbers = #tpu.dot_dimension_numbers<[1], [0], [0], [1], [0, 0, 1, 1], [], []>} : vector<24x96xbf16>, vector<96x48xbf16>, vector<24x48xf32> -> vector<24x48xf32>
    %30 = arith.addf %1, %29 : vector<24x48xf32>
    %c0_19 = arith.constant 0 : index
    %c0_20 = arith.constant 0 : index
    %c0_21 = arith.constant 0 : index
    %31 = vector.load %arg10[%c0_19, %c0_20, %c0_21] : memref<6x1x48xf32, #tpu.memory_space<vmem>>, vector<1x1x48xf32>
    %32 = vector.shape_cast %31 : vector<1x1x48xf32> to vector<1x48xf32>
    %33 = vector.broadcast %32 : vector<1x48xf32> to vector<24x48xf32>
    %34 = arith.addf %30, %33 : vector<24x48xf32>
    %35 = arith.truncf %34 : vector<24x48xf32> to vector<24x48xbf16>
    %cst_22 = arith.constant dense<0.000000e+00> : vector<24x48xf32>
    %36 = tpu.matmul %2, %35, %cst_22 {dimension_numbers = #tpu.dot_dimension_numbers<[1], [0], [0], [1], [0, 0, 1, 1], [], []>} : vector<24x24xbf16>, vector<24x48xbf16>, vector<24x48xf32> -> vector<24x48xf32>
    %37 = arith.truncf %36 : vector<24x48xf32> to vector<24x48xbf16>
    %c1 = arith.constant 1 : index
    %c0_23 = arith.constant 0 : index
    %c0_24 = arith.constant 0 : index
    %38 = vector.load %arg7[%c1, %c0_23, %c0_24] : memref<6x48x96xbf16, #tpu.memory_space<vmem>>, vector<1x48x96xbf16>
    %39 = vector.shape_cast %38 : vector<1x48x96xbf16> to vector<48x96xbf16>
    %cst_25 = arith.constant dense<0.000000e+00> : vector<24x96xf32>
    %40 = tpu.matmul %37, %39, %cst_25 {dimension_numbers = #tpu.dot_dimension_numbers<[1], [0], [0], [1], [0, 0, 1, 1], [], []>} : vector<24x48xbf16>, vector<48x96xbf16>, vector<24x96xf32> -> vector<24x96xf32>
    %c1_26 = arith.constant 1 : index
    %c0_27 = arith.constant 0 : index
    %c0_28 = arith.constant 0 : index
    %41 = vector.load %arg8[%c1_26, %c0_27, %c0_28] : memref<6x1x96xf32, #tpu.memory_space<vmem>>, vector<1x1x96xf32>
    %42 = vector.shape_cast %41 : vector<1x1x96xf32> to vector<1x96xf32>
    %43 = vector.broadcast %42 : vector<1x96xf32> to vector<24x96xf32>
    %44 = arith.addf %40, %43 : vector<24x96xf32>
    %45 = arith.mulf %44, %44 : vector<24x96xf32>
    %46 = arith.mulf %44, %45 : vector<24x96xf32>
    %cst_29 = arith.constant 4.471500e-02 : f32
    %47 = vector.broadcast %cst_29 : f32 to vector<24x96xf32>
    %48 = arith.mulf %47, %46 : vector<24x96xf32>
    %49 = arith.addf %44, %48 : vector<24x96xf32>
    %cst_30 = arith.constant 0.797884583 : f32
    %50 = vector.broadcast %cst_30 : f32 to vector<24x96xf32>
    %51 = arith.mulf %50, %49 : vector<24x96xf32>
    %52 = math.tanh %51 : vector<24x96xf32>
    %cst_31 = arith.constant 1.000000e+00 : f32
    %53 = vector.broadcast %cst_31 : f32 to vector<24x96xf32>
    %54 = arith.addf %53, %52 : vector<24x96xf32>
    %cst_32 = arith.constant 5.000000e-01 : f32
    %55 = vector.broadcast %cst_32 : f32 to vector<24x96xf32>
    %56 = arith.mulf %55, %54 : vector<24x96xf32>
    %57 = arith.mulf %44, %56 : vector<24x96xf32>
    %58 = arith.truncf %57 : vector<24x96xf32> to vector<24x96xbf16>
    %c1_33 = arith.constant 1 : index
    %c0_34 = arith.constant 0 : index
    %c0_35 = arith.constant 0 : index
    %59 = vector.load %arg9[%c1_33, %c0_34, %c0_35] : memref<6x96x48xbf16, #tpu.memory_space<vmem>>, vector<1x96x48xbf16>
    %60 = vector.shape_cast %59 : vector<1x96x48xbf16> to vector<96x48xbf16>
    %cst_36 = arith.constant dense<0.000000e+00> : vector<24x48xf32>
    %61 = tpu.matmul %58, %60, %cst_36 {dimension_numbers = #tpu.dot_dimension_numbers<[1], [0], [0], [1], [0, 0, 1, 1], [], []>} : vector<24x96xbf16>, vector<96x48xbf16>, vector<24x48xf32> -> vector<24x48xf32>
    %62 = arith.addf %34, %61 : vector<24x48xf32>
    %c1_37 = arith.constant 1 : index
    %c0_38 = arith.constant 0 : index
    %c0_39 = arith.constant 0 : index
    %63 = vector.load %arg10[%c1_37, %c0_38, %c0_39] : memref<6x1x48xf32, #tpu.memory_space<vmem>>, vector<1x1x48xf32>
    %64 = vector.shape_cast %63 : vector<1x1x48xf32> to vector<1x48xf32>
    %65 = vector.broadcast %64 : vector<1x48xf32> to vector<24x48xf32>
    %66 = arith.addf %62, %65 : vector<24x48xf32>
    %c0_40 = arith.constant 0 : index
    %c0_41 = arith.constant 0 : index
    %67 = vector.load %arg11[%c0_40, %c0_41] : memref<48x3xf32, #tpu.memory_space<vmem>>, vector<48x3xf32>
    %cst_42 = arith.constant dense<0.000000e+00> : vector<24x3xf32>
    %68 = tpu.matmul %66, %67, %cst_42 {dimension_numbers = #tpu.dot_dimension_numbers<[1], [0], [0], [1], [0, 0, 1, 1], [], []>} : vector<24x48xf32>, vector<48x3xf32>, vector<24x3xf32> -> vector<24x3xf32>
    %c0_43 = arith.constant 0 : index
    %c0_44 = arith.constant 0 : index
    %69 = vector.load %arg12[%c0_43, %c0_44] : memref<1x3xf32, #tpu.memory_space<vmem>>, vector<1x3xf32>
    %70 = vector.broadcast %69 : vector<1x3xf32> to vector<24x3xf32>
    %71 = arith.addf %68, %70 : vector<24x3xf32>
    %c0_45 = arith.constant 0 : index
    %c0_46 = arith.constant 0 : index
    %c0_47 = arith.constant 0 : index
    %72 = vector.load %arg24[%c0_45, %c0_46, %c0_47] : memref<1x24x3xf32, #tpu.memory_space<vmem>>, vector<1x24x3xf32>
    %73 = vector.shape_cast %72 : vector<1x24x3xf32> to vector<24x3xf32>
    %74 = vector.shape_cast %71 : vector<24x3xf32> to vector<1x24x3xf32>
    tpu.vector_store %arg24[%c0_45, %c0_46, %c0_47], %74 {strides = array<i32>} : memref<1x24x3xf32, #tpu.memory_space<vmem>>, vector<1x24x3xf32>,
    %c0_48 = arith.constant 0 : index
    %c0_49 = arith.constant 0 : index
    %75 = vector.load %arg5[%c0_48, %c0_49] : memref<48x24xbf16, #tpu.memory_space<vmem>>, vector<48x24xbf16>
    %76 = arith.truncf %66 : vector<24x48xf32> to vector<24x48xbf16>
    %cst_50 = arith.constant dense<0.000000e+00> : vector<48x48xf32>
    %77 = tpu.matmul %75, %76, %cst_50 {dimension_numbers = #tpu.dot_dimension_numbers<[1], [0], [0], [1], [0, 0, 1, 1], [], []>} : vector<48x24xbf16>, vector<24x48xbf16>, vector<48x48xf32> -> vector<48x48xf32>
    %c0_51 = arith.constant 0 : index
    %c0_52 = arith.constant 0 : index
    %78 = vector.load %arg3[%c0_51, %c0_52] : memref<48x48xbf16, #tpu.memory_space<vmem>>, vector<48x48xbf16>
    %79 = arith.truncf %77 : vector<48x48xf32> to vector<48x48xbf16>
    %cst_53 = arith.constant dense<0.000000e+00> : vector<48x48xf32>
    %80 = tpu.matmul %78, %79, %cst_53 {dimension_numbers = #tpu.dot_dimension_numbers<[1], [0], [0], [1], [0, 0, 1, 1], [], []>} : vector<48x48xbf16>, vector<48x48xbf16>, vector<48x48xf32> -> vector<48x48xf32>
    %81 = arith.truncf %80 : vector<48x48xf32> to vector<48x48xbf16>
    %c2 = arith.constant 2 : index
    %c0_54 = arith.constant 0 : index
    %c0_55 = arith.constant 0 : index
    %82 = vector.load %arg7[%c2, %c0_54, %c0_55] : memref<6x48x96xbf16, #tpu.memory_space<vmem>>, vector<1x48x96xbf16>
    %83 = vector.shape_cast %82 : vector<1x48x96xbf16> to vector<48x96xbf16>
    %cst_56 = arith.constant dense<0.000000e+00> : vector<48x96xf32>
    %84 = tpu.matmul %81, %83, %cst_56 {dimension_numbers = #tpu.dot_dimension_numbers<[1], [0], [0], [1], [0, 0, 1, 1], [], []>} : vector<48x48xbf16>, vector<48x96xbf16>, vector<48x96xf32> -> vector<48x96xf32>
    %c2_57 = arith.constant 2 : index
    %c0_58 = arith.constant 0 : index
    %c0_59 = arith.constant 0 : index
    %85 = vector.load %arg8[%c2_57, %c0_58, %c0_59] : memref<6x1x96xf32, #tpu.memory_space<vmem>>, vector<1x1x96xf32>
    %86 = vector.shape_cast %85 : vector<1x1x96xf32> to vector<1x96xf32>
    %87 = vector.broadcast %86 : vector<1x96xf32> to vector<48x96xf32>
    %88 = arith.addf %84, %87 : vector<48x96xf32>
    %89 = arith.mulf %88, %88 : vector<48x96xf32>
    %90 = arith.mulf %88, %89 : vector<48x96xf32>
    %cst_60 = arith.constant 4.471500e-02 : f32
    %91 = vector.broadcast %cst_60 : f32 to vector<48x96xf32>
    %92 = arith.mulf %91, %90 : vector<48x96xf32>
    %93 = arith.addf %88, %92 : vector<48x96xf32>
    %cst_61 = arith.constant 0.797884583 : f32
    %94 = vector.broadcast %cst_61 : f32 to vector<48x96xf32>
    %95 = arith.mulf %94, %93 : vector<48x96xf32>
    %96 = math.tanh %95 : vector<48x96xf32>
    %cst_62 = arith.constant 1.000000e+00 : f32
    %97 = vector.broadcast %cst_62 : f32 to vector<48x96xf32>
    %98 = arith.addf %97, %96 : vector<48x96xf32>
    %cst_63 = arith.constant 5.000000e-01 : f32
    %99 = vector.broadcast %cst_63 : f32 to vector<48x96xf32>
    %100 = arith.mulf %99, %98 : vector<48x96xf32>
    %101 = arith.mulf %88, %100 : vector<48x96xf32>
    %102 = arith.truncf %101 : vector<48x96xf32> to vector<48x96xbf16>
    %c2_64 = arith.constant 2 : index
    %c0_65 = arith.constant 0 : index
    %c0_66 = arith.constant 0 : index
    %103 = vector.load %arg9[%c2_64, %c0_65, %c0_66] : memref<6x96x48xbf16, #tpu.memory_space<vmem>>, vector<1x96x48xbf16>
    %104 = vector.shape_cast %103 : vector<1x96x48xbf16> to vector<96x48xbf16>
    %cst_67 = arith.constant dense<0.000000e+00> : vector<48x48xf32>
    %105 = tpu.matmul %102, %104, %cst_67 {dimension_numbers = #tpu.dot_dimension_numbers<[1], [0], [0], [1], [0, 0, 1, 1], [], []>} : vector<48x96xbf16>, vector<96x48xbf16>, vector<48x48xf32> -> vector<48x48xf32>
    %106 = arith.addf %77, %105 : vector<48x48xf32>
    %c2_68 = arith.constant 2 : index
    %c0_69 = arith.constant 0 : index
    %c0_70 = arith.constant 0 : index
    %107 = vector.load %arg10[%c2_68, %c0_69, %c0_70] : memref<6x1x48xf32, #tpu.memory_space<vmem>>, vector<1x1x48xf32>
    %108 = vector.shape_cast %107 : vector<1x1x48xf32> to vector<1x48xf32>
    %109 = vector.broadcast %108 : vector<1x48xf32> to vector<48x48xf32>
    %110 = arith.addf %106, %109 : vector<48x48xf32>
    %111 = arith.truncf %110 : vector<48x48xf32> to vector<48x48xbf16>
    %cst_71 = arith.constant dense<0.000000e+00> : vector<48x48xf32>
    %112 = tpu.matmul %78, %111, %cst_71 {dimension_numbers = #tpu.dot_dimension_numbers<[1], [0], [0], [1], [0, 0, 1, 1], [], []>} : vector<48x48xbf16>, vector<48x48xbf16>, vector<48x48xf32> -> vector<48x48xf32>
    %113 = arith.truncf %112 : vector<48x48xf32> to vector<48x48xbf16>
    %c3 = arith.constant 3 : index
    %c0_72 = arith.constant 0 : index
    %c0_73 = arith.constant 0 : index
    %114 = vector.load %arg7[%c3, %c0_72, %c0_73] : memref<6x48x96xbf16, #tpu.memory_space<vmem>>, vector<1x48x96xbf16>
    %115 = vector.shape_cast %114 : vector<1x48x96xbf16> to vector<48x96xbf16>
    %cst_74 = arith.constant dense<0.000000e+00> : vector<48x96xf32>
    %116 = tpu.matmul %113, %115, %cst_74 {dimension_numbers = #tpu.dot_dimension_numbers<[1], [0], [0], [1], [0, 0, 1, 1], [], []>} : vector<48x48xbf16>, vector<48x96xbf16>, vector<48x96xf32> -> vector<48x96xf32>
    %c3_75 = arith.constant 3 : index
    %c0_76 = arith.constant 0 : index
    %c0_77 = arith.constant 0 : index
    %117 = vector.load %arg8[%c3_75, %c0_76, %c0_77] : memref<6x1x96xf32, #tpu.memory_space<vmem>>, vector<1x1x96xf32>
    %118 = vector.shape_cast %117 : vector<1x1x96xf32> to vector<1x96xf32>
    %119 = vector.broadcast %118 : vector<1x96xf32> to vector<48x96xf32>
    %120 = arith.addf %116, %119 : vector<48x96xf32>
    %121 = arith.mulf %120, %120 : vector<48x96xf32>
    %122 = arith.mulf %120, %121 : vector<48x96xf32>
    %cst_78 = arith.constant 4.471500e-02 : f32
    %123 = vector.broadcast %cst_78 : f32 to vector<48x96xf32>
    %124 = arith.mulf %123, %122 : vector<48x96xf32>
    %125 = arith.addf %120, %124 : vector<48x96xf32>
    %cst_79 = arith.constant 0.797884583 : f32
    %126 = vector.broadcast %cst_79 : f32 to vector<48x96xf32>
    %127 = arith.mulf %126, %125 : vector<48x96xf32>
    %128 = math.tanh %127 : vector<48x96xf32>
    %cst_80 = arith.constant 1.000000e+00 : f32
    %129 = vector.broadcast %cst_80 : f32 to vector<48x96xf32>
    %130 = arith.addf %129, %128 : vector<48x96xf32>
    %cst_81 = arith.constant 5.000000e-01 : f32
    %131 = vector.broadcast %cst_81 : f32 to vector<48x96xf32>
    %132 = arith.mulf %131, %130 : vector<48x96xf32>
    %133 = arith.mulf %120, %132 : vector<48x96xf32>
    %134 = arith.truncf %133 : vector<48x96xf32> to vector<48x96xbf16>
    %c3_82 = arith.constant 3 : index
    %c0_83 = arith.constant 0 : index
    %c0_84 = arith.constant 0 : index
    %135 = vector.load %arg9[%c3_82, %c0_83, %c0_84] : memref<6x96x48xbf16, #tpu.memory_space<vmem>>, vector<1x96x48xbf16>
    %136 = vector.shape_cast %135 : vector<1x96x48xbf16> to vector<96x48xbf16>
    %cst_85 = arith.constant dense<0.000000e+00> : vector<48x48xf32>
    %137 = tpu.matmul %134, %136, %cst_85 {dimension_numbers = #tpu.dot_dimension_numbers<[1], [0], [0], [1], [0, 0, 1, 1], [], []>} : vector<48x96xbf16>, vector<96x48xbf16>, vector<48x48xf32> -> vector<48x48xf32>
    %138 = arith.addf %110, %137 : vector<48x48xf32>
    %c3_86 = arith.constant 3 : index
    %c0_87 = arith.constant 0 : index
    %c0_88 = arith.constant 0 : index
    %139 = vector.load %arg10[%c3_86, %c0_87, %c0_88] : memref<6x1x48xf32, #tpu.memory_space<vmem>>, vector<1x1x48xf32>
    %140 = vector.shape_cast %139 : vector<1x1x48xf32> to vector<1x48xf32>
    %141 = vector.broadcast %140 : vector<1x48xf32> to vector<48x48xf32>
    %142 = arith.addf %138, %141 : vector<48x48xf32>
    %c0_89 = arith.constant 0 : index
    %c0_90 = arith.constant 0 : index
    %143 = vector.load %arg11[%c0_89, %c0_90] : memref<48x3xf32, #tpu.memory_space<vmem>>, vector<48x3xf32>
    %cst_91 = arith.constant dense<0.000000e+00> : vector<48x3xf32>
    %144 = tpu.matmul %142, %143, %cst_91 {dimension_numbers = #tpu.dot_dimension_numbers<[1], [0], [0], [1], [0, 0, 1, 1], [], []>} : vector<48x48xf32>, vector<48x3xf32>, vector<48x3xf32> -> vector<48x3xf32>
    %c0_92 = arith.constant 0 : index
    %c0_93 = arith.constant 0 : index
    %145 = vector.load %arg12[%c0_92, %c0_93] : memref<1x3xf32, #tpu.memory_space<vmem>>, vector<1x3xf32>
    %146 = vector.broadcast %145 : vector<1x3xf32> to vector<48x3xf32>
    %147 = arith.addf %144, %146 : vector<48x3xf32>
    %c0_94 = arith.constant 0 : index
    %c0_95 = arith.constant 0 : index
    %c0_96 = arith.constant 0 : index
    %148 = vector.load %arg25[%c0_94, %c0_95, %c0_96] : memref<1x48x3xf32, #tpu.memory_space<vmem>>, vector<1x48x3xf32>
    %149 = vector.shape_cast %148 : vector<1x48x3xf32> to vector<48x3xf32>
    %150 = vector.shape_cast %147 : vector<48x3xf32> to vector<1x48x3xf32>
    tpu.vector_store %arg25[%c0_94, %c0_95, %c0_96], %150 {strides = array<i32>} : memref<1x48x3xf32, #tpu.memory_space<vmem>>, vector<1x48x3xf32>,
    %c0_97 = arith.constant 0 : index
    %c0_98 = arith.constant 0 : index
    %151 = vector.load %arg6[%c0_97, %c0_98] : memref<96x48xbf16, #tpu.memory_space<vmem>>, vector<96x48xbf16>
    %152 = arith.truncf %142 : vector<48x48xf32> to vector<48x48xbf16>
    %cst_99 = arith.constant dense<0.000000e+00> : vector<96x48xf32>
    %153 = tpu.matmul %151, %152, %cst_99 {dimension_numbers = #tpu.dot_dimension_numbers<[1], [0], [0], [1], [0, 0, 1, 1], [], []>} : vector<96x48xbf16>, vector<48x48xbf16>, vector<96x48xf32> -> vector<96x48xf32>
    %c0_100 = arith.constant 0 : index
    %c0_101 = arith.constant 0 : index
    %154 = vector.load %arg4[%c0_100, %c0_101] : memref<96x96xbf16, #tpu.memory_space<vmem>>, vector<96x96xbf16>
    %155 = arith.truncf %153 : vector<96x48xf32> to vector<96x48xbf16>
    %cst_102 = arith.constant dense<0.000000e+00> : vector<96x48xf32>
    %156 = tpu.matmul %154, %155, %cst_102 {dimension_numbers = #tpu.dot_dimension_numbers<[1], [0], [0], [1], [0, 0, 1, 1], [], []>} : vector<96x96xbf16>, vector<96x48xbf16>, vector<96x48xf32> -> vector<96x48xf32>
    %157 = arith.truncf %156 : vector<96x48xf32> to vector<96x48xbf16>
    %c4 = arith.constant 4 : index
    %c0_103 = arith.constant 0 : index
    %c0_104 = arith.constant 0 : index
    %158 = vector.load %arg7[%c4, %c0_103, %c0_104] : memref<6x48x96xbf16, #tpu.memory_space<vmem>>, vector<1x48x96xbf16>
    %159 = vector.shape_cast %158 : vector<1x48x96xbf16> to vector<48x96xbf16>
    %cst_105 = arith.constant dense<0.000000e+00> : vector<96x96xf32>
    %160 = tpu.matmul %157, %159, %cst_105 {dimension_numbers = #tpu.dot_dimension_numbers<[1], [0], [0], [1], [0, 0, 1, 1], [], []>} : vector<96x48xbf16>, vector<48x96xbf16>, vector<96x96xf32> -> vector<96x96xf32>
    %c4_106 = arith.constant 4 : index
    %c0_107 = arith.constant 0 : index
    %c0_108 = arith.constant 0 : index
    %161 = vector.load %arg8[%c4_106, %c0_107, %c0_108] : memref<6x1x96xf32, #tpu.memory_space<vmem>>, vector<1x1x96xf32>
    %162 = vector.shape_cast %161 : vector<1x1x96xf32> to vector<1x96xf32>
    %163 = vector.broadcast %162 : vector<1x96xf32> to vector<96x96xf32>
    %164 = arith.addf %160, %163 : vector<96x96xf32>
    %165 = arith.mulf %164, %164 : vector<96x96xf32>
    %166 = arith.mulf %164, %165 : vector<96x96xf32>
    %cst_109 = arith.constant 4.471500e-02 : f32
    %167 = vector.broadcast %cst_109 : f32 to vector<96x96xf32>
    %168 = arith.mulf %167, %166 : vector<96x96xf32>
    %169 = arith.addf %164, %168 : vector<96x96xf32>
    %cst_110 = arith.constant 0.797884583 : f32
    %170 = vector.broadcast %cst_110 : f32 to vector<96x96xf32>
    %171 = arith.mulf %170, %169 : vector<96x96xf32>
    %172 = math.tanh %171 : vector<96x96xf32>
    %cst_111 = arith.constant 1.000000e+00 : f32
    %173 = vector.broadcast %cst_111 : f32 to vector<96x96xf32>
    %174 = arith.addf %173, %172 : vector<96x96xf32>
    %cst_112 = arith.constant 5.000000e-01 : f32
    %175 = vector.broadcast %cst_112 : f32 to vector<96x96xf32>
    %176 = arith.mulf %175, %174 : vector<96x96xf32>
    %177 = arith.mulf %164, %176 : vector<96x96xf32>
    %178 = arith.truncf %177 : vector<96x96xf32> to vector<96x96xbf16>
    %c4_113 = arith.constant 4 : index
    %c0_114 = arith.constant 0 : index
    %c0_115 = arith.constant 0 : index
    %179 = vector.load %arg9[%c4_113, %c0_114, %c0_115] : memref<6x96x48xbf16, #tpu.memory_space<vmem>>, vector<1x96x48xbf16>
    %180 = vector.shape_cast %179 : vector<1x96x48xbf16> to vector<96x48xbf16>
    %cst_116 = arith.constant dense<0.000000e+00> : vector<96x48xf32>
    %181 = tpu.matmul %178, %180, %cst_116 {dimension_numbers = #tpu.dot_dimension_numbers<[1], [0], [0], [1], [0, 0, 1, 1], [], []>} : vector<96x96xbf16>, vector<96x48xbf16>, vector<96x48xf32> -> vector<96x48xf32>
    %182 = arith.addf %153, %181 : vector<96x48xf32>
    %c4_117 = arith.constant 4 : index
    %c0_118 = arith.constant 0 : index
    %c0_119 = arith.constant 0 : index
    %183 = vector.load %arg10[%c4_117, %c0_118, %c0_119] : memref<6x1x48xf32, #tpu.memory_space<vmem>>, vector<1x1x48xf32>
    %184 = vector.shape_cast %183 : vector<1x1x48xf32> to vector<1x48xf32>
    %185 = vector.broadcast %184 : vector<1x48xf32> to vector<96x48xf32>
    %186 = arith.addf %182, %185 : vector<96x48xf32>
    %187 = arith.truncf %186 : vector<96x48xf32> to vector<96x48xbf16>
    %cst_120 = arith.constant dense<0.000000e+00> : vector<96x48xf32>
    %188 = tpu.matmul %154, %187, %cst_120 {dimension_numbers = #tpu.dot_dimension_numbers<[1], [0], [0], [1], [0, 0, 1, 1], [], []>} : vector<96x96xbf16>, vector<96x48xbf16>, vector<96x48xf32> -> vector<96x48xf32>
    %189 = arith.truncf %188 : vector<96x48xf32> to vector<96x48xbf16>
    %c5 = arith.constant 5 : index
    %c0_121 = arith.constant 0 : index
    %c0_122 = arith.constant 0 : index
    %190 = vector.load %arg7[%c5, %c0_121, %c0_122] : memref<6x48x96xbf16, #tpu.memory_space<vmem>>, vector<1x48x96xbf16>
    %191 = vector.shape_cast %190 : vector<1x48x96xbf16> to vector<48x96xbf16>
    %cst_123 = arith.constant dense<0.000000e+00> : vector<96x96xf32>
    %192 = tpu.matmul %189, %191, %cst_123 {dimension_numbers = #tpu.dot_dimension_numbers<[1], [0], [0], [1], [0, 0, 1, 1], [], []>} : vector<96x48xbf16>, vector<48x96xbf16>, vector<96x96xf32> -> vector<96x96xf32>
    %c5_124 = arith.constant 5 : index
    %c0_125 = arith.constant 0 : index
    %c0_126 = arith.constant 0 : index
    %193 = vector.load %arg8[%c5_124, %c0_125, %c0_126] : memref<6x1x96xf32, #tpu.memory_space<vmem>>, vector<1x1x96xf32>
    %194 = vector.shape_cast %193 : vector<1x1x96xf32> to vector<1x96xf32>
    %195 = vector.broadcast %194 : vector<1x96xf32> to vector<96x96xf32>
    %196 = arith.addf %192, %195 : vector<96x96xf32>
    %197 = arith.mulf %196, %196 : vector<96x96xf32>
    %198 = arith.mulf %196, %197 : vector<96x96xf32>
    %cst_127 = arith.constant 4.471500e-02 : f32
    %199 = vector.broadcast %cst_127 : f32 to vector<96x96xf32>
    %200 = arith.mulf %199, %198 : vector<96x96xf32>
    %201 = arith.addf %196, %200 : vector<96x96xf32>
    %cst_128 = arith.constant 0.797884583 : f32
    %202 = vector.broadcast %cst_128 : f32 to vector<96x96xf32>
    %203 = arith.mulf %202, %201 : vector<96x96xf32>
    %204 = math.tanh %203 : vector<96x96xf32>
    %cst_129 = arith.constant 1.000000e+00 : f32
    %205 = vector.broadcast %cst_129 : f32 to vector<96x96xf32>
    %206 = arith.addf %205, %204 : vector<96x96xf32>
    %cst_130 = arith.constant 5.000000e-01 : f32
    %207 = vector.broadcast %cst_130 : f32 to vector<96x96xf32>
    %208 = arith.mulf %207, %206 : vector<96x96xf32>
    %209 = arith.mulf %196, %208 : vector<96x96xf32>
    %210 = arith.truncf %209 : vector<96x96xf32> to vector<96x96xbf16>
    %c5_131 = arith.constant 5 : index
    %c0_132 = arith.constant 0 : index
    %c0_133 = arith.constant 0 : index
    %211 = vector.load %arg9[%c5_131, %c0_132, %c0_133] : memref<6x96x48xbf16, #tpu.memory_space<vmem>>, vector<1x96x48xbf16>
    %212 = vector.shape_cast %211 : vector<1x96x48xbf16> to vector<96x48xbf16>
    %cst_134 = arith.constant dense<0.000000e+00> : vector<96x48xf32>
    %213 = tpu.matmul %210, %212, %cst_134 {dimension_numbers = #tpu.dot_dimension_numbers<[1], [0], [0], [1], [0, 0, 1, 1], [], []>} : vector<96x96xbf16>, vector<96x48xbf16>, vector<96x48xf32> -> vector<96x48xf32>
    %214 = arith.addf %186, %213 : vector<96x48xf32>
    %c5_135 = arith.constant 5 : index
    %c0_136 = arith.constant 0 : index
    %c0_137 = arith.constant 0 : index
    %215 = vector.load %arg10[%c5_135, %c0_136, %c0_137] : memref<6x1x48xf32, #tpu.memory_space<vmem>>, vector<1x1x48xf32>
    %216 = vector.shape_cast %215 : vector<1x1x48xf32> to vector<1x48xf32>
    %217 = vector.broadcast %216 : vector<1x48xf32> to vector<96x48xf32>
    %218 = arith.addf %214, %217 : vector<96x48xf32>
    %c0_138 = arith.constant 0 : index
    %c0_139 = arith.constant 0 : index
    %219 = vector.load %arg11[%c0_138, %c0_139] : memref<48x3xf32, #tpu.memory_space<vmem>>, vector<48x3xf32>
    %cst_140 = arith.constant dense<0.000000e+00> : vector<96x3xf32>
    %220 = tpu.matmul %218, %219, %cst_140 {dimension_numbers = #tpu.dot_dimension_numbers<[1], [0], [0], [1], [0, 0, 1, 1], [], []>} : vector<96x48xf32>, vector<48x3xf32>, vector<96x3xf32> -> vector<96x3xf32>
    %c0_141 = arith.constant 0 : index
    %c0_142 = arith.constant 0 : index
    %221 = vector.load %arg12[%c0_141, %c0_142] : memref<1x3xf32, #tpu.memory_space<vmem>>, vector<1x3xf32>
    %222 = vector.broadcast %221 : vector<1x3xf32> to vector<96x3xf32>
    %223 = arith.addf %220, %222 : vector<96x3xf32>
    %c0_143 = arith.constant 0 : index
    %c0_144 = arith.constant 0 : index
    %c0_145 = arith.constant 0 : index
    %224 = vector.load %arg26[%c0_143, %c0_144, %c0_145] : memref<1x96x3xf32, #tpu.memory_space<vmem>>, vector<1x96x3xf32>
    %225 = vector.shape_cast %224 : vector<1x96x3xf32> to vector<96x3xf32>
    %226 = vector.shape_cast %223 : vector<96x3xf32> to vector<1x96x3xf32>
    tpu.vector_store %arg26[%c0_143, %c0_144, %c0_145], %226 {strides = array<i32>} : memref<1x96x3xf32, #tpu.memory_space<vmem>>, vector<1x96x3xf32>,
    %c0_146 = arith.constant 0 : index
    %c0_147 = arith.constant 0 : index
    %227 = vector.load %arg13[%c0_146, %c0_147] : memref<192x96xbf16, #tpu.memory_space<vmem>>, vector<192x96xbf16>
    %228 = arith.truncf %218 : vector<96x48xf32> to vector<96x48xbf16>
    %cst_148 = arith.constant dense<0.000000e+00> : vector<192x48xf32>
    %229 = tpu.matmul %227, %228, %cst_148 {dimension_numbers = #tpu.dot_dimension_numbers<[1], [0], [0], [1], [0, 0, 1, 1], [], []>} : vector<192x96xbf16>, vector<96x48xbf16>, vector<192x48xf32> -> vector<192x48xf32>
    %c0_149 = arith.constant 0 : index
    %c0_150 = arith.constant 0 : index
    %230 = vector.load %arg14[%c0_149, %c0_150] : memref<192x1xf32, #tpu.memory_space<vmem>>, vector<192x1xf32>
    %231 = vector.broadcast %230 : vector<192x1xf32> to vector<192x48xf32>
    %232 = arith.addf %229, %231 : vector<192x48xf32>
    %c0_151 = arith.constant 0 : index
    %c0_152 = arith.constant 0 : index
    %233 = vector.load %arg11[%c0_151, %c0_152] : memref<48x3xf32, #tpu.memory_space<vmem>>, vector<48x3xf32>
    %cst_153 = arith.constant dense<0.000000e+00> : vector<192x3xf32>
    %234 = tpu.matmul %232, %233, %cst_153 {dimension_numbers = #tpu.dot_dimension_numbers<[1], [0], [0], [1], [0, 0, 1, 1], [], []>} : vector<192x48xf32>, vector<48x3xf32>, vector<192x3xf32> -> vector<192x3xf32>
    %c0_154 = arith.constant 0 : index
    %c0_155 = arith.constant 0 : index
    %235 = vector.load %arg12[%c0_154, %c0_155] : memref<1x3xf32, #tpu.memory_space<vmem>>, vector<1x3xf32>
    %236 = vector.broadcast %235 : vector<1x3xf32> to vector<192x3xf32>
    %237 = arith.addf %234, %236 : vector<192x3xf32>
    %c0_156 = arith.constant 0 : index
    %c0_157 = arith.constant 0 : index
    %c0_158 = arith.constant 0 : index
    %238 = vector.load %arg27[%c0_156, %c0_157, %c0_158] : memref<1x192x3xf32, #tpu.memory_space<vmem>>, vector<1x192x3xf32>
    %239 = vector.shape_cast %238 : vector<1x192x3xf32> to vector<192x3xf32>
    %240 = vector.shape_cast %237 : vector<192x3xf32> to vector<1x192x3xf32>
    tpu.vector_store %arg27[%c0_156, %c0_157, %c0_158], %240 {strides = array<i32>} : memref<1x192x3xf32, #tpu.memory_space<vmem>>, vector<1x192x3xf32>,
    %c0_159 = arith.constant 0 : index
    %c0_160 = arith.constant 0 : index
    %241 = vector.load %arg15[%c0_159, %c0_160] : memref<384x192xbf16, #tpu.memory_space<vmem>>, vector<384x192xbf16>
    %242 = arith.truncf %232 : vector<192x48xf32> to vector<192x48xbf16>
    %cst_161 = arith.constant dense<0.000000e+00> : vector<384x48xf32>
    %243 = tpu.matmul %241, %242, %cst_161 {dimension_numbers = #tpu.dot_dimension_numbers<[1], [0], [0], [1], [0, 0, 1, 1], [], []>} : vector<384x192xbf16>, vector<192x48xbf16>, vector<384x48xf32> -> vector<384x48xf32>
    %c0_162 = arith.constant 0 : index
    %c0_163 = arith.constant 0 : index
    %244 = vector.load %arg16[%c0_162, %c0_163] : memref<384x1xf32, #tpu.memory_space<vmem>>, vector<384x1xf32>
    %245 = vector.broadcast %244 : vector<384x1xf32> to vector<384x48xf32>
    %246 = arith.addf %243, %245 : vector<384x48xf32>
    %c0_164 = arith.constant 0 : index
    %c0_165 = arith.constant 0 : index
    %c0_166 = arith.constant 0 : index
    %247 = vector.load %arg29[%c0_164, %c0_165, %c0_166] : memref<1x384x48xf32, #tpu.memory_space<vmem>>, vector<1x384x48xf32>
    %248 = vector.shape_cast %247 : vector<1x384x48xf32> to vector<384x48xf32>
    %249 = vector.shape_cast %246 : vector<384x48xf32> to vector<1x384x48xf32>
    tpu.vector_store %arg29[%c0_164, %c0_165, %c0_166], %249 {strides = array<i32>} : memref<1x384x48xf32, #tpu.memory_space<vmem>>, vector<1x384x48xf32>,
    %c0_167 = arith.constant 0 : index
    %c0_168 = arith.constant 0 : index
    %250 = vector.load %arg11[%c0_167, %c0_168] : memref<48x3xf32, #tpu.memory_space<vmem>>, vector<48x3xf32>
    %cst_169 = arith.constant dense<0.000000e+00> : vector<384x3xf32>
    %251 = tpu.matmul %246, %250, %cst_169 {dimension_numbers = #tpu.dot_dimension_numbers<[1], [0], [0], [1], [0, 0, 1, 1], [], []>} : vector<384x48xf32>, vector<48x3xf32>, vector<384x3xf32> -> vector<384x3xf32>
    %c0_170 = arith.constant 0 : index
    %c0_171 = arith.constant 0 : index
    %252 = vector.load %arg12[%c0_170, %c0_171] : memref<1x3xf32, #tpu.memory_space<vmem>>, vector<1x3xf32>
    %253 = vector.broadcast %252 : vector<1x3xf32> to vector<384x3xf32>
    %254 = arith.addf %251, %253 : vector<384x3xf32>
    %c0_172 = arith.constant 0 : index
    %c0_173 = arith.constant 0 : index
    %c0_174 = arith.constant 0 : index
    %255 = vector.load %arg28[%c0_172, %c0_173, %c0_174] : memref<1x384x3xf32, #tpu.memory_space<vmem>>, vector<1x384x3xf32>
    %256 = vector.shape_cast %255 : vector<1x384x3xf32> to vector<384x3xf32>
    %257 = vector.shape_cast %254 : vector<384x3xf32> to vector<1x384x3xf32>
    tpu.vector_store %arg28[%c0_172, %c0_173, %c0_174], %257 {strides = array<i32>} : memref<1x384x3xf32, #tpu.memory_space<vmem>>, vector<1x384x3xf32>,
    %c0_175 = arith.constant 0 : index
    %c0_176 = arith.constant 0 : index
    %258 = vector.load %arg17[%c0_175, %c0_176] : memref<23x384xf32, #tpu.memory_space<vmem>>, vector<23x384xf32>
    %cst_177 = arith.constant dense<0.000000e+00> : vector<23x3xf32>
    %259 = tpu.matmul %258, %254, %cst_177 {dimension_numbers = #tpu.dot_dimension_numbers<[1], [0], [0], [1], [0, 0, 1, 1], [], []>} : vector<23x384xf32>, vector<384x3xf32>, vector<23x3xf32> -> vector<23x3xf32>
    %260 = arith.mulf %259, %259 : vector<23x3xf32>
    %cst_178 = arith.constant dense<0.000000e+00> : vector<23xf32>
    %261 = vector.multi_reduction <add>, %260, %cst_178 [1] : vector<23x3xf32> to vector<23xf32>
    %262 = vector.shape_cast %261 : vector<23xf32> to vector<23x1xf32>
    %263 = math.sqrt %262 : vector<23x1xf32>
    %c0_179 = arith.constant 0 : index
    %c0_180 = arith.constant 0 : index
    %264 = vector.load %arg18[%c0_179, %c0_180] : memref<23x10xf32, #tpu.memory_space<vmem>>, vector<23x10xf32>
    %265 = vector.broadcast %263 : vector<23x1xf32> to vector<23x10xf32>
    %266 = arith.mulf %265, %264 : vector<23x10xf32>
    %cst_181 = arith.constant dense<0.000000e+00> : vector<10xf32>
    %267 = vector.multi_reduction <add>, %266, %cst_181 [0] : vector<23x10xf32> to vector<10xf32>
    %268 = vector.shape_cast %267 : vector<10xf32> to vector<1x10xf32>
    %cst_182 = arith.constant dense<0.000000e+00> : vector<48xf32>
    %269 = vector.multi_reduction <add>, %246, %cst_182 [0] : vector<384x48xf32> to vector<48xf32>
    %270 = vector.shape_cast %269 : vector<48xf32> to vector<1x48xf32>
    %cst_183 = arith.constant 3.840000e+02 : f32
    %271 = vector.broadcast %cst_183 : f32 to vector<1x48xf32>
    %272 = arith.divf %270, %271 : vector<1x48xf32>
    %cst_184 = arith.constant dense<0xFF800000> : vector<48xf32>
    %273 = vector.multi_reduction <maximumf>, %246, %cst_184 [0] : vector<384x48xf32> to vector<48xf32>
    %274 = vector.shape_cast %273 : vector<48xf32> to vector<1x48xf32>
    %c0_185 = arith.constant 0 : index
    %c0_186 = arith.constant 0 : index
    %275 = vector.load %arg19[%c0_185, %c0_186] : memref<48x10xf32, #tpu.memory_space<vmem>>, vector<48x10xf32>
    %cst_187 = arith.constant dense<0.000000e+00> : vector<1x10xf32>
    %276 = tpu.matmul %272, %275, %cst_187 {dimension_numbers = #tpu.dot_dimension_numbers<[1], [0], [0], [1], [0, 0, 1, 1], [], []>} : vector<1x48xf32>, vector<48x10xf32>, vector<1x10xf32> -> vector<1x10xf32>
    %277 = arith.addf %268, %276 : vector<1x10xf32>
    %c0_188 = arith.constant 0 : index
    %c0_189 = arith.constant 0 : index
    %278 = vector.load %arg20[%c0_188, %c0_189] : memref<48x10xf32, #tpu.memory_space<vmem>>, vector<48x10xf32>
    %cst_190 = arith.constant dense<0.000000e+00> : vector<1x10xf32>
    %279 = tpu.matmul %274, %278, %cst_190 {dimension_numbers = #tpu.dot_dimension_numbers<[1], [0], [0], [1], [0, 0, 1, 1], [], []>} : vector<1x48xf32>, vector<48x10xf32>, vector<1x10xf32> -> vector<1x10xf32>
    %280 = arith.addf %277, %279 : vector<1x10xf32>
    %c0_191 = arith.constant 0 : index
    %c0_192 = arith.constant 0 : index
    %281 = vector.load %arg21[%c0_191, %c0_192] : memref<1x10xf32, #tpu.memory_space<vmem>>, vector<1x10xf32>
    %282 = arith.addf %280, %281 : vector<1x10xf32>
    %c0_193 = arith.constant 0 : index
    %c0_194 = arith.constant 0 : index
    %c0_195 = arith.constant 0 : index
    %283 = vector.load %arg30[%c0_193, %c0_194, %c0_195] : memref<1x1x10xf32, #tpu.memory_space<vmem>>, vector<1x1x10xf32>
    %284 = vector.shape_cast %283 : vector<1x1x10xf32> to vector<1x10xf32>
    %285 = vector.shape_cast %282 : vector<1x10xf32> to vector<1x1x10xf32>
    tpu.vector_store %arg30[%c0_193, %c0_194, %c0_195], %285 {strides = array<i32>} : memref<1x1x10xf32, #tpu.memory_space<vmem>>, vector<1x1x10xf32>,
    %c0_196 = arith.constant 0 : index
    %c0_197 = arith.constant 0 : index
    %286 = vector.load %arg22[%c0_196, %c0_197] : memref<10x1152xf32, #tpu.memory_space<vmem>>, vector<10x1152xf32>
    %cst_198 = arith.constant dense<0.000000e+00> : vector<1x1152xf32>
    %287 = tpu.matmul %282, %286, %cst_198 {dimension_numbers = #tpu.dot_dimension_numbers<[1], [0], [0], [1], [0, 0, 1, 1], [], []>} : vector<1x10xf32>, vector<10x1152xf32>, vector<1x1152xf32> -> vector<1x1152xf32>
    %c0_199 = arith.constant 0 : index
    %c0_200 = arith.constant 0 : index
    %c0_201 = arith.constant 0 : index
    %288 = vector.load %arg31[%c0_199, %c0_200, %c0_201] : memref<1x1x1152xf32, #tpu.memory_space<vmem>>, vector<1x1x1152xf32>
    %289 = vector.shape_cast %288 : vector<1x1x1152xf32> to vector<1x1152xf32>
    %290 = vector.shape_cast %287 : vector<1x1152xf32> to vector<1x1x1152xf32>
    tpu.vector_store %arg31[%c0_199, %c0_200, %c0_201], %290 {strides = array<i32>} : memref<1x1x1152xf32, #tpu.memory_space<vmem>>, vector<1x1x1152xf32>,
    %cst_202 = arith.constant dense<0.000000e+00> : vector<3xf32>
    %291 = vector.multi_reduction <add>, %254, %cst_202 [0] : vector<384x3xf32> to vector<3xf32>
    %292 = vector.shape_cast %291 : vector<3xf32> to vector<1x3xf32>
    %cst_203 = arith.constant 3.840000e+02 : f32
    %293 = vector.broadcast %cst_203 : f32 to vector<1x3xf32>
    %294 = arith.divf %292, %293 : vector<1x3xf32>
    %c0_204 = arith.constant 0 : index
    %c0_205 = arith.constant 0 : index
    %295 = vector.load %arg23[%c0_204, %c0_205] : memref<1x3xf32, #tpu.memory_space<vmem>>, vector<1x3xf32>
    %296 = arith.subf %294, %295 : vector<1x3xf32>
    %c0_206 = arith.constant 0 : index
    %c0_207 = arith.constant 0 : index
    %c0_208 = arith.constant 0 : index
    %297 = vector.load %arg32[%c0_206, %c0_207, %c0_208] : memref<1x1x3xf32, #tpu.memory_space<vmem>>, vector<1x1x3xf32>
    %298 = vector.shape_cast %297 : vector<1x1x3xf32> to vector<1x3xf32>
    %299 = vector.shape_cast %296 : vector<1x3xf32> to vector<1x1x3xf32>
    tpu.vector_store %arg32[%c0_206, %c0_207, %c0_208], %299 {strides = array<i32>} : memref<1x1x3xf32, #tpu.memory_space<vmem>>, vector<1x1x3xf32>,
    return
  }
  func.func @transform_0(%arg0: i32) -> (i32, i32, i32) {
    %c0_i32 = arith.constant 0 : i32
    %c0_i32_0 = arith.constant 0 : i32
    %c0_i32_1 = arith.constant 0 : i32
    return %arg0, %c0_i32, %c0_i32_0 : i32, i32, i32
  }
  func.func @transform_1(%arg0: i32) -> (i32, i32) {
    %c0_i32 = arith.constant 0 : i32
    %c0_i32_0 = arith.constant 0 : i32
    %c0_i32_1 = arith.constant 0 : i32
    return %c0_i32, %c0_i32_0 : i32, i32
  }
  func.func @transform_2(%arg0: i32) -> (i32, i32) {
    %c0_i32 = arith.constant 0 : i32
    %c0_i32_0 = arith.constant 0 : i32
    %c0_i32_1 = arith.constant 0 : i32
    return %c0_i32, %c0_i32_0 : i32, i32
  }
  func.func @transform_3(%arg0: i32) -> (i32, i32) {
    %c0_i32 = arith.constant 0 : i32
    %c0_i32_0 = arith.constant 0 : i32
    %c0_i32_1 = arith.constant 0 : i32
    return %c0_i32, %c0_i32_0 : i32, i32
  }
  func.func @transform_4(%arg0: i32) -> (i32, i32) {
    %c0_i32 = arith.constant 0 : i32
    %c0_i32_0 = arith.constant 0 : i32
    %c0_i32_1 = arith.constant 0 : i32
    return %c0_i32, %c0_i32_0 : i32, i32
  }
  func.func @transform_5(%arg0: i32) -> (i32, i32) {
    %c0_i32 = arith.constant 0 : i32
    %c0_i32_0 = arith.constant 0 : i32
    %c0_i32_1 = arith.constant 0 : i32
    return %c0_i32, %c0_i32_0 : i32, i32
  }
  func.func @transform_6(%arg0: i32) -> (i32, i32, i32) {
    %c0_i32 = arith.constant 0 : i32
    %c0_i32_0 = arith.constant 0 : i32
    %c0_i32_1 = arith.constant 0 : i32
    %c0_i32_2 = arith.constant 0 : i32
    return %c0_i32, %c0_i32_0, %c0_i32_1 : i32, i32, i32
  }
  func.func @transform_7(%arg0: i32) -> (i32, i32, i32) {
    %c0_i32 = arith.constant 0 : i32
    %c0_i32_0 = arith.constant 0 : i32
    %c0_i32_1 = arith.constant 0 : i32
    %c0_i32_2 = arith.constant 0 : i32
    return %c0_i32, %c0_i32_0, %c0_i32_1 : i32, i32, i32
  }
  func.func @transform_8(%arg0: i32) -> (i32, i32, i32) {
    %c0_i32 = arith.constant 0 : i32
    %c0_i32_0 = arith.constant 0 : i32
    %c0_i32_1 = arith.constant 0 : i32
    %c0_i32_2 = arith.constant 0 : i32
    return %c0_i32, %c0_i32_0, %c0_i32_1 : i32, i32, i32
  }
  func.func @transform_9(%arg0: i32) -> (i32, i32, i32) {
    %c0_i32 = arith.constant 0 : i32
    %c0_i32_0 = arith.constant 0 : i32
    %c0_i32_1 = arith.constant 0 : i32
    %c0_i32_2 = arith.constant 0 : i32
    return %c0_i32, %c0_i32_0, %c0_i32_1 : i32, i32, i32
  }
  func.func @transform_10(%arg0: i32) -> (i32, i32) {
    %c0_i32 = arith.constant 0 : i32
    %c0_i32_0 = arith.constant 0 : i32
    %c0_i32_1 = arith.constant 0 : i32
    return %c0_i32, %c0_i32_0 : i32, i32
  }
  func.func @transform_11(%arg0: i32) -> (i32, i32) {
    %c0_i32 = arith.constant 0 : i32
    %c0_i32_0 = arith.constant 0 : i32
    %c0_i32_1 = arith.constant 0 : i32
    return %c0_i32, %c0_i32_0 : i32, i32
  }
  func.func @transform_12(%arg0: i32) -> (i32, i32) {
    %c0_i32 = arith.constant 0 : i32
    %c0_i32_0 = arith.constant 0 : i32
    %c0_i32_1 = arith.constant 0 : i32
    return %c0_i32, %c0_i32_0 : i32, i32
  }
  func.func @transform_13(%arg0: i32) -> (i32, i32) {
    %c0_i32 = arith.constant 0 : i32
    %c0_i32_0 = arith.constant 0 : i32
    %c0_i32_1 = arith.constant 0 : i32
    return %c0_i32, %c0_i32_0 : i32, i32
  }
  func.func @transform_14(%arg0: i32) -> (i32, i32) {
    %c0_i32 = arith.constant 0 : i32
    %c0_i32_0 = arith.constant 0 : i32
    %c0_i32_1 = arith.constant 0 : i32
    return %c0_i32, %c0_i32_0 : i32, i32
  }
  func.func @transform_15(%arg0: i32) -> (i32, i32) {
    %c0_i32 = arith.constant 0 : i32
    %c0_i32_0 = arith.constant 0 : i32
    %c0_i32_1 = arith.constant 0 : i32
    return %c0_i32, %c0_i32_0 : i32, i32
  }
  func.func @transform_16(%arg0: i32) -> (i32, i32) {
    %c0_i32 = arith.constant 0 : i32
    %c0_i32_0 = arith.constant 0 : i32
    %c0_i32_1 = arith.constant 0 : i32
    return %c0_i32, %c0_i32_0 : i32, i32
  }
  func.func @transform_17(%arg0: i32) -> (i32, i32) {
    %c0_i32 = arith.constant 0 : i32
    %c0_i32_0 = arith.constant 0 : i32
    %c0_i32_1 = arith.constant 0 : i32
    return %c0_i32, %c0_i32_0 : i32, i32
  }
  func.func @transform_18(%arg0: i32) -> (i32, i32) {
    %c0_i32 = arith.constant 0 : i32
    %c0_i32_0 = arith.constant 0 : i32
    %c0_i32_1 = arith.constant 0 : i32
    return %c0_i32, %c0_i32_0 : i32, i32
  }
  func.func @transform_19(%arg0: i32) -> (i32, i32) {
    %c0_i32 = arith.constant 0 : i32
    %c0_i32_0 = arith.constant 0 : i32
    %c0_i32_1 = arith.constant 0 : i32
    return %c0_i32, %c0_i32_0 : i32, i32
  }
  func.func @transform_20(%arg0: i32) -> (i32, i32) {
    %c0_i32 = arith.constant 0 : i32
    %c0_i32_0 = arith.constant 0 : i32
    %c0_i32_1 = arith.constant 0 : i32
    return %c0_i32, %c0_i32_0 : i32, i32
  }
  func.func @transform_21(%arg0: i32) -> (i32, i32) {
    %c0_i32 = arith.constant 0 : i32
    %c0_i32_0 = arith.constant 0 : i32
    %c0_i32_1 = arith.constant 0 : i32
    return %c0_i32, %c0_i32_0 : i32, i32
  }
  func.func @transform_22(%arg0: i32) -> (i32, i32) {
    %c0_i32 = arith.constant 0 : i32
    %c0_i32_0 = arith.constant 0 : i32
    %c0_i32_1 = arith.constant 0 : i32
    return %c0_i32, %c0_i32_0 : i32, i32
  }
  func.func @transform_23(%arg0: i32) -> (i32, i32, i32) {
    %c0_i32 = arith.constant 0 : i32
    %c0_i32_0 = arith.constant 0 : i32
    %c0_i32_1 = arith.constant 0 : i32
    return %arg0, %c0_i32, %c0_i32_0 : i32, i32, i32
  }
  func.func @transform_24(%arg0: i32) -> (i32, i32, i32) {
    %c0_i32 = arith.constant 0 : i32
    %c0_i32_0 = arith.constant 0 : i32
    %c0_i32_1 = arith.constant 0 : i32
    return %arg0, %c0_i32, %c0_i32_0 : i32, i32, i32
  }
  func.func @transform_25(%arg0: i32) -> (i32, i32, i32) {
    %c0_i32 = arith.constant 0 : i32
    %c0_i32_0 = arith.constant 0 : i32
    %c0_i32_1 = arith.constant 0 : i32
    return %arg0, %c0_i32, %c0_i32_0 : i32, i32, i32
  }
  func.func @transform_26(%arg0: i32) -> (i32, i32, i32) {
    %c0_i32 = arith.constant 0 : i32
    %c0_i32_0 = arith.constant 0 : i32
    %c0_i32_1 = arith.constant 0 : i32
    return %arg0, %c0_i32, %c0_i32_0 : i32, i32, i32
  }
  func.func @transform_27(%arg0: i32) -> (i32, i32, i32) {
    %c0_i32 = arith.constant 0 : i32
    %c0_i32_0 = arith.constant 0 : i32
    %c0_i32_1 = arith.constant 0 : i32
    return %arg0, %c0_i32, %c0_i32_0 : i32, i32, i32
  }
  func.func @transform_28(%arg0: i32) -> (i32, i32, i32) {
    %c0_i32 = arith.constant 0 : i32
    %c0_i32_0 = arith.constant 0 : i32
    %c0_i32_1 = arith.constant 0 : i32
    return %arg0, %c0_i32, %c0_i32_0 : i32, i32, i32
  }
  func.func @transform_29(%arg0: i32) -> (i32, i32, i32) {
    %c0_i32 = arith.constant 0 : i32
    %c0_i32_0 = arith.constant 0 : i32
    %c0_i32_1 = arith.constant 0 : i32
    return %arg0, %c0_i32, %c0_i32_0 : i32, i32, i32
  }
  func.func @transform_30(%arg0: i32) -> (i32, i32, i32) {
    %c0_i32 = arith.constant 0 : i32
    %c0_i32_0 = arith.constant 0 : i32
    %c0_i32_1 = arith.constant 0 : i32
    return %arg0, %c0_i32, %c0_i32_0 : i32, i32, i32
  }
  func.func @transform_31(%arg0: i32) -> (i32, i32, i32) {
    %c0_i32 = arith.constant 0 : i32
    %c0_i32_0 = arith.constant 0 : i32
    %c0_i32_1 = arith.constant 0 : i32
    return %arg0, %c0_i32, %c0_i32_0 : i32, i32, i32
  }
}

</mosaic_0001>

<bundles_post_ra>
// kernel: lidar_hmr_forward.2
= control target key start
LH: loop header
LB: loop body
LE: loop exit
PB: predicated region body
PF: predicated region fallthrough
CT: control target
= control target key end

     0   :  { %17 = vsyncpa [#allocation3], 0  ;;  %s1443_s17 = smov 0   ;;  %s1576_s0 = inlined_call_operand.vmem [shape: f32[2,64,3], index: 0, kind: input, shape index: {}]   ;;  %s1577_s1 = inlined_call_operand.vmem [shape: bf16[3,48], index: 1, kind: input, shape index: {}]   ;;  %s1578_s2 = inlined_call_operand.vmem [shape: f32[1,48], index: 2, kind: input, shape index: {}]   ;;  %s1579_s3 = inlined_call_operand.vmem [shape: bf16[48,48], index: 3, kind: input, shape index: {}]   ;;  %s1580_s4 = inlined_call_operand.vmem [shape: f32[1,48], index: 4, kind: input, shape index: {}]   ;;  %s1581_s5 = inlined_call_operand.vmem [shape: bf16[48,48], index: 5, kind: input, shape index: {}]   ;;  %s1582_s6 = inlined_call_operand.vmem [shape: f32[1,48], index: 6, kind: input, shape index: {}]   ;;  %s1583_s7 = inlined_call_operand.hbm [shape: bf16[48,1152], index: 7, kind: input, shape index: {}]   ;;  %s1584_s8 = inlined_call_operand.vmem [shape: f32[1,1152], index: 8, kind: input, shape index: {}]   ;;  %s1585_s9 = inlined_call_operand.vmem [shape: f32[2,64,48], index: 9, kind: output, shape index: {0}]   ;;  %s1586_s10 = inlined_call_operand.vmem [shape: f32[2,1,48], index: 10, kind: output, shape index: {1}]   ;;  %s1587_s11 = inlined_call_operand.vmem [shape: f32[2,1,1152], index: 11, kind: output, shape index: {2}]  }
   0x1 LB: > { %s329_s20 = sshll.u32 %s1583_s7, 4  ;;  %s1113_s21 = sadd.s32 4294967295, %s1377_s17   ;;  %s1377_s17 = sphi %s1443_s17, %s23_s17   ;;  %s330_s20 = int_to_ptr.hbm [resolvable:$true] %s329_s20 }
   0x2   : > { %p1115_p0 = scmp.ge.s32.totalorder %s1377_s17, 1  ;;  %p300_p1 = scmp.lt.s32.totalorder %s1377_s17, 3 }
   0x3   : > { %p1320_p2 = scmp.eq.s32.totalorder %s1113_s21, 0  ;;  %s1379_s22 = smov [#allocation2]  }
   0x4   : > { %p301_p3 = pnand %p1115_p0, %p300_p1  ;;  %s331_s23 = sshll.u32 %s1379_s22, 4  ;;  %s332_s23 = int_to_ptr.vmem [resolvable:$true] %s331_s23 }
   0x5   : > { %s1380_s24 = smov 576   ;;  %s1381_s25 = smov 36  }
   0x6   : > { %p1316_p4 = pneg %p301_p3  ;;  %358 = sbr.rel (%p301_p3) target bundleno = 689 (0x2b1), region = 56 }
   0x8   : > { %p1317_p5 = pnand %p1320_p2, %p1316_p4 }
   0xa   : > { %1319 = dma.hbm_to_vmem [thread:$0]  (!%p1317_p5), %s330_s20, 3456, %s332_s23, [#allocation3], %s1380_s24, %s1380_s24, %s1381_s25  }
   0xb   : > { %1372 = dma.done.wait (%p1320_p2), [#allocation3], 3456  }
   0xc   : > { %1374 = vsyncadd (%p1320_p2), [#allocation3], 4294963840  ;;  %vm454_vm0 = vcmask 1040384   ;;  %p406_p6 = scmp.lt.s32.totalorder %s1113_s21, 1  ;;  %vm455_vm1 = vcmask 1041408   ;;  %v1382_v0 = vmov 65535  }
   0xd   : > { %v456_v1 = vsel %vm454_vm0, 4294967295, %v1382_v0  ;;  %v436_v3 = vld [vmem:[%s1577_s1] sm:$0x3]  ;;  %vm441_vm2 = vcmask 23552   ;;  %v1280_v17 = vld [vmem:[%s1579_s3 + $0x10] sm:$0xff]  ;;  %v1279_v18 = vld [vmem:[%s1579_s3 + $0x8] sm:$0xff] }
   0xe   : > { %s1589_s21 = smov (!%p406_p6, %s1113_s21), 1  ;;  %v457_v2 = vsel %vm455_vm1, %v456_v1, 0  ;;  %548 = vmatpush.bf16.msra.mxu1 %v1280_v17  ;;  %v1278_v19 = vld [vmem:[%s1579_s3] sm:$0xff]  ;;  %vm530_vm3 = vcmask 392192   ;;  %v1283_v60 = vld [vmem:[%s1581_s5 + $0x10] sm:$0xff]  ;;  %v1282_v61 = vld [vmem:[%s1581_s5 + $0x8] sm:$0xff] }
   0xf   : > { %s1276_s26 = sshll.u32 %s1589_s21, 6  ;;  %v459_v6 = vand.u32 %v457_v2, %v436_v3  ;;  %v1334_v21 = vld [vmem:[%s1578_s2] ss:$0 sm:$0xff]  ;;  %635 = vmatpush.bf16.msra.mxu2 %v1283_v60  ;;  %v1231_v2 = vld [vmem:[#allocation2 + $0x90] sm:$0xf]  ;;  %vm643_vm4 = vcmask 385024   ;;  %s418_s20 = scalar_lea.vmem %s1586_s10, %s1589_s21 }
  0x10   : > { %s410_s29 = scalar_lea.vmem %s1576_s0, %s1276_s26  ;;  %v1486_v49 = vld [vmem:[%s1580_s4] ss:$0 sm:$0xff]  ;;  %s1493_s28 = scalar_lea.vmem %s1585_s9, %s1276_s26  ;;  %v1306_v3 = vld [vmem:[#allocation2 + $0xb0] sm:$0xf0]  ;;  %v1293_v17 = vld [vmem:[#allocation2 + $0x4c] sm:$0xf] }
  0x11   : > { %v424_v4 = vld [vmem:[%s410_s29] sm:$0xff]  ;;  %v425_v5 = vld [vmem:[%s410_s29 + $0x8] sm:$0xff]  ;;  %468 = vmatpush.bf16.msra.mxu0 %v459_v6  ;;  %v426_v8 = vld [vmem:[%s410_s29 + $0x10] sm:$0xff]  ;;  %v1232_v6 = vor.u32 %v1306_v3, %v1231_v2  ;;  %s1311_s22 = smul.u32 9, %s1589_s21  ;;  %vm972_vm6 = vcmask 1042434   ;;  %vm975_vm7 = vcmask 1044484  }
  0x12   : > { %v432_v7 = vpack.c.bf16 %v425_v5, %v424_v4  ;;  %v427_v9 = vld [vmem:[%s410_s29 + $0x18] sm:$0xff]  ;;  %v428_v11 = vld [vmem:[%s410_s29 + $0x20] sm:$0xff]  ;;  %v429_v12 = vld [vmem:[%s410_s29 + $0x28] sm:$0xff]  ;;  %549 = vmatpush.bf16.msra.mxu1 %v1279_v18  ;;  %vm977_vm8 = vcmask 1046534   ;;  %vm979_vm9 = vcmask 1045508   ;;  %vm981_vm10 = vcmask 1043456  }
  0x13   : > { %v433_v10 = vpack.c.bf16 %v427_v9, %v426_v8  ;;  %v434_v13 = vpack.c.bf16 %v429_v12, %v428_v11  ;;  %v430_v14 = vld [vmem:[%s410_s29 + $0x30] sm:$0xff]  ;;  %v431_v15 = vld [vmem:[%s410_s29 + $0x38] sm:$0xff]  ;;  %636 = vmatpush.bf16.msra.mxu2 %v1282_v61  ;;  %v1281_v63 = vld [vmem:[%s1581_s5] sm:$0xff]  ;;  %844 = vmatpush.bf16.msra.mxu3 %v1232_v6 }
  0x14   : > { %1124 = vmatmul.msk.bf16.vlgmr.msra.gmra.mxu0 %vm441_vm2, %v432_v7  ;;  %v435_v16 = vpack.c.bf16 %v431_v15, %v430_v14  ;;  %v1302_v4 = vld [vmem:[#allocation2 + $0x94] sm:$0xf]  ;;  %v1233_v7 = vld [vmem:[#allocation2 + $0xb4] sm:$0xf0]  ;;  %v1305_v8 = vld [vmem:[#allocation2 + $0xac] sm:$0xf] }
  0x15   : > { %v1257_v9 = vld [vmem:[#allocation2 + $0xcc] sm:$0xf0]  ;;  %v1195_v14 = vld [vmem:[#allocation2 + $0x48] sm:$0xf]  ;;  %v1191_v60 = vld [vmem:[#allocation2 + $0x20] sm:$0xf] }
  0x16   : > { %550 = vmatpush.bf16.msra.mxu1 %v1278_v19  ;;  %v1260_v11 = vor.u32 %v1305_v8, %v1257_v9  ;;  %v1263_v12 = vld [vmem:[#allocation2 + $0xb0] sm:$0xf]  ;;  %v1292_v61 = vld [vmem:[#allocation2 + $0x40] sm:$0xf0]  ;;  %v1303_v2 = vld [vmem:[#allocation2 + $0x9c] sm:$0xf] }
  0x17   : > { %637 = vmatpush.bf16.msra.mxu2 %v1281_v63  ;;  %v1197_v19 = vld [vmem:[#allocation2 + $0x6c] sm:$0xf0]  ;;  %v1239_v63 = vld [vmem:[#allocation2 + $0x98] sm:$0xf]  ;;  %v1241_v3 = vld [vmem:[#allocation2 + $0xbc] sm:$0xf0] }
  0x18   : > { %935 = vmatpush.bf16.msrb.mxu0 %v1260_v11  ;;  %v1298_v6 = vld [vmem:[#allocation2 + $0x70] sm:$0xf0]  ;;  %v1205_v8 = vld [vmem:[#allocation2 + $0x74] sm:$0xf0]  ;;  %v1289_v11 = vld [vmem:[#allocation2 + $0x28] sm:$0xf0] }
  0x24   : > { %1125 = vmatmul.msk.bf16.gmra.mxu0 %vm441_vm2, %v433_v10  ;;  %v1236_v10 = vor.u32 %v1302_v4, %v1233_v7  ;;  %v1203_v4 = vld [vmem:[#allocation2 + $0x50] sm:$0xf]  ;;  %v1294_v7 = vld [vmem:[#allocation2 + $0x54] sm:$0xf] }
  0x25   : > { %v1204_v9 = vor.u32 %v1298_v6, %v1203_v4 }
  0x26   : > { %857 = vmatpush.bf16.msrb.mxu2 %v1236_v10  ;;  %v1167_v10 = vld [vmem:[#allocation2 + $0x8] sm:$0xf] }
  0x34   : > { %1126 = vmatmul.msk.bf16.gmra.mxu0 %vm441_vm2, %v434_v13  ;;  %v1310_v13 = vld [vmem:[#allocation2 + $0xd0] sm:$0xf0] }
  0x35   : > { %v1264_v15 = vor.u32 %v1310_v13, %v1263_v12  ;;  %v1208_v12 = vor.u32 %v1294_v7, %v1205_v8  ;;  %v1168_v13 = vor.u32 %v1289_v11, %v1167_v10 }
  0x37   : > { %948 = vmatpush.bf16.msrb.mxu1 %v1264_v15  ;;  %v1169_v15 = vld [vmem:[#allocation2 + $0x2c] sm:$0xf0] }
  0x44   : > { %1127 = vmatmul.msk.bf16.gmra.mxu0 %vm441_vm2, %v435_v16  ;;  %v1297_v16 = vld [vmem:[#allocation2 + $0x68] sm:$0xf0] }
  0x45   : > { %v1196_v18 = vor.u32 %v1297_v16, %v1195_v14  ;;  %v1285_v14 = vld [vmem:[#allocation2 + $0xc] sm:$0xf] }
  0x46   : > { %v1172_v16 = vor.u32 %v1285_v14, %v1169_v15 }
  0x47   : > { %845 = vmatpush.bf16.msra.mxu3 %v1196_v18  ;;  %v1247_v18 = vld [vmem:[#allocation2 + $0xa0] sm:$0xf] }
  0x91   : > { %v470_v20 = vpop.f32.mrf.mxu0 }
  0x92   : > { %v471_v22 = vadd.f32 %v1334_v21, %v470_v20  ;;  %v1296_v20 = vld [vmem:[#allocation2 + $0x64] sm:$0xf] }
  0x94   : > { %v490_v25 = vmax.f32 %v471_v22, 0.0  ;;  %v1200_v22 = vor.u32 %v1293_v17, %v1197_v19  ;;  %v608_v17 = vld [vmem:[%s1582_s6] sm:$0x1] }
  0x96   : > { %858 = vmatpush.bf16.msrb.mxu2 %v1200_v22  ;;  %v1249_v22 = vld [vmem:[#allocation2 + $0xc4] sm:$0xf0] }
  0x99   : > { %v472_v23 = vpop.f32.mrf.mxu0 }
  0x9a   : > { %v473_v24 = vadd.f32 %v1334_v21, %v472_v23 }
  0x9c   : > { %v491_v26 = vmax.f32 %v473_v24, 0.0  ;;  %v1227_v24 = vld [vmem:[#allocation2 + $0x68] sm:$0xf] }
  0x9e   : > { %v498_v27 = vpack.c.bf16 %v491_v26, %v490_v25  ;;  %v1301_v25 = vld [vmem:[#allocation2 + $0x88] sm:$0xf0] }
  0x9f   : > { %v1228_v26 = vor.u32 %v1301_v25, %v1227_v24 }
  0xa0   : > { %1140 = vmatmul.msk.bf16.vlgmr.msra.gmra.mxu1 %vm530_vm3, %v498_v27 }
  0xa1   : > { %v475_v28 = vpop.f32.mrf.mxu0  ;;  %949 = vmatpush.bf16.msrb.mxu1 %v1228_v26 }
  0xa2   : > { %v476_v29 = vadd.f32 %v1334_v21, %v475_v28 }
  0xa4   : > { %v492_v32 = vmax.f32 %v476_v29, 0.0 }
  0xa9   : > { %v477_v30 = vpop.f32.mrf.mxu0 }
  0xaa   : > { %v478_v31 = vadd.f32 %v1334_v21, %v477_v30 }
  0xac   : > { %v493_v33 = vmax.f32 %v478_v31, 0.0 }
  0xae   : > { %v499_v34 = vpack.c.bf16 %v493_v33, %v492_v32 }
  0xb0   : > { %1141 = vmatmul.msk.bf16.gmra.mxu1 %vm530_vm3, %v499_v34 }
  0xb1   : > { %v480_v35 = vpop.f32.mrf.mxu0 }
  0xb2   : > { %v481_v36 = vadd.f32 %v1334_v21, %v480_v35 }
  0xb4   : > { %v494_v39 = vmax.f32 %v481_v36, 0.0 }
  0xb9   : > { %v482_v37 = vpop.f32.mrf.mxu0 }
  0xba   : > { %v483_v38 = vadd.f32 %v1334_v21, %v482_v37 }
  0xbc   : > { %v495_v40 = vmax.f32 %v483_v38, 0.0 }
  0xbe   : > { %v500_v41 = vpack.c.bf16 %v495_v40, %v494_v39 }
  0xc0   : > { %1142 = vmatmul.msk.bf16.gmra.mxu1 %vm530_vm3, %v500_v41 }
  0xc1   : > { %v485_v42 = vpop.f32.mrf.mxu0 }
  0xc2   : > { %v486_v43 = vadd.f32 %v1334_v21, %v485_v42 }
  0xc4   : > { %v496_v46 = vmax.f32 %v486_v43, 0.0 }
  0xc9   : > { %v487_v44 = vpop.f32.mrf.mxu0 }
  0xca   : > { %v488_v45 = vadd.f32 %v1334_v21, %v487_v44  ;;  %v1221_v21 = vld [vmem:[#allocation2 + $0x84] sm:$0xf0] }
  0xcb   : > { %v1224_v23 = vor.u32 %v1296_v20, %v1221_v21  ;;  %v1308_v20 = vld [vmem:[#allocation2 + $0xc0] sm:$0xf0] }
  0xcc   : > { %v497_v47 = vmax.f32 %v488_v45, 0.0  ;;  %v1304_v21 = vld [vmem:[#allocation2 + $0xa4] sm:$0xf]  ;;  %v1248_v25 = vor.u32 %v1308_v20, %v1247_v18 }
  0xcd   : > { %936 = vmatpush.bf16.msrb.mxu0 %v1224_v23  ;;  %v1252_v26 = vor.u32 %v1304_v21, %v1249_v22 }
  0xce   : > { %v501_v48 = vpack.c.bf16 %v497_v47, %v496_v46 }
  0xd0   : > { %1143 = vmatmul.msk.bf16.gmra.mxu1 %vm530_vm3, %v501_v48 }
 0x11d   : > { %v552_v50 = vpop.f32.mrf.mxu1 }
 0x11e   : > { %v1496_v51 = vadd.f32 %v1486_v49, %v552_v50 }
 0x120   : > { %572 = vst.msk [vmem:[%s1493_s28] sm:$0xff] %vm530_vm3, %v1496_v51  ;;  %v580_v34 = vsel %vm530_vm3, %v1496_v51, -inf  ;;  %v1159_v51 = vld [vmem:[#allocation2] sm:$0xf] }
 0x125   : > { %v554_v52 = vpop.f32.mrf.mxu1 }
 0x126   : > { %v555_v53 = vadd.f32 %v1486_v49, %v554_v52  ;;  %v1288_v52 = vld [vmem:[#allocation2 + $0x20] sm:$0xf0] }
 0x128   : > { %573 = vst.msk [vmem:[%s1493_s28 + $0x8] sm:$0xff] %vm530_vm3, %v555_v53  ;;  %v581_v29 = vsel %vm530_vm3, %v555_v53, -inf  ;;  %v1284_v53 = vld [vmem:[#allocation2 + $0x4] sm:$0xf] }
 0x12d   : > { %v557_v54 = vpop.f32.mrf.mxu1 }
 0x12e   : > { %v558_v55 = vadd.f32 %v1486_v49, %v557_v54  ;;  %v1160_v54 = vor.u32 %v1288_v52, %v1159_v51 }
 0x130   : > { %574 = vst.msk [vmem:[%s1493_s28 + $0x10] sm:$0xff] %vm530_vm3, %v558_v55  ;;  %v582_v35 = vsel %vm530_vm3, %v558_v55, -inf  ;;  %v1161_v55 = vld [vmem:[#allocation2 + $0x24] sm:$0xf0]  ;;  %846 = vmatpush.bf16.msra.mxu3 %v1160_v54 }
 0x135   : > { %v559_v56 = vpop.f32.mrf.mxu1 }
 0x136   : > { %v560_v57 = vadd.f32 %v1486_v49, %v559_v56  ;;  %v1287_v56 = vld [vmem:[#allocation2 + $0x1c] sm:$0xf] }
 0x138   : > { %575 = vst.msk [vmem:[%s1493_s28 + $0x18] sm:$0xff] %vm530_vm3, %v560_v57  ;;  %v583_v36 = vsel %vm530_vm3, %v560_v57, -inf  ;;  %v1185_v57 = vld [vmem:[#allocation2 + $0x3c] sm:$0xf0] }
 0x13d   : > { %v562_v58 = vpop.f32.mrf.mxu1 }
 0x13e   : > { %v563_v59 = vadd.f32 %v1486_v49, %v562_v58  ;;  %v1164_v58 = vor.u32 %v1284_v53, %v1161_v55 }
 0x140   : > { %576 = vst.msk [vmem:[%s1493_s28 + $0x20] sm:$0xff] %vm530_vm3, %v563_v59  ;;  %v584_v30 = vsel %vm530_vm3, %v563_v59, -inf  ;;  %v1188_v59 = vor.u32 %v1287_v56, %v1185_v57  ;;  %859 = vmatpush.bf16.msrb.mxu2 %v1164_v58 }
 0x141   : > { %v585_v38 = vmax.f32 %v580_v34, %v584_v30  ;;  %v1213_v30 = vld [vmem:[#allocation2 + $0x7c] sm:$0xf0] }
 0x142   : > { %937 = vmatpush.bf16.msrb.mxu0 %v1188_v59 }
 0x145   : > { %v564_v62 = vpop.f32.mrf.mxu1 }
 0x146   : > { %v565_v0 = vadd.f32 %v1486_v49, %v564_v62  ;;  %v1192_v62 = vor.u32 %v1292_v61, %v1191_v60 }
 0x148   : > { %577 = vst.msk [vmem:[%s1493_s28 + $0x28] sm:$0xff] %vm530_vm3, %v565_v0  ;;  %v586_v27 = vsel %vm530_vm3, %v565_v0, -inf  ;;  %950 = vmatpush.bf16.msrb.mxu1 %v1192_v62  ;;  %v1307_v0 = vld [vmem:[#allocation2 + $0xb8] sm:$0xf0] }
 0x149   : > { %v587_v33 = vmax.f32 %v581_v29, %v586_v27  ;;  %v1211_v27 = vld [vmem:[#allocation2 + $0x58] sm:$0xf]  ;;  %v1295_v29 = vld [vmem:[#allocation2 + $0x5c] sm:$0xf] }
 0x14b   : > { %v592_v41 = vmax.f32 %v585_v38, %v587_v33  ;;  %v1175_v33 = vld [vmem:[#allocation2 + $0x10] sm:$0xf] }
 0x14d   : > { %v567_v1 = vpop.f32.mrf.mxu1 }
 0x14e   : > { %v568_v5 = vadd.f32 %v1486_v49, %v567_v1  ;;  %v1240_v1 = vor.u32 %v1307_v0, %v1239_v63 }
 0x150   : > { %578 = vst.msk [vmem:[%s1493_s28 + $0x30] sm:$0xff] %vm530_vm3, %v568_v5  ;;  %v588_v31 = vsel %vm530_vm3, %v568_v5, -inf  ;;  %870 = vmatpush.bf16.msrb.mxu3 %v1240_v1  ;;  %v1244_v5 = vor.u32 %v1303_v2, %v1241_v3  ;;  %v676_v2 = vld [vmem:[%s1584_s8] sm:$0xff] }
 0x151   : > { %v589_v39 = vmax.f32 %v582_v35, %v588_v31  ;;  %v1290_v35 = vld [vmem:[#allocation2 + $0x30] sm:$0xf0]  ;;  %v820_v3 = vperm.slane %v676_v2, 2  ;;  %v821_v4 = vperm.slane %v676_v2, 3  ;;  %v819_v7 = vperm.slane %v676_v2, 1 }
 0x152   : > { %v1176_v38 = vor.u32 %v1290_v35, %v1175_v33  ;;  %v822_v8 = vperm.slane %v676_v2, 4  ;;  %v825_v10 = vperm.slane %v676_v2, 7  ;;  %v818_v18 = vperm.slane %v676_v2, 0 }
 0x154   : > { %871 = vmatpush.bf16.msrb.mxu3 %v1204_v9  ;;  %v823_v9 = vperm.slane %v676_v2, 5 }
 0x155   : > { %v569_v28 = vpop.f32.mrf.mxu1 }
 0x156   : > { %v570_v32 = vadd.f32 %v1486_v49, %v569_v28  ;;  %v1299_v28 = vld [vmem:[#allocation2 + $0x78] sm:$0xf0] }
 0x157   : > { %v1212_v31 = vor.u32 %v1299_v28, %v1211_v27 }
 0x158   : > { %579 = vst.msk [vmem:[%s1493_s28 + $0x38] sm:$0xff] %vm530_vm3, %v570_v32  ;;  %v590_v37 = vsel %vm530_vm3, %v570_v32, -inf  ;;  %872 = vmatpush.bf16.msrb.mxu3 %v1168_v13  ;;  %v1216_v32 = vor.u32 %v1295_v29, %v1213_v30  ;;  %s1564_s28 = scalar_lea.vmem %s1587_s11, %s1311_s22 }
 0x159   : > { %v591_v40 = vmax.f32 %v583_v36, %v590_v37  ;;  %v1286_v36 = vld [vmem:[#allocation2 + $0x14] sm:$0xf]  ;;  %v1177_v37 = vld [vmem:[#allocation2 + $0x34] sm:$0xf0] }
 0x15b   : > { %v593_v42 = vmax.f32 %v589_v39, %v591_v40  ;;  %v1180_v39 = vor.u32 %v1286_v36, %v1177_v37  ;;  %v1255_v40 = vld [vmem:[#allocation2 + $0xa8] sm:$0xf] }
 0x15d   : > { %v594_v43 = vmax.f32 %v592_v41, %v593_v42  ;;  %v1309_v41 = vld [vmem:[#allocation2 + $0xc8] sm:$0xf0] }
 0x15e   : > { %v1256_v42 = vor.u32 %v1309_v41, %v1255_v40 }
 0x15f   : > { %v595_v44 = vrot.slane %v594_v43, 4 }
 0x161   : > { %v596_v45 = vmax.f32 %v594_v43, %v595_v44  ;;  %v1219_v43 = vld [vmem:[#allocation2 + $0x60] sm:$0xf]  ;;  %v1300_v44 = vld [vmem:[#allocation2 + $0x80] sm:$0xf0] }
 0x163   : > { %v597_v46 = vrot.slane %v596_v45, 2 }
 0x165   : > { %v598_v47 = vmax.f32 %v596_v45, %v597_v46  ;;  %v1220_v45 = vor.u32 %v1300_v44, %v1219_v43  ;;  %v1183_v46 = vld [vmem:[#allocation2 + $0x18] sm:$0xf] }
 0x167   : > { %v599_v48 = vrot.slane %v598_v47, 1 }
 0x169   : > { %v600_v49 = vmax.f32 %v598_v47, %v599_v48  ;;  %v1291_v47 = vld [vmem:[#allocation2 + $0x38] sm:$0xf0] }
 0x16a   : > { %v1184_v48 = vor.u32 %v1291_v47, %v1183_v46 }
 0x16b   : > { %v601_v50 = vpack.c.bf16 %v600_v49, %v600_v49  ;;  %v985_v49 = vlaneseq }
 0x16d   : > { %1156 = vmatmul.msk.bf16.vlgmr.msra.gmra.mxu2 %vm530_vm3, %v601_v50  ;;  %v1336_v50 = vld [vmem:[%s1584_s8 + $0x8] ss:$0 sm:$0xff]  ;;  %vm987_vm5 = vcmp.lt.s32.totalorder %v985_v49, 128 }
 0x16e   : > { %883 = vmatpush.bf16.msra.mxu2 %v1244_v5 }
 0x172   : > { %884 = vmatpush.bf16.msra.mxu2 %v1208_v12 }
 0x176   : > { %885 = vmatpush.bf16.msra.mxu2 %v1172_v16  ;;  %v824_v16 = vperm.slane %v676_v2, 6 }
 0x1f0   : > { %v639_v19 = vpop.f32.mrf.mxu2 }
 0x1f1   : > { %v640_v23 = vadd.f32 %v639_v19, %v608_v17 }
 0x1f3   : > { %644 = vst.msk [vmem:[%s418_s20] sm:$0x1] %vm643_vm4, %v640_v23  ;;  %v645_v24 = vpack.c.bf16 %v640_v23, %v640_v23 }
 0x1f5   : > { %1265 = vmatmul.msk.bf16.vlgmr.msra.gmra.mxu3 %vm530_vm3, %v645_v24  ;;  %1266 = vmatmul.msk.bf16.vlgmr.msrb.gmra.mxu2 %vm530_vm3, %v645_v24 }
 0x1f6   : > { %1272 = vmatmul.msk.bf16.vlgmr.msrb.gmra.mxu0 %vm530_vm3, %v645_v24  ;;  %1273 = vmatmul.msk.bf16.vlgmr.msrb.gmra.mxu1 %vm530_vm3, %v645_v24 }
 0x1f7   : > { %896 = vmatpush.bf16.msra.mxu3 %v1248_v25  ;;  %909 = vmatpush.bf16.msrb.mxu2 %v1252_v26 }
 0x1f8   : > { %v641_v34 = vpop.f32.mrf.mxu2 }
 0x1fb   : > { %897 = vmatpush.bf16.msra.mxu3 %v1212_v31  ;;  %910 = vmatpush.bf16.msrb.mxu2 %v1216_v32 }
 0x1ff   : > { %898 = vmatpush.bf16.msra.mxu3 %v1176_v38  ;;  %911 = vmatpush.bf16.msrb.mxu2 %v1180_v39 }
 0x205   : > { %1267 = vmatmul.msk.bf16.vlgmr.msrb.gmra.mxu3 %vm530_vm3, %v645_v24  ;;  %1268 = vmatmul.msk.bf16.vlgmr.msra.gmra.mxu2 %vm530_vm3, %v645_v24 }
 0x206   : > { %922 = vmatpush.bf16.msrb.mxu3 %v1256_v42 }
 0x20a   : > { %923 = vmatpush.bf16.msrb.mxu3 %v1220_v45 }
 0x20e   : > { %924 = vmatpush.bf16.msrb.mxu3 %v1184_v48 }
 0x215   : > { %1269 = vmatmul.msk.bf16.vlgmr.msra.gmra.mxu3 %vm530_vm3, %v645_v24  ;;  %1270 = vmatmul.msk.bf16.vlgmr.msrb.gmra.mxu2 %vm530_vm3, %v645_v24 }
 0x225   : > { %1271 = vmatmul.msk.bf16.vlgmr.msrb.gmra.mxu3 %vm530_vm3, %v645_v24 }
 0x273   : > { %v939_v51 = vpop.f32.mrf.mxu0  ;;  %v952_v52 = vpop.f32.mrf.mxu1 }
 0x274   : > { %v953_v53 = vadd.f32 %v1336_v50, %v952_v52  ;;  %v940_v17 = vadd.f32 %v939_v51, %v825_v10 }
 0x276   : > { %989 = vst.msk [vmem:[%s1564_s28 + $0x8] sm:$0x1] %vm987_vm5, %v953_v53  ;;  %v970_v26 = vrot.slane %v940_v17, 1 }
 0x278   : > { %v848_v54 = vpop.f32.mrf.mxu3  ;;  %v861_v55 = vpop.f32.mrf.mxu2 }
 0x279   : > { %v862_v13 = vadd.f32 %v861_v55, %v819_v7  ;;  %v849_v27 = vadd.f32 %v848_v54, %v818_v18 }
 0x27b   : > { %v941_v56 = vpop.f32.mrf.mxu0  ;;  %v954_v57 = vpop.f32.mrf.mxu1  ;;  %v964_v22 = vrot.slane %v862_v13, 7 }
 0x27d   : > { %v971_v30 = vsel %vm454_vm0, %v849_v27, %v964_v22 }
 0x280   : > { %v850_v58 = vpop.f32.mrf.mxu3  ;;  %v863_v59 = vpop.f32.mrf.mxu2 }
 0x288   : > { %v874_v60 = vpop.f32.mrf.mxu3  ;;  %v887_v61 = vpop.f32.mrf.mxu2 }
 0x289   : > { %v875_v11 = vadd.f32 %v874_v60, %v820_v3  ;;  %v888_v12 = vadd.f32 %v887_v61, %v821_v4 }
 0x28b   : > { %v965_v19 = vrot.slane %v875_v11, 6  ;;  %v966_v20 = vrot.slane %v888_v12, 5 }
 0x28d   : > { %v973_v28 = vsel %vm972_vm6, %v965_v19, %v966_v20 }
 0x28e   : > { %v974_v33 = vsel %vm455_vm1, %v971_v30, %v973_v28 }
 0x290   : > { %v876_v62 = vpop.f32.mrf.mxu3  ;;  %v889_v63 = vpop.f32.mrf.mxu2 }
 0x298   : > { %v900_v0 = vpop.f32.mrf.mxu3  ;;  %v913_v1 = vpop.f32.mrf.mxu2 }
 0x299   : > { %v901_v14 = vadd.f32 %v900_v0, %v822_v8  ;;  %v914_v15 = vadd.f32 %v913_v1, %v823_v9 }
 0x29b   : > { %v967_v23 = vrot.slane %v901_v14, 4  ;;  %v968_v24 = vrot.slane %v914_v15, 3 }
 0x29d   : > { %v976_v31 = vsel %vm975_vm7, %v967_v23, %v968_v24 }
 0x2a0   : > { %v902_v5 = vpop.f32.mrf.mxu3  ;;  %v915_v6 = vpop.f32.mrf.mxu2 }
 0x2a8   : > { %v926_v21 = vpop.f32.mrf.mxu3 }
 0x2a9   : > { %v927_v25 = vadd.f32 %v926_v21, %v824_v16 }
 0x2ab   : > { %v969_v29 = vrot.slane %v927_v25, 2 }
 0x2ad   : > { %v978_v32 = vsel %vm977_vm8, %v969_v29, %v970_v26 }
 0x2ae   : > { %v980_v34 = vsel %vm979_vm9, %v976_v31, %v978_v32 }
 0x2af   : > { %v982_v35 = vsel %vm981_vm10, %v974_v33, %v980_v34 }
 0x2b0   : > { %984 = vst [vmem:[%s1564_s28] sm:$0xff] %v982_v35  ;;  %v928_v36 = vpop.f32.mrf.mxu3 }
 0x2b1 PF: > { %s23_s17 = sadd.s32 1, %s1377_s17  }
 0x2b2   : > { %p20_p7 = scmp.ge.s32.totalorder %s23_s17, 4  }
 0x2b4   :  { %22 = sbr.rel (!%p20_p7) target bundleno = 1 (0x1), region = 115 }
 0x2b9   :  { %1037 = vsyncpa [#allocation3], 1 }
 0x2ba   :  { %1039 = vsyncpa [#allocation3 + $0x1], 1 }

// kernel: squeeze.3
= control target key start
LH: loop header
LB: loop body
LE: loop exit
PB: predicated region body
PF: predicated region fallthrough
CT: control target
= control target key end

     0   :  { %s122_s8 = smov 125   ;;  %s123_s9 = smov 113   ;;  %vm7_vm0 = vcmask 23552   ;;  %s208_s0 = inlined_call_operand.vmem [shape: f32[2,45], index: 0, kind: input, shape index: {}]   ;;  %s209_s1 = inlined_call_operand.vmem [shape: f32[2,15,3], index: 1, kind: output, shape index: {}]  }
   0x1   :  { %v4_v0 = vld [vmem:[%s208_s0] sm:$0x3]  ;;  %s121_s0 = smov 119   ;;  %s124_s10 = smov 116  }
   0x2   :  { %5 = vst [vmem:[#allocation0] sm:$0x3] %v4_v0  ;;  %s125_s11 = smov 122   ;;  %s126_s12 = smov 110  }
   0x3   :  { %s127_s13 = smov 104   ;;  %s128_s14 = smov 107  }
   0x4   :  { %s129_s15 = smov 101   ;;  %s130_s16 = smov 95  }
   0x5   :  { %s131_s17 = smov 98   ;;  %s132_s18 = smov 92  }
   0x6   :  { %s133_s19 = smov 86   ;;  %s134_s20 = smov 89  }
   0x9   :  { %v21_v1 = vld [vmem:[#allocation0] sm:$0x3]  }
   0xa   :  { %v9_v2 = vld [vmem:[#allocation0] sm:$0x3]   ;;  %22 = vrot.lane.b32.xlu1 %v21_v1, %s121_s0 }
   0xb   :  { %10 = vrot.lane.b32.xlu0 %v9_v2, %s122_s8  ;;  %v33_v3 = vld [vmem:[#allocation0] sm:$0x3]  }
   0xc   :  { %34 = vrot.lane.b32.xlu2 %v33_v3, %s123_s9  ;;  %v27_v4 = vld [vmem:[#allocation0] sm:$0x3]  }
   0xd   :  { %v15_v5 = vld [vmem:[#allocation0] sm:$0x3]  }
   0xe   :  { %v39_v6 = vld [vmem:[#allocation0] sm:$0x3]  }
   0xf   :  { %v51_v7 = vld [vmem:[#allocation0] sm:$0x3]  }
  0x10   :  { %v45_v8 = vld [vmem:[#allocation0] sm:$0x3]  }
  0x11   :  { %v57_v9 = vld [vmem:[#allocation0] sm:$0x3]  }
  0x12   :  { %28 = vrot.lane.b32.xlu1 %v27_v4, %s124_s10  ;;  %v69_v10 = vld [vmem:[#allocation0] sm:$0x3]  }
  0x13   :  { %16 = vrot.lane.b32.xlu0 %v15_v5, %s125_s11  ;;  %v63_v11 = vld [vmem:[#allocation0] sm:$0x3]  }
  0x14   :  { %40 = vrot.lane.b32.xlu2 %v39_v6, %s126_s12  ;;  %v75_v12 = vld [vmem:[#allocation0] sm:$0x3]  }
  0x15   :  { %v87_v13 = vld [vmem:[#allocation0] sm:$0x3]  }
  0x16   :  { %v81_v14 = vld [vmem:[#allocation0] sm:$0x3]  }
  0x17   :  { %v6_v15 = vld [vmem:[#allocation0] sm:$0x3]  }
  0x18   :  { %8 = vst.msk [vmem:[%s209_s1] ss:$16 sm:$0x3] %vm7_vm0, %v6_v15  }
  0x1a   :  { %52 = vrot.lane.b32.xlu1 %v51_v7, %s127_s13 }
  0x1b   :  { %46 = vrot.lane.b32.xlu0 %v45_v8, %s128_s14 }
  0x1c   :  { %58 = vrot.lane.b32.xlu2 %v57_v9, %s129_s15 }
  0x22   :  { %70 = vrot.lane.b32.xlu1 %v69_v10, %s130_s16 }
  0x23   :  { %64 = vrot.lane.b32.xlu0 %v63_v11, %s131_s17 }
  0x24   :  { %76 = vrot.lane.b32.xlu2 %v75_v12, %s132_s18 }
  0x2a   :  { %88 = vrot.lane.b32.xlu1 %v87_v13, %s133_s19 }
  0x2b   :  { %82 = vrot.lane.b32.xlu0 %v81_v14, %s134_s20 }
  0x66   :  { %v35_v16 = vpop.permute.xlu2 %34  }
  0x67   :  { %97 = vst.msk [vmem:[%s209_s1 + $0x5] ss:$16 sm:$0x3] %vm7_vm0, %v35_v16  }
  0x6e   :  { %v41_v17 = vpop.permute.xlu2 %40  }
  0x6f   :  { %98 = vst.msk [vmem:[%s209_s1 + $0x6] ss:$16 sm:$0x3] %vm7_vm0, %v41_v17  }
  0x76   :  { %v59_v18 = vpop.permute.xlu2 %58  }
  0x77   :  { %101 = vst.msk [vmem:[%s209_s1 + $0x9] ss:$16 sm:$0x3] %vm7_vm0, %v59_v18  }
  0x7c   :  { %v23_v19 = vpop.permute.xlu1 %22  }
  0x7d   :  { %v11_v20 = vpop.permute.xlu0 %10   ;;  %95 = vst.msk [vmem:[%s209_s1 + $0x3] ss:$16 sm:$0x3] %vm7_vm0, %v23_v19  }
  0x7e   :  { %93 = vst.msk [vmem:[%s209_s1 + $0x1] ss:$16 sm:$0x3] %vm7_vm0, %v11_v20   ;;  %v77_v21 = vpop.permute.xlu2 %76  }
  0x7f   :  { %104 = vst.msk [vmem:[%s209_s1 + $0xc] ss:$16 sm:$0x3] %vm7_vm0, %v77_v21  }
  0x84   :  { %v29_v22 = vpop.permute.xlu1 %28  }
  0x85   :  { %v17_v23 = vpop.permute.xlu0 %16   ;;  %96 = vst.msk [vmem:[%s209_s1 + $0x4] ss:$16 sm:$0x3] %vm7_vm0, %v29_v22  }
  0x86   :  { %94 = vst.msk [vmem:[%s209_s1 + $0x2] ss:$16 sm:$0x3] %vm7_vm0, %v17_v23  }
  0x8c   :  { %v53_v24 = vpop.permute.xlu1 %52  }
  0x8d   :  { %v47_v25 = vpop.permute.xlu0 %46   ;;  %100 = vst.msk [vmem:[%s209_s1 + $0x8] ss:$16 sm:$0x3] %vm7_vm0, %v53_v24  }
  0x8e   :  { %99 = vst.msk [vmem:[%s209_s1 + $0x7] ss:$16 sm:$0x3] %vm7_vm0, %v47_v25  }
  0x94   :  { %v71_v26 = vpop.permute.xlu1 %70  }
  0x95   :  { %v65_v27 = vpop.permute.xlu0 %64   ;;  %103 = vst.msk [vmem:[%s209_s1 + $0xb] ss:$16 sm:$0x3] %vm7_vm0, %v71_v26  }
  0x96   :  { %102 = vst.msk [vmem:[%s209_s1 + $0xa] ss:$16 sm:$0x3] %vm7_vm0, %v65_v27  }
  0x9c   :  { %v89_v28 = vpop.permute.xlu1 %88  }
  0x9d   :  { %v83_v29 = vpop.permute.xlu0 %82   ;;  %106 = vst.msk [vmem:[%s209_s1 + $0xe] ss:$16 sm:$0x3] %vm7_vm0, %v89_v28  }
  0x9e   :  { %105 = vst.msk [vmem:[%s209_s1 + $0xd] ss:$16 sm:$0x3] %vm7_vm0, %v83_v29  }

// kernel: lidar_hmr_forward.3
= control target key start
LH: loop header
LB: loop body
LE: loop exit
PB: predicated region body
PF: predicated region fallthrough
CT: control target
= control target key end

     0   :  { %s7464_s6 = smov 1   ;;  %s7465_s10 = smov 2   ;;  %s9593_s0 = inlined_call_operand.smem [shape: u32[32], index: -1, kind: input, shape index: {}] }
   0x1   :  { %s7505_s5 = sld [smem:[%s9593_s0]]   ;;  %s7466_s14 = smov 3  }
   0x2   :  { %s7510_s9 = sld [smem:[%s9593_s0 + %s7464_s6]]   ;;  %s7467_s18 = smov 4  }
   0x3   :  { %s7515_s13 = sld [smem:[%s9593_s0 + %s7465_s10]]   ;;  %s7468_s22 = smov 5  }
   0x4   :  { %s7520_s17 = sld [smem:[%s9593_s0 + %s7466_s14]]   ;;  %s7469_s26 = smov 6  }
   0x5   :  { %s7525_s21 = sld [smem:[%s9593_s0 + %s7467_s18]]   ;;  %s7470_s30 = smov 7  }
   0x6   :  { %s7530_s25 = sld [smem:[%s9593_s0 + %s7468_s22]]   ;;  %s7471_s4 = smov 8  }
   0x7   :  { %9618 = sst [smem:[#allocation5_spill]] %s7505_s5  ;;  %s7472_s10 = smov 9  }
   0x8   :  { %9619 = sst [smem:[#allocation6_spill]] %s7510_s9  ;;  %s7473_s15 = smov 10  }
   0x9   :  { %9620 = sst [smem:[#allocation7_spill]] %s7515_s13  ;;  %s7474_s20 = smov 11  }
   0xa   :  { %s7535_s29 = sld [smem:[%s9593_s0 + %s7469_s26]]   ;;  %s7475_s26 = smov 12  }
   0xb   :  { %s7540_s3 = sld [smem:[%s9593_s0 + %s7470_s30]]   ;;  %s7476_s1 = smov 13  }
   0xc   :  { %s7545_s8 = sld [smem:[%s9593_s0 + %s7471_s4]]   ;;  %s7477_s7 = smov 14  }
   0xd   :  { %s7550_s14 = sld [smem:[%s9593_s0 + %s7472_s10]]   ;;  %s7479_s22 = smov 16  }
   0xe   :  { %s7555_s19 = sld [smem:[%s9593_s0 + %s7473_s15]]   ;;  %s7478_s15 = smov 15  }
   0xf   :  { %s7560_s24 = sld [smem:[%s9593_s0 + %s7474_s20]]   ;;  %s7480_s28 = smov 17  }
  0x10   :  { %s7565_s30 = sld [smem:[%s9593_s0 + %s7475_s26]]  }
  0x11   :  { %9621 = sst [smem:[#allocation8_spill]] %s7540_s3 }
  0x12   :  { %9622 = sst [smem:[#allocation9_spill]] %s7545_s8 }
  0x13   :  { %s7570_s6 = sld [smem:[%s9593_s0 + %s7476_s1]]  }
  0x14   :  { %s7575_s12 = sld [smem:[%s9593_s0 + %s7477_s7]]   ;;  %s7481_s7 = smov 18  }
  0x15   :  { %s7580_s20 = sld [smem:[%s9593_s0 + %s7478_s15]]   ;;  %s7482_s15 = smov 19  }
  0x16   :  { %9623 = sst [smem:[#allocation10_spill]] %s7565_s30 }
  0x17   :  { %s7585_s27 = sld [smem:[%s9593_s0 + %s7479_s22]]   ;;  %s7483_s22 = smov 20  }
  0x18   :  { %s7590_s4 = sld [smem:[%s9593_s0 + %s7480_s28]]   ;;  %s7484_s28 = smov 21  }
  0x19   :  { %9624 = sst [smem:[#allocation11_spill]] %s7570_s6 }
  0x1a   :  { %9625 = sst [smem:[#allocation12_spill]] %s7575_s12 }
  0x1b   :  { %9626 = sst [smem:[#allocation13_spill]] %s7580_s20 }
  0x1c   :  { %s7595_s12 = sld [smem:[%s9593_s0 + %s7481_s7]]   ;;  %s7485_s7 = smov 22  }
  0x1d   :  { %9627 = sst [smem:[#allocation14_spill]] %s7585_s27 }
  0x1e   :  { %9628 = sst [smem:[#allocation15_spill]] %s7590_s4 }
  0x1f   :  { %s7600_s20 = sld [smem:[%s9593_s0 + %s7482_s15]]   ;;  %s7486_s15 = smov 23  }
  0x20   :  { %s7605_s27 = sld [smem:[%s9593_s0 + %s7483_s22]]   ;;  %s7487_s22 = smov 24  }
  0x21   :  { %s7610_s4 = sld [smem:[%s9593_s0 + %s7484_s28]]   ;;  %s7488_s28 = smov 25  }
  0x22   :  { %9629 = sst [smem:[#allocation16_spill]] %s7595_s12 }
  0x23   :  { %s7615_s12 = sld [smem:[%s9593_s0 + %s7485_s7]]   ;;  %s7489_s7 = smov 26  }
  0x25   :  { %9630 = sst [smem:[#allocation17_spill]] %s7600_s20 }
  0x26   :  { %9631 = sst [smem:[#allocation18_spill]] %s7605_s27 }
  0x27   :  { %9632 = sst [smem:[#allocation19_spill]] %s7610_s4 }
  0x28   :  { %s7620_s20 = sld [smem:[%s9593_s0 + %s7486_s15]]   ;;  %s7490_s15 = smov 27  }
  0x29   :  { %9633 = sst [smem:[#allocation20_spill]] %s7615_s12 }
  0x2a   :  { %s7625_s27 = sld [smem:[%s9593_s0 + %s7487_s22]]   ;;  %s7491_s22 = smov 28  }
  0x2b   :  { %s7630_s4 = sld [smem:[%s9593_s0 + %s7488_s28]]   ;;  %s7492_s28 = smov 29  }
  0x2c   :  { %s7635_s12 = sld [smem:[%s9593_s0 + %s7489_s7]]   ;;  %s7493_s7 = smov 30  }
  0x2d   :  { %s7640_s30 = sld [smem:[%s9593_s0 + %s7490_s15]]   ;;  %s7494_s15 = smov 31  }
  0x2e   :  { %s7645_s6 = sld [smem:[%s9593_s0 + %s7491_s22]]  }
  0x31   :  { %9634 = sst [smem:[#allocation21_spill]] %s7630_s4 }
  0x32   :  { %9635 = sst [smem:[#allocation22_spill]] %s7635_s12 }
  0x33   :  { %9636 = sst [smem:[#allocation23_spill]] %s7640_s30 }
  0x34   :  { %9637 = sst [smem:[#allocation24_spill]] %s7645_s6 }
  0x35   :  { %s7650_s4 = sld [smem:[%s9593_s0 + %s7492_s28]]  }
  0x36   :  { %s7655_s12 = sld [smem:[%s9593_s0 + %s7493_s7]]  }
  0x37   :  { %s7660_s30 = sld [smem:[%s9593_s0 + %s7494_s15]]  }
  0x38   :  { %69 = vsyncpa [#allocation3], 0 }
  0x39   :  { %71 = vsyncpa [#allocation3 + $0x1], 0  ;;  %s7662_s22 = smov 0   ;;  %s7664_s23 = smov 0  }
  0x3a   :  { %s7666_s26 = smov 0   ;;  %s7668_s28 = smov 0  }
  0x3b LB: > { %s9638_s13 = sld [smem:[#allocation7_spill]]  ;;  %s7683_s0 = sadd.s32 4294967295, %s7462_s28   ;;  %s7462_s28 = sphi %s7668_s28, %s9665_s28   ;;  %s7458_s26 = sphi %s7666_s26, %s9664_s26   ;;  %s7454_s23 = sphi %s7664_s23, %s9663_s23   ;;  %s7450_s22 = sphi %s7662_s22, %s9662_s22  }
  0x3c   : > { %s9639_s9 = sld [smem:[#allocation6_spill]]  ;;  %s6195_s1 = sadd.s32 4294967294, %s7462_s28  }
  0x3d   : > { %s9640_s8 = sld [smem:[#allocation9_spill]]  ;;  %s7687_s2 = sadd.s32 1, %s7462_s28  }
  0x3e   : > { %s9641_s3 = sld [smem:[#allocation8_spill]]  ;;  %s728_s7 = sadd.s32 1, %s7458_s26 }
  0x3f   : > { %s725_s10 = ssub.s32 %s7462_s28, %s7687_s2  ;;  %p738_p0 = scmp.ne.s32.totalorder %s7458_s26, %s7454_s23 }
  0x40   : > { %p726_p1 = scmp.eq.s32.totalorder %s725_s10, 0  ;;  %p739_p2 = scmp.eq.s32.totalorder %s7683_s0, 1 }
  0x41   : > { %p744_p3 = scmp.ne.s32.totalorder %s7454_s23, %s7450_s22  ;;  %p745_p4 = scmp.eq.s32.totalorder %s6195_s1, 1 }
  0x42   : > { %s7698_s11 = scalar_select %p726_p1, %s7458_s26, %s728_s7  }
  0x43   : > { %p7700_p5 = por %p739_p2, %p738_p0  ;;  %p7704_p6 = por %p745_p4, %p744_p3 }
  0x44   : > { %p6198_p7 = scmp.ge.s32.totalorder %s7462_s28, 1  ;;  %p889_p8 = scmp.lt.s32.totalorder %s7462_s28, 3 }
  0x46   : > { %p890_p9 = pnand %p6198_p7, %p889_p8 }
  0x47   : > { %s9644_s5 = sld [smem:[#allocation5_spill]] (!%p890_p9)  ;;  %p1005_p10 = scmp.lt.s32.totalorder (!%p890_p9), %s7683_s0, 1 }
  0x48   : > { %893 = sbr.rel (%p890_p9) target bundleno = 5013 (0x1395), region = 112  ;;  %s9651_s6 = sld [smem:[#allocation24_spill]] (!%p890_p9) }
  0x4d   : > { %s7712_s18 = scalar_select %p1005_p10, %s7683_s0, 1  ;;  %vm1071_vm0 = vcmask 1043456   ;;  %v7730_v6 = vld [vmem:[%s9639_s9] sm:$0xff]  ;;  %vm1064_vm1 = vcmask 195584   ;;  %v1053_v7 = vld [vmem:[%s9639_s9 + $0x8] sm:$0xf] }
  0x4e   : > { %v1061_v8 = vunpack.c.l.b16 %v1053_v7  ;;  %v7067_v10 = vld [vmem:[%s7535_s29 + $0x10] sm:$0xff]  ;;  %v7066_v11 = vld [vmem:[%s7535_s29 + $0x8] sm:$0xff]  ;;  %v7065_v12 = vld [vmem:[%s7535_s29] sm:$0xff]  ;;  %vm1123_vm2 = vcmask 392192   ;;  %vm1225_vm3 = vcmask 785408   ;;  %vm1497_vm4 = vcmask 23552  }
  0x4f   : > { %s7209_s1 = smul.u32 24, %s7712_s18  ;;  %1135 = vmatpush.bf16.msra.mxu1 %v7067_v10  ;;  %v7073_v19 = vld [vmem:[%s9640_s8 + $0x28] sm:$0xff]  ;;  %v7072_v20 = vld [vmem:[%s9640_s8 + $0x20] sm:$0xff]  ;;  %v7071_v21 = vld [vmem:[%s9640_s8 + $0x18] sm:$0xff]  ;;  %vm4302_vm5 = vcmask 523264   ;;  %vm5840_vm7 = vcmask 16384  }
  0x50   : > { %v7735_v9 = vpack.c.b16 %v1061_v8, %v1061_v8  ;;  %1234 = vmatpush.bf16.msra.mxu2 %v7073_v19  ;;  %v7070_v22 = vld [vmem:[%s9640_s8 + $0x10] sm:$0xff]  ;;  %v7069_v23 = vld [vmem:[%s9640_s8 + $0x8] sm:$0xff]  ;;  %v7290_v24 = vld [vmem:[%s9641_s3] ss:$0 sm:$0xff]  ;;  %vm5140_vm8 = vcmask 22528   ;;  %vm5494_vm9 = vcmask 1041408  }
  0x51   : > { %s1009_s7 = scalar_lea.vmem %s9644_s5, %s7209_s1  ;;  %v7068_v25 = vld [vmem:[%s9640_s8] sm:$0xff]  ;;  %s1014_s10 = scalar_lea.vmem %s7620_s20, %s7209_s1  ;;  %vm5186_vm14 = vcmask 80896  }
  0x52   : > { %v7718_v0 = vld [vmem:[%s1009_s7 + $0x10] sm:$0xff]  ;;  %v7722_v2 = vld [vmem:[%s1009_s7] sm:$0xff]  ;;  %v7724_v3 = vld [vmem:[%s1009_s7 + $0x8] sm:$0xff]  ;;  %s7210_s1 = smul.u32 48, %s7712_s18 }
  0x53   : > { %v1055_v1 = vpack.c.bf16 %v7718_v0, %v7718_v0  ;;  %v1054_v5 = vpack.c.bf16 %v7724_v3, %v7722_v2  ;;  %1136 = vmatpush.bf16.msra.mxu1 %v7066_v11  ;;  %s7211_s5 = smul.u32 96, %s7712_s18 }
  0x54   : > { %1235 = vmatpush.bf16.msra.mxu2 %v7072_v20  ;;  %s1019_s7 = scalar_lea.vmem %s7625_s27, %s7210_s1  ;;  %s9646_s1 = sld [smem:[#allocation10_spill]] }
  0x55   : > { %v1073_v4 = vsel %vm1071_vm0, %v1055_v1, 0 }
  0x56   : > { %1081 = vmatpush.bf16.msra.mxu0 %v1073_v4  ;;  %v7291_v4 = vld [vmem:[%s7550_s14] ss:$0 sm:$0xff] }
  0x57   : > { %1137 = vmatpush.bf16.msra.mxu1 %v7065_v12 }
  0x58   : > { %1236 = vmatpush.bf16.msra.mxu2 %v7071_v21  ;;  %v7082_v21 = vld [vmem:[%s9640_s8 + $0x58] sm:$0xff] }
  0x5a   : > { %1082 = vmatpush.bf16.msra.mxu0 %v1054_v5 }
  0x5c   : > { %1237 = vmatpush.bf16.msra.mxu2 %v7070_v22  ;;  %v7081_v22 = vld [vmem:[%s9640_s8 + $0x50] sm:$0xff] }
  0x5d   : > { %6210 = vmatmul.msk.bf16.vlgmr.msra.gmra.mxu0 %vm1064_vm1, %v7730_v6 }
  0x60   : > { %1238 = vmatpush.bf16.msra.mxu2 %v7069_v23  ;;  %v7080_v23 = vld [vmem:[%s9640_s8 + $0x48] sm:$0xff] }
  0x64   : > { %1239 = vmatpush.bf16.msra.mxu2 %v7068_v25  ;;  %v7078_v25 = vld [vmem:[%s9640_s8 + $0x38] sm:$0xff] }
  0x6d   : > { %6211 = vmatmul.msk.bf16.gmra.mxu0 %vm1064_vm1, %v7735_v9 }
  0xda   : > { %v1084_v13 = vpop.f32.mrf.mxu0 }
  0xe2   : > { %v1086_v14 = vpop.f32.mrf.mxu0 }
  0xe3   : > { %v1093_v15 = vpack.c.bf16 %v1086_v14, %v1084_v13 }
  0xe5   : > { %6224 = vmatmul.msk.bf16.vlgmr.msra.gmra.mxu1 %vm1123_vm2, %v1093_v15 }
  0xea   : > { %v1089_v16 = vpop.f32.mrf.mxu0 }
  0xeb   : > { %v1094_v17 = vpack.c.bf16 %v1089_v16, %v1089_v16  ;;  %v7074_v16 = vld [vmem:[%s7535_s29 + $0x18] sm:$0xff] }
  0xf2   : > { %v1091_v18 = vpop.f32.mrf.mxu0 }
  0xf5   : > { %6225 = vmatmul.msk.bf16.gmra.mxu1 %vm1123_vm2, %v1094_v17 }
 0x162   : > { %v1139_v26 = vpop.f32.mrf.mxu1 }
 0x163   : > { %v1140_v27 = vadd.f32 %v7290_v24, %v1139_v26  ;;  %v7292_v26 = vld [vmem:[%s9641_s3 + $0x1] ss:$0 sm:$0xff] }
 0x165   : > { %v1148_v28 = vmul.f32 %v1140_v27, %v1140_v27 }
 0x167   : > { %v1151_v29 = vmul.f32 %v1148_v28, %v1140_v27 }
 0x169   : > { %v1154_v30 = vmul.f32 0.044715, %v1151_v29 }
 0x16a   : > { %v1141_v31 = vpop.f32.mrf.mxu1 }
 0x16b   : > { %v1157_v32 = vadd.f32 %v1154_v30, %v1140_v27  ;;  %v1142_v33 = vadd.f32 %v7290_v24, %v1141_v31 }
 0x16d   : > { %v1160_v34 = vmul.f32 0.7978846, %v1157_v32  ;;  %v1149_v35 = vmul.f32 %v1142_v33, %v1142_v33 }
 0x16f   : > { %v1152_v36 = vmul.f32 %v1149_v35, %v1142_v33  ;;  %7307 = vtanh.f32 %v1160_v34 }
 0x171   : > { %v1155_v37 = vmul.f32 0.044715, %v1152_v36 }
 0x172   : > { %v1144_v38 = vpop.f32.mrf.mxu1 }
 0x173   : > { %v1158_v39 = vadd.f32 %v1155_v37, %v1142_v33  ;;  %v1145_v40 = vadd.f32 %v7290_v24, %v1144_v38  ;;  %v7079_v24 = vld [vmem:[%s9640_s8 + $0x40] sm:$0xff] }
 0x175   : > { %v1161_v41 = vmul.f32 0.7978846, %v1158_v39  ;;  %v1150_v42 = vmul.f32 %v1145_v40, %v1145_v40  ;;  %v7308_v43 = vpop.eup %7307 }
 0x176   : > { %v1166_v47 = vadd.f32 1.0, %v7308_v43 }
 0x177   : > { %7309 = vtanh.f32 %v1161_v41  ;;  %v1153_v44 = vmul.f32 %v1150_v42, %v1145_v40 }
 0x178   : > { %v1169_v52 = vmul.f32 0.5, %v1166_v47 }
 0x179   : > { %v1156_v45 = vmul.f32 0.044715, %v1153_v44 }
 0x17a   : > { %v1146_v46 = vpop.f32.mrf.mxu1  ;;  %v1172_v54 = vmul.f32 %v1169_v52, %v1140_v27  ;;  %v7077_v27 = vld [vmem:[%s9640_s8 + $0x30] sm:$0xff] }
 0x17b   : > { %v1159_v48 = vadd.f32 %v1156_v45, %v1145_v40  ;;  %v7785_v45 = vld [vmem:[%s7555_s19 + $0x28] sm:$0xff]  ;;  %v7788_v46 = vld [vmem:[%s7555_s19 + $0x20] sm:$0xff] }
 0x17c   : > { %1481 = vmatpush.msrb.mxu1 %v7785_v45 }
 0x17d   : > { %v7310_v49 = vpop.eup %7309  ;;  %v1162_v50 = vmul.f32 0.7978846, %v1159_v48 }
 0x17e   : > { %v1167_v51 = vadd.f32 1.0, %v7310_v49  ;;  %v7792_v49 = vld [vmem:[%s7555_s19 + $0x18] sm:$0xff]  ;;  %1482 = vmatpush.msrb.mxu1 %v7788_v46 }
 0x17f   : > { %7311 = vtanh.f32 %v1162_v50 }
 0x180   : > { %v1170_v53 = vmul.f32 0.5, %v1167_v51  ;;  %1483 = vmatpush.msrb.mxu1 %v7792_v49 }
 0x182   : > { %v1173_v55 = vmul.f32 %v1170_v53, %v1142_v33 }
 0x184   : > { %v1175_v56 = vpack.c.bf16 %v1173_v55, %v1172_v54 }
 0x185   : > { %v7312_v57 = vpop.eup %7311 }
 0x186   : > { %6250 = vmatmul.msk.bf16.vlgmr.msra.gmra.mxu2 %vm1225_vm3, %v1175_v56  ;;  %v1168_v58 = vadd.f32 1.0, %v7312_v57 }
 0x188   : > { %v1171_v59 = vmul.f32 0.5, %v1168_v58 }
 0x18a   : > { %v1174_v60 = vmul.f32 %v1171_v59, %v1145_v40 }
 0x18c   : > { %v1176_v61 = vpack.c.bf16 %v1174_v60, %v1174_v60 }
 0x196   : > { %6251 = vmatmul.msk.bf16.gmra.mxu2 %vm1225_vm3, %v1176_v61 }
 0x209   : > { %v1241_v62 = vpop.f32.mrf.mxu2 }
 0x20a   : > { %v1250_v10 = vadd.f32 %v1241_v62, %v7722_v2  ;;  %v7076_v2 = vld [vmem:[%s7535_s29 + $0x28] sm:$0xff] }
 0x20b   : > { %1326 = vmatpush.bf16.msrb.mxu0 %v7076_v2 }
 0x20c   : > { %v7764_v14 = vadd.f32 %v7291_v4, %v1250_v10  ;;  %v7803_v10 = vld [vmem:[%s7555_s19 + $0x8] sm:$0xff] }
 0x211   : > { %v1243_v63 = vpop.f32.mrf.mxu2 }
 0x212   : > { %v1251_v7 = vadd.f32 %v1243_v63, %v7724_v3  ;;  %v7075_v3 = vld [vmem:[%s7535_s29 + $0x20] sm:$0xff] }
 0x213   : > { %1327 = vmatpush.bf16.msrb.mxu0 %v7075_v3 }
 0x214   : > { %v7761_v12 = vadd.f32 %v7291_v4, %v1251_v7  ;;  %v7799_v7 = vld [vmem:[%s7555_s19 + $0x10] sm:$0xff] }
 0x215   : > { %1484 = vmatpush.msrb.mxu1 %v7799_v7 }
 0x217   : > { %1328 = vmatpush.bf16.msrb.mxu0 %v7074_v16  ;;  %1485 = vmatpush.msrb.mxu1 %v7803_v10 }
 0x219   : > { %v1246_v1 = vpop.f32.mrf.mxu2 }
 0x21a   : > { %v1252_v5 = vadd.f32 %v1246_v1, %v7718_v0  ;;  %v1260_v0 = vpack.c.bf16 %v7761_v12, %v7764_v14 }
 0x21c   : > { %v7756_v8 = vadd.f32 %v7291_v4, %v1252_v5 }
 0x21e   : > { %v1261_v11 = vpack.c.bf16 %v7756_v8, %v7756_v8 }
 0x220   : > { %v1263_v13 = vsel %vm1071_vm0, %v1261_v11, 0  ;;  %v7807_v11 = vld [vmem:[%s7555_s19] sm:$0xff] }
 0x221   : > { %v1248_v15 = vpop.f32.mrf.mxu2  ;;  %1271 = vmatpush.bf16.msra.mxu3 %v1263_v13  ;;  %1486 = vmatpush.msrb.mxu1 %v7807_v11  ;;  %v7293_v13 = vld [vmem:[%s7550_s14 + $0x1] ss:$0 sm:$0xff] }
 0x225   : > { %1272 = vmatpush.bf16.msra.mxu3 %v1260_v0 }
 0x228   : > { %6252 = vmatmul.msk.bf16.vlgmr.msra.gmra.mxu3 %vm1064_vm1, %v7730_v6 }
 0x229   : > { %1425 = vmatpush.bf16.msrb.mxu3 %v7082_v21 }
 0x22d   : > { %1426 = vmatpush.bf16.msrb.mxu3 %v7081_v22  ;;  %v7084_v22 = vld [vmem:[%s7525_s21 + $0x8] sm:$0xff] }
 0x231   : > { %1427 = vmatpush.bf16.msrb.mxu3 %v7080_v23  ;;  %v7085_v23 = vld [vmem:[%s7525_s21 + $0x10] sm:$0xff] }
 0x235   : > { %1428 = vmatpush.bf16.msrb.mxu3 %v7079_v24 }
 0x238   : > { %6253 = vmatmul.msk.bf16.gmra.mxu3 %vm1064_vm1, %v7735_v9 }
 0x239   : > { %1429 = vmatpush.bf16.msrb.mxu3 %v7078_v25 }
 0x23d   : > { %1430 = vmatpush.bf16.msrb.mxu3 %v7077_v27 }
 0x2ab   : > { %v1274_v17 = vpop.f32.mrf.mxu3 }
 0x2b3   : > { %v1276_v18 = vpop.f32.mrf.mxu3 }
 0x2b4   : > { %v1283_v19 = vpack.c.bf16 %v1276_v18, %v1274_v17 }
 0x2b6   : > { %6273 = vmatmul.msk.bf16.vlgmr.msrb.gmra.mxu0 %vm1123_vm2, %v1283_v19 }
 0x2bb   : > { %v1279_v6 = vpop.f32.mrf.mxu3 }
 0x2bc   : > { %v1284_v20 = vpack.c.bf16 %v1279_v6, %v1279_v6 }
 0x2c3   : > { %v1281_v9 = vpop.f32.mrf.mxu3 }
 0x2c6   : > { %6274 = vmatmul.msk.bf16.gmra.mxu0 %vm1123_vm2, %v1284_v20 }
 0x333   : > { %v1330_v28 = vpop.f32.mrf.mxu0 }
 0x334   : > { %v1331_v29 = vadd.f32 %v7292_v26, %v1330_v28 }
 0x336   : > { %v1339_v30 = vmul.f32 %v1331_v29, %v1331_v29 }
 0x338   : > { %v1342_v31 = vmul.f32 %v1339_v30, %v1331_v29 }
 0x33a   : > { %v1345_v32 = vmul.f32 0.044715, %v1342_v31 }
 0x33b   : > { %v1332_v33 = vpop.f32.mrf.mxu0 }
 0x33c   : > { %v1348_v34 = vadd.f32 %v1345_v32, %v1331_v29  ;;  %v1333_v35 = vadd.f32 %v7292_v26, %v1332_v33 }
 0x33e   : > { %v1351_v36 = vmul.f32 0.7978846, %v1348_v34  ;;  %v1340_v37 = vmul.f32 %v1333_v35, %v1333_v35 }
 0x340   : > { %v1343_v38 = vmul.f32 %v1340_v37, %v1333_v35  ;;  %7313 = vtanh.f32 %v1351_v36 }
 0x342   : > { %v1346_v39 = vmul.f32 0.044715, %v1343_v38 }
 0x343   : > { %v1335_v40 = vpop.f32.mrf.mxu0 }
 0x344   : > { %v1349_v41 = vadd.f32 %v1346_v39, %v1333_v35  ;;  %v1336_v42 = vadd.f32 %v7292_v26, %v1335_v40  ;;  %v7850_v39 = vld [vmem:[%s9638_s13] sm:$0xff]  ;;  %v7855_v40 = vld [vmem:[%s9638_s13 + $0x8] sm:$0xff] }
 0x346   : > { %v1352_v43 = vmul.f32 0.7978846, %v1349_v41  ;;  %v1341_v44 = vmul.f32 %v1336_v42, %v1336_v42  ;;  %v7314_v47 = vpop.eup %7313  ;;  %v7860_v41 = vld [vmem:[%s9638_s13 + $0x10] sm:$0xff] }
 0x347   : > { %v1357_v51 = vadd.f32 1.0, %v7314_v47 }
 0x348   : > { %7315 = vtanh.f32 %v1352_v43  ;;  %v1344_v48 = vmul.f32 %v1341_v44, %v1336_v42  ;;  %v7090_v43 = vld [vmem:[%s7535_s29 + $0x38] sm:$0xff]  ;;  %v7089_v44 = vld [vmem:[%s7535_s29 + $0x30] sm:$0xff] }
 0x349   : > { %v1360_v56 = vmul.f32 0.5, %v1357_v51 }
 0x34a   : > { %v1347_v50 = vmul.f32 0.044715, %v1344_v48 }
 0x34b   : > { %v1337_v52 = vpop.f32.mrf.mxu0  ;;  %v1363_v59 = vmul.f32 %v1360_v56, %v1331_v29 }
 0x34c   : > { %v1350_v53 = vadd.f32 %v1347_v50, %v1336_v42 }
 0x34e   : > { %v7316_v54 = vpop.eup %7315  ;;  %v1353_v55 = vmul.f32 0.7978846, %v1350_v53 }
 0x34f   : > { %v1358_v57 = vadd.f32 1.0, %v7316_v54 }
 0x350   : > { %7317 = vtanh.f32 %v1353_v55 }
 0x351   : > { %v1361_v58 = vmul.f32 0.5, %v1358_v57  ;;  %v7097_v57 = vld [vmem:[%s9640_s8 + $0x88] sm:$0xff] }
 0x352   : > { %1800 = vmatpush.bf16.msra.mxu3 %v7097_v57 }
 0x353   : > { %v1364_v60 = vmul.f32 %v1361_v58, %v1333_v35  ;;  %v7096_v58 = vld [vmem:[%s9640_s8 + $0x80] sm:$0xff] }
 0x355   : > { %v1366_v61 = vpack.c.bf16 %v1364_v60, %v1363_v59  ;;  %v7095_v59 = vld [vmem:[%s9640_s8 + $0x78] sm:$0xff]  ;;  %v7094_v60 = vld [vmem:[%s9640_s8 + $0x70] sm:$0xff] }
 0x356   : > { %v7318_v62 = vpop.eup %7317  ;;  %1801 = vmatpush.bf16.msra.mxu3 %v7096_v58 }
 0x357   : > { %6311 = vmatmul.msk.bf16.vlgmr.msrb.gmra.mxu3 %vm1225_vm3, %v1366_v61  ;;  %v1359_v63 = vadd.f32 1.0, %v7318_v62  ;;  %v7093_v61 = vld [vmem:[%s9640_s8 + $0x68] sm:$0xff]  ;;  %v7295_v62 = vld [vmem:[%s9641_s3 + $0x2] ss:$0 sm:$0xff] }
 0x359   : > { %v1362_v1 = vmul.f32 0.5, %v1359_v63  ;;  %v7092_v63 = vld [vmem:[%s9640_s8 + $0x60] sm:$0xff] }
 0x35a   : > { %1802 = vmatpush.bf16.msra.mxu3 %v7095_v59 }
 0x35b   : > { %v1365_v4 = vmul.f32 %v1362_v1, %v1336_v42  ;;  %v7091_v42 = vld [vmem:[%s7535_s29 + $0x40] sm:$0xff] }
 0x35c   : > { %1664 = vmatpush.bf16.msra.mxu0 %v7091_v42 }
 0x35d   : > { %v1367_v5 = vpack.c.bf16 %v1365_v4, %v1365_v4 }
 0x35e   : > { %1803 = vmatpush.bf16.msra.mxu3 %v7094_v60 }
 0x360   : > { %1665 = vmatpush.bf16.msra.mxu0 %v7090_v43 }
 0x362   : > { %1804 = vmatpush.bf16.msra.mxu3 %v7093_v61 }
 0x364   : > { %1666 = vmatpush.bf16.msra.mxu0 %v7089_v44 }
 0x366   : > { %1805 = vmatpush.bf16.msra.mxu3 %v7092_v63 }
 0x367   : > { %6312 = vmatmul.msk.bf16.gmra.mxu3 %vm1225_vm3, %v1367_v5 }
 0x36a   : > { %2126 = vmatpush.msrb.mxu3 %v7785_v45 }
 0x36c   : > { %2127 = vmatpush.msrb.mxu3 %v7788_v46 }
 0x36e   : > { %2128 = vmatpush.msrb.mxu3 %v7792_v49 }
 0x370   : > { %2129 = vmatpush.msrb.mxu3 %v7799_v7 }
 0x372   : > { %2130 = vmatpush.msrb.mxu3 %v7803_v10 }
 0x374   : > { %2131 = vmatpush.msrb.mxu3 %v7807_v11 }
 0x3da   : > { %v1432_v15 = vpop.f32.mrf.mxu3 }
 0x3db   : > { %v1441_v0 = vadd.f32 %v1432_v15, %v7764_v14 }
 0x3dd   : > { %v1449_v2 = vadd.f32 %v7293_v13, %v1441_v0 }
 0x3df   : > { %6314 = vmatmul.msk.f32.vlgmr.msrb.gmra.mxu1 %vm1123_vm2, %v1449_v2 }
 0x3e2   : > { %v1434_v3 = vpop.f32.mrf.mxu3 }
 0x3e3   : > { %v1442_v16 = vadd.f32 %v1434_v3, %v7761_v12  ;;  %v7083_v12 = vld [vmem:[%s7525_s21] sm:$0xff] }
 0x3e5   : > { %v1450_v17 = vadd.f32 %v7293_v13, %v1442_v16 }
 0x3e7   : > { %6315 = vmatmul.msk.f32.gmra.mxu1 %vm1123_vm2, %v1450_v17  ;;  %v1507_v21 = vpack.c.bf16 %v1450_v17, %v1449_v2 }
 0x3ea   : > { %v1437_v18 = vpop.f32.mrf.mxu3 }
 0x3eb   : > { %v1443_v19 = vadd.f32 %v1437_v18, %v7756_v8  ;;  %v7294_v8 = vld [vmem:[%s7560_s24] ss:$0 sm:$0xff] }
 0x3ed   : > { %v1451_v6 = vadd.f32 %v7293_v13, %v1443_v19 }
 0x3ef   : > { %6316 = vmatmul.msk.f32.gmra.mxu1 %vm1123_vm2, %v1451_v6  ;;  %v1508_v14 = vpack.c.bf16 %v1451_v6, %v1451_v6 }
 0x3f1   : > { %v1534_v20 = vsel %vm1071_vm0, %v1508_v14, 0 }
 0x3f2   : > { %v1439_v9 = vpop.f32.mrf.mxu3  ;;  %1542 = vmatpush.bf16.msrb.mxu2 %v1534_v20 }
 0x3f6   : > { %1543 = vmatpush.bf16.msrb.mxu2 %v1507_v21 }
 0x3f9   : > { %6329 = vmatmul.msk.bf16.vlgmr.msrb.gmra.mxu2 %vm1064_vm1, %v7083_v12 }
 0x409   : > { %6330 = vmatmul.msk.bf16.gmra.mxu2 %vm1064_vm1, %v7084_v22 }
 0x419   : > { %6331 = vmatmul.msk.bf16.gmra.mxu2 %vm1064_vm1, %v7085_v23 }
 0x45c   : > { %v1488_v24 = vpop.f32.mrf.mxu1 }
 0x45d   : > { %v1489_v25 = vadd.f32 %v7294_v8, %v1488_v24 }
 0x45f   : > { %1498 = vst.msk [vmem:[%s1014_s10] sm:$0xff] %vm1497_vm4, %v1489_v25 }
 0x464   : > { %v1491_v26 = vpop.f32.mrf.mxu1 }
 0x465   : > { %v1492_v27 = vadd.f32 %v7294_v8, %v1491_v26 }
 0x467   : > { %1499 = vst.msk [vmem:[%s1014_s10 + $0x8] sm:$0xff] %vm1497_vm4, %v1492_v27 }
 0x46c   : > { %v1494_v28 = vpop.f32.mrf.mxu1 }
 0x46d   : > { %v1495_v29 = vadd.f32 %v7294_v8, %v1494_v28 }
 0x46f   : > { %1500 = vst.msk [vmem:[%s1014_s10 + $0x10] sm:$0xff] %vm1497_vm4, %v1495_v29  ;;  %s9645_s10 = sld [smem:[#allocation11_spill]] }
 0x47c   : > { %v7831_v30 = vpop.f32.mrf.mxu2 }
 0x484   : > { %v7833_v31 = vpop.f32.mrf.mxu2 }
 0x485   : > { %v1566_v38 = vpack.c.bf16 %v7833_v31, %v7831_v30 }
 0x48c   : > { %v7835_v32 = vpop.f32.mrf.mxu2 }
 0x494   : > { %v7837_v33 = vpop.f32.mrf.mxu2 }
 0x495   : > { %v1567_v37 = vpack.c.bf16 %v7837_v33, %v7835_v32 }
 0x49c   : > { %v7839_v34 = vpop.f32.mrf.mxu2 }
 0x4a4   : > { %v7841_v35 = vpop.f32.mrf.mxu2 }
 0x4a5   : > { %v1568_v36 = vpack.c.bf16 %v7841_v35, %v7839_v34 }
 0x4a7   : > { %1598 = vmatpush.bf16.msra.mxu1 %v1568_v36 }
 0x4ab   : > { %1599 = vmatpush.bf16.msra.mxu1 %v1567_v37 }
 0x4af   : > { %1600 = vmatpush.bf16.msra.mxu1 %v1566_v38 }
 0x4b2   : > { %6344 = vmatmul.msk.bf16.vlgmr.msra.gmra.mxu1 %vm1123_vm2, %v7850_v39 }
 0x4c2   : > { %6345 = vmatmul.msk.bf16.gmra.mxu1 %vm1123_vm2, %v7855_v40 }
 0x4d2   : > { %6346 = vmatmul.msk.bf16.gmra.mxu1 %vm1123_vm2, %v7860_v41 }
 0x52f   : > { %v1602_v47 = vpop.f32.mrf.mxu1 }
 0x537   : > { %v1604_v48 = vpop.f32.mrf.mxu1 }
 0x538   : > { %v1617_v50 = vpack.c.bf16 %v1604_v48, %v1602_v47 }
 0x53a   : > { %6366 = vmatmul.msk.bf16.vlgmr.msra.gmra.mxu0 %vm1123_vm2, %v1617_v50 }
 0x53f   : > { %v1607_v51 = vpop.f32.mrf.mxu1 }
 0x547   : > { %v1609_v52 = vpop.f32.mrf.mxu1 }
 0x548   : > { %v1618_v53 = vpack.c.bf16 %v1609_v52, %v1607_v51 }
 0x54a   : > { %6367 = vmatmul.msk.bf16.gmra.mxu0 %vm1123_vm2, %v1618_v53 }
 0x54f   : > { %v1612_v54 = vpop.f32.mrf.mxu1 }
 0x557   : > { %v1614_v55 = vpop.f32.mrf.mxu1 }
 0x558   : > { %v1619_v56 = vpack.c.bf16 %v1614_v55, %v1612_v54 }
 0x55a   : > { %6368 = vmatmul.msk.bf16.gmra.mxu0 %vm1123_vm2, %v1619_v56 }
 0x5b7   : > { %v1668_v1 = vpop.f32.mrf.mxu0 }
 0x5b8   : > { %v1669_v4 = vadd.f32 %v7295_v62, %v1668_v1 }
 0x5ba   : > { %v1683_v5 = vmul.f32 %v1669_v4, %v1669_v4 }
 0x5bc   : > { %v1689_v13 = vmul.f32 %v1683_v5, %v1669_v4 }
 0x5be   : > { %v1695_v15 = vmul.f32 0.044715, %v1689_v13 }
 0x5bf   : > { %v1670_v0 = vpop.f32.mrf.mxu0 }
 0x5c0   : > { %v1701_v2 = vadd.f32 %v1695_v15, %v1669_v4  ;;  %v1671_v3 = vadd.f32 %v7295_v62, %v1670_v0 }
 0x5c2   : > { %v1707_v16 = vmul.f32 0.7978846, %v1701_v2  ;;  %v1684_v17 = vmul.f32 %v1671_v3, %v1671_v3 }
 0x5c4   : > { %v1690_v18 = vmul.f32 %v1684_v17, %v1671_v3  ;;  %7319 = vtanh.f32 %v1707_v16 }
 0x5c6   : > { %v1696_v45 = vmul.f32 0.044715, %v1690_v18 }
 0x5c7   : > { %v1673_v19 = vpop.f32.mrf.mxu0 }
 0x5c8   : > { %v1702_v46 = vadd.f32 %v1696_v45, %v1671_v3  ;;  %v1674_v6 = vadd.f32 %v7295_v62, %v1673_v19 }
 0x5ca   : > { %v1708_v14 = vmul.f32 0.7978846, %v1702_v46  ;;  %v1685_v49 = vmul.f32 %v1674_v6, %v1674_v6  ;;  %v7320_v20 = vpop.eup %7319 }
 0x5cb   : > { %v1719_v21 = vadd.f32 1.0, %v7320_v20 }
 0x5cc   : > { %7321 = vtanh.f32 %v1708_v14  ;;  %v1691_v9 = vmul.f32 %v1685_v49, %v1674_v6 }
 0x5cd   : > { %v1725_v11 = vmul.f32 0.5, %v1719_v21 }
 0x5ce   : > { %v1697_v7 = vmul.f32 0.044715, %v1691_v9 }
 0x5cf   : > { %v1675_v12 = vpop.f32.mrf.mxu0  ;;  %v1731_v29 = vmul.f32 %v1725_v11, %v1669_v4 }
 0x5d0   : > { %v1703_v22 = vadd.f32 %v1697_v7, %v1674_v6  ;;  %v1676_v10 = vadd.f32 %v7295_v62, %v1675_v12  ;;  %v7296_v12 = vld [vmem:[%s7550_s14 + $0x2] ss:$0 sm:$0xff] }
 0x5d2   : > { %v7322_v23 = vpop.eup %7321  ;;  %v1709_v8 = vmul.f32 0.7978846, %v1703_v22  ;;  %v1686_v24 = vmul.f32 %v1676_v10, %v1676_v10 }
 0x5d3   : > { %v1720_v25 = vadd.f32 1.0, %v7322_v23 }
 0x5d4   : > { %v1692_v26 = vmul.f32 %v1686_v24, %v1676_v10  ;;  %7323 = vtanh.f32 %v1709_v8 }
 0x5d5   : > { %v1726_v27 = vmul.f32 0.5, %v1720_v25 }
 0x5d6   : > { %v1698_v28 = vmul.f32 0.044715, %v1692_v26 }
 0x5d7   : > { %v1732_v36 = vmul.f32 %v1726_v27, %v1671_v3  ;;  %v1678_v37 = vpop.f32.mrf.mxu0 }
 0x5d8   : > { %v1704_v38 = vadd.f32 %v1698_v28, %v1676_v10  ;;  %v1679_v42 = vadd.f32 %v7295_v62, %v1678_v37  ;;  %v7099_v28 = vld [vmem:[%s7535_s29 + $0x50] sm:$0xff] }
 0x5d9   : > { %v1737_v43 = vpack.c.bf16 %v1732_v36, %v1731_v29  ;;  %v7098_v29 = vld [vmem:[%s7535_s29 + $0x48] sm:$0xff] }
 0x5da   : > { %v1710_v44 = vmul.f32 0.7978846, %v1704_v38  ;;  %v1687_v47 = vmul.f32 %v1679_v42, %v1679_v42  ;;  %v7324_v48 = vpop.eup %7323 }
 0x5db   : > { %6405 = vmatmul.msk.bf16.vlgmr.msra.gmra.mxu3 %vm1225_vm3, %v1737_v43  ;;  %v1721_v53 = vadd.f32 1.0, %v7324_v48  ;;  %v7105_v48 = vld [vmem:[%s9640_s8 + $0xb0] sm:$0xff] }
 0x5dc   : > { %v1693_v50 = vmul.f32 %v1687_v47, %v1679_v42  ;;  %7325 = vtanh.f32 %v1710_v44  ;;  %v7106_v47 = vld [vmem:[%s9640_s8 + $0xb8] sm:$0xff] }
 0x5dd   : > { %v1727_v60 = vmul.f32 0.5, %v1721_v53  ;;  %2049 = vmatpush.bf16.msrb.mxu0 %v7106_v47  ;;  %v7297_v53 = vld [vmem:[%s9641_s3 + $0x3] ss:$0 sm:$0xff] }
 0x5de   : > { %v1699_v51 = vmul.f32 0.044715, %v1693_v50  ;;  %v7104_v50 = vld [vmem:[%s9640_s8 + $0xa8] sm:$0xff] }
 0x5df   : > { %v1680_v52 = vpop.f32.mrf.mxu0  ;;  %v1733_v4 = vmul.f32 %v1727_v60, %v1674_v6 }
 0x5e0   : > { %v1705_v54 = vadd.f32 %v1699_v51, %v1679_v42  ;;  %v1681_v55 = vadd.f32 %v7295_v62, %v1680_v52  ;;  %v7103_v51 = vld [vmem:[%s9640_s8 + $0xa0] sm:$0xff]  ;;  %v7102_v52 = vld [vmem:[%s9640_s8 + $0x98] sm:$0xff] }
 0x5e1   : > { %2050 = vmatpush.bf16.msrb.mxu0 %v7105_v48 }
 0x5e2   : > { %v7326_v56 = vpop.eup %7325  ;;  %v1711_v57 = vmul.f32 0.7978846, %v1705_v54  ;;  %v1688_v58 = vmul.f32 %v1681_v55, %v1681_v55  ;;  %v7101_v54 = vld [vmem:[%s9640_s8 + $0x90] sm:$0xff] }
 0x5e3   : > { %v1722_v59 = vadd.f32 1.0, %v7326_v56 }
 0x5e4   : > { %v1694_v61 = vmul.f32 %v1688_v58, %v1681_v55  ;;  %7327 = vtanh.f32 %v1711_v57 }
 0x5e5   : > { %v1728_v63 = vmul.f32 0.5, %v1722_v59  ;;  %2051 = vmatpush.bf16.msrb.mxu0 %v7104_v50 }
 0x5e6   : > { %v1700_v1 = vmul.f32 0.044715, %v1694_v61 }
 0x5e7   : > { %v1734_v5 = vmul.f32 %v1728_v63, %v1676_v10 }
 0x5e8   : > { %v1706_v13 = vadd.f32 %v1700_v1, %v1681_v55 }
 0x5e9   : > { %v1738_v15 = vpack.c.bf16 %v1734_v5, %v1733_v4  ;;  %2052 = vmatpush.bf16.msrb.mxu0 %v7103_v51 }
 0x5ea   : > { %v1712_v0 = vmul.f32 0.7978846, %v1706_v13  ;;  %v7328_v2 = vpop.eup %7327 }
 0x5eb   : > { %6406 = vmatmul.msk.bf16.gmra.mxu3 %vm1225_vm3, %v1738_v15  ;;  %v1723_v3 = vadd.f32 1.0, %v7328_v2 }
 0x5ec   : > { %7329 = vtanh.f32 %v1712_v0 }
 0x5ed   : > { %v1729_v17 = vmul.f32 0.5, %v1723_v3  ;;  %2053 = vmatpush.bf16.msrb.mxu0 %v7102_v52 }
 0x5ef   : > { %v1735_v45 = vmul.f32 %v1729_v17, %v1679_v42 }
 0x5f1   : > { %2054 = vmatpush.bf16.msrb.mxu0 %v7101_v54 }
 0x5f2   : > { %v7330_v62 = vpop.eup %7329 }
 0x5f3   : > { %v1724_v16 = vadd.f32 1.0, %v7330_v62 }
 0x5f5   : > { %v1730_v18 = vmul.f32 0.5, %v1724_v16 }
 0x5f7   : > { %v1736_v19 = vmul.f32 %v1730_v18, %v1681_v55 }
 0x5f9   : > { %v1739_v46 = vpack.c.bf16 %v1736_v19, %v1735_v45 }
 0x5fb   : > { %6407 = vmatmul.msk.bf16.gmra.mxu3 %vm1225_vm3, %v1739_v46 }
 0x65e   : > { %v1807_v6 = vpop.f32.mrf.mxu3 }
 0x65f   : > { %v1822_v26 = vadd.f32 %v1807_v6, %v7831_v30  ;;  %v7100_v30 = vld [vmem:[%s7535_s29 + $0x58] sm:$0xff] }
 0x660   : > { %1913 = vmatpush.bf16.msrb.mxu1 %v7100_v30 }
 0x661   : > { %v7907_v27 = vadd.f32 %v7296_v12, %v1822_v26 }
 0x664   : > { %1914 = vmatpush.bf16.msrb.mxu1 %v7099_v28 }
 0x666   : > { %v1809_v14 = vpop.f32.mrf.mxu3 }
 0x667   : > { %v1823_v11 = vadd.f32 %v1809_v14, %v7833_v31 }
 0x668   : > { %1915 = vmatpush.bf16.msrb.mxu1 %v7098_v29 }
 0x66e   : > { %v1812_v49 = vpop.f32.mrf.mxu3 }
 0x66f   : > { %v1824_v23 = vadd.f32 %v1812_v49, %v7835_v32  ;;  %v7903_v32 = vadd.f32 %v7296_v12, %v1823_v11 }
 0x671   : > { %v1839_v31 = vpack.c.bf16 %v7903_v32, %v7907_v27 }
 0x676   : > { %v1814_v20 = vpop.f32.mrf.mxu3 }
 0x677   : > { %v1825_v22 = vadd.f32 %v1814_v20, %v7837_v33  ;;  %v7901_v33 = vadd.f32 %v7296_v12, %v1824_v23 }
 0x679   : > { %v7896_v25 = vadd.f32 %v7296_v12, %v1825_v22 }
 0x67e   : > { %v1817_v9 = vpop.f32.mrf.mxu3 }
 0x67f   : > { %v1826_v7 = vadd.f32 %v1817_v9, %v7839_v34 }
 0x681   : > { %v7891_v8 = vadd.f32 %v7296_v12, %v1826_v7 }
 0x686   : > { %v1819_v21 = vpop.f32.mrf.mxu3 }
 0x687   : > { %v1827_v10 = vadd.f32 %v1819_v21, %v7841_v35  ;;  %v1840_v35 = vpack.c.bf16 %v7896_v25, %v7901_v33 }
 0x689   : > { %v7893_v24 = vadd.f32 %v7296_v12, %v1827_v10 }
 0x68b   : > { %v1841_v34 = vpack.c.bf16 %v7893_v24, %v7891_v8 }
 0x68d   : > { %1847 = vmatpush.bf16.msra.mxu2 %v1841_v34 }
 0x691   : > { %1848 = vmatpush.bf16.msra.mxu2 %v1840_v35 }
 0x695   : > { %1849 = vmatpush.bf16.msra.mxu2 %v1839_v31 }
 0x698   : > { %6409 = vmatmul.msk.bf16.vlgmr.msra.gmra.mxu2 %vm1123_vm2, %v7850_v39 }
 0x6a8   : > { %6410 = vmatmul.msk.bf16.gmra.mxu2 %vm1123_vm2, %v7855_v40 }
 0x6b8   : > { %6411 = vmatmul.msk.bf16.gmra.mxu2 %vm1123_vm2, %v7860_v41 }
 0x71b   : > { %v1851_v36 = vpop.f32.mrf.mxu2 }
 0x723   : > { %v1853_v37 = vpop.f32.mrf.mxu2 }
 0x724   : > { %v1866_v38 = vpack.c.bf16 %v1853_v37, %v1851_v36 }
 0x726   : > { %6431 = vmatmul.msk.bf16.vlgmr.msrb.gmra.mxu1 %vm1123_vm2, %v1866_v38 }
 0x72b   : > { %v1856_v39 = vpop.f32.mrf.mxu2 }
 0x733   : > { %v1858_v40 = vpop.f32.mrf.mxu2 }
 0x734   : > { %v1867_v41 = vpack.c.bf16 %v1858_v40, %v1856_v39 }
 0x736   : > { %6432 = vmatmul.msk.bf16.gmra.mxu1 %vm1123_vm2, %v1867_v41 }
 0x73b   : > { %v1861_v42 = vpop.f32.mrf.mxu2 }
 0x743   : > { %v1863_v43 = vpop.f32.mrf.mxu2 }
 0x744   : > { %v1868_v44 = vpack.c.bf16 %v1863_v43, %v1861_v42 }
 0x746   : > { %6433 = vmatmul.msk.bf16.gmra.mxu1 %vm1123_vm2, %v1868_v44 }
 0x7a3   : > { %v1917_v55 = vpop.f32.mrf.mxu1 }
 0x7a4   : > { %v1918_v56 = vadd.f32 %v7297_v53, %v1917_v55 }
 0x7a6   : > { %v1932_v57 = vmul.f32 %v1918_v56, %v1918_v56 }
 0x7a8   : > { %v1938_v58 = vmul.f32 %v1932_v57, %v1918_v56 }
 0x7aa   : > { %v1944_v59 = vmul.f32 0.044715, %v1938_v58 }
 0x7ab   : > { %v1919_v60 = vpop.f32.mrf.mxu1 }
 0x7ac   : > { %v1950_v61 = vadd.f32 %v1944_v59, %v1918_v56  ;;  %v1920_v63 = vadd.f32 %v7297_v53, %v1919_v60 }
 0x7ae   : > { %v1956_v1 = vmul.f32 0.7978846, %v1950_v61  ;;  %v1933_v4 = vmul.f32 %v1920_v63, %v1920_v63 }
 0x7b0   : > { %v1939_v5 = vmul.f32 %v1933_v4, %v1920_v63  ;;  %7331 = vtanh.f32 %v1956_v1 }
 0x7b2   : > { %v1945_v13 = vmul.f32 0.044715, %v1939_v5 }
 0x7b3   : > { %v1922_v15 = vpop.f32.mrf.mxu1 }
 0x7b4   : > { %v1951_v0 = vadd.f32 %v1945_v13, %v1920_v63  ;;  %v1923_v2 = vadd.f32 %v7297_v53, %v1922_v15  ;;  %v7298_v13 = vld [vmem:[%s7550_s14 + $0x3] ss:$0 sm:$0xff] }
 0x7b6   : > { %v1957_v3 = vmul.f32 0.7978846, %v1951_v0  ;;  %v1934_v62 = vmul.f32 %v1923_v2, %v1923_v2  ;;  %v7332_v16 = vpop.eup %7331 }
 0x7b7   : > { %v1968_v45 = vadd.f32 1.0, %v7332_v16 }
 0x7b8   : > { %7333 = vtanh.f32 %v1957_v3  ;;  %v1940_v17 = vmul.f32 %v1934_v62, %v1923_v2 }
 0x7b9   : > { %v1974_v9 = vmul.f32 0.5, %v1968_v45 }
 0x7ba   : > { %v1946_v18 = vmul.f32 0.044715, %v1940_v17 }
 0x7bb   : > { %v1924_v19 = vpop.f32.mrf.mxu1  ;;  %v1980_v10 = vmul.f32 %v1974_v9, %v1918_v56 }
 0x7bc   : > { %v1952_v46 = vadd.f32 %v1946_v18, %v1923_v2  ;;  %v1925_v6 = vadd.f32 %v7297_v53, %v1924_v19 }
 0x7be   : > { %v7334_v14 = vpop.eup %7333  ;;  %v1958_v49 = vmul.f32 0.7978846, %v1952_v46  ;;  %v1935_v20 = vmul.f32 %v1925_v6, %v1925_v6 }
 0x7bf   : > { %v1969_v7 = vadd.f32 1.0, %v7334_v14 }
 0x7c0   : > { %v1941_v21 = vmul.f32 %v1935_v20, %v1925_v6  ;;  %7335 = vtanh.f32 %v1958_v49 }
 0x7c1   : > { %v1975_v12 = vmul.f32 0.5, %v1969_v7  ;;  %v7107_v7 = vld [vmem:[%s7530_s25] sm:$0xff] }
 0x7c2   : > { %v1947_v22 = vmul.f32 0.044715, %v1941_v21  ;;  %v7108_v21 = vld [vmem:[%s7530_s25 + $0x8] sm:$0xff] }
 0x7c3   : > { %v1981_v23 = vmul.f32 %v1975_v12, %v1920_v63  ;;  %v1927_v11 = vpop.f32.mrf.mxu1  ;;  %v7110_v12 = vld [vmem:[%s7530_s25 + $0x18] sm:$0xff] }
 0x7c4   : > { %v1953_v34 = vadd.f32 %v1947_v22, %v1925_v6  ;;  %v1928_v26 = vadd.f32 %v7297_v53, %v1927_v11  ;;  %v7111_v22 = vld [vmem:[%s7530_s25 + $0x20] sm:$0xff] }
 0x7c5   : > { %v1986_v35 = vpack.c.bf16 %v1981_v23, %v1980_v10  ;;  %v7299_v10 = vld [vmem:[%s7560_s24] ss:$0 sm:$0xff]  ;;  %v7112_v23 = vld [vmem:[%s7530_s25 + $0x28] sm:$0xff] }
 0x7c6   : > { %v1959_v31 = vmul.f32 0.7978846, %v1953_v34  ;;  %v1936_v30 = vmul.f32 %v1928_v26, %v1928_v26  ;;  %v7336_v28 = vpop.eup %7335 }
 0x7c7   : > { %6470 = vmatmul.msk.bf16.vlgmr.msrb.gmra.mxu0 %vm1225_vm3, %v1986_v35  ;;  %v1970_v38 = vadd.f32 1.0, %v7336_v28 }
 0x7c8   : > { %v1942_v29 = vmul.f32 %v1936_v30, %v1928_v26  ;;  %7337 = vtanh.f32 %v1959_v31 }
 0x7c9   : > { %v1976_v47 = vmul.f32 0.5, %v1970_v38 }
 0x7ca   : > { %v1948_v36 = vmul.f32 0.044715, %v1942_v29 }
 0x7cb   : > { %v1929_v37 = vpop.f32.mrf.mxu1  ;;  %v1982_v52 = vmul.f32 %v1976_v47, %v1923_v2 }
 0x7cc   : > { %v1954_v39 = vadd.f32 %v1948_v36, %v1928_v26  ;;  %v1930_v40 = vadd.f32 %v7297_v53, %v1929_v37 }
 0x7ce   : > { %v7338_v41 = vpop.eup %7337  ;;  %v1960_v42 = vmul.f32 0.7978846, %v1954_v39  ;;  %v1937_v43 = vmul.f32 %v1930_v40, %v1930_v40 }
 0x7cf   : > { %v1971_v44 = vadd.f32 1.0, %v7338_v41 }
 0x7d0   : > { %v1943_v48 = vmul.f32 %v1937_v43, %v1930_v40  ;;  %7339 = vtanh.f32 %v1960_v42 }
 0x7d1   : > { %v1977_v50 = vmul.f32 0.5, %v1971_v44 }
 0x7d2   : > { %v1949_v51 = vmul.f32 0.044715, %v1943_v48 }
 0x7d3   : > { %v1983_v54 = vmul.f32 %v1977_v50, %v1925_v6 }
 0x7d4   : > { %v1955_v55 = vadd.f32 %v1949_v51, %v1930_v40 }
 0x7d5   : > { %v1987_v56 = vpack.c.bf16 %v1983_v54, %v1982_v52 }
 0x7d6   : > { %v1961_v57 = vmul.f32 0.7978846, %v1955_v55  ;;  %v7340_v58 = vpop.eup %7339 }
 0x7d7   : > { %6471 = vmatmul.msk.bf16.gmra.mxu0 %vm1225_vm3, %v1987_v56  ;;  %v1972_v53 = vadd.f32 1.0, %v7340_v58 }
 0x7d8   : > { %7341 = vtanh.f32 %v1961_v57 }
 0x7d9   : > { %v1978_v61 = vmul.f32 0.5, %v1972_v53 }
 0x7db   : > { %v1984_v1 = vmul.f32 %v1978_v61, %v1928_v26  ;;  %v8004_v61 = vld [vmem:[%s7520_s17] sm:$0xff] }
 0x7de   : > { %v7342_v59 = vpop.eup %7341 }
 0x7df   : > { %v1973_v60 = vadd.f32 1.0, %v7342_v59 }
 0x7e1   : > { %v1979_v63 = vmul.f32 0.5, %v1973_v60 }
 0x7e3   : > { %v1985_v4 = vmul.f32 %v1979_v63, %v1930_v40  ;;  %v8009_v63 = vld [vmem:[%s7520_s17 + $0x8] sm:$0xff] }
 0x7e5   : > { %v1988_v5 = vpack.c.bf16 %v1985_v4, %v1984_v1  ;;  %v8014_v1 = vld [vmem:[%s7520_s17 + $0x10] sm:$0xff]  ;;  %v8019_v4 = vld [vmem:[%s7520_s17 + $0x18] sm:$0xff] }
 0x7e7   : > { %6472 = vmatmul.msk.bf16.gmra.mxu0 %vm1225_vm3, %v1988_v5  ;;  %v8024_v5 = vld [vmem:[%s7520_s17 + $0x20] sm:$0xff] }
 0x844   : > { %v2056_v15 = vpop.f32.mrf.mxu0 }
 0x845   : > { %v2071_v0 = vadd.f32 %v2056_v15, %v7907_v27  ;;  %v7121_v15 = vld [vmem:[%s7535_s29 + $0x70] sm:$0xff] }
 0x846   : > { %2423 = vmatpush.bf16.msra.mxu0 %v7121_v15 }
 0x847   : > { %v2082_v2 = vadd.f32 %v7298_v13, %v2071_v0  ;;  %v7120_v0 = vld [vmem:[%s7535_s29 + $0x68] sm:$0xff] }
 0x849   : > { %6474 = vmatmul.msk.f32.vlgmr.msrb.gmra.mxu3 %vm1123_vm2, %v2082_v2 }
 0x84a   : > { %2424 = vmatpush.bf16.msra.mxu0 %v7120_v0 }
 0x84c   : > { %v2058_v3 = vpop.f32.mrf.mxu0 }
 0x84d   : > { %v2072_v62 = vadd.f32 %v2058_v3, %v7903_v32 }
 0x84f   : > { %v2083_v16 = vadd.f32 %v7298_v13, %v2072_v62 }
 0x851   : > { %6475 = vmatmul.msk.f32.gmra.mxu3 %vm1123_vm2, %v2083_v16 }
 0x854   : > { %v2061_v17 = vpop.f32.mrf.mxu0 }
 0x855   : > { %v2073_v18 = vadd.f32 %v2061_v17, %v7901_v33 }
 0x857   : > { %v2084_v45 = vadd.f32 %v7298_v13, %v2073_v18 }
 0x859   : > { %6476 = vmatmul.msk.f32.gmra.mxu3 %vm1123_vm2, %v2084_v45 }
 0x85c   : > { %v2063_v19 = vpop.f32.mrf.mxu0 }
 0x85d   : > { %v2074_v46 = vadd.f32 %v2063_v19, %v7896_v25 }
 0x85f   : > { %v2085_v27 = vadd.f32 %v7298_v13, %v2074_v46 }
 0x861   : > { %6477 = vmatmul.msk.f32.gmra.mxu3 %vm1123_vm2, %v2085_v27  ;;  %v2170_v25 = vpack.c.bf16 %v2085_v27, %v2084_v45 }
 0x864   : > { %v2066_v6 = vpop.f32.mrf.mxu0 }
 0x865   : > { %v2075_v32 = vadd.f32 %v2066_v6, %v7891_v8  ;;  %v2169_v8 = vpack.c.bf16 %v2083_v16, %v2082_v2  ;;  %v7119_v2 = vld [vmem:[%s7535_s29 + $0x60] sm:$0xff] }
 0x866   : > { %2425 = vmatpush.bf16.msra.mxu0 %v7119_v2 }
 0x867   : > { %v2086_v14 = vadd.f32 %v7298_v13, %v2075_v32 }
 0x869   : > { %6478 = vmatmul.msk.f32.gmra.mxu3 %vm1123_vm2, %v2086_v14 }
 0x86c   : > { %v2068_v49 = vpop.f32.mrf.mxu0 }
 0x86d   : > { %v2076_v33 = vadd.f32 %v2068_v49, %v7893_v24  ;;  %v7109_v24 = vld [vmem:[%s7530_s25 + $0x10] sm:$0xff] }
 0x86f   : > { %v2087_v20 = vadd.f32 %v7298_v13, %v2076_v33  ;;  %v8029_v13 = vld [vmem:[%s7520_s17 + $0x28] sm:$0xff] }
 0x871   : > { %v2171_v9 = vpack.c.bf16 %v2087_v20, %v2086_v14  ;;  %6479 = vmatmul.msk.f32.gmra.mxu3 %vm1123_vm2, %v2087_v20 }
 0x873   : > { %2225 = vmatpush.bf16.msra.mxu1 %v2171_v9 }
 0x877   : > { %2226 = vmatpush.bf16.msra.mxu1 %v2170_v25 }
 0x87b   : > { %2227 = vmatpush.bf16.msra.mxu1 %v2169_v8 }
 0x87e   : > { %6504 = vmatmul.msk.bf16.vlgmr.msra.gmra.mxu1 %vm1123_vm2, %v7107_v7  ;;  %v7127_v7 = vld [vmem:[%s9640_s8 + $0xe8] sm:$0xff] }
 0x87f   : > { %2640 = vmatpush.bf16.msra.mxu3 %v7127_v7 }
 0x88e   : > { %6505 = vmatmul.msk.bf16.gmra.mxu1 %vm1123_vm2, %v7108_v21  ;;  %v7126_v21 = vld [vmem:[%s9640_s8 + $0xe0] sm:$0xff] }
 0x88f   : > { %2641 = vmatpush.bf16.msra.mxu3 %v7126_v21 }
 0x89e   : > { %6506 = vmatmul.msk.bf16.gmra.mxu1 %vm1123_vm2, %v7109_v24  ;;  %v7125_v24 = vld [vmem:[%s9640_s8 + $0xd8] sm:$0xff] }
 0x89f   : > { %2642 = vmatpush.bf16.msra.mxu3 %v7125_v24 }
 0x8ae   : > { %6507 = vmatmul.msk.bf16.gmra.mxu1 %vm1123_vm2, %v7110_v12  ;;  %v7124_v12 = vld [vmem:[%s9640_s8 + $0xd0] sm:$0xff] }
 0x8af   : > { %2643 = vmatpush.bf16.msra.mxu3 %v7124_v12 }
 0x8be   : > { %6508 = vmatmul.msk.bf16.gmra.mxu1 %vm1123_vm2, %v7111_v22  ;;  %v7123_v22 = vld [vmem:[%s9640_s8 + $0xc8] sm:$0xff] }
 0x8bf   : > { %2644 = vmatpush.bf16.msra.mxu3 %v7123_v22 }
 0x8cc   : > { %v2133_v11 = vpop.f32.mrf.mxu3 }
 0x8cd   : > { %v2134_v34 = vadd.f32 %v7299_v10, %v2133_v11 }
 0x8ce   : > { %6509 = vmatmul.msk.bf16.gmra.mxu1 %vm1123_vm2, %v7112_v23  ;;  %v7122_v23 = vld [vmem:[%s9640_s8 + $0xc0] sm:$0xff] }
 0x8cf   : > { %2151 = vst.msk [vmem:[%s1019_s7] sm:$0xff] %vm1497_vm4, %v2134_v34  ;;  %2645 = vmatpush.bf16.msra.mxu3 %v7122_v23 }
 0x8d4   : > { %v2136_v26 = vpop.f32.mrf.mxu3 }
 0x8d5   : > { %v2137_v35 = vadd.f32 %v7299_v10, %v2136_v26 }
 0x8d7   : > { %2152 = vst.msk [vmem:[%s1019_s7 + $0x8] sm:$0xff] %vm1497_vm4, %v2137_v35 }
 0x8dc   : > { %v2139_v31 = vpop.f32.mrf.mxu3 }
 0x8dd   : > { %v2140_v30 = vadd.f32 %v7299_v10, %v2139_v31 }
 0x8df   : > { %2153 = vst.msk [vmem:[%s1019_s7 + $0x10] sm:$0xff] %vm1497_vm4, %v2140_v30 }
 0x8e4   : > { %v2142_v28 = vpop.f32.mrf.mxu3 }
 0x8e5   : > { %v2143_v29 = vadd.f32 %v7299_v10, %v2142_v28 }
 0x8e7   : > { %2154 = vst.msk [vmem:[%s1019_s7 + $0x18] sm:$0xff] %vm1497_vm4, %v2143_v29 }
 0x8ec   : > { %v2145_v36 = vpop.f32.mrf.mxu3 }
 0x8ed   : > { %v2146_v37 = vadd.f32 %v7299_v10, %v2145_v36 }
 0x8ef   : > { %2155 = vst.msk [vmem:[%s1019_s7 + $0x20] sm:$0xff] %vm1497_vm4, %v2146_v37 }
 0x8f4   : > { %v2148_v38 = vpop.f32.mrf.mxu3 }
 0x8f5   : > { %v2149_v39 = vadd.f32 %v7299_v10, %v2148_v38  ;;  %v8048_v10 = vld [vmem:[%s9641_s3 + $0x4] ss:$0 sm:$0xff] }
 0x8f7   : > { %2156 = vst.msk [vmem:[%s1019_s7 + $0x28] sm:$0xff] %vm1497_vm4, %v2149_v39  ;;  %s9647_s7 = sld [smem:[#allocation13_spill]] }
 0x8fb   : > { %v7967_v40 = vpop.f32.mrf.mxu1 }
 0x903   : > { %v7969_v41 = vpop.f32.mrf.mxu1 }
 0x904   : > { %v2271_v60 = vpack.c.bf16 %v7969_v41, %v7967_v40 }
 0x90b   : > { %v7971_v42 = vpop.f32.mrf.mxu1 }
 0x913   : > { %v7973_v43 = vpop.f32.mrf.mxu1 }
 0x914   : > { %v2272_v59 = vpack.c.bf16 %v7973_v43, %v7971_v42 }
 0x91b   : > { %v7975_v44 = vpop.f32.mrf.mxu1 }
 0x923   : > { %v7977_v47 = vpop.f32.mrf.mxu1 }
 0x924   : > { %v2273_v53 = vpack.c.bf16 %v7977_v47, %v7975_v44 }
 0x92b   : > { %v7979_v48 = vpop.f32.mrf.mxu1 }
 0x933   : > { %v7981_v50 = vpop.f32.mrf.mxu1 }
 0x934   : > { %v2274_v58 = vpack.c.bf16 %v7981_v50, %v7979_v48 }
 0x93b   : > { %v7983_v51 = vpop.f32.mrf.mxu1 }
 0x943   : > { %v7985_v52 = vpop.f32.mrf.mxu1 }
 0x944   : > { %v2275_v57 = vpack.c.bf16 %v7985_v52, %v7983_v51 }
 0x94b   : > { %v7987_v54 = vpop.f32.mrf.mxu1 }
 0x953   : > { %v7989_v55 = vpop.f32.mrf.mxu1 }
 0x954   : > { %v2276_v56 = vpack.c.bf16 %v7989_v55, %v7987_v54 }
 0x956   : > { %2327 = vmatpush.bf16.msrb.mxu1 %v2276_v56 }
 0x95a   : > { %2328 = vmatpush.bf16.msrb.mxu1 %v2275_v57 }
 0x95e   : > { %2329 = vmatpush.bf16.msrb.mxu1 %v2274_v58 }
 0x962   : > { %2330 = vmatpush.bf16.msrb.mxu1 %v2273_v53 }
 0x966   : > { %2331 = vmatpush.bf16.msrb.mxu1 %v2272_v59 }
 0x96a   : > { %2332 = vmatpush.bf16.msrb.mxu1 %v2271_v60 }
 0x96d   : > { %6534 = vmatmul.msk.bf16.vlgmr.msrb.gmra.mxu1 %vm1225_vm3, %v8004_v61 }
 0x97d   : > { %6535 = vmatmul.msk.bf16.gmra.mxu1 %vm1225_vm3, %v8009_v63 }
 0x98d   : > { %6536 = vmatmul.msk.bf16.gmra.mxu1 %vm1225_vm3, %v8014_v1 }
 0x99d   : > { %6537 = vmatmul.msk.bf16.gmra.mxu1 %vm1225_vm3, %v8019_v4 }
 0x9ad   : > { %6538 = vmatmul.msk.bf16.gmra.mxu1 %vm1225_vm3, %v8024_v5 }
 0x9bd   : > { %6539 = vmatmul.msk.bf16.gmra.mxu1 %vm1225_vm3, %v8029_v13 }
 0x9ea   : > { %v2334_v3 = vpop.f32.mrf.mxu1 }
 0x9f2   : > { %v2336_v62 = vpop.f32.mrf.mxu1 }
 0x9f3   : > { %v2364_v16 = vpack.c.bf16 %v2336_v62, %v2334_v3 }
 0x9f5   : > { %6559 = vmatmul.msk.bf16.vlgmr.msra.gmra.mxu0 %vm1123_vm2, %v2364_v16 }
 0x9fa   : > { %v2339_v17 = vpop.f32.mrf.mxu1 }
 0xa02   : > { %v2341_v18 = vpop.f32.mrf.mxu1 }
 0xa03   : > { %v2365_v45 = vpack.c.bf16 %v2341_v18, %v2339_v17 }
 0xa05   : > { %6560 = vmatmul.msk.bf16.gmra.mxu0 %vm1123_vm2, %v2365_v45 }
 0xa0a   : > { %v2344_v19 = vpop.f32.mrf.mxu1 }
 0xa12   : > { %v2346_v46 = vpop.f32.mrf.mxu1 }
 0xa13   : > { %v2366_v27 = vpack.c.bf16 %v2346_v46, %v2344_v19 }
 0xa15   : > { %6561 = vmatmul.msk.bf16.gmra.mxu0 %vm1123_vm2, %v2366_v27 }
 0xa1a   : > { %v2349_v6 = vpop.f32.mrf.mxu1 }
 0xa22   : > { %v2351_v32 = vpop.f32.mrf.mxu1 }
 0xa23   : > { %v2367_v14 = vpack.c.bf16 %v2351_v32, %v2349_v6 }
 0xa25   : > { %6562 = vmatmul.msk.bf16.gmra.mxu0 %vm1123_vm2, %v2367_v14 }
 0xa2a   : > { %v2354_v49 = vpop.f32.mrf.mxu1 }
 0xa32   : > { %v2356_v33 = vpop.f32.mrf.mxu1 }
 0xa33   : > { %v2368_v20 = vpack.c.bf16 %v2356_v33, %v2354_v49 }
 0xa35   : > { %6563 = vmatmul.msk.bf16.gmra.mxu0 %vm1123_vm2, %v2368_v20 }
 0xa3a   : > { %v2359_v9 = vpop.f32.mrf.mxu1 }
 0xa42   : > { %v2361_v25 = vpop.f32.mrf.mxu1 }
 0xa43   : > { %v2369_v8 = vpack.c.bf16 %v2361_v25, %v2359_v9 }
 0xa45   : > { %6564 = vmatmul.msk.bf16.gmra.mxu0 %vm1123_vm2, %v2369_v8 }
 0xa72   : > { %v2427_v11 = vpop.f32.mrf.mxu0 }
 0xa73   : > { %v2428_v34 = vadd.f32 %v8048_v10, %v2427_v11 }
 0xa75   : > { %v2457_v26 = vmul.f32 %v2428_v34, %v2428_v34 }
 0xa77   : > { %v2469_v35 = vmul.f32 %v2457_v26, %v2428_v34 }
 0xa79   : > { %v2481_v31 = vmul.f32 0.044715, %v2469_v35 }
 0xa7a   : > { %v2429_v30 = vpop.f32.mrf.mxu0 }
 0xa7b   : > { %v2493_v28 = vadd.f32 %v2481_v31, %v2428_v34  ;;  %v2430_v29 = vadd.f32 %v8048_v10, %v2429_v30 }
 0xa7d   : > { %v2505_v36 = vmul.f32 0.7978846, %v2493_v28  ;;  %v2458_v37 = vmul.f32 %v2430_v29, %v2430_v29 }
 0xa7f   : > { %v2470_v38 = vmul.f32 %v2458_v37, %v2430_v29  ;;  %7343 = vtanh.f32 %v2505_v36 }
 0xa81   : > { %v2482_v39 = vmul.f32 0.044715, %v2470_v38 }
 0xa82   : > { %v2432_v56 = vpop.f32.mrf.mxu0 }
 0xa83   : > { %v2494_v57 = vadd.f32 %v2482_v39, %v2430_v29  ;;  %v2433_v58 = vadd.f32 %v8048_v10, %v2432_v56 }
 0xa85   : > { %v2506_v53 = vmul.f32 0.7978846, %v2494_v57  ;;  %v2459_v59 = vmul.f32 %v2433_v58, %v2433_v58  ;;  %v7344_v60 = vpop.eup %7343 }
 0xa86   : > { %v2529_v2 = vadd.f32 1.0, %v7344_v60 }
 0xa87   : > { %7345 = vtanh.f32 %v2506_v53  ;;  %v2471_v15 = vmul.f32 %v2459_v59, %v2433_v58 }
 0xa88   : > { %v2541_v19 = vmul.f32 0.5, %v2529_v2 }
 0xa89   : > { %v2483_v0 = vmul.f32 0.044715, %v2471_v15 }
 0xa8a   : > { %v2434_v3 = vpop.f32.mrf.mxu0  ;;  %v2553_v14 = vmul.f32 %v2541_v19, %v2428_v34 }
 0xa8b   : > { %v2495_v62 = vadd.f32 %v2483_v0, %v2433_v58  ;;  %v2435_v16 = vadd.f32 %v8048_v10, %v2434_v3 }
 0xa8d   : > { %v7346_v17 = vpop.eup %7345  ;;  %v2507_v18 = vmul.f32 0.7978846, %v2495_v62  ;;  %v2460_v45 = vmul.f32 %v2435_v16, %v2435_v16 }
 0xa8e   : > { %v2530_v46 = vadd.f32 1.0, %v7346_v17 }
 0xa8f   : > { %v2472_v27 = vmul.f32 %v2460_v45, %v2435_v16  ;;  %7347 = vtanh.f32 %v2507_v18 }
 0xa90   : > { %v2542_v6 = vmul.f32 0.5, %v2530_v46 }
 0xa91   : > { %v2484_v32 = vmul.f32 0.044715, %v2472_v27 }
 0xa92   : > { %v2554_v49 = vmul.f32 %v2542_v6, %v2430_v29  ;;  %v2437_v33 = vpop.f32.mrf.mxu0 }
 0xa93   : > { %v2496_v20 = vadd.f32 %v2484_v32, %v2435_v16  ;;  %v2438_v9 = vadd.f32 %v8048_v10, %v2437_v33 }
 0xa94   : > { %v2565_v25 = vpack.c.bf16 %v2554_v49, %v2553_v14 }
 0xa95   : > { %v2508_v8 = vmul.f32 0.7978846, %v2496_v20  ;;  %v2461_v7 = vmul.f32 %v2438_v9, %v2438_v9  ;;  %v7348_v21 = vpop.eup %7347 }
 0xa96   : > { %6601 = vmatmul.msk.bf16.vlgmr.msra.gmra.mxu3 %vm1225_vm3, %v2565_v25  ;;  %v2531_v23 = vadd.f32 1.0, %v7348_v21 }
 0xa97   : > { %v2473_v24 = vmul.f32 %v2461_v7, %v2438_v9  ;;  %7349 = vtanh.f32 %v2508_v8 }
 0xa98   : > { %v2543_v28 = vmul.f32 0.5, %v2531_v23 }
 0xa99   : > { %v2485_v12 = vmul.f32 0.044715, %v2473_v24 }
 0xa9a   : > { %v2439_v22 = vpop.f32.mrf.mxu0  ;;  %v2555_v39 = vmul.f32 %v2543_v28, %v2433_v58 }
 0xa9b   : > { %v2497_v11 = vadd.f32 %v2485_v12, %v2438_v9  ;;  %v2440_v26 = vadd.f32 %v8048_v10, %v2439_v22 }
 0xa9d   : > { %v7350_v34 = vpop.eup %7349  ;;  %v2509_v35 = vmul.f32 0.7978846, %v2497_v11  ;;  %v2462_v31 = vmul.f32 %v2440_v26, %v2440_v26 }
 0xa9e   : > { %v2532_v30 = vadd.f32 1.0, %v7350_v34 }
 0xa9f   : > { %v2474_v29 = vmul.f32 %v2462_v31, %v2440_v26  ;;  %7351 = vtanh.f32 %v2509_v35 }
 0xaa0   : > { %v2544_v36 = vmul.f32 0.5, %v2532_v30 }
 0xaa1   : > { %v2486_v37 = vmul.f32 0.044715, %v2474_v29 }
 0xaa2   : > { %v2442_v38 = vpop.f32.mrf.mxu0  ;;  %v2556_v56 = vmul.f32 %v2544_v36, %v2435_v16 }
 0xaa3   : > { %v2498_v57 = vadd.f32 %v2486_v37, %v2440_v26  ;;  %v2443_v53 = vadd.f32 %v8048_v10, %v2442_v38 }
 0xaa4   : > { %v2566_v59 = vpack.c.bf16 %v2556_v56, %v2555_v39 }
 0xaa5   : > { %v2510_v60 = vmul.f32 0.7978846, %v2498_v57  ;;  %v2463_v15 = vmul.f32 %v2443_v53, %v2443_v53  ;;  %v7352_v0 = vpop.eup %7351 }
 0xaa6   : > { %6602 = vmatmul.msk.bf16.gmra.mxu3 %vm1225_vm3, %v2566_v59  ;;  %v2533_v17 = vadd.f32 1.0, %v7352_v0 }
 0xaa7   : > { %7353 = vtanh.f32 %v2510_v60  ;;  %v2475_v2 = vmul.f32 %v2463_v15, %v2443_v53 }
 0xaa8   : > { %v2545_v27 = vmul.f32 0.5, %v2533_v17 }
 0xaa9   : > { %v2487_v3 = vmul.f32 0.044715, %v2475_v2 }
 0xaaa   : > { %v2444_v62 = vpop.f32.mrf.mxu0  ;;  %v2557_v20 = vmul.f32 %v2545_v27, %v2438_v9 }
 0xaab   : > { %v2499_v18 = vadd.f32 %v2487_v3, %v2443_v53  ;;  %v2445_v45 = vadd.f32 %v8048_v10, %v2444_v62 }
 0xaad   : > { %v7354_v19 = vpop.eup %7353  ;;  %v2511_v58 = vmul.f32 0.7978846, %v2499_v18  ;;  %v2464_v16 = vmul.f32 %v2445_v45, %v2445_v45 }
 0xaae   : > { %v2534_v46 = vadd.f32 1.0, %v7354_v19 }
 0xaaf   : > { %v2476_v6 = vmul.f32 %v2464_v16, %v2445_v45  ;;  %7355 = vtanh.f32 %v2511_v58 }
 0xab0   : > { %v2546_v32 = vmul.f32 0.5, %v2534_v46 }
 0xab1   : > { %v2488_v14 = vmul.f32 0.044715, %v2476_v6 }
 0xab2   : > { %v2558_v49 = vmul.f32 %v2546_v32, %v2440_v26  ;;  %v2447_v33 = vpop.f32.mrf.mxu0 }
 0xab3   : > { %v2500_v25 = vadd.f32 %v2488_v14, %v2445_v45  ;;  %v2448_v8 = vadd.f32 %v8048_v10, %v2447_v33 }
 0xab4   : > { %v2567_v7 = vpack.c.bf16 %v2558_v49, %v2557_v20 }
 0xab5   : > { %v2512_v21 = vmul.f32 0.7978846, %v2500_v25  ;;  %v2465_v24 = vmul.f32 %v2448_v8, %v2448_v8  ;;  %v7356_v12 = vpop.eup %7355 }
 0xab6   : > { %6603 = vmatmul.msk.bf16.gmra.mxu3 %vm1225_vm3, %v2567_v7  ;;  %v2535_v34 = vadd.f32 1.0, %v7356_v12 }
 0xab7   : > { %7357 = vtanh.f32 %v2512_v21  ;;  %v2477_v22 = vmul.f32 %v2465_v24, %v2448_v8 }
 0xab8   : > { %v2547_v29 = vmul.f32 0.5, %v2535_v34 }
 0xab9   : > { %v2489_v23 = vmul.f32 0.044715, %v2477_v22 }
 0xaba   : > { %v2449_v11 = vpop.f32.mrf.mxu0  ;;  %v2559_v57 = vmul.f32 %v2547_v29, %v2443_v53 }
 0xabb   : > { %v2501_v35 = vadd.f32 %v2489_v23, %v2448_v8  ;;  %v2450_v31 = vadd.f32 %v8048_v10, %v2449_v11 }
 0xabd   : > { %v7358_v26 = vpop.eup %7357  ;;  %v2513_v30 = vmul.f32 0.7978846, %v2501_v35  ;;  %v2466_v9 = vmul.f32 %v2450_v31, %v2450_v31 }
 0xabe   : > { %v2536_v28 = vadd.f32 1.0, %v7358_v26 }
 0xabf   : > { %v2478_v36 = vmul.f32 %v2466_v9, %v2450_v31  ;;  %7359 = vtanh.f32 %v2513_v30 }
 0xac0   : > { %v2548_v37 = vmul.f32 0.5, %v2536_v28 }
 0xac1   : > { %v2490_v38 = vmul.f32 0.044715, %v2478_v36 }
 0xac2   : > { %v2560_v39 = vmul.f32 %v2548_v37, %v2445_v45  ;;  %v2452_v56 = vpop.f32.mrf.mxu0 }
 0xac3   : > { %v2502_v59 = vadd.f32 %v2490_v38, %v2450_v31  ;;  %v2453_v60 = vadd.f32 %v8048_v10, %v2452_v56 }
 0xac4   : > { %v2568_v15 = vpack.c.bf16 %v2560_v39, %v2559_v57 }
 0xac5   : > { %v2514_v0 = vmul.f32 0.7978846, %v2502_v59  ;;  %v2467_v2 = vmul.f32 %v2453_v60, %v2453_v60  ;;  %v7360_v3 = vpop.eup %7359 }
 0xac6   : > { %6604 = vmatmul.msk.bf16.gmra.mxu3 %vm1225_vm3, %v2568_v15  ;;  %v2537_v19 = vadd.f32 1.0, %v7360_v3  ;;  %v7301_v15 = vld [vmem:[%s7550_s14 + $0x4] ss:$0 sm:$0xff] }
 0xac7   : > { %7361 = vtanh.f32 %v2514_v0  ;;  %v2479_v62 = vmul.f32 %v2467_v2, %v2453_v60 }
 0xac8   : > { %v2549_v6 = vmul.f32 0.5, %v2537_v19 }
 0xac9   : > { %v2491_v17 = vmul.f32 0.044715, %v2479_v62 }
 0xaca   : > { %v2454_v18 = vpop.f32.mrf.mxu0  ;;  %v2561_v20 = vmul.f32 %v2549_v6, %v2448_v8 }
 0xacb   : > { %v2503_v58 = vadd.f32 %v2491_v17, %v2453_v60  ;;  %v2455_v16 = vadd.f32 %v8048_v10, %v2454_v18 }
 0xacd   : > { %v7362_v45 = vpop.eup %7361  ;;  %v2515_v46 = vmul.f32 0.7978846, %v2503_v58  ;;  %v2468_v53 = vmul.f32 %v2455_v16, %v2455_v16 }
 0xace   : > { %v2538_v27 = vadd.f32 1.0, %v7362_v45 }
 0xacf   : > { %v2480_v32 = vmul.f32 %v2468_v53, %v2455_v16  ;;  %7363 = vtanh.f32 %v2515_v46 }
 0xad0   : > { %v2550_v14 = vmul.f32 0.5, %v2538_v27 }
 0xad1   : > { %v2492_v49 = vmul.f32 0.044715, %v2480_v32 }
 0xad2   : > { %v2562_v33 = vmul.f32 %v2550_v14, %v2450_v31 }
 0xad3   : > { %v2504_v25 = vadd.f32 %v2492_v49, %v2455_v16 }
 0xad4   : > { %v2569_v7 = vpack.c.bf16 %v2562_v33, %v2561_v20  ;;  %v7129_v33 = vld [vmem:[%s7535_s29 + $0x80] sm:$0xff] }
 0xad5   : > { %v2516_v21 = vmul.f32 0.7978846, %v2504_v25  ;;  %v7364_v24 = vpop.eup %7363 }
 0xad6   : > { %6605 = vmatmul.msk.bf16.gmra.mxu3 %vm1225_vm3, %v2569_v7  ;;  %v2539_v12 = vadd.f32 1.0, %v7364_v24 }
 0xad7   : > { %7365 = vtanh.f32 %v2516_v21 }
 0xad8   : > { %v2551_v23 = vmul.f32 0.5, %v2539_v12 }
 0xada   : > { %v2563_v35 = vmul.f32 %v2551_v23, %v2453_v60 }
 0xadd   : > { %v7366_v10 = vpop.eup %7365 }
 0xade   : > { %v2540_v22 = vadd.f32 1.0, %v7366_v10 }
 0xae0   : > { %v2552_v11 = vmul.f32 0.5, %v2540_v22 }
 0xae2   : > { %v2564_v34 = vmul.f32 %v2552_v11, %v2455_v16 }
 0xae4   : > { %v2570_v26 = vpack.c.bf16 %v2564_v34, %v2563_v35 }
 0xae6   : > { %6606 = vmatmul.msk.bf16.gmra.mxu3 %vm1225_vm3, %v2570_v26 }
 0xb19   : > { %v2647_v31 = vpop.f32.mrf.mxu3 }
 0xb21   : > { %v2649_v8 = vpop.f32.mrf.mxu3 }
 0xb22   : > { %v2678_v27 = vadd.f32 %v2649_v8, %v7969_v41  ;;  %v7135_v8 = vld [vmem:[%s9640_s8 + $0x110] sm:$0xff] }
 0xb24   : > { %v8110_v14 = vadd.f32 %v7301_v15, %v2678_v27 }
 0xb29   : > { %v2652_v30 = vpop.f32.mrf.mxu3 }
 0xb2a   : > { %v2679_v53 = vadd.f32 %v2652_v30, %v7971_v42  ;;  %v7134_v30 = vld [vmem:[%s9640_s8 + $0x108] sm:$0xff] }
 0xb2c   : > { %v8108_v32 = vadd.f32 %v7301_v15, %v2679_v53 }
 0xb31   : > { %v2654_v9 = vpop.f32.mrf.mxu3 }
 0xb32   : > { %v2680_v45 = vadd.f32 %v2654_v9, %v7973_v43  ;;  %v2677_v43 = vadd.f32 %v2647_v31, %v7967_v40  ;;  %v7130_v40 = vld [vmem:[%s7535_s29 + $0x88] sm:$0xff]  ;;  %v7136_v31 = vld [vmem:[%s9640_s8 + $0x118] sm:$0xff]  ;;  %v7133_v9 = vld [vmem:[%s9640_s8 + $0x100] sm:$0xff] }
 0xb33   : > { %2810 = vmatpush.bf16.msra.mxu1 %v7130_v40  ;;  %3027 = vmatpush.bf16.msrb.mxu0 %v7136_v31 }
 0xb34   : > { %v8103_v6 = vadd.f32 %v7301_v15, %v2680_v45  ;;  %v8114_v49 = vadd.f32 %v7301_v15, %v2677_v43 }
 0xb36   : > { %v2707_v42 = vpack.c.bf16 %v8103_v6, %v8108_v32  ;;  %v2706_v41 = vpack.c.bf16 %v8110_v14, %v8114_v49 }
 0xb37   : > { %2811 = vmatpush.bf16.msra.mxu1 %v7129_v33  ;;  %3028 = vmatpush.bf16.msrb.mxu0 %v7135_v8 }
 0xb39   : > { %v2657_v28 = vpop.f32.mrf.mxu3 }
 0xb3a   : > { %v2681_v16 = vadd.f32 %v2657_v28, %v7975_v44  ;;  %v7132_v28 = vld [vmem:[%s9640_s8 + $0xf8] sm:$0xff] }
 0xb3b   : > { %3029 = vmatpush.bf16.msrb.mxu0 %v7134_v30 }
 0xb3f   : > { %3030 = vmatpush.bf16.msrb.mxu0 %v7133_v9 }
 0xb41   : > { %v2659_v29 = vpop.f32.mrf.mxu3 }
 0xb43   : > { %3031 = vmatpush.bf16.msrb.mxu0 %v7132_v28 }
 0xb49   : > { %v2662_v36 = vpop.f32.mrf.mxu3 }
 0xb51   : > { %v2664_v37 = vpop.f32.mrf.mxu3 }
 0xb52   : > { %v2684_v17 = vadd.f32 %v2664_v37, %v7981_v50 }
 0xb59   : > { %v2667_v38 = vpop.f32.mrf.mxu3 }
 0xb5a   : > { %v2685_v2 = vadd.f32 %v2667_v38, %v7983_v51 }
 0xb5c   : > { %v8084_v58 = vadd.f32 %v7301_v15, %v2685_v2 }
 0xb61   : > { %v2669_v39 = vpop.f32.mrf.mxu3 }
 0xb62   : > { %v2686_v60 = vadd.f32 %v2669_v39, %v7985_v52  ;;  %v2682_v52 = vadd.f32 %v2659_v29, %v7977_v47  ;;  %v8100_v47 = vadd.f32 %v7301_v15, %v2681_v16  ;;  %v8145_v29 = vld [vmem:[%s9641_s3 + $0x5] ss:$0 sm:$0xff]  ;;  %s9648_s3 = sld [smem:[#allocation21_spill]] }
 0xb64   : > { %v8079_v18 = vadd.f32 %v7301_v15, %v2686_v60  ;;  %v8095_v46 = vadd.f32 %v7301_v15, %v2682_v52 }
 0xb66   : > { %v2710_v51 = vpack.c.bf16 %v8079_v18, %v8084_v58  ;;  %v2708_v44 = vpack.c.bf16 %v8095_v46, %v8100_v47 }
 0xb69   : > { %v2672_v56 = vpop.f32.mrf.mxu3 }
 0xb6a   : > { %v2687_v57 = vadd.f32 %v2672_v56, %v7987_v54  ;;  %v2683_v54 = vadd.f32 %v2662_v36, %v7979_v48  ;;  %v7131_v36 = vld [vmem:[%s9640_s8 + $0xf0] sm:$0xff]  ;;  %s8278_s8 = scalar_lea.vmem %s9648_s3, %s7211_s5  ;;  %s9649_s5 = sld [smem:[#allocation22_spill]] }
 0xb6b   : > { %3032 = vmatpush.bf16.msrb.mxu0 %v7131_v36  ;;  %s7212_s3 = smul.u32 192, %s7712_s18 }
 0xb6c   : > { %v8074_v3 = vadd.f32 %v7301_v15, %v2687_v57  ;;  %v8092_v50 = vadd.f32 %v7301_v15, %v2683_v54 }
 0xb71   : > { %v2674_v59 = vpop.f32.mrf.mxu3 }
 0xb72   : > { %v2688_v0 = vadd.f32 %v2674_v59, %v7989_v55  ;;  %v8087_v55 = vadd.f32 %v7301_v15, %v2684_v17 }
 0xb74   : > { %v8076_v62 = vadd.f32 %v7301_v15, %v2688_v0  ;;  %v2709_v48 = vpack.c.bf16 %v8087_v55, %v8092_v50 }
 0xb76   : > { %v2711_v19 = vpack.c.bf16 %v8076_v62, %v8074_v3 }
 0xb78   : > { %2714 = vmatpush.bf16.msrb.mxu2 %v2711_v19 }
 0xb7c   : > { %2715 = vmatpush.bf16.msrb.mxu2 %v2710_v51 }
 0xb80   : > { %2716 = vmatpush.bf16.msrb.mxu2 %v2709_v48 }
 0xb84   : > { %2717 = vmatpush.bf16.msrb.mxu2 %v2708_v44 }
 0xb88   : > { %2718 = vmatpush.bf16.msrb.mxu2 %v2707_v42 }
 0xb8c   : > { %2719 = vmatpush.bf16.msrb.mxu2 %v2706_v41 }
 0xb8f   : > { %6608 = vmatmul.msk.bf16.vlgmr.msrb.gmra.mxu2 %vm1225_vm3, %v8004_v61  ;;  %v7128_v61 = vld [vmem:[%s7535_s29 + $0x78] sm:$0xff] }
 0xb90   : > { %2812 = vmatpush.bf16.msra.mxu1 %v7128_v61 }
 0xb9f   : > { %6609 = vmatmul.msk.bf16.gmra.mxu2 %vm1225_vm3, %v8009_v63 }
 0xbaf   : > { %6610 = vmatmul.msk.bf16.gmra.mxu2 %vm1225_vm3, %v8014_v1 }
 0xbbf   : > { %6611 = vmatmul.msk.bf16.gmra.mxu2 %vm1225_vm3, %v8019_v4 }
 0xbcf   : > { %6612 = vmatmul.msk.bf16.gmra.mxu2 %vm1225_vm3, %v8024_v5 }
 0xbdf   : > { %6613 = vmatmul.msk.bf16.gmra.mxu2 %vm1225_vm3, %v8029_v13 }
 0xc12   : > { %v2721_v20 = vpop.f32.mrf.mxu2 }
 0xc1a   : > { %v2723_v63 = vpop.f32.mrf.mxu2 }
 0xc1b   : > { %v2751_v25 = vpack.c.bf16 %v2723_v63, %v2721_v20 }
 0xc1d   : > { %6633 = vmatmul.msk.bf16.vlgmr.msra.gmra.mxu1 %vm1123_vm2, %v2751_v25 }
 0xc22   : > { %v2726_v1 = vpop.f32.mrf.mxu2 }
 0xc2a   : > { %v2728_v7 = vpop.f32.mrf.mxu2 }
 0xc2b   : > { %v2752_v4 = vpack.c.bf16 %v2728_v7, %v2726_v1 }
 0xc2d   : > { %6634 = vmatmul.msk.bf16.gmra.mxu1 %vm1123_vm2, %v2752_v4 }
 0xc32   : > { %v2731_v21 = vpop.f32.mrf.mxu2 }
 0xc3a   : > { %v2733_v5 = vpop.f32.mrf.mxu2 }
 0xc3b   : > { %v2753_v24 = vpack.c.bf16 %v2733_v5, %v2731_v21 }
 0xc3d   : > { %6635 = vmatmul.msk.bf16.gmra.mxu1 %vm1123_vm2, %v2753_v24 }
 0xc42   : > { %v2736_v13 = vpop.f32.mrf.mxu2 }
 0xc4a   : > { %v2738_v12 = vpop.f32.mrf.mxu2 }
 0xc4b   : > { %v2754_v10 = vpack.c.bf16 %v2738_v12, %v2736_v13 }
 0xc4d   : > { %6636 = vmatmul.msk.bf16.gmra.mxu1 %vm1123_vm2, %v2754_v10 }
 0xc52   : > { %v2741_v22 = vpop.f32.mrf.mxu2 }
 0xc5a   : > { %v2743_v23 = vpop.f32.mrf.mxu2 }
 0xc5b   : > { %v2755_v11 = vpack.c.bf16 %v2743_v23, %v2741_v22 }
 0xc5d   : > { %6637 = vmatmul.msk.bf16.gmra.mxu1 %vm1123_vm2, %v2755_v11 }
 0xc62   : > { %v2746_v34 = vpop.f32.mrf.mxu2 }
 0xc6a   : > { %v2748_v35 = vpop.f32.mrf.mxu2 }
 0xc6b   : > { %v2756_v26 = vpack.c.bf16 %v2748_v35, %v2746_v34 }
 0xc6d   : > { %6638 = vmatmul.msk.bf16.gmra.mxu1 %vm1123_vm2, %v2756_v26 }
 0xc9a   : > { %v2814_v37 = vpop.f32.mrf.mxu1 }
 0xc9b   : > { %v2815_v38 = vadd.f32 %v8145_v29, %v2814_v37 }
 0xc9d   : > { %v2844_v39 = vmul.f32 %v2815_v38, %v2815_v38 }
 0xc9f   : > { %v2856_v56 = vmul.f32 %v2844_v39, %v2815_v38 }
 0xca1   : > { %v2868_v57 = vmul.f32 0.044715, %v2856_v56 }
 0xca2   : > { %v2816_v59 = vpop.f32.mrf.mxu1 }
 0xca3   : > { %v2880_v15 = vadd.f32 %v2868_v57, %v2815_v38  ;;  %v2817_v60 = vadd.f32 %v8145_v29, %v2816_v59 }
 0xca5   : > { %v2892_v0 = vmul.f32 0.7978846, %v2880_v15  ;;  %v2845_v2 = vmul.f32 %v2817_v60, %v2817_v60 }
 0xca7   : > { %v2857_v17 = vmul.f32 %v2845_v2, %v2817_v60  ;;  %7367 = vtanh.f32 %v2892_v0 }
 0xca9   : > { %v2869_v19 = vmul.f32 0.044715, %v2857_v17 }
 0xcaa   : > { %v2819_v54 = vpop.f32.mrf.mxu1 }
 0xcab   : > { %v2881_v52 = vadd.f32 %v2869_v19, %v2817_v60  ;;  %v2820_v51 = vadd.f32 %v8145_v29, %v2819_v54 }
 0xcad   : > { %v2893_v16 = vmul.f32 0.7978846, %v2881_v52  ;;  %v2846_v45 = vmul.f32 %v2820_v51, %v2820_v51  ;;  %v7368_v48 = vpop.eup %7367 }
 0xcae   : > { %v2916_v44 = vadd.f32 1.0, %v7368_v48 }
 0xcaf   : > { %7369 = vtanh.f32 %v2893_v16  ;;  %v2858_v53 = vmul.f32 %v2846_v45, %v2820_v51 }
 0xcb0   : > { %v2928_v20 = vmul.f32 0.5, %v2916_v44 }
 0xcb1   : > { %v2870_v27 = vmul.f32 0.044715, %v2858_v53 }
 0xcb2   : > { %v2821_v43 = vpop.f32.mrf.mxu1  ;;  %v2940_v4 = vmul.f32 %v2928_v20, %v2815_v38 }
 0xcb3   : > { %v2882_v42 = vadd.f32 %v2870_v27, %v2820_v51  ;;  %v2822_v41 = vadd.f32 %v8145_v29, %v2821_v43 }
 0xcb5   : > { %v7370_v40 = vpop.eup %7369  ;;  %v2894_v33 = vmul.f32 0.7978846, %v2882_v42  ;;  %v2847_v61 = vmul.f32 %v2822_v41, %v2822_v41 }
 0xcb6   : > { %v2917_v63 = vadd.f32 1.0, %v7370_v40 }
 0xcb7   : > { %v2859_v25 = vmul.f32 %v2847_v61, %v2822_v41  ;;  %7371 = vtanh.f32 %v2894_v33 }
 0xcb8   : > { %v2929_v1 = vmul.f32 0.5, %v2917_v63 }
 0xcb9   : > { %v2871_v7 = vmul.f32 0.044715, %v2859_v25 }
 0xcba   : > { %v2941_v21 = vmul.f32 %v2929_v1, %v2817_v60  ;;  %v2824_v5 = vpop.f32.mrf.mxu1 }
 0xcbb   : > { %v2883_v24 = vadd.f32 %v2871_v7, %v2822_v41  ;;  %v2825_v13 = vadd.f32 %v8145_v29, %v2824_v5 }
 0xcbc   : > { %v2952_v12 = vpack.c.bf16 %v2941_v21, %v2940_v4 }
 0xcbd   : > { %v2895_v10 = vmul.f32 0.7978846, %v2883_v24  ;;  %v2848_v22 = vmul.f32 %v2825_v13, %v2825_v13  ;;  %v7372_v23 = vpop.eup %7371 }
 0xcbe   : > { %6675 = vmatmul.msk.bf16.vlgmr.msrb.gmra.mxu0 %vm1225_vm3, %v2952_v12  ;;  %v2918_v26 = vadd.f32 1.0, %v7372_v23 }
 0xcbf   : > { %7373 = vtanh.f32 %v2895_v10  ;;  %v2860_v11 = vmul.f32 %v2848_v22, %v2825_v13 }
 0xcc0   : > { %v2930_v37 = vmul.f32 0.5, %v2918_v26 }
 0xcc1   : > { %v2872_v34 = vmul.f32 0.044715, %v2860_v11 }
 0xcc2   : > { %v2826_v35 = vpop.f32.mrf.mxu1  ;;  %v2942_v59 = vmul.f32 %v2930_v37, %v2820_v51 }
 0xcc3   : > { %v2884_v31 = vadd.f32 %v2872_v34, %v2825_v13  ;;  %v2827_v8 = vadd.f32 %v8145_v29, %v2826_v35 }
 0xcc5   : > { %v7374_v30 = vpop.eup %7373  ;;  %v2896_v9 = vmul.f32 0.7978846, %v2884_v31  ;;  %v2849_v28 = vmul.f32 %v2827_v8, %v2827_v8 }
 0xcc6   : > { %v2919_v36 = vadd.f32 1.0, %v7374_v30 }
 0xcc7   : > { %v2861_v38 = vmul.f32 %v2849_v28, %v2827_v8  ;;  %7375 = vtanh.f32 %v2896_v9 }
 0xcc8   : > { %v2931_v39 = vmul.f32 0.5, %v2919_v36 }
 0xcc9   : > { %v2873_v56 = vmul.f32 0.044715, %v2861_v38 }
 0xcca   : > { %v2829_v57 = vpop.f32.mrf.mxu1  ;;  %v2943_v15 = vmul.f32 %v2931_v39, %v2822_v41 }
 0xccb   : > { %v2885_v60 = vadd.f32 %v2873_v56, %v2827_v8  ;;  %v2830_v0 = vadd.f32 %v8145_v29, %v2829_v57 }
 0xccc   : > { %v2953_v2 = vpack.c.bf16 %v2943_v15, %v2942_v59 }
 0xccd   : > { %v2897_v17 = vmul.f32 0.7978846, %v2885_v60  ;;  %v2850_v19 = vmul.f32 %v2830_v0, %v2830_v0  ;;  %v7376_v54 = vpop.eup %7375  ;;  %v3098_v60 = vld [vmem:[%s7555_s19 + $0x28] sm:$0xff] }
 0xcce   : > { %6676 = vmatmul.msk.bf16.gmra.mxu0 %vm1225_vm3, %v2953_v2  ;;  %v2920_v48 = vadd.f32 1.0, %v7376_v54  ;;  %v3097_v2 = vld [vmem:[%s7555_s19 + $0x20] sm:$0xff]  ;;  %3149 = vmatpush.msrb.mxu3 %v3098_v60  ;;  %v3096_v54 = vld [vmem:[%s7555_s19 + $0x18] sm:$0xff] }
 0xccf   : > { %7377 = vtanh.f32 %v2897_v17  ;;  %v2862_v52 = vmul.f32 %v2850_v19, %v2830_v0  ;;  %3635 = vmatpush.msra.mxu0 %v3098_v60  ;;  %7197 = vmatpush.msrb.mxu1 %v3098_v60 }
 0xcd0   : > { %v2932_v41 = vmul.f32 0.5, %v2920_v48  ;;  %3150 = vmatpush.msrb.mxu3 %v3097_v2 }
 0xcd1   : > { %v2874_v16 = vmul.f32 0.044715, %v2862_v52  ;;  %3636 = vmatpush.msra.mxu0 %v3097_v2  ;;  %7198 = vmatpush.msrb.mxu1 %v3097_v2 }
 0xcd2   : > { %v2831_v45 = vpop.f32.mrf.mxu1  ;;  %v2944_v63 = vmul.f32 %v2932_v41, %v2825_v13  ;;  %3151 = vmatpush.msrb.mxu3 %v3096_v54 }
 0xcd3   : > { %v2886_v53 = vadd.f32 %v2874_v16, %v2830_v0  ;;  %v2832_v27 = vadd.f32 %v8145_v29, %v2831_v45  ;;  %3637 = vmatpush.msra.mxu0 %v3096_v54  ;;  %7199 = vmatpush.msrb.mxu1 %v3096_v54 }
 0xcd5   : > { %v7378_v44 = vpop.eup %7377  ;;  %v2898_v51 = vmul.f32 0.7978846, %v2886_v53  ;;  %v2851_v43 = vmul.f32 %v2832_v27, %v2832_v27 }
 0xcd6   : > { %v2921_v42 = vadd.f32 1.0, %v7378_v44 }
 0xcd7   : > { %v2863_v40 = vmul.f32 %v2851_v43, %v2832_v27  ;;  %7379 = vtanh.f32 %v2898_v51 }
 0xcd8   : > { %v2933_v33 = vmul.f32 0.5, %v2921_v42 }
 0xcd9   : > { %v2875_v61 = vmul.f32 0.044715, %v2863_v40 }
 0xcda   : > { %v2834_v20 = vpop.f32.mrf.mxu1  ;;  %v2945_v25 = vmul.f32 %v2933_v33, %v2827_v8 }
 0xcdb   : > { %v2887_v1 = vadd.f32 %v2875_v61, %v2832_v27  ;;  %v2835_v7 = vadd.f32 %v8145_v29, %v2834_v20 }
 0xcdc   : > { %v2954_v4 = vpack.c.bf16 %v2945_v25, %v2944_v63 }
 0xcdd   : > { %v2899_v21 = vmul.f32 0.7978846, %v2887_v1  ;;  %v2852_v5 = vmul.f32 %v2835_v7, %v2835_v7  ;;  %v7380_v24 = vpop.eup %7379 }
 0xcde   : > { %6677 = vmatmul.msk.bf16.gmra.mxu0 %vm1225_vm3, %v2954_v4  ;;  %v2922_v23 = vadd.f32 1.0, %v7380_v24 }
 0xcdf   : > { %7381 = vtanh.f32 %v2899_v21  ;;  %v2864_v12 = vmul.f32 %v2852_v5, %v2835_v7 }
 0xce0   : > { %v2934_v8 = vmul.f32 0.5, %v2922_v23  ;;  %v3094_v23 = vld [vmem:[%s7555_s19 + $0x8] sm:$0xff] }
 0xce1   : > { %v2876_v10 = vmul.f32 0.044715, %v2864_v12 }
 0xce2   : > { %v2836_v22 = vpop.f32.mrf.mxu1  ;;  %v2946_v37 = vmul.f32 %v2934_v8, %v2830_v0 }
 0xce3   : > { %v2888_v11 = vadd.f32 %v2876_v10, %v2835_v7  ;;  %v2837_v34 = vadd.f32 %v8145_v29, %v2836_v22  ;;  %v3095_v22 = vld [vmem:[%s7555_s19 + $0x10] sm:$0xff] }
 0xce4   : > { %3152 = vmatpush.msrb.mxu3 %v3095_v22  ;;  %3638 = vmatpush.msra.mxu0 %v3095_v22 }
 0xce5   : > { %v7382_v35 = vpop.eup %7381  ;;  %v2900_v13 = vmul.f32 0.7978846, %v2888_v11  ;;  %v2853_v26 = vmul.f32 %v2837_v34, %v2837_v34  ;;  %7200 = vmatpush.msrb.mxu1 %v3095_v22  ;;  %v3093_v11 = vld [vmem:[%s7555_s19] sm:$0xff]  ;;  %v3239_v22 = vld [vmem:[%s9645_s10 + $0x28] sm:$0xff] }
 0xce6   : > { %v2923_v31 = vadd.f32 1.0, %v7382_v35  ;;  %3153 = vmatpush.msrb.mxu3 %v3094_v23  ;;  %3639 = vmatpush.msra.mxu0 %v3094_v23 }
 0xce7   : > { %v2865_v30 = vmul.f32 %v2853_v26, %v2837_v34  ;;  %7383 = vtanh.f32 %v2900_v13  ;;  %7201 = vmatpush.msrb.mxu1 %v3094_v23  ;;  %v3253_v23 = vld [vmem:[%s9645_s10 + $0x98] sm:$0xff] }
 0xce8   : > { %v2935_v9 = vmul.f32 0.5, %v2923_v31  ;;  %3154 = vmatpush.msrb.mxu3 %v3093_v11  ;;  %3640 = vmatpush.msra.mxu0 %v3093_v11 }
 0xce9   : > { %v2877_v28 = vmul.f32 0.044715, %v2865_v30  ;;  %7202 = vmatpush.msrb.mxu1 %v3093_v11  ;;  %v7137_v11 = vld [vmem:[%s9646_s1] sm:$0xff] }
 0xcea   : > { %v2839_v36 = vpop.f32.mrf.mxu1  ;;  %v2947_v38 = vmul.f32 %v2935_v9, %v2832_v27 }
 0xceb   : > { %v2889_v39 = vadd.f32 %v2877_v28, %v2837_v34  ;;  %v2840_v56 = vadd.f32 %v8145_v29, %v2839_v36 }
 0xcec   : > { %v2955_v57 = vpack.c.bf16 %v2947_v38, %v2946_v37 }
 0xced   : > { %v2901_v59 = vmul.f32 0.7978846, %v2889_v39  ;;  %v2854_v15 = vmul.f32 %v2840_v56, %v2840_v56  ;;  %v7384_v17 = vpop.eup %7383 }
 0xcee   : > { %6678 = vmatmul.msk.bf16.gmra.mxu0 %vm1225_vm3, %v2955_v57  ;;  %v2924_v16 = vadd.f32 1.0, %v7384_v17  ;;  %v7495_v17 = vmov 0  }
 0xcef   : > { %7385 = vtanh.f32 %v2901_v59  ;;  %v2866_v19 = vmul.f32 %v2854_v15, %v2840_v56  ;;  %7287 = vset.pattern.permute.xlu0 %v7495_v17  ;;  %7288 = vset.pattern.permute.xlu1 %v7495_v17 }
 0xcf0   : > { %v2936_v43 = vmul.f32 0.5, %v2924_v16  ;;  %7289 = vset.pattern.permute.xlu2 %v7495_v17  ;;  %v3803_v17 = vld [vmem:[%s9647_s7 + $0x28] sm:$0xff] }
 0xcf1   : > { %v2878_v52 = vmul.f32 0.044715, %v2866_v19  ;;  %v3234_v19 = vld [vmem:[%s9645_s10] sm:$0xff] }
 0xcf2   : > { %v2841_v0 = vpop.f32.mrf.mxu1  ;;  %v2948_v33 = vmul.f32 %v2936_v43, %v2835_v7  ;;  %3260 = vperm.xlu0 %7287, %v3234_v19   ;;  %v3811_v19 = vld [vmem:[%s9647_s7 + $0x68] sm:$0xff] }
 0xcf3   : > { %v2890_v45 = vadd.f32 %v2878_v52, %v2840_v56  ;;  %v2842_v48 = vadd.f32 %v8145_v29, %v2841_v0  ;;  %v3249_v52 = vld [vmem:[%s9645_s10 + $0x78] sm:$0xff] }
 0xcf4   : > { %3335 = vperm.xlu1 %7288, %v3249_v52  }
 0xcf5   : > { %v7386_v53 = vpop.eup %7385  ;;  %v2902_v27 = vmul.f32 0.7978846, %v2890_v45  ;;  %v2855_v44 = vmul.f32 %v2842_v48, %v2842_v48 }
 0xcf6   : > { %v2925_v51 = vadd.f32 1.0, %v7386_v53 }
 0xcf7   : > { %v2867_v42 = vmul.f32 %v2855_v44, %v2842_v48  ;;  %7387 = vtanh.f32 %v2902_v27 }
 0xcf8   : > { %v2937_v41 = vmul.f32 0.5, %v2925_v51  ;;  %v3245_v51 = vld [vmem:[%s9645_s10 + $0x58] sm:$0xff] }
 0xcf9   : > { %v2879_v40 = vmul.f32 0.044715, %v2867_v42 }
 0xcfa   : > { %v2949_v61 = vmul.f32 %v2937_v41, %v2837_v34  ;;  %v8173_v34 = vld [vmem:[%s7550_s14 + $0x5] ss:$0 sm:$0xff] }
 0xcfb   : > { %v2891_v20 = vadd.f32 %v2879_v40, %v2842_v48  ;;  %v3246_v40 = vld [vmem:[%s9645_s10 + $0x60] sm:$0xff] }
 0xcfc   : > { %v2956_v63 = vpack.c.bf16 %v2949_v61, %v2948_v33  ;;  %v3243_v33 = vld [vmem:[%s9645_s10 + $0x48] sm:$0xff]  ;;  %3320 = vperm.xlu2 %7289, %v3246_v40   ;;  %v3822_v40 = vld [vmem:[%s9647_s7 + $0xc0] sm:$0xff] }
 0xcfd   : > { %v2903_v25 = vmul.f32 0.7978846, %v2891_v20  ;;  %v7388_v29 = vpop.eup %7387 }
 0xcfe   : > { %6679 = vmatmul.msk.bf16.gmra.mxu0 %vm1225_vm3, %v2956_v63  ;;  %v2926_v1 = vadd.f32 1.0, %v7388_v29  ;;  %v3240_v29 = vld [vmem:[%s9645_s10 + $0x30] sm:$0xff] }
 0xcff   : > { %7389 = vtanh.f32 %v2903_v25  ;;  %v3247_v25 = vld [vmem:[%s9645_s10 + $0x68] sm:$0xff] }
 0xd00   : > { %v2938_v5 = vmul.f32 0.5, %v2926_v1 }
 0xd02   : > { %v2950_v12 = vmul.f32 %v2938_v5, %v2840_v56  ;;  %v3236_v5 = vld [vmem:[%s9645_s10 + $0x10] sm:$0xff] }
 0xd04   : > { %3325 = vperm.xlu2 %7289, %v3247_v25  }
 0xd05   : > { %v7390_v4 = vpop.eup %7389 }
 0xd06   : > { %v2927_v21 = vadd.f32 1.0, %v7390_v4  ;;  %v3254_v4 = vld [vmem:[%s9645_s10 + $0xa0] sm:$0xff] }
 0xd08   : > { %v2939_v24 = vmul.f32 0.5, %v2927_v21 }
 0xd0a   : > { %v2951_v10 = vmul.f32 %v2939_v24, %v2842_v48  ;;  %v3235_v48 = vld [vmem:[%s9645_s10 + $0x8] sm:$0xff] }
 0xd0b   : > { %3265 = vperm.xlu1 %7288, %v3235_v48   ;;  %v3255_v24 = vld [vmem:[%s9645_s10 + $0xa8] sm:$0xff] }
 0xd0c   : > { %v2957_v7 = vpack.c.bf16 %v2951_v10, %v2950_v12  ;;  %3270 = vperm.xlu2 %7289, %v3236_v5   ;;  %v3238_v12 = vld [vmem:[%s9645_s10 + $0x20] sm:$0xff] }
 0xd0e   : > { %6680 = vmatmul.msk.bf16.gmra.mxu0 %vm1225_vm3, %v2957_v7  ;;  %v3256_v7 = vld [vmem:[%s9645_s10 + $0xb0] sm:$0xff] }
 0xd13   : > { %3315 = vperm.xlu1 %7288, %v3245_v51  }
 0xd14   : > { %3370 = vperm.xlu2 %7289, %v3256_v7  }
 0xd1b   : > { %3305 = vperm.xlu1 %7288, %v3243_v33  }
 0xd23   : > { %3290 = vperm.xlu1 %7288, %v3240_v29  }
 0xd2b   : > { %3365 = vperm.xlu1 %7288, %v3255_v24  }
 0xd33   : > { %3285 = vperm.xlu1 %7288, %v3239_v22  }
 0xd3b   : > { %v3034_v35 = vpop.f32.mrf.mxu0 }
 0xd3c   : > { %v3064_v13 = vadd.f32 %v3034_v35, %v8114_v49  ;;  %v3250_v35 = vld [vmem:[%s9645_s10 + $0x80] sm:$0xff] }
 0xd3d   : > { %3340 = vperm.xlu1 %7288, %v3250_v35   ;;  %v3834_v35 = vld [vmem:[%s9647_s7 + $0x120] sm:$0xff] }
 0xd3e   : > { %v8177_v26 = vadd.f32 %v8173_v34, %v3064_v13  ;;  %v3798_v13 = vld [vmem:[%s9647_s7] sm:$0xff] }
 0xd40   : > { %6682 = vmatmul.msk.f32.vlgmr.msrb.gmra.mxu3 %vm1123_vm2, %v8177_v26 }
 0xd43   : > { %v3036_v31 = vpop.f32.mrf.mxu0 }
 0xd44   : > { %v3065_v8 = vadd.f32 %v3036_v31, %v8110_v14  ;;  %v3237_v31 = vld [vmem:[%s9645_s10 + $0x18] sm:$0xff] }
 0xd46   : > { %v8183_v30 = vadd.f32 %v8173_v34, %v3065_v8  ;;  %v3799_v8 = vld [vmem:[%s9647_s7 + $0x8] sm:$0xff] }
 0xd47   : > { %3853 = vperm.xlu1 %7288, %v3799_v8   ;;  %v3827_v8 = vld [vmem:[%s9647_s7 + $0xe8] sm:$0xff] }
 0xd48   : > { %6683 = vmatmul.msk.f32.gmra.mxu3 %vm1123_vm2, %v8183_v30  ;;  %v3228_v9 = vpack.c.bf16 %v8183_v30, %v8177_v26  ;;  %v7138_v26 = vld [vmem:[%s9646_s1 + $0x8] sm:$0xff]  ;;  %v3252_v30 = vld [vmem:[%s9645_s10 + $0x90] sm:$0xff] }
 0xd4b   : > { %v3039_v28 = vpop.f32.mrf.mxu0 }
 0xd4c   : > { %v3066_v49 = vadd.f32 %v3039_v28, %v8108_v32  ;;  %v3801_v28 = vld [vmem:[%s9647_s7 + $0x18] sm:$0xff] }
 0xd4e   : > { %v8191_v36 = vadd.f32 %v8173_v34, %v3066_v49  ;;  %v8273_v49 = vld [vmem:[%s7560_s24] ss:$0 sm:$0xff] }
 0xd50   : > { %6684 = vmatmul.msk.f32.gmra.mxu3 %vm1123_vm2, %v8191_v36 }
 0xd53   : > { %v3041_v37 = vpop.f32.mrf.mxu0 }
 0xd54   : > { %v3067_v14 = vadd.f32 %v3041_v37, %v8103_v6 }
 0xd56   : > { %v8197_v38 = vadd.f32 %v8173_v34, %v3067_v14 }
 0xd58   : > { %6685 = vmatmul.msk.f32.gmra.mxu3 %vm1123_vm2, %v8197_v38  ;;  %v3229_v39 = vpack.c.bf16 %v8197_v38, %v8191_v36  ;;  %v3804_v36 = vld [vmem:[%s9647_s7 + $0x30] sm:$0xff]  ;;  %v3251_v38 = vld [vmem:[%s9645_s10 + $0x88] sm:$0xff] }
 0xd5b   : > { %v3044_v32 = vpop.f32.mrf.mxu0 }
 0xd5c   : > { %v3068_v56 = vadd.f32 %v3044_v32, %v8100_v47  ;;  %v3807_v32 = vld [vmem:[%s9647_s7 + $0x48] sm:$0xff] }
 0xd5e   : > { %v8205_v57 = vadd.f32 %v8173_v34, %v3068_v56 }
 0xd60   : > { %6686 = vmatmul.msk.f32.gmra.mxu3 %vm1123_vm2, %v8205_v57 }
 0xd63   : > { %v3046_v6 = vpop.f32.mrf.mxu0 }
 0xd64   : > { %v3069_v59 = vadd.f32 %v3046_v6, %v8095_v46  ;;  %v7139_v6 = vld [vmem:[%s9646_s1 + $0x10] sm:$0xff] }
 0xd66   : > { %v8211_v15 = vadd.f32 %v8173_v34, %v3069_v59  ;;  %v3800_v59 = vld [vmem:[%s9647_s7 + $0x10] sm:$0xff] }
 0xd68   : > { %6687 = vmatmul.msk.f32.gmra.mxu3 %vm1123_vm2, %v8211_v15  ;;  %v3230_v10 = vpack.c.bf16 %v8211_v15, %v8205_v57  ;;  %v3808_v15 = vld [vmem:[%s9647_s7 + $0x50] sm:$0xff] }
 0xd6b   : > { %v3049_v60 = vpop.f32.mrf.mxu0 }
 0xd6c   : > { %v3070_v47 = vadd.f32 %v3049_v60, %v8092_v50  ;;  %v3248_v50 = vld [vmem:[%s9645_s10 + $0x70] sm:$0xff]  ;;  %v3810_v60 = vld [vmem:[%s9647_s7 + $0x60] sm:$0xff] }
 0xd6d   : > { %3330 = vperm.xlu0 %7287, %v3248_v50   ;;  %v3806_v50 = vld [vmem:[%s9647_s7 + $0x40] sm:$0xff] }
 0xd6e   : > { %v3087_v2 = vadd.f32 %v8173_v34, %v3070_v47 }
 0xd70   : > { %6688 = vmatmul.msk.f32.gmra.mxu3 %vm1123_vm2, %v3087_v2 }
 0xd73   : > { %v3051_v46 = vpop.f32.mrf.mxu0 }
 0xd74   : > { %v3071_v54 = vadd.f32 %v3051_v46, %v8087_v55  ;;  %v3244_v55 = vld [vmem:[%s9645_s10 + $0x50] sm:$0xff]  ;;  %v3813_v46 = vld [vmem:[%s9647_s7 + $0x78] sm:$0xff] }
 0xd75   : > { %3310 = vperm.xlu0 %7287, %v3244_v55   ;;  %v3809_v55 = vld [vmem:[%s9647_s7 + $0x58] sm:$0xff] }
 0xd76   : > { %v3088_v0 = vadd.f32 %v8173_v34, %v3071_v54 }
 0xd78   : > { %6689 = vmatmul.msk.f32.gmra.mxu3 %vm1123_vm2, %v3088_v0 }
 0xd7b   : > { %v3054_v16 = vpop.f32.mrf.mxu0 }
 0xd7c   : > { %v3072_v45 = vadd.f32 %v3054_v16, %v8084_v58  ;;  %v3242_v58 = vld [vmem:[%s9645_s10 + $0x40] sm:$0xff] }
 0xd7d   : > { %3300 = vperm.xlu0 %7287, %v3242_v58   ;;  %v3814_v16 = vld [vmem:[%s9647_s7 + $0x80] sm:$0xff] }
 0xd7e   : > { %v3089_v53 = vadd.f32 %v8173_v34, %v3072_v45  ;;  %v3816_v45 = vld [vmem:[%s9647_s7 + $0x90] sm:$0xff]  ;;  %v7141_v58 = vld [vmem:[%s9646_s1 + $0x20] sm:$0xff] }
 0xd80   : > { %6690 = vmatmul.msk.f32.gmra.mxu3 %vm1123_vm2, %v3089_v53 }
 0xd83   : > { %v3056_v27 = vpop.f32.mrf.mxu0 }
 0xd84   : > { %v3073_v44 = vadd.f32 %v3056_v27, %v8079_v18  ;;  %v3257_v18 = vld [vmem:[%s9645_s10 + $0xb8] sm:$0xff] }
 0xd85   : > { %3375 = vperm.xlu0 %7287, %v3257_v18   ;;  %v3817_v27 = vld [vmem:[%s9647_s7 + $0x98] sm:$0xff]  ;;  %v3815_v18 = vld [vmem:[%s9647_s7 + $0x88] sm:$0xff] }
 0xd86   : > { %v3090_v43 = vadd.f32 %v8173_v34, %v3073_v44  ;;  %v3819_v44 = vld [vmem:[%s9647_s7 + $0xa8] sm:$0xff] }
 0xd88   : > { %6691 = vmatmul.msk.f32.gmra.mxu3 %vm1123_vm2, %v3090_v43  ;;  %v3232_v21 = vpack.c.bf16 %v3090_v43, %v3089_v53 }
 0xd8b   : > { %v3059_v42 = vpop.f32.mrf.mxu0 }
 0xd8c   : > { %v3074_v41 = vadd.f32 %v3059_v42, %v8074_v3  ;;  %v3812_v42 = vld [vmem:[%s9647_s7 + $0x70] sm:$0xff] }
 0xd8d   : > { %3360 = vperm.xlu0 %7287, %v3254_v4   ;;  %v3826_v4 = vld [vmem:[%s9647_s7 + $0xe0] sm:$0xff] }
 0xd8e   : > { %v3091_v61 = vadd.f32 %v8173_v34, %v3074_v41  ;;  %v3820_v41 = vld [vmem:[%s9647_s7 + $0xb0] sm:$0xff] }
 0xd90   : > { %6692 = vmatmul.msk.f32.gmra.mxu3 %vm1123_vm2, %v3091_v61 }
 0xd93   : > { %v3061_v20 = vpop.f32.mrf.mxu0 }
 0xd94   : > { %v3075_v63 = vadd.f32 %v3061_v20, %v8076_v62  ;;  %v3231_v62 = vpack.c.bf16 %v3088_v0, %v3087_v2  ;;  %v7140_v0 = vld [vmem:[%s9646_s1 + $0x18] sm:$0xff]  ;;  %v3823_v20 = vld [vmem:[%s9647_s7 + $0xc8] sm:$0xff] }
 0xd95   : > { %3280 = vperm.xlu0 %7287, %v3238_v12   ;;  %v3829_v12 = vld [vmem:[%s9647_s7 + $0xf8] sm:$0xff] }
 0xd96   : > { %v3092_v3 = vadd.f32 %v8173_v34, %v3075_v63  ;;  %v3241_v34 = vld [vmem:[%s9645_s10 + $0x38] sm:$0xff] }
 0xd97   : > { %3295 = vperm.xlu2 %7289, %v3241_v34   ;;  %v3825_v63 = vld [vmem:[%s9647_s7 + $0xd8] sm:$0xff]  ;;  %v3832_v34 = vld [vmem:[%s9647_s7 + $0x110] sm:$0xff] }
 0xd98   : > { %v3233_v1 = vpack.c.bf16 %v3092_v3, %v3091_v61  ;;  %6693 = vmatmul.msk.f32.gmra.mxu3 %vm1123_vm2, %v3092_v3  ;;  %v7142_v3 = vld [vmem:[%s9646_s1 + $0x28] sm:$0xff] }
 0xd9a   : > { %3476 = vmatpush.bf16.msra.mxu2 %v3233_v1  ;;  %v3818_v1 = vld [vmem:[%s9647_s7 + $0xa0] sm:$0xff] }
 0xd9d   : > { %3355 = vperm.xlu0 %7287, %v3253_v23   ;;  %v7143_v23 = vld [vmem:[%s9646_s1 + $0x30] sm:$0xff] }
 0xd9e   : > { %3477 = vmatpush.bf16.msra.mxu2 %v3232_v21  ;;  %v3828_v21 = vld [vmem:[%s9647_s7 + $0xf0] sm:$0xff] }
 0xd9f   : > { %3275 = vperm.xlu2 %7289, %v3237_v31  }
 0xda2   : > { %3478 = vmatpush.bf16.msra.mxu2 %v3231_v62  ;;  %v3821_v62 = vld [vmem:[%s9647_s7 + $0xb8] sm:$0xff] }
 0xda5   : > { %3848 = vperm.xlu0 %7287, %v3798_v13  }
 0xda6   : > { %3479 = vmatpush.bf16.msra.mxu2 %v3230_v10  ;;  %v3831_v10 = vld [vmem:[%s9647_s7 + $0x108] sm:$0xff] }
 0xda7   : > { %3350 = vperm.xlu2 %7289, %v3252_v30   ;;  %v3842_v30 = vld [vmem:[%s9647_s7 + $0x160] sm:$0xff] }
 0xdaa   : > { %3480 = vmatpush.bf16.msra.mxu2 %v3229_v39  ;;  %v3805_v39 = vld [vmem:[%s9647_s7 + $0x38] sm:$0xff] }
 0xdad   : > { %3863 = vperm.xlu0 %7287, %v3801_v28   ;;  %v3841_v28 = vld [vmem:[%s9647_s7 + $0x158] sm:$0xff] }
 0xdae   : > { %3481 = vmatpush.bf16.msra.mxu2 %v3228_v9  ;;  %v3802_v9 = vld [vmem:[%s9647_s7 + $0x20] sm:$0xff] }
 0xdaf   : > { %3868 = vperm.xlu1 %7288, %v3802_v9   ;;  %3345 = vperm.xlu2 %7289, %v3251_v38   ;;  %v8356_v9 = vpop.permute.xlu2 %3320  ;;  %v3830_v38 = vld [vmem:[%s9647_s7 + $0x100] sm:$0xff] }
 0xdb1   : > { %6742 = vmatmul.msk.bf16.vlgmr.msra.gmra.mxu2 %vm1225_vm3, %v7137_v11  ;;  %v3824_v11 = vld [vmem:[%s9647_s7 + $0xd0] sm:$0xff] }
 0xdb5   : > { %3878 = vperm.xlu0 %7287, %v3804_v36  }
 0xdb7   : > { %3883 = vperm.xlu1 %7288, %v3805_v39   ;;  %3858 = vperm.xlu2 %7289, %v3800_v59   ;;  %v3836_v39 = vld [vmem:[%s9647_s7 + $0x130] sm:$0xff] }
 0xdb8   : > { %v3844_v59 = vld [vmem:[%s9647_s7 + $0x170] sm:$0xff] }
 0xdbd   : > { %3893 = vperm.xlu0 %7287, %v3807_v32   ;;  %v8364_v32 = vpop.permute.xlu1 %3335 }
 0xdbf   : > { %3898 = vperm.xlu1 %7288, %v3808_v15   ;;  %3873 = vperm.xlu2 %7289, %v3803_v17   ;;  %v3845_v15 = vld [vmem:[%s9647_s7 + $0x178] sm:$0xff]  ;;  %v3835_v17 = vld [vmem:[%s9647_s7 + $0x128] sm:$0xff] }
 0xdc1   : > { %6743 = vmatmul.msk.bf16.gmra.mxu2 %vm1225_vm3, %v7138_v26  ;;  %v3261_v26 = vpop.permute.xlu0 %3260 }
 0xdc3   : > { %v3156_v37 = vpop.f32.mrf.mxu3 }
 0xdc4   : > { %v3157_v14 = vadd.f32 %v8273_v49, %v3156_v37 }
 0xdc5   : > { %3908 = vperm.xlu0 %7287, %v3810_v60   ;;  %v3266_v60 = vpop.permute.xlu1 %3265 }
 0xdc6   : > { %3192 = vst.msk [vmem:[%s8278_s8] sm:$0xff] %vm1497_vm4, %v3157_v14  ;;  %v7144_v14 = vld [vmem:[%s9646_s1 + $0x38] sm:$0xff] }
 0xdc7   : > { %3913 = vperm.xlu1 %7288, %v3811_v19   ;;  %3888 = vperm.xlu2 %7289, %v3806_v50   ;;  %v3839_v19 = vld [vmem:[%s9647_s7 + $0x148] sm:$0xff] }
 0xdc8   : > { %v3843_v50 = vld [vmem:[%s9647_s7 + $0x168] sm:$0xff] }
 0xdcb   : > { %v3159_v56 = vpop.f32.mrf.mxu3 }
 0xdcc   : > { %v3160_v57 = vadd.f32 %v8273_v49, %v3159_v56  ;;  %v3837_v56 = vld [vmem:[%s9647_s7 + $0x138] sm:$0xff] }
 0xdcd   : > { %3923 = vperm.xlu0 %7287, %v3813_v46  }
 0xdce   : > { %3193 = vst.msk [vmem:[%s8278_s8 + $0x8] sm:$0xff] %vm1497_vm4, %v3160_v57 }
 0xdcf   : > { %3928 = vperm.xlu1 %7288, %v3814_v16   ;;  %3903 = vperm.xlu2 %7289, %v3809_v55   ;;  %v7146_v55 = vld [vmem:[%s9646_s1 + $0x48] sm:$0xff] }
 0xdd1   : > { %6744 = vmatmul.msk.bf16.gmra.mxu2 %vm1225_vm3, %v7139_v6  ;;  %v3833_v6 = vld [vmem:[%s9647_s7 + $0x118] sm:$0xff] }
 0xdd3   : > { %v3162_v47 = vpop.f32.mrf.mxu3 }
 0xdd4   : > { %v3163_v2 = vadd.f32 %v8273_v49, %v3162_v47 }
 0xdd5   : > { %3938 = vperm.xlu0 %7287, %v3816_v45  }
 0xdd6   : > { %3194 = vst.msk [vmem:[%s8278_s8 + $0x10] sm:$0xff] %vm1497_vm4, %v3163_v2  ;;  %v7145_v2 = vld [vmem:[%s9646_s1 + $0x40] sm:$0xff] }
 0xdd7   : > { %3943 = vperm.xlu1 %7288, %v3817_v27   ;;  %3918 = vperm.xlu2 %7289, %v3812_v42   ;;  %v3838_v27 = vld [vmem:[%s9647_s7 + $0x140] sm:$0xff] }
 0xddb   : > { %v3165_v54 = vpop.f32.mrf.mxu3 }
 0xddc   : > { %v3166_v52 = vadd.f32 %v8273_v49, %v3165_v54  ;;  %v3316_v54 = vpop.permute.xlu1 %3315 }
 0xddd   : > { %3953 = vperm.xlu0 %7287, %v3819_v44  }
 0xdde   : > { %3195 = vst.msk [vmem:[%s8278_s8 + $0x18] sm:$0xff] %vm1497_vm4, %v3166_v52 }
 0xddf   : > { %3958 = vperm.xlu1 %7288, %v3820_v41   ;;  %3933 = vperm.xlu2 %7289, %v3815_v18   ;;  %v8368_v57 = vpop.permute.xlu0 %3330 }
 0xde1   : > { %6745 = vmatmul.msk.bf16.gmra.mxu2 %vm1225_vm3, %v7140_v0 }
 0xde3   : > { %v3168_v48 = vpop.f32.mrf.mxu3 }
 0xde4   : > { %v3169_v53 = vadd.f32 %v8273_v49, %v3168_v48  ;;  %v3306_v44 = vpop.permute.xlu1 %3305 }
 0xde5   : > { %3968 = vperm.xlu0 %7287, %v3822_v40   ;;  %v3840_v40 = vld [vmem:[%s9647_s7 + $0x150] sm:$0xff]  ;;  %s9661_s7 = sand.u32 1, %s7454_s23  }
 0xde6   : > { %3196 = vst.msk [vmem:[%s8278_s8 + $0x20] sm:$0xff] %vm1497_vm4, %v3169_v53  ;;  %s5873_s9 = scalar_lea.sflag [#allocation3], %s9661_s7 }
 0xde7   : > { %3973 = vperm.xlu1 %7288, %v3823_v20   ;;  %3948 = vperm.xlu2 %7289, %v3818_v1   ;;  %v8375_v47 = vpop.permute.xlu0 %3310 }
 0xdeb   : > { %v3171_v51 = vpop.f32.mrf.mxu3 }
 0xdec   : > { %v3172_v43 = vadd.f32 %v8273_v49, %v3171_v51 }
 0xded   : > { %3983 = vperm.xlu0 %7287, %v3825_v63  }
 0xdee   : > { %3197 = vst.msk [vmem:[%s8278_s8 + $0x28] sm:$0xff] %vm1497_vm4, %v3172_v43 }
 0xdef   : > { %3988 = vperm.xlu1 %7288, %v3826_v4   ;;  %3963 = vperm.xlu2 %7289, %v3821_v62   ;;  %v3301_v16 = vpop.permute.xlu0 %3300 }
 0xdf1   : > { %6746 = vmatmul.msk.bf16.gmra.mxu2 %vm1225_vm3, %v7141_v58 }
 0xdf3   : > { %v3174_v33 = vpop.f32.mrf.mxu3 }
 0xdf4   : > { %v3175_v61 = vadd.f32 %v8273_v49, %v3174_v33  ;;  %v3291_v33 = vpop.permute.xlu1 %3290 }
 0xdf5   : > { %3998 = vperm.xlu0 %7287, %v3828_v21  }
 0xdf6   : > { %3198 = vst.msk [vmem:[%s8278_s8 + $0x30] sm:$0xff] %vm1497_vm4, %v3175_v61 }
 0xdf7   : > { %4003 = vperm.xlu1 %7288, %v3829_v12   ;;  %3978 = vperm.xlu2 %7289, %v3824_v11   ;;  %v8396_v43 = vpop.permute.xlu0 %3375  ;;  %v7148_v12 = vld [vmem:[%s9646_s1 + $0x58] sm:$0xff] }
 0xdfb   : > { %v3177_v25 = vpop.f32.mrf.mxu3 }
 0xdfc   : > { %v3178_v29 = vadd.f32 %v8273_v49, %v3177_v25  ;;  %v7147_v25 = vld [vmem:[%s9646_s1 + $0x50] sm:$0xff]  ;;  %s9653_s1 = smul.u32 384, %s7712_s18 }
 0xdfd   : > { %4013 = vperm.xlu0 %7287, %v3831_v10  }
 0xdfe   : > { %3199 = vst.msk [vmem:[%s8278_s8 + $0x38] sm:$0xff] %vm1497_vm4, %v3178_v29 }
 0xdff   : > { %4018 = vperm.xlu1 %7288, %v3832_v34   ;;  %3993 = vperm.xlu2 %7289, %v3827_v8   ;;  %v8404_v61 = vpop.permute.xlu0 %3360 }
 0xe01   : > { %6747 = vmatmul.msk.bf16.gmra.mxu2 %vm1225_vm3, %v7142_v3  ;;  %v8414_v3 = vpop.permute.xlu1 %3365 }
 0xe03   : > { %v3180_v5 = vpop.f32.mrf.mxu3 }
 0xe04   : > { %v3181_v24 = vadd.f32 %v8273_v49, %v3180_v5 }
 0xe05   : > { %4028 = vperm.xlu0 %7287, %v3834_v35  }
 0xe06   : > { %3200 = vst.msk [vmem:[%s8278_s8 + $0x40] sm:$0xff] %vm1497_vm4, %v3181_v24 }
 0xe07   : > { %4063 = vperm.xlu1 %7288, %v3841_v28   ;;  %4008 = vperm.xlu2 %7289, %v3830_v38   ;;  %v3281_v1 = vpop.permute.xlu0 %3280 }
 0xe09   : > { %v3286_v5 = vpop.permute.xlu1 %3285 }
 0xe0b   : > { %v3183_v7 = vpop.f32.mrf.mxu3 }
 0xe0c   : > { %v3184_v22 = vadd.f32 %v8273_v49, %v3183_v7 }
 0xe0d   : > { %4068 = vperm.xlu0 %7287, %v3842_v30  }
 0xe0e   : > { %3201 = vst.msk [vmem:[%s8278_s8 + $0x48] sm:$0xff] %vm1497_vm4, %v3184_v22 }
 0xe0f   : > { %4038 = vperm.xlu1 %7288, %v3836_v39   ;;  %4023 = vperm.xlu2 %7289, %v3833_v6  }
 0xe11   : > { %6748 = vmatmul.msk.bf16.gmra.mxu2 %vm1225_vm3, %v7143_v23 }
 0xe13   : > { %v3186_v13 = vpop.f32.mrf.mxu3 }
 0xe14   : > { %v3187_v31 = vadd.f32 %v8273_v49, %v3186_v13 }
 0xe15   : > { %4043 = vperm.xlu0 %7287, %v3837_v56  }
 0xe16   : > { %3202 = vst.msk [vmem:[%s8278_s8 + $0x50] sm:$0xff] %vm1497_vm4, %v3187_v31 }
 0xe17   : > { %4078 = vperm.xlu1 %7288, %v3844_v59   ;;  %4033 = vperm.xlu2 %7289, %v3835_v17  }
 0xe1b   : > { %v3189_v36 = vpop.f32.mrf.mxu3 }
 0xe1c   : > { %v3190_v37 = vadd.f32 %v8273_v49, %v3189_v36  ;;  %v8370_v49 = vpop.permute.xlu2 %3325 }
 0xe1d   : > { %4083 = vperm.xlu0 %7287, %v3845_v15  }
 0xe1e   : > { %3203 = vst.msk [vmem:[%s8278_s8 + $0x58] sm:$0xff] %vm1497_vm4, %v3190_v37  ;;  %s8448_s8 = scalar_lea.vmem %s9649_s5, %s7212_s3  ;;  %s9650_s5 = sld [smem:[#allocation12_spill]] }
 0xe1f   : > { %4053 = vperm.xlu1 %7288, %v3839_v19   ;;  %4073 = vperm.xlu2 %7289, %v3843_v50   ;;  %s9605_s3 = smul.u32 384, %s7712_s18 }
 0xe21   : > { %6749 = vmatmul.msk.bf16.gmra.mxu2 %vm1225_vm3, %v7144_v14 }
 0xe24   : > { %v3271_v46 = vpop.permute.xlu2 %3270 }
 0xe27   : > { %4048 = vperm.xlu2 %7289, %v3838_v27  }
 0xe2c   : > { %v8386_v45 = vpop.permute.xlu2 %3370 }
 0xe2f   : > { %4058 = vperm.xlu2 %7289, %v3840_v40   ;;  %v6780_v40 = vld [vmem:[%s9650_s5] sm:$0xf] }
 0xe31   : > { %6750 = vmatmul.msk.bf16.gmra.mxu2 %vm1225_vm3, %v7145_v2 }
 0xe34   : > { %v3483_v52 = vpop.f32.mrf.mxu2  ;;  %v3296_v58 = vpop.permute.xlu2 %3295 }
 0xe35   : > { %v8381_v0 = vadd.f32 %v3483_v52, %v3261_v26 }
 0xe37   : > { %6754 = vmatmul.msk.f32.vlgmr.msra.gmra.mxu0 %vm1123_vm2, %v8381_v0 }
 0xe3c   : > { %v3485_v48 = vpop.f32.mrf.mxu2  ;;  %v3276_v18 = vpop.permute.xlu2 %3275 }
 0xe3d   : > { %v8388_v53 = vadd.f32 %v3485_v48, %v3266_v60 }
 0xe3f   : > { %v3786_v51 = vpack.c.bf16 %v8388_v53, %v8381_v0  ;;  %6755 = vmatmul.msk.f32.gmra.mxu0 %vm1123_vm2, %v8388_v53  ;;  %v7152_v0 = vld [vmem:[%s9650_s5 + $0x14] sm:$0xf0] }
 0xe41   : > { %6751 = vmatmul.msk.bf16.gmra.mxu2 %vm1225_vm3, %v7146_v55 }
 0xe44   : > { %v3488_v42 = vpop.f32.mrf.mxu2 }
 0xe45   : > { %v8399_v41 = vadd.f32 %v3488_v42, %v3271_v46 }
 0xe47   : > { %6756 = vmatmul.msk.f32.gmra.mxu0 %vm1123_vm2, %v8399_v41 }
 0xe4c   : > { %v3490_v20 = vpop.f32.mrf.mxu2 }
 0xe4d   : > { %v8406_v63 = vadd.f32 %v3490_v20, %v3276_v18  ;;  %v3356_v18 = vpop.permute.xlu0 %3355 }
 0xe4f   : > { %v3787_v29 = vpack.c.bf16 %v8406_v63, %v8399_v41  ;;  %6757 = vmatmul.msk.f32.gmra.mxu0 %vm1123_vm2, %v8406_v63 }
 0xe51   : > { %6752 = vmatmul.msk.bf16.gmra.mxu2 %vm1225_vm3, %v7147_v25 }
 0xe54   : > { %v3493_v4 = vpop.f32.mrf.mxu2 }
 0xe55   : > { %v8416_v21 = vadd.f32 %v3493_v4, %v3281_v1 }
 0xe57   : > { %6758 = vmatmul.msk.f32.gmra.mxu0 %vm1123_vm2, %v8416_v21 }
 0xe5c   : > { %v3495_v24 = vpop.f32.mrf.mxu2 }
 0xe5d   : > { %v8420_v62 = vadd.f32 %v3495_v24, %v3286_v5  ;;  %v6788_v24 = vld [vmem:[%s9650_s5 + $0x10] sm:$0xf] }
 0xe5f   : > { %v3788_v10 = vpack.c.bf16 %v8420_v62, %v8416_v21  ;;  %6759 = vmatmul.msk.f32.vlgmr.msrb.gmra.mxu1 %vm1123_vm2, %v8420_v62  ;;  %v6789_v62 = vor.u32 %v7152_v0, %v6788_v24 }
 0xe61   : > { %6753 = vmatmul.msk.bf16.gmra.mxu2 %vm1225_vm3, %v7148_v12  ;;  %vm5471_vm3 = vcmask 73728  }
 0xe64   : > { %v3498_v7 = vpop.f32.mrf.mxu2 }
 0xe65   : > { %v3499_v22 = vadd.f32 %v3498_v7, %v3291_v33  ;;  %v7150_v33 = vld [vmem:[%s9650_s5 + $0x4] sm:$0xf0] }
 0xe66   : > { %v6781_v1 = vor.u32 %v7150_v33, %v6780_v40 }
 0xe67   : > { %6760 = vmatmul.msk.f32.gmra.mxu1 %vm1123_vm2, %v3499_v22 }
 0xe6c   : > { %v3500_v23 = vpop.f32.mrf.mxu2 }
 0xe6d   : > { %v3501_v11 = vadd.f32 %v3500_v23, %v3296_v58 }
 0xe6f   : > { %v3789_v34 = vpack.c.bf16 %v3501_v11, %v3499_v22  ;;  %6761 = vmatmul.msk.f32.gmra.mxu1 %vm1123_vm2, %v3501_v11  ;;  %v6796_v11 = vld [vmem:[%s9650_s5 + $0x20] sm:$0xf] }
 0xe74   : > { %v3503_v35 = vpop.f32.mrf.mxu2 }
 0xe75   : > { %v3504_v13 = vadd.f32 %v3503_v35, %v3301_v16 }
 0xe77   : > { %6762 = vmatmul.msk.f32.gmra.mxu1 %vm1123_vm2, %v3504_v13 }
 0xe7c   : > { %v3505_v31 = vpop.f32.mrf.mxu2 }
 0xe7d   : > { %v3506_v8 = vadd.f32 %v3505_v31, %v3306_v44 }
 0xe7f   : > { %6763 = vmatmul.msk.f32.gmra.mxu1 %vm1123_vm2, %v3506_v8  ;;  %v3790_v52 = vpack.c.bf16 %v3506_v8, %v3504_v13 }
 0xe84   : > { %v3508_v28 = vpop.f32.mrf.mxu2 }
 0xe85   : > { %v3509_v26 = vadd.f32 %v3508_v28, %v8375_v47  ;;  %v8445_v47 = vld [vmem:[%s7560_s24] ss:$0 sm:$0xff] }
 0xe87   : > { %6764 = vmatmul.msk.f32.gmra.mxu1 %vm1123_vm2, %v3509_v26 }
 0xe8c   : > { %v3510_v30 = vpop.f32.mrf.mxu2 }
 0xe8d   : > { %v3511_v36 = vadd.f32 %v3510_v30, %v3316_v54 }
 0xe8f   : > { %6765 = vmatmul.msk.f32.gmra.mxu1 %vm1123_vm2, %v3511_v36  ;;  %v3791_v46 = vpack.c.bf16 %v3511_v36, %v3509_v26 }
 0xe94   : > { %v3513_v37 = vpop.f32.mrf.mxu2 }
 0xe95   : > { %v3514_v14 = vadd.f32 %v3513_v37, %v8356_v9  ;;  %v3351_v9 = vpop.permute.xlu2 %3350  ;;  %v7156_v37 = vld [vmem:[%s9650_s5 + $0x34] sm:$0xf0] }
 0xe97   : > { %6766 = vmatmul.msk.f32.gmra.mxu1 %vm1123_vm2, %v3514_v14 }
 0xe9c   : > { %v3515_v38 = vpop.f32.mrf.mxu2 }
 0xe9d   : > { %v3516_v39 = vadd.f32 %v3515_v38, %v8370_v49  ;;  %v3341_v49 = vpop.permute.xlu1 %3340  ;;  %v3346_v54 = vpop.permute.xlu2 %3345  ;;  %v6782_v38 = vld [vmem:[%s9650_s5 + $0x8] sm:$0xf0] }
 0xe9f   : > { %6767 = vmatmul.msk.f32.gmra.mxu1 %vm1123_vm2, %v3516_v39  ;;  %v3792_v2 = vpack.c.bf16 %v3516_v39, %v3514_v14  ;;  %v7149_v14 = vld [vmem:[%s9650_s5 + $0x4] sm:$0xf] }
 0xea4   : > { %v3518_v56 = vpop.f32.mrf.mxu2 }
 0xea5   : > { %v3519_v6 = vadd.f32 %v3518_v56, %v8368_v57 }
 0xea7   : > { %6768 = vmatmul.msk.f32.gmra.mxu1 %vm1123_vm2, %v3519_v6 }
 0xeac   : > { %v3520_v59 = vpop.f32.mrf.mxu2 }
 0xead   : > { %v3521_v15 = vadd.f32 %v3520_v59, %v8364_v32  ;;  %v6785_v59 = vor.u32 %v7149_v14, %v6782_v38  ;;  %v6852_v14 = vld [vmem:[%s9650_s5 + $0x90] sm:$0xf]  ;;  %v7168_v38 = vld [vmem:[%s9650_s5 + $0x94] sm:$0xf0] }
 0xeaf   : > { %v3793_v60 = vpack.c.bf16 %v3521_v15, %v3519_v6  ;;  %6769 = vmatmul.msk.f32.gmra.mxu1 %vm1123_vm2, %v3521_v15 }
 0xeb1   : > { %4375 = vmatpush.bf16.msrb.mxu0 %v3793_v60 }
 0xeb4   : > { %v3523_v17 = vpop.f32.mrf.mxu2  ;;  %v3642_v57 = vpop.f32.mrf.mxu0 }
 0xeb5   : > { %v8450_v19 = vadd.f32 %v3523_v17, %v3341_v49  ;;  %v3643_v32 = vadd.f32 %v8445_v47, %v3642_v57  ;;  %4376 = vmatpush.bf16.msrb.mxu0 %v3792_v2  ;;  %v6812_v49 = vld [vmem:[%s9650_s5 + $0x40] sm:$0xf]  ;;  %v7158_v2 = vld [vmem:[%s9650_s5 + $0x44] sm:$0xf0]  ;;  %v7151_v17 = vld [vmem:[%s9650_s5 + $0x14] sm:$0xf] }
 0xeb6   : > { %v6790_v57 = vld [vmem:[%s9650_s5 + $0x18] sm:$0xf0] }
 0xeb7   : > { %3714 = vst.msk [vmem:[%s8448_s8] sm:$0xff] %vm1497_vm4, %v3643_v32  ;;  %6770 = vmatmul.msk.f32.gmra.mxu1 %vm1123_vm2, %v8450_v19  ;;  %v6813_v32 = vor.u32 %v7158_v2, %v6812_v49  ;;  %v4684_v49 = vld [vmem:[%s7555_s19 + $0x18] sm:$0xff]  ;;  %v4683_v2 = vld [vmem:[%s7555_s19 + $0x10] sm:$0xff] }
 0xeb9   : > { %4377 = vmatpush.bf16.msrb.mxu0 %v3791_v46  ;;  %v6793_v46 = vor.u32 %v7151_v17, %v6790_v57  ;;  %v4682_v17 = vld [vmem:[%s7555_s19 + $0x8] sm:$0xff] }
 0xebc   : > { %v3525_v50 = vpop.f32.mrf.mxu2  ;;  %v3645_v16 = vpop.f32.mrf.mxu0 }
 0xebd   : > { %v8457_v48 = vadd.f32 %v3525_v50, %v3346_v54  ;;  %v3646_v55 = vadd.f32 %v8445_v47, %v3645_v16  ;;  %4378 = vmatpush.bf16.msrb.mxu0 %v3790_v52  ;;  %v6820_v16 = vld [vmem:[%s9650_s5 + $0x50] sm:$0xf] }
 0xebf   : > { %3715 = vst.msk [vmem:[%s8448_s8 + $0x8] sm:$0xff] %vm1497_vm4, %v3646_v55  ;;  %6771 = vmatmul.msk.f32.gmra.mxu1 %vm1123_vm2, %v8457_v48  ;;  %v3794_v39 = vpack.c.bf16 %v8457_v48, %v8450_v19  ;;  %v7160_v48 = vld [vmem:[%s9650_s5 + $0x54] sm:$0xf0]  ;;  %v7153_v55 = vld [vmem:[%s9650_s5 + $0x24] sm:$0xf] }
 0xec1   : > { %4379 = vmatpush.bf16.msrb.mxu0 %v3789_v34 }
 0xec4   : > { %v3528_v27 = vpop.f32.mrf.mxu2  ;;  %v3648_v44 = vpop.f32.mrf.mxu0 }
 0xec5   : > { %v3529_v58 = vadd.f32 %v3528_v27, %v3351_v9  ;;  %v3649_v42 = vadd.f32 %v8445_v47, %v3648_v44  ;;  %4380 = vmatpush.bf16.msrb.mxu0 %v3788_v10  ;;  %v6798_v27 = vld [vmem:[%s9650_s5 + $0x28] sm:$0xf0] }
 0xec7   : > { %3716 = vst.msk [vmem:[%s8448_s8 + $0x10] sm:$0xff] %vm1497_vm4, %v3649_v42  ;;  %6772 = vmatmul.msk.f32.gmra.mxu1 %vm1123_vm2, %v3529_v58  ;;  %v6801_v42 = vor.u32 %v7153_v55, %v6798_v27 }
 0xec9   : > { %4381 = vmatpush.bf16.msrb.mxu0 %v3787_v29 }
 0xecc   : > { %v3530_v20 = vpop.f32.mrf.mxu2  ;;  %v3651_v25 = vpop.f32.mrf.mxu0 }
 0xecd   : > { %v3531_v4 = vadd.f32 %v3530_v20, %v3356_v18  ;;  %v3652_v21 = vadd.f32 %v8445_v47, %v3651_v25  ;;  %4382 = vmatpush.bf16.msrb.mxu0 %v3786_v51  ;;  %v4686_v20 = vld [vmem:[%s7555_s19 + $0x28] sm:$0xff]  ;;  %v6828_v25 = vld [vmem:[%s9650_s5 + $0x60] sm:$0xf] }
 0xece   : > { %4845 = vmatpush.msrb.mxu2 %v4686_v20 }
 0xecf   : > { %3717 = vst.msk [vmem:[%s8448_s8 + $0x18] sm:$0xff] %vm1497_vm4, %v3652_v21  ;;  %6773 = vmatmul.msk.f32.gmra.mxu1 %vm1123_vm2, %v3531_v4  ;;  %v3795_v36 = vpack.c.bf16 %v3531_v4, %v3529_v58  ;;  %v6821_v58 = vor.u32 %v7160_v48, %v6820_v16  ;;  %v7155_v4 = vld [vmem:[%s9650_s5 + $0x34] sm:$0xf]  ;;  %v6806_v21 = vld [vmem:[%s9650_s5 + $0x38] sm:$0xf0] }
 0xed0   : > { %4383 = vmatmul.bf16.vlgmr.msrb.gmra.mxu0 %v6781_v1  ;;  %v7162_v1 = vld [vmem:[%s9650_s5 + $0x64] sm:$0xf0]  ;;  %v6838_v16 = vld [vmem:[%s9650_s5 + $0x78] sm:$0xf0] }
 0xed4   : > { %v3533_v41 = vpop.f32.mrf.mxu2  ;;  %v3654_v63 = vpop.f32.mrf.mxu0 }
 0xed5   : > { %v3534_v29 = vadd.f32 %v3533_v41, %v8404_v61  ;;  %v3655_v5 = vadd.f32 %v8445_v47, %v3654_v63  ;;  %v6829_v63 = vor.u32 %v7162_v1, %v6828_v25 }
 0xed7   : > { %3718 = vst.msk [vmem:[%s8448_s8 + $0x20] sm:$0xff] %vm1497_vm4, %v3655_v5  ;;  %6774 = vmatmul.msk.f32.gmra.mxu1 %vm1123_vm2, %v3534_v29 }
 0xedc   : > { %v3535_v53 = vpop.f32.mrf.mxu2  ;;  %v3657_v51 = vpop.f32.mrf.mxu1 }
 0xedd   : > { %v3536_v12 = vadd.f32 %v3535_v53, %v8414_v3  ;;  %v3658_v10 = vadd.f32 %v8445_v47, %v3657_v51  ;;  %v7154_v3 = vld [vmem:[%s9650_s5 + $0x24] sm:$0xf0]  ;;  %v6836_v53 = vld [vmem:[%s9650_s5 + $0x70] sm:$0xf]  ;;  %v7164_v51 = vld [vmem:[%s9650_s5 + $0x74] sm:$0xf0] }
 0xede   : > { %v6797_v13 = vor.u32 %v7154_v3, %v6796_v11  ;;  %v4685_v3 = vld [vmem:[%s7555_s19 + $0x20] sm:$0xff] }
 0xedf   : > { %3719 = vst.msk [vmem:[%s8448_s8 + $0x28] sm:$0xff] %vm1497_vm4, %v3658_v10  ;;  %6775 = vmatmul.msk.f32.gmra.mxu1 %vm1123_vm2, %v3536_v12  ;;  %v3796_v28 = vpack.c.bf16 %v3536_v12, %v3534_v29  ;;  %v6809_v29 = vor.u32 %v7155_v4, %v6806_v21  ;;  %v6814_v12 = vld [vmem:[%s9650_s5 + $0x48] sm:$0xf0]  ;;  %4846 = vmatpush.msrb.mxu2 %v4685_v3  ;;  %v3849_v4 = vpop.permute.xlu0 %3848 }
 0xee0   : > { %4388 = vmatmul.bf16.gmra.mxu0 %v6789_v62  ;;  %v7157_v62 = vld [vmem:[%s9650_s5 + $0x44] sm:$0xf] }
 0xee1   : > { %4847 = vmatpush.msrb.mxu2 %v4684_v49 }
 0xee3   : > { %4848 = vmatpush.msrb.mxu2 %v4683_v2 }
 0xee4   : > { %v3538_v61 = vpop.f32.mrf.mxu2  ;;  %v3660_v7 = vpop.f32.mrf.mxu1 }
 0xee5   : > { %v3539_v22 = vadd.f32 %v3538_v61, %v8386_v45  ;;  %v3661_v23 = vadd.f32 %v8445_v47, %v3660_v7  ;;  %v6837_v61 = vor.u32 %v7164_v51, %v6836_v53  ;;  %v6817_v7 = vor.u32 %v7157_v62, %v6814_v12  ;;  %4849 = vmatpush.msrb.mxu2 %v4682_v17  ;;  %v7167_v53 = vld [vmem:[%s9650_s5 + $0x94] sm:$0xf]  ;;  %v6854_v51 = vld [vmem:[%s9650_s5 + $0x98] sm:$0xf0] }
 0xee7   : > { %3720 = vst.msk [vmem:[%s8448_s8 + $0x30] sm:$0xff] %vm1497_vm4, %v3661_v23  ;;  %6776 = vmatmul.msk.f32.gmra.mxu1 %vm1123_vm2, %v3539_v22 }
 0xeec   : > { %v3540_v34 = vpop.f32.mrf.mxu2  ;;  %v3663_v35 = vpop.f32.mrf.mxu1 }
 0xeed   : > { %v3541_v31 = vadd.f32 %v3540_v34, %v8396_v43  ;;  %v3664_v8 = vadd.f32 %v8445_v47, %v3663_v35  ;;  %v6804_v43 = vld [vmem:[%s9650_s5 + $0x30] sm:$0xf]  ;;  %v6844_v34 = vld [vmem:[%s9650_s5 + $0x80] sm:$0xf]  ;;  %v7166_v35 = vld [vmem:[%s9650_s5 + $0x84] sm:$0xf0] }
 0xeee   : > { %v6805_v6 = vor.u32 %v7156_v37, %v6804_v43 }
 0xeef   : > { %v3797_v45 = vpack.c.bf16 %v3541_v31, %v3539_v22  ;;  %3721 = vst.msk [vmem:[%s8448_s8 + $0x38] sm:$0xff] %vm1497_vm4, %v3664_v8  ;;  %6777 = vmatmul.msk.f32.gmra.mxu1 %vm1123_vm2, %v3541_v31  ;;  %v6822_v31 = vld [vmem:[%s9650_s5 + $0x58] sm:$0xf0] }
 0xef0   : > { %4393 = vmatmul.bf16.gmra.mxu0 %v6797_v13  ;;  %v7159_v13 = vld [vmem:[%s9650_s5 + $0x54] sm:$0xf] }
 0xef1   : > { %4508 = vmatpush.bf16.msra.mxu3 %v3797_v45  ;;  %v6845_v45 = vor.u32 %v7166_v35, %v6844_v34  ;;  %v3859_v34 = vpop.permute.xlu2 %3858 }
 0xef4   : > { %v3666_v26 = vpop.f32.mrf.mxu1 }
 0xef5   : > { %v3667_v30 = vadd.f32 %v8445_v47, %v3666_v26  ;;  %4509 = vmatpush.bf16.msra.mxu3 %v3796_v28  ;;  %v6825_v28 = vor.u32 %v7159_v13, %v6822_v31 }
 0xef7   : > { %3722 = vst.msk [vmem:[%s8448_s8 + $0x40] sm:$0xff] %vm1497_vm4, %v3667_v30 }
 0xef9   : > { %4510 = vmatpush.bf16.msra.mxu3 %v3795_v36 }
 0xefc   : > { %v3669_v56 = vpop.f32.mrf.mxu1 }
 0xefd   : > { %v3670_v15 = vadd.f32 %v8445_v47, %v3669_v56  ;;  %4511 = vmatpush.bf16.msra.mxu3 %v3794_v39  ;;  %v7161_v39 = vld [vmem:[%s9650_s5 + $0x64] sm:$0xf]  ;;  %v6830_v56 = vld [vmem:[%s9650_s5 + $0x68] sm:$0xf0] }
 0xeff   : > { %3723 = vst.msk [vmem:[%s8448_s8 + $0x48] sm:$0xff] %vm1497_vm4, %v3670_v15  ;;  %v6833_v15 = vor.u32 %v7161_v39, %v6830_v56 }
 0xf00   : > { %4398 = vmatmul.bf16.gmra.mxu0 %v6805_v6  ;;  %6970 = vmatmul.msk.bf16.vlgmr.msra.gmra.mxu3 %vm4302_vm5, %v6785_v59  ;;  %v6853_v59 = vor.u32 %v7168_v38, %v6852_v14 }
 0xf01   : > { %7203 = vmatpush.msrb.mxu3 %v4686_v20  ;;  %v6846_v20 = vld [vmem:[%s9650_s5 + $0x88] sm:$0xf0] }
 0xf03   : > { %7204 = vmatpush.msrb.mxu3 %v4685_v3 }
 0xf04   : > { %v3672_v60 = vpop.f32.mrf.mxu1 }
 0xf05   : > { %v3673_v9 = vadd.f32 %v8445_v47, %v3672_v60  ;;  %7205 = vmatpush.msrb.mxu3 %v4684_v49 }
 0xf07   : > { %3724 = vst.msk [vmem:[%s8448_s8 + $0x50] sm:$0xff] %vm1497_vm4, %v3673_v9  ;;  %7206 = vmatpush.msrb.mxu3 %v4683_v2 }
 0xf09   : > { %7207 = vmatpush.msrb.mxu3 %v4682_v17 }
 0xf0c   : > { %v3675_v19 = vpop.f32.mrf.mxu1 }
 0xf0d   : > { %v3676_v54 = vadd.f32 %v8445_v47, %v3675_v19  ;;  %v4681_v19 = vld [vmem:[%s7555_s19] sm:$0xff] }
 0xf0e   : > { %4850 = vmatpush.msrb.mxu2 %v4681_v19  ;;  %7208 = vmatpush.msrb.mxu3 %v4681_v19 }
 0xf0f   : > { %3725 = vst.msk [vmem:[%s8448_s8 + $0x58] sm:$0xff] %vm1497_vm4, %v3676_v54  ;;  %v6860_v54 = vld [vmem:[%s9650_s5 + $0xa0] sm:$0xf] }
 0xf10   : > { %4403 = vmatmul.bf16.gmra.mxu0 %v6813_v32  ;;  %6971 = vmatmul.msk.bf16.gmra.mxu3 %vm4302_vm5, %v6793_v46 }
 0xf14   : > { %v3678_v52 = vpop.f32.mrf.mxu1 }
 0xf15   : > { %v3679_v50 = vadd.f32 %v8445_v47, %v3678_v52  ;;  %v7170_v52 = vld [vmem:[%s9650_s5 + $0xa4] sm:$0xf0] }
 0xf16   : > { %v6861_v55 = vor.u32 %v7170_v52, %v6860_v54 }
 0xf17   : > { %3726 = vst.msk [vmem:[%s8448_s8 + $0x60] sm:$0xff] %vm1497_vm4, %v3679_v50  ;;  %v7163_v50 = vld [vmem:[%s9650_s5 + $0x74] sm:$0xf] }
 0xf18   : > { %v6841_v27 = vor.u32 %v7163_v50, %v6838_v16  ;;  %v6892_v50 = vld [vmem:[%s9650_s5 + $0xe0] sm:$0xf]  ;;  %v3874_v16 = vpop.permute.xlu2 %3873 }
 0xf1c   : > { %v3681_v44 = vpop.f32.mrf.mxu1 }
 0xf1d   : > { %v3682_v40 = vadd.f32 %v8445_v47, %v3681_v44 }
 0xf1f   : > { %3727 = vst.msk [vmem:[%s8448_s8 + $0x68] sm:$0xff] %vm1497_vm4, %v3682_v40  ;;  %v6868_v40 = vld [vmem:[%s9650_s5 + $0xb0] sm:$0xf] }
 0xf20   : > { %4408 = vmatmul.bf16.gmra.mxu0 %v6821_v58  ;;  %6972 = vmatmul.msk.bf16.gmra.mxu3 %vm4302_vm5, %v6801_v42 }
 0xf24   : > { %v3684_v33 = vpop.f32.mrf.mxu1 }
 0xf25   : > { %v3685_v18 = vadd.f32 %v8445_v47, %v3684_v33  ;;  %v7172_v33 = vld [vmem:[%s9650_s5 + $0xb4] sm:$0xf0] }
 0xf26   : > { %v6869_v25 = vor.u32 %v7172_v33, %v6868_v40 }
 0xf27   : > { %3728 = vst.msk [vmem:[%s8448_s8 + $0x70] sm:$0xff] %vm1497_vm4, %v3685_v18  ;;  %v7165_v18 = vld [vmem:[%s9650_s5 + $0x84] sm:$0xf] }
 0xf28   : > { %v6849_v1 = vor.u32 %v7165_v18, %v6846_v20 }
 0xf2c   : > { %v3687_v41 = vpop.f32.mrf.mxu1 }
 0xf2d   : > { %v3688_v5 = vadd.f32 %v8445_v47, %v3687_v41 }
 0xf2f   : > { %3729 = vst.msk [vmem:[%s8448_s8 + $0x78] sm:$0xff] %vm1497_vm4, %v3688_v5  ;;  %v6876_v5 = vld [vmem:[%s9650_s5 + $0xc0] sm:$0xf] }
 0xf30   : > { %4413 = vmatmul.bf16.gmra.mxu0 %v6829_v63  ;;  %6973 = vmatmul.msk.bf16.gmra.mxu3 %vm4302_vm5, %v6809_v29 }
 0xf34   : > { %v3690_v24 = vpop.f32.mrf.mxu1 }
 0xf35   : > { %v3691_v0 = vadd.f32 %v8445_v47, %v3690_v24  ;;  %v3854_v24 = vpop.permute.xlu1 %3853 }
 0xf37   : > { %3730 = vst.msk [vmem:[%s8448_s8 + $0x80] sm:$0xff] %vm1497_vm4, %v3691_v0  ;;  %v7174_v0 = vld [vmem:[%s9650_s5 + $0xc4] sm:$0xf0] }
 0xf3c   : > { %v3693_v10 = vpop.f32.mrf.mxu1 }
 0xf3d   : > { %v3694_v22 = vadd.f32 %v8445_v47, %v3693_v10 }
 0xf3f   : > { %3731 = vst.msk [vmem:[%s8448_s8 + $0x88] sm:$0xff] %vm1497_vm4, %v3694_v22 }
 0xf40   : > { %4418 = vmatmul.bf16.gmra.mxu0 %v6837_v61  ;;  %6974 = vmatmul.msk.bf16.gmra.mxu3 %vm4302_vm5, %v6817_v7  ;;  %v6877_v61 = vor.u32 %v7174_v0, %v6876_v5  ;;  %v6857_v7 = vor.u32 %v7167_v53, %v6854_v51 }
 0xf44   : > { %v3696_v23 = vpop.f32.mrf.mxu1 }
 0xf45   : > { %v3697_v11 = vadd.f32 %v8445_v47, %v3696_v23 }
 0xf47   : > { %3732 = vst.msk [vmem:[%s8448_s8 + $0x90] sm:$0xff] %vm1497_vm4, %v3697_v11 }
 0xf4c   : > { %v3699_v8 = vpop.f32.mrf.mxu1 }
 0xf4d   : > { %v3700_v26 = vadd.f32 %v8445_v47, %v3699_v8  ;;  %v4384_v30 = vpop.f32.mrf.mxu0 }
 0xf4e   : > { %v4385_v21 = vadd.f32 %v4384_v30, %v3849_v4  ;;  %v3864_v30 = vpop.permute.xlu0 %3863 }
 0xf4f   : > { %3733 = vst.msk [vmem:[%s8448_s8 + $0x98] sm:$0xff] %vm1497_vm4, %v3700_v26  ;;  %v6884_v26 = vld [vmem:[%s9650_s5 + $0xd0] sm:$0xf] }
 0xf50   : > { %4423 = vmatmul.bf16.gmra.mxu0 %v6845_v45  ;;  %6975 = vmatmul.msk.bf16.gmra.mxu3 %vm4302_vm5, %v6825_v28 }
 0xf54   : > { %v3702_v36 = vpop.f32.mrf.mxu1 }
 0xf55   : > { %v3703_v43 = vadd.f32 %v8445_v47, %v3702_v36  ;;  %v8578_v37 = vpop.f32.mrf.mxu0  ;;  %v7176_v36 = vld [vmem:[%s9650_s5 + $0xd4] sm:$0xf0] }
 0xf56   : > { %v4387_v62 = vadd.f32 %v8578_v37, %v3854_v24  ;;  %v6862_v37 = vld [vmem:[%s9650_s5 + $0xa8] sm:$0xf0]  ;;  %v6885_v56 = vor.u32 %v7176_v36, %v6884_v26 }
 0xf57   : > { %3734 = vst.msk [vmem:[%s8448_s8 + $0xa0] sm:$0xff] %vm1497_vm4, %v3703_v43  ;;  %v7169_v43 = vld [vmem:[%s9650_s5 + $0xa4] sm:$0xf] }
 0xf5c   : > { %v3705_v6 = vpop.f32.mrf.mxu1 }
 0xf5d   : > { %v3706_v60 = vadd.f32 %v8445_v47, %v3705_v6  ;;  %v8587_v9 = vpop.f32.mrf.mxu0  ;;  %v6865_v6 = vor.u32 %v7169_v43, %v6862_v37  ;;  %v3889_v43 = vpop.permute.xlu2 %3888 }
 0xf5e   : > { %v4390_v35 = vadd.f32 %v8587_v9, %v3859_v34  ;;  %v3869_v9 = vpop.permute.xlu1 %3868 }
 0xf5f   : > { %3735 = vst.msk [vmem:[%s8448_s8 + $0xa8] sm:$0xff] %vm1497_vm4, %v3706_v60 }
 0xf60   : > { %4428 = vmatmul.bf16.gmra.mxu0 %v6853_v59  ;;  %6976 = vmatmul.msk.bf16.gmra.mxu3 %vm4302_vm5, %v6833_v15 }
 0xf64   : > { %v3708_v57 = vpop.f32.mrf.mxu1 }
 0xf65   : > { %v3709_v32 = vadd.f32 %v8445_v47, %v3708_v57  ;;  %v8597_v46 = vpop.f32.mrf.mxu0 }
 0xf66   : > { %v4392_v14 = vadd.f32 %v8597_v46, %v3864_v30 }
 0xf67   : > { %3736 = vst.msk [vmem:[%s8448_s8 + $0xb0] sm:$0xff] %vm1497_vm4, %v3709_v32 }
 0xf6c   : > { %v3711_v48 = vpop.f32.mrf.mxu1 }
 0xf6d   : > { %v3712_v44 = vadd.f32 %v8445_v47, %v3711_v48  ;;  %v8606_v58 = vpop.f32.mrf.mxu0  ;;  %v7178_v48 = vld [vmem:[%s9650_s5 + $0xe4] sm:$0xf0] }
 0xf6e   : > { %v4395_v49 = vadd.f32 %v8606_v58, %v3869_v9  ;;  %v6893_v33 = vor.u32 %v7178_v48, %v6892_v50 }
 0xf6f   : > { %3737 = vst.msk [vmem:[%s8448_s8 + $0xb8] sm:$0xff] %vm1497_vm4, %v3712_v44  ;;  %s8624_s8 = scalar_lea.vmem %s9651_s6, %s9605_s3  ;;  %s9652_s3 = sld [smem:[#allocation23_spill]] }
 0xf70   : > { %4433 = vmatmul.bf16.gmra.mxu0 %v6861_v55  ;;  %6977 = vmatmul.msk.bf16.gmra.mxu3 %vm4302_vm5, %v6841_v27  ;;  %v7171_v55 = vld [vmem:[%s9650_s5 + $0xb4] sm:$0xf]  ;;  %v6870_v27 = vld [vmem:[%s9650_s5 + $0xb8] sm:$0xf0] }
 0xf71   : > { %v6873_v18 = vor.u32 %v7171_v55, %v6870_v27 }
 0xf75   : > { %v8611_v42 = vpop.f32.mrf.mxu0  ;;  %s8859_s6 = scalar_lea.vmem %s9652_s3, %s9653_s1  ;;  %s9654_s1 = sld [smem:[#allocation14_spill]] }
 0xf76   : > { %v4397_v44 = vadd.f32 %v8611_v42, %v3874_v16  ;;  %s9655_s3 = sld [smem:[#allocation20_spill]] }
 0xf7d   : > { %v8617_v47 = vpop.f32.mrf.mxu0 }
 0xf80   : > { %4438 = vmatmul.bf16.gmra.mxu0 %v6869_v25  ;;  %6978 = vmatmul.msk.bf16.gmra.mxu3 %vm4302_vm5, %v6849_v1 }
 0xf83   : > { %v4513_v41 = vpop.f32.mrf.mxu3 }
 0xf84   : > { %v4514_v63 = vadd.f32 %v4513_v41, %v4385_v21  ;;  %v3879_v41 = vpop.permute.xlu0 %3878 }
 0xf85   : > { %v8626_v29 = vpop.f32.mrf.mxu0 }
 0xf86   : > { %4633 = vst.msk [vmem:[%s8624_s8] sm:$0xff] %vm1123_vm2, %v4514_v63  ;;  %6994 = vmatmul.msk.f32.vlgmr.msrb.gmra.mxu2 %vm1123_vm2, %v4514_v63  ;;  %v5199_v23 = vsel %vm1123_vm2, %v4514_v63, 0.0  ;;  %v8672_v19 = vsel %vm1123_vm2, %v4514_v63, -inf  ;;  %v4400_v63 = vadd.f32 %v8617_v47, %v3879_v41  ;;  %v7184_v41 = vld [vmem:[%s9650_s5 + $0x114] sm:$0xf0] }
 0xf8b   : > { %v4515_v12 = vpop.f32.mrf.mxu3 }
 0xf8c   : > { %v4516_v10 = vadd.f32 %v4515_v12, %v4387_v62  ;;  %v3894_v9 = vpop.permute.xlu0 %3893 }
 0xf8d   : > { %v8636_v22 = vpop.f32.mrf.mxu0 }
 0xf8e   : > { %4634 = vst.msk [vmem:[%s8624_s8 + $0x8] sm:$0xff] %vm1123_vm2, %v4516_v10  ;;  %v5200_v11 = vsel %vm1123_vm2, %v4516_v10, 0.0  ;;  %6995 = vmatmul.msk.f32.gmra.mxu2 %vm1123_vm2, %v4516_v10  ;;  %v8691_v25 = vsel %vm1123_vm2, %v4516_v10, -inf  ;;  %v6900_v10 = vld [vmem:[%s9650_s5 + $0xf0] sm:$0xf]  ;;  %v4405_v37 = vadd.f32 %v8636_v22, %v3889_v43 }
 0xf8f   : > { %v5201_v3 = vadd.f32 %v5200_v11, %v5199_v23  ;;  %v7173_v23 = vld [vmem:[%s9650_s5 + $0xc4] sm:$0xf]  ;;  %v6878_v11 = vld [vmem:[%s9650_s5 + $0xc8] sm:$0xf0]  ;;  %v6908_v22 = vld [vmem:[%s9650_s5 + $0x100] sm:$0xf] }
 0xf90   : > { %4443 = vmatmul.bf16.gmra.mxu0 %v6877_v61  ;;  %6979 = vmatmul.msk.bf16.gmra.mxu3 %vm4302_vm5, %v6857_v7  ;;  %v3884_v61 = vpop.permute.xlu1 %3883  ;;  %v7180_v7 = vld [vmem:[%s9650_s5 + $0xf4] sm:$0xf0] }
 0xf93   : > { %v4518_v13 = vpop.f32.mrf.mxu3 }
 0xf94   : > { %v4519_v31 = vadd.f32 %v4518_v13, %v4390_v35  ;;  %v6901_v13 = vor.u32 %v7180_v7, %v6900_v10 }
 0xf95   : > { %v8645_v8 = vpop.f32.mrf.mxu0 }
 0xf96   : > { %4635 = vst.msk [vmem:[%s8624_s8 + $0x10] sm:$0xff] %vm1123_vm2, %v4519_v31  ;;  %v5202_v45 = vsel %vm1123_vm2, %v4519_v31, 0.0  ;;  %6996 = vmatmul.msk.f32.gmra.mxu2 %vm1123_vm2, %v4519_v31  ;;  %v8707_v53 = vsel %vm1123_vm2, %v4519_v31, -inf  ;;  %v6881_v31 = vor.u32 %v7173_v23, %v6878_v11 }
 0xf97   : > { %v5203_v28 = vadd.f32 %v5202_v45, %v5201_v3  ;;  %v4402_v3 = vadd.f32 %v8626_v29, %v3884_v61 }
 0xf9b   : > { %v4520_v38 = vpop.f32.mrf.mxu3 }
 0xf9c   : > { %v8656_v39 = vadd.f32 %v4520_v38, %v4392_v14 }
 0xf9d   : > { %v8658_v59 = vpop.f32.mrf.mxu0 }
 0xf9e   : > { %4636 = vst.msk [vmem:[%s8624_s8 + $0x18] sm:$0xff] %vm1123_vm2, %v8656_v39  ;;  %v5204_v15 = vsel %vm1123_vm2, %v8656_v39, 0.0  ;;  %6997 = vmatmul.msk.f32.gmra.mxu2 %vm1123_vm2, %v8656_v39 }
 0xf9f   : > { %v5205_v60 = vadd.f32 %v5204_v15, %v5203_v28  ;;  %v8727_v28 = vsel %vm1123_vm2, %v8656_v39, -inf }
 0xfa0   : > { %4448 = vmatmul.bf16.gmra.mxu0 %v6885_v56  ;;  %6980 = vmatmul.msk.bf16.gmra.mxu3 %vm4302_vm5, %v6865_v6 }
 0xfa3   : > { %v4523_v2 = vpop.f32.mrf.mxu3 }
 0xfa4   : > { %v4524_v17 = vadd.f32 %v4523_v2, %v4395_v49  ;;  %v7182_v49 = vld [vmem:[%s9650_s5 + $0x104] sm:$0xf0]  ;;  %v7175_v2 = vld [vmem:[%s9650_s5 + $0xd4] sm:$0xf] }
 0xfa5   : > { %v8669_v57 = vpop.f32.mrf.mxu0  ;;  %v6909_v16 = vor.u32 %v7182_v49, %v6908_v22 }
 0xfa6   : > { %4637 = vst.msk [vmem:[%s8624_s8 + $0x20] sm:$0xff] %vm1123_vm2, %v4524_v17  ;;  %v5206_v32 = vsel %vm1123_vm2, %v4524_v17, 0.0  ;;  %v8678_v46 = vsel %vm1123_vm2, %v4524_v17, -inf  ;;  %6998 = vmatmul.msk.f32.gmra.mxu2 %vm1123_vm2, %v4524_v17  ;;  %v6886_v17 = vld [vmem:[%s9650_s5 + $0xd8] sm:$0xf0] }
 0xfa7   : > { %v5207_v54 = vadd.f32 %v5206_v32, %v5205_v60  ;;  %v5313_v52 = vmax.f32 %v8672_v19, %v8678_v46  ;;  %v4407_v32 = vadd.f32 %v8645_v8, %v3894_v9  ;;  %v6889_v48 = vor.u32 %v7175_v2, %v6886_v17  ;;  %v3899_v8 = vpop.permute.xlu1 %3898 }
 0xfab   : > { %v4525_v58 = vpop.f32.mrf.mxu3 }
 0xfac   : > { %v4526_v40 = vadd.f32 %v4525_v58, %v4397_v44  ;;  %v4410_v44 = vadd.f32 %v8658_v59, %v3899_v8  ;;  %v7177_v59 = vld [vmem:[%s9650_s5 + $0xe4] sm:$0xf]  ;;  %v6910_v8 = vld [vmem:[%s9650_s5 + $0x108] sm:$0xf0] }
 0xfad   : > { %v8688_v20 = vpop.f32.mrf.mxu0 }
 0xfae   : > { %4638 = vst.msk [vmem:[%s8624_s8 + $0x28] sm:$0xff] %vm1123_vm2, %v4526_v40  ;;  %v5208_v1 = vsel %vm1123_vm2, %v4526_v40, 0.0  ;;  %v8697_v4 = vsel %vm1123_vm2, %v4526_v40, -inf  ;;  %6999 = vmatmul.msk.f32.gmra.mxu2 %vm1123_vm2, %v4526_v40 }
 0xfaf   : > { %v5209_v42 = vadd.f32 %v5208_v1, %v5207_v54  ;;  %v5315_v21 = vmax.f32 %v8691_v25, %v8697_v4 }
 0xfb0   : > { %4453 = vmatmul.bf16.gmra.mxu0 %v6893_v33  ;;  %6981 = vmatmul.msk.bf16.gmra.mxu3 %vm4302_vm5, %v6873_v18 }
 0xfb3   : > { %v4528_v5 = vpop.f32.mrf.mxu3 }
 0xfb4   : > { %v4529_v24 = vadd.f32 %v4528_v5, %v4400_v63  ;;  %v6894_v63 = vld [vmem:[%s9650_s5 + $0xe8] sm:$0xf0] }
 0xfb5   : > { %v8704_v0 = vpop.f32.mrf.mxu0 }
 0xfb6   : > { %4639 = vst.msk [vmem:[%s8624_s8 + $0x30] sm:$0xff] %vm1123_vm2, %v4529_v24  ;;  %v5210_v51 = vsel %vm1123_vm2, %v4529_v24, 0.0  ;;  %v8713_v62 = vsel %vm1123_vm2, %v4529_v24, -inf  ;;  %7000 = vmatmul.msk.f32.gmra.mxu2 %vm1123_vm2, %v4529_v24 }
 0xfb7   : > { %v5211_v12 = vadd.f32 %v5210_v51, %v5209_v42  ;;  %v5317_v47 = vmax.f32 %v8707_v53, %v8713_v62  ;;  %v6916_v42 = vld [vmem:[%s9650_s5 + $0x110] sm:$0xf]  ;;  %v6897_v62 = vor.u32 %v7177_v59, %v6894_v63 }
 0xfb8   : > { %v6917_v51 = vor.u32 %v7184_v41, %v6916_v42 }
 0xfbb   : > { %v4530_v34 = vpop.f32.mrf.mxu3 }
 0xfbc   : > { %v4531_v35 = vadd.f32 %v4530_v34, %v4402_v3 }
 0xfbd   : > { %v8723_v45 = vpop.f32.mrf.mxu0 }
 0xfbe   : > { %4640 = vst.msk [vmem:[%s8624_s8 + $0x38] sm:$0xff] %vm1123_vm2, %v4531_v35  ;;  %v5212_v26 = vsel %vm1123_vm2, %v4531_v35, 0.0  ;;  %v8733_v30 = vsel %vm1123_vm2, %v4531_v35, -inf  ;;  %7001 = vmatmul.msk.f32.gmra.mxu2 %vm1123_vm2, %v4531_v35 }
 0xfbf   : > { %v5213_v29 = vadd.f32 %v5212_v26, %v5211_v12  ;;  %v5319_v36 = vmax.f32 %v8727_v28, %v8733_v30  ;;  %v6924_v26 = vld [vmem:[%s9650_s5 + $0x120] sm:$0xf]  ;;  %v7186_v30 = vld [vmem:[%s9650_s5 + $0x124] sm:$0xf0] }
 0xfc0   : > { %4458 = vmatmul.bf16.gmra.mxu0 %v6901_v13  ;;  %6982 = vmatmul.msk.bf16.gmra.mxu3 %vm4302_vm5, %v6881_v31 }
 0xfc3   : > { %v4533_v14 = vpop.f32.mrf.mxu3 }
 0xfc4   : > { %v4534_v38 = vadd.f32 %v4533_v14, %v4405_v37 }
 0xfc5   : > { %v8740_v39 = vpop.f32.mrf.mxu0 }
 0xfc6   : > { %4641 = vst.msk [vmem:[%s8624_s8 + $0x40] sm:$0xff] %vm1123_vm2, %v4534_v38  ;;  %v5214_v56 = vsel %vm1123_vm2, %v4534_v38, 0.0  ;;  %v5320_v6 = vsel %vm1123_vm2, %v4534_v38, -inf  ;;  %7002 = vmatmul.msk.f32.gmra.mxu2 %vm1123_vm2, %v4534_v38  ;;  %v6925_v38 = vor.u32 %v7186_v30, %v6924_v26 }
 0xfc7   : > { %v5215_v15 = vadd.f32 %v5214_v56, %v5213_v29  ;;  %v8750_v60 = vmax.f32 %v5313_v52, %v5320_v6  ;;  %v7179_v29 = vld [vmem:[%s9650_s5 + $0xf4] sm:$0xf] }
 0xfcb   : > { %v4535_v54 = vpop.f32.mrf.mxu3 }
 0xfcc   : > { %v4536_v50 = vadd.f32 %v4535_v54, %v4407_v32 }
 0xfcd   : > { %v8757_v55 = vpop.f32.mrf.mxu0 }
 0xfce   : > { %4642 = vst.msk [vmem:[%s8624_s8 + $0x48] sm:$0xff] %vm1123_vm2, %v4536_v50  ;;  %v5216_v19 = vsel %vm1123_vm2, %v4536_v50, 0.0  ;;  %v5322_v46 = vsel %vm1123_vm2, %v4536_v50, -inf  ;;  %7003 = vmatmul.msk.f32.gmra.mxu2 %vm1123_vm2, %v4536_v50 }
 0xfcf   : > { %v5217_v52 = vadd.f32 %v5216_v19, %v5215_v15  ;;  %v8764_v27 = vmax.f32 %v5315_v21, %v5322_v46  ;;  %v3904_v21 = vpop.permute.xlu2 %3903  ;;  %v6932_v19 = vld [vmem:[%s9650_s5 + $0x130] sm:$0xf] }
 0xfd0   : > { %4463 = vmatmul.bf16.gmra.mxu0 %v6909_v16  ;;  %6983 = vmatmul.msk.bf16.gmra.mxu3 %vm4302_vm5, %v6889_v48  ;;  %v4412_v5 = vadd.f32 %v8669_v57, %v3904_v21  ;;  %v3909_v57 = vpop.permute.xlu0 %3908 }
 0xfd1   : > { %v4415_v23 = vadd.f32 %v8688_v20, %v3909_v57  ;;  %v3914_v20 = vpop.permute.xlu1 %3913 }
 0xfd2   : > { %v4417_v43 = vadd.f32 %v8704_v0, %v3914_v20 }
 0xfd3   : > { %v4538_v58 = vpop.f32.mrf.mxu3 }
 0xfd4   : > { %v4539_v40 = vadd.f32 %v4538_v58, %v4410_v44 }
 0xfd5   : > { %v8768_v33 = vpop.f32.mrf.mxu0 }
 0xfd6   : > { %4643 = vst.msk [vmem:[%s8624_s8 + $0x50] sm:$0xff] %vm1123_vm2, %v4539_v40  ;;  %v5218_v18 = vsel %vm1123_vm2, %v4539_v40, 0.0  ;;  %v5324_v25 = vsel %vm1123_vm2, %v4539_v40, -inf  ;;  %7004 = vmatmul.msk.f32.gmra.mxu2 %vm1123_vm2, %v4539_v40 }
 0xfd7   : > { %v5219_v1 = vadd.f32 %v5218_v18, %v5217_v52  ;;  %v8775_v4 = vmax.f32 %v5317_v47, %v5324_v25  ;;  %v3919_v9 = vpop.permute.xlu2 %3918  ;;  %v7188_v52 = vld [vmem:[%s9650_s5 + $0x134] sm:$0xf0] }
 0xfd8   : > { %v4420_v49 = vadd.f32 %v8723_v45, %v3919_v9  ;;  %v3924_v46 = vpop.permute.xlu0 %3923  ;;  %v7181_v45 = vld [vmem:[%s9650_s5 + $0x104] sm:$0xf]  ;;  %v6933_v18 = vor.u32 %v7188_v52, %v6932_v19 }
 0xfd9   : > { %v4422_v44 = vadd.f32 %v8740_v39, %v3924_v46  ;;  %v6913_v25 = vor.u32 %v7181_v45, %v6910_v8  ;;  %v3929_v39 = vpop.permute.xlu1 %3928 }
 0xfda   : > { %v4425_v63 = vadd.f32 %v8757_v55, %v3929_v39  ;;  %v6940_v55 = vld [vmem:[%s9650_s5 + $0x140] sm:$0xf] }
 0xfdb   : > { %v4540_v24 = vpop.f32.mrf.mxu3 }
 0xfdc   : > { %v4541_v53 = vadd.f32 %v4540_v24, %v4412_v5 }
 0xfdd   : > { %v8782_v12 = vpop.f32.mrf.mxu0 }
 0xfde   : > { %4644 = vst.msk [vmem:[%s8624_s8 + $0x58] sm:$0xff] %vm1123_vm2, %v4541_v53  ;;  %v5220_v10 = vsel %vm1123_vm2, %v4541_v53, 0.0  ;;  %v5326_v47 = vsel %vm1123_vm2, %v4541_v53, -inf  ;;  %7005 = vmatmul.msk.f32.gmra.mxu2 %vm1123_vm2, %v4541_v53 }
 0xfdf   : > { %v5221_v61 = vadd.f32 %v5220_v10, %v5219_v1  ;;  %v8789_v7 = vmax.f32 %v5319_v36, %v5326_v47  ;;  %v6902_v36 = vld [vmem:[%s9650_s5 + $0xf8] sm:$0xf0] }
 0xfe0   : > { %4468 = vmatmul.bf16.gmra.mxu0 %v6917_v51  ;;  %6984 = vmatmul.msk.bf16.gmra.mxu3 %vm4302_vm5, %v6897_v62  ;;  %v6905_v56 = vor.u32 %v7179_v29, %v6902_v36  ;;  %v8851_v62 = vld [vmem:[%s7560_s24] ss:$0 sm:$0xff] }
 0xfe3   : > { %v4543_v11 = vpop.f32.mrf.mxu3 }
 0xfe4   : > { %v4544_v3 = vadd.f32 %v4543_v11, %v4415_v23  ;;  %v7190_v11 = vld [vmem:[%s9650_s5 + $0x144] sm:$0xf0] }
 0xfe5   : > { %v8793_v34 = vpop.f32.mrf.mxu0  ;;  %v6941_v20 = vor.u32 %v7190_v11, %v6940_v55  ;;  %v7194_v55 = vld [vmem:[%s9650_s5 + $0x164] sm:$0xf0] }
 0xfe6   : > { %4645 = vst.msk [vmem:[%s8624_s8 + $0x60] sm:$0xff] %vm1123_vm2, %v4544_v3  ;;  %v5222_v35 = vsel %vm1123_vm2, %v4544_v3, 0.0  ;;  %v8799_v13 = vsel %vm1123_vm2, %v4544_v3, -inf  ;;  %7006 = vmatmul.msk.f32.gmra.mxu2 %vm1123_vm2, %v4544_v3  ;;  %v7183_v3 = vld [vmem:[%s9650_s5 + $0x114] sm:$0xf] }
 0xfe7   : > { %v5223_v31 = vadd.f32 %v5222_v35, %v5221_v61  ;;  %v5329_v28 = vmax.f32 %v8750_v60, %v8799_v13  ;;  %v6918_v35 = vld [vmem:[%s9650_s5 + $0x118] sm:$0xf0] }
 0xfe8   : > { %v6921_v30 = vor.u32 %v7183_v3, %v6918_v35 }
 0xfeb   : > { %v4545_v37 = vpop.f32.mrf.mxu3 }
 0xfec   : > { %v4546_v14 = vadd.f32 %v4545_v37, %v4417_v43  ;;  %v3939_v37 = vpop.permute.xlu0 %3938 }
 0xfed   : > { %v8809_v6 = vpop.f32.mrf.mxu0 }
 0xfee   : > { %4646 = vst.msk [vmem:[%s8624_s8 + $0x68] sm:$0xff] %vm1123_vm2, %v4546_v14  ;;  %v5224_v15 = vsel %vm1123_vm2, %v4546_v14, 0.0  ;;  %v8815_v60 = vsel %vm1123_vm2, %v4546_v14, -inf  ;;  %7007 = vmatmul.msk.f32.gmra.mxu2 %vm1123_vm2, %v4546_v14 }
 0xfef   : > { %v5225_v22 = vadd.f32 %v5224_v15, %v5223_v31  ;;  %v5331_v0 = vmax.f32 %v8764_v27, %v8815_v60  ;;  %v4430_v15 = vadd.f32 %v8782_v12, %v3939_v37 }
 0xff0   : > { %4473 = vmatmul.bf16.gmra.mxu0 %v6925_v38  ;;  %6985 = vmatmul.msk.bf16.gmra.mxu3 %vm4302_vm5, %v6905_v56 }
 0xff3   : > { %v4548_v2 = vpop.f32.mrf.mxu3 }
 0xff4   : > { %v4549_v17 = vadd.f32 %v4548_v2, %v4420_v49  ;;  %v6948_v2 = vld [vmem:[%s9650_s5 + $0x150] sm:$0xf] }
 0xff5   : > { %v8822_v32 = vpop.f32.mrf.mxu0 }
 0xff6   : > { %4647 = vst.msk [vmem:[%s8624_s8 + $0x70] sm:$0xff] %vm1123_vm2, %v4549_v17  ;;  %v5226_v54 = vsel %vm1123_vm2, %v4549_v17, 0.0  ;;  %v5332_v50 = vsel %vm1123_vm2, %v4549_v17, -inf  ;;  %7008 = vmatmul.msk.f32.gmra.mxu2 %vm1123_vm2, %v4549_v17  ;;  %v3944_v17 = vpop.permute.xlu1 %3943 }
 0xff7   : > { %v5227_v16 = vadd.f32 %v5226_v54, %v5225_v22  ;;  %v5333_v48 = vmax.f32 %v8775_v4, %v5332_v50  ;;  %v7192_v50 = vld [vmem:[%s9650_s5 + $0x154] sm:$0xf0]  ;;  %v4432_v19 = vadd.f32 %v8793_v34, %v3944_v17  ;;  %v7189_v17 = vld [vmem:[%s9650_s5 + $0x144] sm:$0xf] }
 0xffb   : > { %v4550_v58 = vpop.f32.mrf.mxu3 }
 0xffc   : > { %v4551_v40 = vadd.f32 %v4550_v58, %v4422_v44  ;;  %v6949_v44 = vor.u32 %v7192_v50, %v6948_v2  ;;  %v7196_v2 = vld [vmem:[%s9650_s5 + $0x174] sm:$0xf0] }
 0xffd   : > { %v8835_v1 = vpop.f32.mrf.mxu0 }
 0xffe   : > { %4648 = vst.msk [vmem:[%s8624_s8 + $0x78] sm:$0xff] %vm1123_vm2, %v4551_v40  ;;  %v5228_v42 = vsel %vm1123_vm2, %v4551_v40, 0.0  ;;  %v5334_v4 = vsel %vm1123_vm2, %v4551_v40, -inf  ;;  %7009 = vmatmul.msk.f32.gmra.mxu2 %vm1123_vm2, %v4551_v40 }
 0xfff   : > { %v5229_v21 = vadd.f32 %v5228_v42, %v5227_v16  ;;  %v5335_v41 = vmax.f32 %v8789_v7, %v5334_v4  ;;  %v3934_v7 = vpop.permute.xlu2 %3933  ;;  %v7185_v16 = vld [vmem:[%s9650_s5 + $0x124] sm:$0xf] }
0x1000   : > { %4478 = vmatmul.bf16.gmra.mxu0 %v6933_v18  ;;  %6986 = vmatmul.msk.bf16.gmra.mxu3 %vm4302_vm5, %v6913_v25  ;;  %v4427_v13 = vadd.f32 %v8768_v33, %v3934_v7  ;;  %v7187_v7 = vld [vmem:[%s9650_s5 + $0x134] sm:$0xf] }
0x1001   : > { %v5341_v59 = vmax.f32 %v5333_v48, %v5335_v41  ;;  %v6926_v48 = vld [vmem:[%s9650_s5 + $0x128] sm:$0xf0] }
0x1002   : > { %v6929_v58 = vor.u32 %v7185_v16, %v6926_v48 }
0x1003   : > { %v4553_v5 = vpop.f32.mrf.mxu3 }
0x1004   : > { %v4554_v24 = vadd.f32 %v4553_v5, %v4425_v63 }
0x1005   : > { %v8853_v61 = vpop.f32.mrf.mxu0 }
0x1006   : > { %4649 = vst.msk [vmem:[%s8624_s8 + $0x80] sm:$0xff] %vm1123_vm2, %v4554_v24  ;;  %v5230_v53 = vsel %vm1123_vm2, %v4554_v24, 0.0  ;;  %v5336_v51 = vsel %vm1123_vm2, %v4554_v24, -inf  ;;  %7010 = vmatmul.msk.f32.gmra.mxu2 %vm1123_vm2, %v4554_v24 }
0x1007   : > { %v5231_v10 = vadd.f32 %v5230_v53, %v5229_v21  ;;  %v5337_v47 = vmax.f32 %v5329_v28, %v5336_v51  ;;  %v3949_v42 = vpop.permute.xlu2 %3948  ;;  %v6956_v51 = vld [vmem:[%s9650_s5 + $0x160] sm:$0xf] }
0x1008   : > { %v4435_v21 = vadd.f32 %v8809_v6, %v3949_v42 }
0x1009   : > { %v5343_v57 = vmax.f32 %v5337_v47, %v5341_v59  ;;  %v4852_v23 = vpop.f32.mrf.mxu2 }
0x100a   : > { %v8866_v31 = vadd.f32 %v8851_v62, %v4852_v23 }
0x100b   : > { %v4555_v28 = vpop.f32.mrf.mxu3 }
0x100c   : > { %4996 = vst.msk [vmem:[%s8859_s6] sm:$0xff] %vm1497_vm4, %v8866_v31  ;;  %v4556_v26 = vadd.f32 %v4555_v28, %v4427_v13  ;;  %v6957_v13 = vor.u32 %v7194_v55, %v6956_v51  ;;  %v5736_v55 = vsel %vm1497_vm4, %v8866_v31, 0.0 }
0x100d   : > { %v8880_v38 = vpop.f32.mrf.mxu0 }
0x100e   : > { %4650 = vst.msk [vmem:[%s8624_s8 + $0x88] sm:$0xff] %vm1123_vm2, %v4556_v26  ;;  %v5232_v29 = vsel %vm1123_vm2, %v4556_v26, 0.0  ;;  %v5338_v36 = vsel %vm1123_vm2, %v4556_v26, -inf  ;;  %7011 = vmatmul.msk.f32.gmra.mxu2 %vm1123_vm2, %v4556_v26 }
0x100f   : > { %v5233_v33 = vadd.f32 %v5232_v29, %v5231_v10  ;;  %v5339_v43 = vmax.f32 %v5331_v0, %v5338_v36  ;;  %v3954_v10 = vpop.permute.xlu0 %3953  ;;  %v3959_v36 = vpop.permute.xlu1 %3958 }
0x1010   : > { %4483 = vmatmul.bf16.gmra.mxu0 %v6941_v20  ;;  %6987 = vmatmul.msk.bf16.gmra.mxu3 %vm4302_vm5, %v6921_v30  ;;  %v4437_v23 = vadd.f32 %v8822_v32, %v3954_v10  ;;  %v7191_v10 = vld [vmem:[%s9650_s5 + $0x154] sm:$0xf] }
0x1011   : > { %v5345_v14 = vmax.f32 %v5339_v43, %v5343_v57  ;;  %v4855_v56 = vpop.f32.mrf.mxu2  ;;  %v6934_v57 = vld [vmem:[%s9650_s5 + $0x138] sm:$0xf0]  ;;  %v4440_v43 = vadd.f32 %v8835_v1, %v3959_v36 }
0x1012   : > { %v8884_v22 = vadd.f32 %v8851_v62, %v4855_v56  ;;  %v6937_v28 = vor.u32 %v7187_v7, %v6934_v57 }
0x1013   : > { %v4558_v9 = vpop.f32.mrf.mxu3 }
0x1014   : > { %4997 = vst.msk [vmem:[%s8859_s6 + $0x8] sm:$0xff] %vm1497_vm4, %v8884_v22  ;;  %v4559_v27 = vadd.f32 %v4558_v9, %v4430_v15 }
0x1015   : > { %v8902_v52 = vpop.f32.mrf.mxu0 }
0x1016   : > { %4651 = vst.msk [vmem:[%s8624_s8 + $0x90] sm:$0xff] %vm1123_vm2, %v4559_v27  ;;  %v5234_v60 = vsel %vm1123_vm2, %v4559_v27, 0.0  ;;  %v5340_v0 = vsel %vm1123_vm2, %v4559_v27, -inf  ;;  %7012 = vmatmul.msk.f32.gmra.mxu2 %vm1123_vm2, %v4559_v27 }
0x1017   : > { %v5235_v49 = vadd.f32 %v5234_v60, %v5233_v33  ;;  %v5347_v12 = vmax.f32 %v5340_v0, %v5345_v14  ;;  %v3964_v60 = vpop.permute.xlu2 %3963  ;;  %v6964_v0 = vld [vmem:[%s9650_s5 + $0x170] sm:$0xf] }
0x1018   : > { %v4442_v50 = vadd.f32 %v8853_v61, %v3964_v60 }
0x1019   : > { %v4858_v54 = vpop.f32.mrf.mxu2 }
0x101a   : > { %v8900_v46 = vadd.f32 %v8851_v62, %v4858_v54  ;;  %v6942_v54 = vld [vmem:[%s9650_s5 + $0x148] sm:$0xf0] }
0x101b   : > { %v4560_v45 = vpop.f32.mrf.mxu3 }
0x101c   : > { %4998 = vst.msk [vmem:[%s8859_s6 + $0x10] sm:$0xff] %vm1497_vm4, %v8900_v46  ;;  %v4561_v8 = vadd.f32 %v4560_v45, %v4432_v19  ;;  %v6965_v45 = vor.u32 %v7196_v2, %v6964_v0  ;;  %v5739_v57 = vsel %vm1497_vm4, %v8900_v46, 0.0 }
0x101d   : > { %v8920_v63 = vpop.f32.mrf.mxu0 }
0x101e   : > { %4652 = vst.msk [vmem:[%s8624_s8 + $0x98] sm:$0xff] %vm1123_vm2, %v4561_v8  ;;  %v5236_v40 = vsel %vm1123_vm2, %v4561_v8, 0.0  ;;  %v5342_v34 = vsel %vm1123_vm2, %v4561_v8, -inf  ;;  %7013 = vmatmul.msk.f32.gmra.mxu2 %vm1123_vm2, %v4561_v8  ;;  %v6945_v8 = vor.u32 %v7189_v17, %v6942_v54 }
0x101f   : > { %v5237_v18 = vadd.f32 %v5236_v40, %v5235_v49  ;;  %v5349_v25 = vmax.f32 %v5342_v34, %v5347_v12  ;;  %v3969_v34 = vpop.permute.xlu0 %3968 }
0x1020   : > { %4488 = vmatmul.bf16.gmra.mxu0 %v6949_v44  ;;  %6988 = vmatmul.msk.bf16.gmra.mxu3 %vm4302_vm5, %v6929_v58 }
0x1021   : > { %v4861_v4 = vpop.f32.mrf.mxu2 }
0x1022   : > { %v8915_v41 = vadd.f32 %v8851_v62, %v4861_v4 }
0x1023   : > { %v4563_v39 = vpop.f32.mrf.mxu3 }
0x1024   : > { %4999 = vst.msk [vmem:[%s8859_s6 + $0x18] sm:$0xff] %vm1497_vm4, %v8915_v41  ;;  %v4564_v59 = vadd.f32 %v4563_v39, %v4435_v21 }
0x1025   : > { %v8943_v32 = vpop.f32.mrf.mxu0 }
0x1026   : > { %4653 = vst.msk [vmem:[%s8624_s8 + $0xa0] sm:$0xff] %vm1123_vm2, %v4564_v59  ;;  %v5238_v5 = vsel %vm1123_vm2, %v4564_v59, 0.0  ;;  %v5344_v24 = vsel %vm1123_vm2, %v4564_v59, -inf  ;;  %7014 = vmatmul.msk.f32.gmra.mxu2 %vm1123_vm2, %v4564_v59 }
0x1027   : > { %v5239_v6 = vadd.f32 %v5238_v5, %v5237_v18  ;;  %v5351_v53 = vmax.f32 %v5344_v24, %v5349_v25  ;;  %v4445_v25 = vadd.f32 %v8880_v38, %v3969_v34 }
0x1029   : > { %v4864_v47 = vpop.f32.mrf.mxu2 }
0x102a   : > { %v8933_v11 = vadd.f32 %v8851_v62, %v4864_v47  ;;  %v6950_v47 = vld [vmem:[%s9650_s5 + $0x158] sm:$0xf0] }
0x102b   : > { %v4565_v3 = vpop.f32.mrf.mxu3 }
0x102c   : > { %5000 = vst.msk [vmem:[%s8859_s6 + $0x20] sm:$0xff] %vm1497_vm4, %v8933_v11  ;;  %v4566_v35 = vadd.f32 %v4565_v3, %v4437_v23 }
0x102d   : > { %v8959_v49 = vpop.f32.mrf.mxu0 }
0x102e   : > { %4654 = vst.msk [vmem:[%s8624_s8 + $0xa8] sm:$0xff] %vm1123_vm2, %v4566_v35  ;;  %v5240_v26 = vsel %vm1123_vm2, %v4566_v35, 0.0  ;;  %v5346_v20 = vsel %vm1123_vm2, %v4566_v35, -inf  ;;  %7015 = vmatmul.msk.f32.gmra.mxu2 %vm1123_vm2, %v4566_v35 }
0x102f   : > { %v5241_v30 = vadd.f32 %v5240_v26, %v5239_v6  ;;  %v5353_v29 = vmax.f32 %v5346_v20, %v5351_v53  ;;  %v5737_v6 = vsel %vm1497_vm4, %v8884_v22, 0.0  ;;  %v3974_v53 = vpop.permute.xlu1 %3973  ;;  %v6953_v26 = vor.u32 %v7191_v10, %v6950_v47 }
0x1030   : > { %4493 = vmatmul.bf16.gmra.mxu0 %v6957_v13  ;;  %6989 = vmatmul.msk.bf16.gmra.mxu3 %vm4302_vm5, %v6937_v28  ;;  %v4447_v7 = vadd.f32 %v8902_v52, %v3974_v53  ;;  %v5738_v3 = vadd.f32 %v5737_v6, %v5736_v55  ;;  %v5741_v13 = vsel %vm1497_vm4, %v8915_v41, 0.0  ;;  %v5743_v52 = vsel %vm1497_vm4, %v8933_v11, 0.0 }
0x1031   : > { %v4867_v33 = vpop.f32.mrf.mxu2 }
0x1032   : > { %v8948_v37 = vadd.f32 %v8851_v62, %v4867_v33  ;;  %v5740_v20 = vadd.f32 %v5739_v57, %v5738_v3 }
0x1033   : > { %v4568_v14 = vpop.f32.mrf.mxu3 }
0x1034   : > { %5001 = vst.msk [vmem:[%s8859_s6 + $0x28] sm:$0xff] %vm1497_vm4, %v8948_v37  ;;  %v4569_v56 = vadd.f32 %v4568_v14, %v4440_v43  ;;  %v5742_v33 = vadd.f32 %v5741_v13, %v5740_v20 }
0x1035   : > { %v8981_v4 = vpop.f32.mrf.mxu0 }
0x1036   : > { %4655 = vst.msk [vmem:[%s8624_s8 + $0xb0] sm:$0xff] %vm1123_vm2, %v4569_v56  ;;  %v5242_v15 = vsel %vm1123_vm2, %v4569_v56, 0.0  ;;  %v5348_v9 = vsel %vm1123_vm2, %v4569_v56, -inf  ;;  %7016 = vmatmul.msk.f32.gmra.mxu2 %vm1123_vm2, %v4569_v56  ;;  %v5745_v56 = vsel %vm1497_vm4, %v8948_v37, 0.0 }
0x1037   : > { %v5243_v1 = vadd.f32 %v5242_v15, %v5241_v30  ;;  %v5355_v27 = vmax.f32 %v5348_v9, %v5353_v29  ;;  %v3979_v15 = vpop.permute.xlu2 %3978  ;;  %v5744_v9 = vadd.f32 %v5743_v52, %v5742_v33 }
0x1039   : > { %v4870_v12 = vpop.f32.mrf.mxu2 }
0x103a   : > { %v8966_v16 = vadd.f32 %v8851_v62, %v4870_v12  ;;  %v5746_v12 = vadd.f32 %v5745_v56, %v5744_v9  ;;  %v7195_v56 = vld [vmem:[%s9650_s5 + $0x174] sm:$0xf] }
0x103b   : > { %v4570_v48 = vpop.f32.mrf.mxu3 }
0x103c   : > { %5002 = vst.msk [vmem:[%s8859_s6 + $0x30] sm:$0xff] %vm1497_vm4, %v8966_v16  ;;  %v4571_v19 = vadd.f32 %v4570_v48, %v4442_v50  ;;  %v5747_v60 = vsel %vm1497_vm4, %v8966_v16, 0.0 }
0x103d   : > { %v9008_v30 = vpop.f32.mrf.mxu0  ;;  %v5748_v50 = vadd.f32 %v5747_v60, %v5746_v12 }
0x103e   : > { %4656 = vst.msk [vmem:[%s8624_s8 + $0xb8] sm:$0xff] %vm1123_vm2, %v4571_v19  ;;  %v5244_v44 = vsel %vm1123_vm2, %v4571_v19, 0.0  ;;  %v5350_v58 = vsel %vm1123_vm2, %v4571_v19, -inf  ;;  %7017 = vmatmul.msk.f32.gmra.mxu2 %vm1123_vm2, %v4571_v19 }
0x103f   : > { %v5245_v61 = vadd.f32 %v5244_v44, %v5243_v1  ;;  %v5357_v40 = vmax.f32 %v5350_v58, %v5355_v27  ;;  %v4450_v27 = vadd.f32 %v8920_v63, %v3979_v15  ;;  %v6966_v15 = vld [vmem:[%s9650_s5 + $0x178] sm:$0xf0] }
0x1040   : > { %4498 = vmatmul.bf16.gmra.mxu0 %v6965_v45  ;;  %6990 = vmatmul.msk.bf16.gmra.mxu3 %vm4302_vm5, %v6945_v8 }
0x1041   : > { %v4873_v18 = vpop.f32.mrf.mxu2 }
0x1042   : > { %v8979_v42 = vadd.f32 %v8851_v62, %v4873_v18 }
0x1043   : > { %v4573_v21 = vpop.f32.mrf.mxu3 }
0x1044   : > { %5003 = vst.msk [vmem:[%s8859_s6 + $0x38] sm:$0xff] %vm1497_vm4, %v8979_v42  ;;  %v4574_v39 = vadd.f32 %v4573_v21, %v4445_v25  ;;  %v5749_v17 = vsel %vm1497_vm4, %v8979_v42, 0.0  ;;  %v7193_v25 = vld [vmem:[%s9650_s5 + $0x164] sm:$0xf]  ;;  %v6958_v21 = vld [vmem:[%s9650_s5 + $0x168] sm:$0xf0] }
0x1045   : > { %v5750_v45 = vadd.f32 %v5749_v17, %v5748_v50  ;;  %v9038_v8 = vpop.f32.mrf.mxu0  ;;  %v6961_v53 = vor.u32 %v7193_v25, %v6958_v21  ;;  %v6969_v17 = vor.u32 %v7195_v56, %v6966_v15 }
0x1046   : > { %4657 = vst.msk [vmem:[%s8624_s8 + $0xc0] sm:$0xff] %vm1123_vm2, %v4574_v39  ;;  %v5246_v59 = vsel %vm1123_vm2, %v4574_v39, 0.0  ;;  %v5352_v5 = vsel %vm1123_vm2, %v4574_v39, -inf  ;;  %7018 = vmatmul.msk.f32.gmra.mxu2 %vm1123_vm2, %v4574_v39 }
0x1047   : > { %v5247_v38 = vadd.f32 %v5246_v59, %v5245_v61  ;;  %v5359_v24 = vmax.f32 %v5352_v5, %v5357_v40  ;;  %v3984_v40 = vpop.permute.xlu0 %3983 }
0x1048   : > { %v4452_v39 = vadd.f32 %v8943_v32, %v3984_v40 }
0x1049   : > { %v4876_v51 = vpop.f32.mrf.mxu2 }
0x104a   : > { %v9001_v23 = vadd.f32 %v8851_v62, %v4876_v51 }
0x104b   : > { %v4575_v35 = vpop.f32.mrf.mxu3 }
0x104c   : > { %5004 = vst.msk [vmem:[%s8859_s6 + $0x40] sm:$0xff] %vm1497_vm4, %v9001_v23  ;;  %v4576_v28 = vadd.f32 %v4575_v35, %v4447_v7  ;;  %v5751_v63 = vsel %vm1497_vm4, %v9001_v23, 0.0  ;;  %v3989_v7 = vpop.permute.xlu1 %3988 }
0x104d   : > { %v5752_v34 = vadd.f32 %v5751_v63, %v5750_v45  ;;  %v9059_v57 = vpop.f32.mrf.mxu0  ;;  %v4455_v35 = vadd.f32 %v8959_v49, %v3989_v7 }
0x104e   : > { %4658 = vst.msk [vmem:[%s8624_s8 + $0xc8] sm:$0xff] %vm1123_vm2, %v4576_v28  ;;  %v5248_v29 = vsel %vm1123_vm2, %v4576_v28, 0.0  ;;  %v5354_v36 = vsel %vm1123_vm2, %v4576_v28, -inf  ;;  %7019 = vmatmul.msk.f32.gmra.mxu2 %vm1123_vm2, %v4576_v28 }
0x104f   : > { %v5249_v43 = vadd.f32 %v5248_v29, %v5247_v38  ;;  %v5361_v14 = vmax.f32 %v5354_v36, %v5359_v24 }
0x1050   : > { %6991 = vmatmul.msk.bf16.gmra.mxu3 %vm4302_vm5, %v6953_v26 }
0x1051   : > { %v4879_v1 = vpop.f32.mrf.mxu2 }
0x1052   : > { %v9024_v0 = vadd.f32 %v8851_v62, %v4879_v1 }
0x1053   : > { %v4578_v2 = vpop.f32.mrf.mxu3 }
0x1054   : > { %5005 = vst.msk [vmem:[%s8859_s6 + $0x48] sm:$0xff] %vm1497_vm4, %v9024_v0  ;;  %v4579_v54 = vadd.f32 %v4578_v2, %v4450_v27  ;;  %v5753_v61 = vsel %vm1497_vm4, %v9024_v0, 0.0 }
0x1055   : > { %v5754_v5 = vadd.f32 %v5753_v61, %v5752_v34  ;;  %v9081_v27 = vpop.f32.mrf.mxu0 }
0x1056   : > { %4659 = vst.msk [vmem:[%s8624_s8 + $0xd0] sm:$0xff] %vm1123_vm2, %v4579_v54  ;;  %v5250_v48 = vsel %vm1123_vm2, %v4579_v54, 0.0  ;;  %v5356_v19 = vsel %vm1123_vm2, %v4579_v54, -inf  ;;  %7020 = vmatmul.msk.f32.gmra.mxu2 %vm1123_vm2, %v4579_v54 }
0x1057   : > { %v5251_v44 = vadd.f32 %v5250_v48, %v5249_v43  ;;  %v5363_v58 = vmax.f32 %v5356_v19, %v5361_v14  ;;  %v3994_v43 = vpop.permute.xlu2 %3993  ;;  %v3999_v19 = vpop.permute.xlu0 %3998 }
0x1058   : > { %v4457_v9 = vadd.f32 %v8981_v4, %v3994_v43 }
0x1059   : > { %v4882_v18 = vpop.f32.mrf.mxu2 }
0x105a   : > { %v9046_v59 = vadd.f32 %v8851_v62, %v4882_v18 }
0x105b   : > { %v4580_v38 = vpop.f32.mrf.mxu3 }
0x105c   : > { %5006 = vst.msk [vmem:[%s8859_s6 + $0x50] sm:$0xff] %vm1497_vm4, %v9046_v59  ;;  %v5755_v24 = vsel %vm1497_vm4, %v9046_v59, 0.0  ;;  %v4581_v6 = vadd.f32 %v4580_v38, %v4452_v39  ;;  %v4004_v38 = vpop.permute.xlu1 %4003 }
0x105d   : > { %v5756_v51 = vadd.f32 %v5755_v24, %v5754_v5  ;;  %v4469_v18 = vpop.f32.mrf.mxu0 }
0x105e   : > { %4660 = vst.msk [vmem:[%s8624_s8 + $0xd8] sm:$0xff] %vm1123_vm2, %v4581_v6  ;;  %v5252_v10 = vsel %vm1123_vm2, %v4581_v6, 0.0  ;;  %v5358_v32 = vsel %vm1123_vm2, %v4581_v6, -inf  ;;  %7021 = vmatmul.msk.f32.gmra.mxu2 %vm1123_vm2, %v4581_v6  ;;  %v4462_v6 = vadd.f32 %v9038_v8, %v4004_v38 }
0x105f   : > { %v5253_v47 = vadd.f32 %v5252_v10, %v5251_v44  ;;  %v5365_v55 = vmax.f32 %v5358_v32, %v5363_v58  ;;  %v4460_v44 = vadd.f32 %v9008_v30, %v3999_v19  ;;  %v4014_v15 = vpop.permute.xlu0 %4013 }
0x1060   : > { %6992 = vmatmul.msk.bf16.gmra.mxu3 %vm4302_vm5, %v6961_v53 }
0x1061   : > { %v4885_v3 = vpop.f32.mrf.mxu2 }
0x1062   : > { %v9063_v13 = vadd.f32 %v8851_v62, %v4885_v3 }
0x1063   : > { %v4583_v28 = vpop.f32.mrf.mxu3 }
0x1064   : > { %5007 = vst.msk [vmem:[%s8859_s6 + $0x58] sm:$0xff] %vm1497_vm4, %v9063_v13  ;;  %v5757_v26 = vsel %vm1497_vm4, %v9063_v13, 0.0  ;;  %v4584_v20 = vadd.f32 %v4583_v28, %v4455_v35  ;;  %v4009_v28 = vpop.permute.xlu2 %4008 }
0x1065   : > { %v5758_v52 = vadd.f32 %v5757_v26, %v5756_v51  ;;  %v4471_v8 = vpop.f32.mrf.mxu0 }
0x1066   : > { %4661 = vst.msk [vmem:[%s8624_s8 + $0xe0] sm:$0xff] %vm1123_vm2, %v4584_v20  ;;  %v5254_v29 = vsel %vm1123_vm2, %v4584_v20, 0.0  ;;  %v5360_v49 = vsel %vm1123_vm2, %v4584_v20, -inf  ;;  %7022 = vmatmul.msk.f32.gmra.mxu2 %vm1123_vm2, %v4584_v20  ;;  %v4465_v20 = vadd.f32 %v9059_v57, %v4009_v28 }
0x1067   : > { %v5255_v36 = vadd.f32 %v5254_v29, %v5253_v47  ;;  %v5367_v33 = vmax.f32 %v5360_v49, %v5365_v55 }
0x1069   : > { %v4888_v14 = vpop.f32.mrf.mxu2 }
0x106a   : > { %v9079_v1 = vadd.f32 %v8851_v62, %v4888_v14 }
0x106b   : > { %v4585_v60 = vpop.f32.mrf.mxu3 }
0x106c   : > { %5008 = vst.msk [vmem:[%s8859_s6 + $0x60] sm:$0xff] %vm1497_vm4, %v9079_v1  ;;  %v5759_v12 = vsel %vm1497_vm4, %v9079_v1, 0.0  ;;  %v4586_v2 = vadd.f32 %v4585_v60, %v4457_v9 }
0x106d   : > { %v5760_v54 = vadd.f32 %v5759_v12, %v5758_v52  ;;  %v4474_v9 = vpop.f32.mrf.mxu0  ;;  %v4467_v12 = vadd.f32 %v9081_v27, %v4014_v15 }
0x106e   : > { %4662 = vst.msk [vmem:[%s8624_s8 + $0xe8] sm:$0xff] %vm1123_vm2, %v4586_v2  ;;  %v5256_v4 = vsel %vm1123_vm2, %v4586_v2, 0.0  ;;  %v5362_v50 = vsel %vm1123_vm2, %v4586_v2, -inf  ;;  %7023 = vmatmul.msk.f32.gmra.mxu2 %vm1123_vm2, %v4586_v2 }
0x106f   : > { %v5257_v63 = vadd.f32 %v5256_v4, %v5255_v36  ;;  %v5369_v48 = vmax.f32 %v5362_v50, %v5367_v33 }
0x1070   : > { %6993 = vmatmul.msk.bf16.gmra.mxu3 %vm4302_vm5, %v6969_v17 }
0x1071   : > { %v4891_v45 = vpop.f32.mrf.mxu2 }
0x1072   : > { %v4892_v58 = vadd.f32 %v8851_v62, %v4891_v45 }
0x1073   : > { %v4588_v61 = vpop.f32.mrf.mxu3 }
0x1074   : > { %5009 = vst.msk [vmem:[%s8859_s6 + $0x68] sm:$0xff] %vm1497_vm4, %v4892_v58  ;;  %v5761_v40 = vsel %vm1497_vm4, %v4892_v58, 0.0  ;;  %v4589_v34 = vadd.f32 %v4588_v61, %v4460_v44 }
0x1075   : > { %v5762_v25 = vadd.f32 %v5761_v40, %v5760_v54  ;;  %v4476_v45 = vpop.f32.mrf.mxu0  ;;  %v4024_v40 = vpop.permute.xlu2 %4023 }
0x1076   : > { %4663 = vst.msk [vmem:[%s8624_s8 + $0xf0] sm:$0xff] %vm1123_vm2, %v4589_v34  ;;  %v5258_v21 = vsel %vm1123_vm2, %v4589_v34, 0.0  ;;  %v5364_v39 = vsel %vm1123_vm2, %v4589_v34, -inf  ;;  %7024 = vmatmul.msk.f32.gmra.mxu2 %vm1123_vm2, %v4589_v34 }
0x1077   : > { %v5259_v30 = vadd.f32 %v5258_v21, %v5257_v63  ;;  %v5371_v5 = vmax.f32 %v5364_v39, %v5369_v48  ;;  %v4019_v63 = vpop.permute.xlu1 %4018 }
0x1078   : > { %v4470_v19 = vadd.f32 %v4469_v18, %v4019_v63  ;;  %v4472_v18 = vadd.f32 %v4471_v8, %v4024_v40 }
0x1079   : > { %v4894_v24 = vpop.f32.mrf.mxu2 }
0x107a   : > { %v4895_v53 = vadd.f32 %v8851_v62, %v4894_v24 }
0x107b   : > { %v4590_v51 = vpop.f32.mrf.mxu3 }
0x107c   : > { %5010 = vst.msk [vmem:[%s8859_s6 + $0x70] sm:$0xff] %vm1497_vm4, %v4895_v53  ;;  %v5763_v10 = vsel %vm1497_vm4, %v4895_v53, 0.0  ;;  %v4591_v32 = vadd.f32 %v4590_v51, %v4462_v6 }
0x107d   : > { %v5764_v47 = vadd.f32 %v5763_v10, %v5762_v25 }
0x107e   : > { %4664 = vst.msk [vmem:[%s8624_s8 + $0xf8] sm:$0xff] %vm1123_vm2, %v4591_v32  ;;  %v5260_v55 = vsel %vm1123_vm2, %v4591_v32, 0.0  ;;  %v5366_v7 = vsel %vm1123_vm2, %v4591_v32, -inf  ;;  %7025 = vmatmul.msk.f32.gmra.mxu2 %vm1123_vm2, %v4591_v32 }
0x107f   : > { %v5261_v3 = vadd.f32 %v5260_v55, %v5259_v30  ;;  %v5373_v35 = vmax.f32 %v5366_v7, %v5371_v5  ;;  %v4029_v5 = vpop.permute.xlu0 %4028 }
0x1081   : > { %v4897_v26 = vpop.f32.mrf.mxu2 }
0x1082   : > { %v4898_v52 = vadd.f32 %v8851_v62, %v4897_v26 }
0x1083   : > { %v4593_v29 = vpop.f32.mrf.mxu3 }
0x1084   : > { %5011 = vst.msk [vmem:[%s8859_s6 + $0x78] sm:$0xff] %vm1497_vm4, %v4898_v52  ;;  %v5765_v49 = vsel %vm1497_vm4, %v4898_v52, 0.0  ;;  %v4594_v36 = vadd.f32 %v4593_v29, %v4465_v20  ;;  %5053 = vmatpush.msra.mxu1 %v4898_v52 }
0x1085   : > { %v9119_v33 = vadd.f32 %v5765_v49, %v5764_v47  ;;  %v4034_v47 = vpop.permute.xlu2 %4033 }
0x1086   : > { %4665 = vst.msk [vmem:[%s8624_s8 + $0x100] sm:$0xff] %vm1123_vm2, %v4594_v36  ;;  %v5262_v43 = vsel %vm1123_vm2, %v4594_v36, 0.0  ;;  %v5368_v14 = vsel %vm1123_vm2, %v4594_v36, -inf  ;;  %7026 = vmatmul.msk.f32.gmra.mxu2 %vm1123_vm2, %v4594_v36  ;;  %5054 = vmatpush.msra.mxu1 %v4895_v53  ;;  %v4477_v7 = vadd.f32 %v4476_v45, %v4034_v47 }
0x1087   : > { %v5263_v57 = vadd.f32 %v5262_v43, %v5261_v3  ;;  %v5375_v56 = vmax.f32 %v5368_v14, %v5373_v35  ;;  %v9197_v20 = vpop.permute.xlu0 %4068 }
0x1088   : > { %5055 = vmatpush.msra.mxu1 %v4892_v58 }
0x1089   : > { %v4900_v60 = vpop.f32.mrf.mxu2 }
0x108a   : > { %v9128_v2 = vadd.f32 %v8851_v62, %v4900_v60  ;;  %5056 = vmatpush.msra.mxu1 %v9079_v1 }
0x108b   : > { %v4595_v17 = vpop.f32.mrf.mxu3 }
0x108c   : > { %5012 = vst.msk [vmem:[%s8859_s6 + $0x80] sm:$0xff] %vm1497_vm4, %v9128_v2  ;;  %v4596_v54 = vadd.f32 %v4595_v17, %v4467_v12  ;;  %5057 = vmatpush.msra.mxu1 %v9063_v13 }
0x108d   : > { %v9210_v12 = vpop.permute.xlu2 %4073 }
0x108e   : > { %4666 = vst.msk [vmem:[%s8624_s8 + $0x108] sm:$0xff] %vm1123_vm2, %v4596_v54  ;;  %v5264_v4 = vsel %vm1123_vm2, %v4596_v54, 0.0  ;;  %v5370_v50 = vsel %vm1123_vm2, %v4596_v54, -inf  ;;  %7027 = vmatmul.msk.f32.gmra.mxu2 %vm1123_vm2, %v4596_v54  ;;  %5058 = vmatpush.msra.mxu1 %v9046_v59 }
0x108f   : > { %v5265_v1 = vadd.f32 %v5264_v4, %v5263_v57  ;;  %v5377_v27 = vmax.f32 %v5370_v50, %v5375_v56  ;;  %v4044_v4 = vpop.permute.xlu0 %4043 }
0x1090   : > { %5059 = vmatpush.msra.mxu1 %v9024_v0 }
0x1091   : > { %v4903_v48 = vpop.f32.mrf.mxu2 }
0x1092   : > { %v9143_v13 = vadd.f32 %v8851_v62, %v4903_v48  ;;  %5060 = vmatpush.msra.mxu1 %v9001_v23 }
0x1093   : > { %v4598_v44 = vpop.f32.mrf.mxu3 }
0x1094   : > { %5013 = vst.msk [vmem:[%s8859_s6 + $0x88] sm:$0xff] %vm1497_vm4, %v9143_v13  ;;  %v4599_v58 = vadd.f32 %v4598_v44, %v4470_v19  ;;  %5061 = vmatpush.msra.mxu1 %v8979_v42 }
0x1096   : > { %4667 = vst.msk [vmem:[%s8624_s8 + $0x110] sm:$0xff] %vm1123_vm2, %v4599_v58  ;;  %v5266_v0 = vsel %vm1123_vm2, %v4599_v58, 0.0  ;;  %v5372_v59 = vsel %vm1123_vm2, %v4599_v58, -inf  ;;  %7028 = vmatmul.msk.f32.gmra.mxu2 %vm1123_vm2, %v4599_v58  ;;  %5062 = vmatpush.msra.mxu1 %v8966_v16  ;;  %v4479_v16 = vpop.f32.mrf.mxu0 }
0x1097   : > { %v5267_v23 = vadd.f32 %v5266_v0, %v5265_v1  ;;  %v5379_v61 = vmax.f32 %v5372_v59, %v5377_v27 }
0x1098   : > { %5063 = vmatpush.msra.mxu1 %v8948_v37 }
0x1099   : > { %v4906_v34 = vpop.f32.mrf.mxu2 }
0x109a   : > { %v9158_v42 = vadd.f32 %v8851_v62, %v4906_v34  ;;  %5064 = vmatpush.msra.mxu1 %v8933_v11 }
0x109b   : > { %v4600_v25 = vpop.f32.mrf.mxu3 }
0x109c   : > { %5014 = vst.msk [vmem:[%s8859_s6 + $0x90] sm:$0xff] %vm1497_vm4, %v9158_v42  ;;  %v4601_v21 = vadd.f32 %v4600_v25, %v4472_v18  ;;  %5065 = vmatpush.msra.mxu1 %v8915_v41  ;;  %v4475_v41 = vadd.f32 %v4474_v9, %v4029_v5  ;;  %v5769_v18 = vsel %vm1497_vm4, %v9143_v13, 0.0 }
0x109e   : > { %4668 = vst.msk [vmem:[%s8624_s8 + $0x118] sm:$0xff] %vm1123_vm2, %v4601_v21  ;;  %v5268_v37 = vsel %vm1123_vm2, %v4601_v21, 0.0  ;;  %v5374_v39 = vsel %vm1123_vm2, %v4601_v21, -inf  ;;  %7029 = vmatmul.msk.f32.gmra.mxu2 %vm1123_vm2, %v4601_v21  ;;  %5066 = vmatpush.msra.mxu1 %v8900_v46  ;;  %v9179_v46 = vpop.permute.xlu1 %4063  ;;  %v4481_v10 = vpop.f32.mrf.mxu0 }
0x109f   : > { %v5269_v11 = vadd.f32 %v5268_v37, %v5267_v23  ;;  %v5381_v30 = vmax.f32 %v5374_v39, %v5379_v61  ;;  %v4482_v1 = vadd.f32 %v4481_v10, %v4044_v4  ;;  %v5767_v23 = vsel %vm1497_vm4, %v9128_v2, 0.0  ;;  %v4049_v61 = vpop.permute.xlu2 %4048 }
0x10a0   : > { %5067 = vmatpush.msra.mxu1 %v8884_v22  ;;  %v5768_v21 = vadd.f32 %v5767_v23, %v9119_v33  ;;  %v5771_v37 = vsel %vm1497_vm4, %v9158_v42, 0.0 }
0x10a1   : > { %v4909_v38 = vpop.f32.mrf.mxu2 }
0x10a2   : > { %v9173_v24 = vadd.f32 %v8851_v62, %v4909_v38  ;;  %5068 = vmatpush.msra.mxu1 %v8866_v31 }
0x10a3   : > { %v4603_v6 = vpop.f32.mrf.mxu3 }
0x10a4   : > { %5015 = vst.msk [vmem:[%s8859_s6 + $0x98] sm:$0xff] %vm1497_vm4, %v9173_v24  ;;  %v4604_v53 = vadd.f32 %v4603_v6, %v4475_v41  ;;  %v5773_v5 = vsel %vm1497_vm4, %v9173_v24, 0.0 }
0x10a6   : > { %4669 = vst.msk [vmem:[%s8624_s8 + $0x120] sm:$0xff] %vm1123_vm2, %v4604_v53  ;;  %v5270_v22 = vsel %vm1123_vm2, %v4604_v53, 0.0  ;;  %v5376_v51 = vsel %vm1123_vm2, %v4604_v53, -inf  ;;  %7030 = vmatmul.msk.f32.gmra.mxu2 %vm1123_vm2, %v4604_v53  ;;  %v4039_v49 = vpop.permute.xlu1 %4038  ;;  %v4484_v36 = vpop.f32.mrf.mxu0 }
0x10a7   : > { %v5271_v32 = vadd.f32 %v5270_v22, %v5269_v11  ;;  %v5383_v31 = vmax.f32 %v5376_v51, %v5381_v30  ;;  %v4480_v14 = vadd.f32 %v4479_v16, %v4039_v49  ;;  %v4485_v34 = vadd.f32 %v4484_v36, %v4049_v61 }
0x10a8   : > { %v5770_v11 = vadd.f32 %v5769_v18, %v5768_v21 }
0x10a9   : > { %v4912_v55 = vpop.f32.mrf.mxu2 }
0x10aa   : > { %v9187_v8 = vadd.f32 %v8851_v62, %v4912_v55  ;;  %v5772_v41 = vadd.f32 %v5771_v37, %v5770_v11 }
0x10ab   : > { %v4605_v3 = vpop.f32.mrf.mxu3 }
0x10ac   : > { %5016 = vst.msk [vmem:[%s8859_s6 + $0xa0] sm:$0xff] %vm1497_vm4, %v9187_v8  ;;  %v4606_v35 = vadd.f32 %v4605_v3, %v4477_v7  ;;  %v5775_v22 = vsel %vm1497_vm4, %v9187_v8, 0.0  ;;  %v5774_v10 = vadd.f32 %v5773_v5, %v5772_v41 }
0x10ae   : > { %4670 = vst.msk [vmem:[%s8624_s8 + $0x128] sm:$0xff] %vm1123_vm2, %v4606_v35  ;;  %v5272_v28 = vsel %vm1123_vm2, %v4606_v35, 0.0  ;;  %v5378_v26 = vsel %vm1123_vm2, %v4606_v35, -inf  ;;  %7031 = vmatmul.msk.f32.gmra.mxu2 %vm1123_vm2, %v4606_v35  ;;  %v4486_v63 = vpop.f32.mrf.mxu0  ;;  %v9223_v58 = vpop.permute.xlu1 %4078  ;;  %v5776_v7 = vadd.f32 %v5775_v22, %v5774_v10 }
0x10af   : > { %v5273_v52 = vadd.f32 %v5272_v28, %v5271_v32  ;;  %v5385_v29 = vmax.f32 %v5378_v26, %v5383_v31 }
0x10b1   : > { %v4915_v43 = vpop.f32.mrf.mxu2 }
0x10b2   : > { %v9200_v57 = vadd.f32 %v8851_v62, %v4915_v43 }
0x10b3   : > { %v4608_v56 = vpop.f32.mrf.mxu3 }
0x10b4   : > { %5017 = vst.msk [vmem:[%s8859_s6 + $0xa8] sm:$0xff] %vm1497_vm4, %v9200_v57  ;;  %v4609_v15 = vadd.f32 %v4608_v56, %v4480_v14  ;;  %v5777_v47 = vsel %vm1497_vm4, %v9200_v57, 0.0 }
0x10b5   : > { %v5778_v26 = vadd.f32 %v5777_v47, %v5776_v7  ;;  %v9309_v7 = vld [vmem:[%s7560_s24] ss:$0 sm:$0xff] }
0x10b6   : > { %4671 = vst.msk [vmem:[%s8624_s8 + $0x130] sm:$0xff] %vm1123_vm2, %v4609_v15  ;;  %v5274_v9 = vsel %vm1123_vm2, %v4609_v15, 0.0  ;;  %v5380_v60 = vsel %vm1123_vm2, %v4609_v15, -inf  ;;  %7032 = vmatmul.msk.f32.gmra.mxu2 %vm1123_vm2, %v4609_v15  ;;  %v4489_v30 = vpop.f32.mrf.mxu0  ;;  %v4054_v51 = vpop.permute.xlu1 %4053 }
0x10b7   : > { %v5275_v17 = vadd.f32 %v5274_v9, %v5273_v52  ;;  %v5387_v54 = vmax.f32 %v5380_v60, %v5385_v29  ;;  %v4487_v31 = vadd.f32 %v4486_v63, %v4054_v51  ;;  %v4059_v9 = vpop.permute.xlu2 %4058 }
0x10b9   : > { %v4918_v50 = vpop.f32.mrf.mxu2 }
0x10ba   : > { %v9213_v27 = vadd.f32 %v8851_v62, %v4918_v50 }
0x10bb   : > { %v4610_v48 = vpop.f32.mrf.mxu3 }
0x10bc   : > { %5018 = vst.msk [vmem:[%s8859_s6 + $0xb0] sm:$0xff] %vm1497_vm4, %v9213_v27  ;;  %v4611_v19 = vadd.f32 %v4610_v48, %v4482_v1  ;;  %v5779_v35 = vsel %vm1497_vm4, %v9213_v27, 0.0 }
0x10bd   : > { %v5780_v43 = vadd.f32 %v5779_v35, %v5778_v26 }
0x10be   : > { %4672 = vst.msk [vmem:[%s8624_s8 + $0x138] sm:$0xff] %vm1123_vm2, %v4611_v19  ;;  %v5276_v45 = vsel %vm1123_vm2, %v4611_v19, 0.0  ;;  %v5382_v44 = vsel %vm1123_vm2, %v4611_v19, -inf  ;;  %7033 = vmatmul.msk.f32.gmra.mxu2 %vm1123_vm2, %v4611_v19  ;;  %v4491_v36 = vpop.f32.mrf.mxu0 }
0x10bf   : > { %v5277_v0 = vadd.f32 %v5276_v45, %v5275_v17  ;;  %v5389_v59 = vmax.f32 %v5382_v44, %v5387_v54  ;;  %v4490_v54 = vadd.f32 %v4489_v30, %v4059_v9 }
0x10c1   : > { %v4921_v40 = vpop.f32.mrf.mxu2 }
0x10c2   : > { %v9230_v25 = vadd.f32 %v8851_v62, %v4921_v40  ;;  %v4492_v40 = vadd.f32 %v4491_v36, %v9179_v46 }
0x10c3   : > { %v4613_v16 = vpop.f32.mrf.mxu3 }
0x10c4   : > { %5019 = vst.msk [vmem:[%s8859_s6 + $0xb8] sm:$0xff] %vm1497_vm4, %v9230_v25  ;;  %v4614_v39 = vadd.f32 %v4613_v16, %v4485_v34  ;;  %v5781_v52 = vsel %vm1497_vm4, %v9230_v25, 0.0 }
0x10c5   : > { %v5782_v60 = vadd.f32 %v5781_v52, %v5780_v43 }
0x10c6   : > { %4673 = vst.msk [vmem:[%s8624_s8 + $0x140] sm:$0xff] %vm1123_vm2, %v4614_v39  ;;  %v5278_v38 = vsel %vm1123_vm2, %v4614_v39, 0.0  ;;  %v5384_v33 = vsel %vm1123_vm2, %v4614_v39, -inf  ;;  %7034 = vmatmul.msk.f32.gmra.mxu2 %vm1123_vm2, %v4614_v39  ;;  %v4494_v23 = vpop.f32.mrf.mxu0 }
0x10c7   : > { %v5279_v6 = vadd.f32 %v5278_v38, %v5277_v0  ;;  %v5391_v53 = vmax.f32 %v5384_v33, %v5389_v59  ;;  %v4495_v38 = vadd.f32 %v4494_v23, %v9197_v20 }
0x10c9   : > { %v4924_v32 = vpop.f32.mrf.mxu2 }
0x10ca   : > { %v9250_v55 = vadd.f32 %v8851_v62, %v4924_v32 }
0x10cb   : > { %v4615_v3 = vpop.f32.mrf.mxu3 }
0x10cc   : > { %5020 = vst.msk [vmem:[%s8859_s6 + $0xc0] sm:$0xff] %vm1497_vm4, %v9250_v55  ;;  %v4616_v28 = vadd.f32 %v4615_v3, %v4487_v31  ;;  %v5783_v15 = vsel %vm1497_vm4, %v9250_v55, 0.0 }
0x10cd   : > { %v5784_v50 = vadd.f32 %v5783_v15, %v5782_v60 }
0x10ce   : > { %4674 = vst.msk [vmem:[%s8624_s8 + $0x148] sm:$0xff] %vm1123_vm2, %v4616_v28  ;;  %v5280_v29 = vsel %vm1123_vm2, %v4616_v28, 0.0  ;;  %v5386_v49 = vsel %vm1123_vm2, %v4616_v28, -inf  ;;  %7035 = vmatmul.msk.f32.gmra.mxu2 %vm1123_vm2, %v4616_v28  ;;  %v4496_v41 = vpop.f32.mrf.mxu0 }
0x10cf   : > { %v5281_v14 = vadd.f32 %v5280_v29, %v5279_v6  ;;  %v5393_v56 = vmax.f32 %v5386_v49, %v5391_v53  ;;  %v4497_v47 = vadd.f32 %v4496_v41, %v9210_v12 }
0x10d1   : > { %v4927_v17 = vpop.f32.mrf.mxu2 }
0x10d2   : > { %v9267_v4 = vadd.f32 %v8851_v62, %v4927_v17 }
0x10d3   : > { %v4618_v1 = vpop.f32.mrf.mxu3 }
0x10d4   : > { %5021 = vst.msk [vmem:[%s8859_s6 + $0xc8] sm:$0xff] %vm1497_vm4, %v9267_v4  ;;  %v5785_v63 = vsel %vm1497_vm4, %v9267_v4, 0.0  ;;  %v4619_v48 = vadd.f32 %v4618_v1, %v4490_v54 }
0x10d5   : > { %v5786_v19 = vadd.f32 %v5785_v63, %v5784_v50 }
0x10d6   : > { %4675 = vst.msk [vmem:[%s8624_s8 + $0x150] sm:$0xff] %vm1123_vm2, %v4619_v48  ;;  %v5282_v45 = vsel %vm1123_vm2, %v4619_v48, 0.0  ;;  %v5388_v44 = vsel %vm1123_vm2, %v4619_v48, -inf  ;;  %7036 = vmatmul.msk.f32.gmra.mxu2 %vm1123_vm2, %v4619_v48  ;;  %v4499_v52 = vpop.f32.mrf.mxu0 }
0x10d7   : > { %v5283_v0 = vadd.f32 %v5282_v45, %v5281_v14  ;;  %v5395_v59 = vmax.f32 %v5388_v44, %v5393_v56  ;;  %v4500_v56 = vadd.f32 %v4499_v52, %v9223_v58  ;;  %v5051_v52 = vld [vmem:[%s9654_s1 + $0x38] sm:$0x7f] }
0x10d9   : > { %v4930_v61 = vpop.f32.mrf.mxu2 }
0x10da   : > { %v9281_v34 = vadd.f32 %v8851_v62, %v4930_v61 }
0x10db   : > { %v4620_v18 = vpop.f32.mrf.mxu3 }
0x10dc   : > { %5022 = vst.msk [vmem:[%s8859_s6 + $0xd0] sm:$0xff] %vm1497_vm4, %v9281_v34  ;;  %v5787_v21 = vsel %vm1497_vm4, %v9281_v34, 0.0  ;;  %v4621_v16 = vadd.f32 %v4620_v18, %v4492_v40 }
0x10dd   : > { %v5788_v37 = vadd.f32 %v5787_v21, %v5786_v19  ;;  %v4084_v19 = vpop.permute.xlu0 %4083 }
0x10de   : > { %4676 = vst.msk [vmem:[%s8624_s8 + $0x158] sm:$0xff] %vm1123_vm2, %v4621_v16  ;;  %v5284_v39 = vsel %vm1123_vm2, %v4621_v16, 0.0  ;;  %v5390_v46 = vsel %vm1123_vm2, %v4621_v16, -inf  ;;  %7037 = vmatmul.msk.f32.vlgmr.msrb.gmra.mxu3 %vm1123_vm2, %v4621_v16  ;;  %v4501_v58 = vpop.f32.mrf.mxu0 }
0x10df   : > { %v5285_v11 = vadd.f32 %v5284_v39, %v5283_v0  ;;  %v5400_v30 = vmax.f32 %v5390_v46, %v5395_v59  ;;  %v4502_v44 = vadd.f32 %v4501_v58, %v4084_v19 }
0x10e1   : > { %v4933_v5 = vpop.f32.mrf.mxu2 }
0x10e2   : > { %v9295_v33 = vadd.f32 %v8851_v62, %v4933_v5 }
0x10e3   : > { %v4623_v6 = vpop.f32.mrf.mxu3 }
0x10e4   : > { %5023 = vst.msk [vmem:[%s8859_s6 + $0xd8] sm:$0xff] %vm1497_vm4, %v9295_v33  ;;  %v5789_v53 = vsel %vm1497_vm4, %v9295_v33, 0.0  ;;  %v4624_v22 = vadd.f32 %v4623_v6, %v4495_v38 }
0x10e5   : > { %v5790_v51 = vadd.f32 %v5789_v53, %v5788_v37 }
0x10e6   : > { %4677 = vst.msk [vmem:[%s8624_s8 + $0x160] sm:$0xff] %vm1123_vm2, %v4624_v22  ;;  %v5286_v20 = vsel %vm1123_vm2, %v4624_v22, 0.0  ;;  %v5392_v10 = vsel %vm1123_vm2, %v4624_v22, -inf  ;;  %7038 = vmatmul.msk.f32.gmra.mxu3 %vm1123_vm2, %v4624_v22  ;;  %v5047_v22 = vld [vmem:[%s9654_s1 + $0x18] sm:$0xff] }
0x10e7   : > { %v5287_v62 = vadd.f32 %v5286_v20, %v5285_v11  ;;  %v5397_v32 = vmax.f32 %v5392_v10, %v5400_v30  ;;  %v5050_v10 = vld [vmem:[%s9654_s1 + $0x30] sm:$0x7f] }
0x10e9   : > { %v4936_v31 = vpop.f32.mrf.mxu2 }
0x10ea   : > { %v4937_v3 = vadd.f32 %v9309_v7, %v4936_v31  ;;  %v5045_v31 = vld [vmem:[%s9654_s1 + $0x8] sm:$0xff] }
0x10eb   : > { %v4625_v35 = vpop.f32.mrf.mxu3 }
0x10ec   : > { %5024 = vst.msk [vmem:[%s8859_s6 + $0xe0] sm:$0xff] %vm1497_vm4, %v4937_v3  ;;  %v5791_v28 = vsel %vm1497_vm4, %v4937_v3, 0.0  ;;  %v4626_v26 = vadd.f32 %v4625_v35, %v4497_v47  ;;  %v5048_v35 = vld [vmem:[%s9654_s1 + $0x20] sm:$0xff] }
0x10ed   : > { %v5792_v29 = vadd.f32 %v5791_v28, %v5790_v51 }
0x10ee   : > { %4678 = vst.msk [vmem:[%s8624_s8 + $0x168] sm:$0xff] %vm1123_vm2, %v4626_v26  ;;  %v5288_v49 = vsel %vm1123_vm2, %v4626_v26, 0.0  ;;  %v5394_v12 = vsel %vm1123_vm2, %v4626_v26, -inf  ;;  %7039 = vmatmul.msk.f32.gmra.mxu3 %vm1123_vm2, %v4626_v26 }
0x10ef   : > { %v5289_v36 = vadd.f32 %v5288_v49, %v5287_v62  ;;  %v5399_v43 = vmax.f32 %v5394_v12, %v5397_v32 }
0x10f1   : > { %v4939_v14 = vpop.f32.mrf.mxu2 }
0x10f2   : > { %v4940_v15 = vadd.f32 %v9309_v7, %v4939_v14 }
0x10f3   : > { %v4628_v9 = vpop.f32.mrf.mxu3 }
0x10f4   : > { %5025 = vst.msk [vmem:[%s8859_s6 + $0xe8] sm:$0xff] %vm1497_vm4, %v4940_v15  ;;  %v5793_v60 = vsel %vm1497_vm4, %v4940_v15, 0.0  ;;  %v4629_v17 = vadd.f32 %v4628_v9, %v4500_v56 }
0x10f5   : > { %v5794_v54 = vadd.f32 %v5793_v60, %v5792_v29 }
0x10f6   : > { %4679 = vst.msk [vmem:[%s8624_s8 + $0x170] sm:$0xff] %vm1123_vm2, %v4629_v17  ;;  %v5290_v50 = vsel %vm1123_vm2, %v4629_v17, 0.0  ;;  %v5396_v1 = vsel %vm1123_vm2, %v4629_v17, -inf  ;;  %7040 = vmatmul.msk.f32.gmra.mxu3 %vm1123_vm2, %v4629_v17 }
0x10f7   : > { %v5291_v63 = vadd.f32 %v5290_v50, %v5289_v36  ;;  %v5401_v48 = vmax.f32 %v5396_v1, %v5399_v43 }
0x10f9   : > { %v4942_v45 = vpop.f32.mrf.mxu2 }
0x10fa   : > { %v4943_v0 = vadd.f32 %v9309_v7, %v4942_v45 }
0x10fb   : > { %v4630_v59 = vpop.f32.mrf.mxu3 }
0x10fc   : > { %5026 = vst.msk [vmem:[%s8859_s6 + $0xf0] sm:$0xff] %vm1497_vm4, %v4943_v0  ;;  %v5795_v23 = vsel %vm1497_vm4, %v4943_v0, 0.0  ;;  %v4631_v61 = vadd.f32 %v4630_v59, %v4502_v44 }
0x10fd   : > { %v5796_v40 = vadd.f32 %v5795_v23, %v5794_v54 }
0x10fe   : > { %4680 = vst.msk [vmem:[%s8624_s8 + $0x178] sm:$0xff] %vm1123_vm2, %v4631_v61  ;;  %v5292_v18 = vsel %vm1123_vm2, %v4631_v61, 0.0  ;;  %v5398_v21 = vsel %vm1123_vm2, %v4631_v61, -inf  ;;  %7041 = vmatmul.msk.f32.gmra.mxu3 %vm1123_vm2, %v4631_v61  ;;  %s1046_s8 = scalar_lea.vmem %s7660_s30, %s7712_s18 }
0x10ff   : > { %v9339_v16 = vadd.f32 %v5292_v18, %v5291_v63  ;;  %v9341_v37 = vmax.f32 %v5398_v21, %v5401_v48  ;;  %v7496_v21 = vmov 384.0  }
0x1100   : > { %7391 = vrcp.f32 %v7496_v21 }
0x1101   : > { %v4945_v39 = vpop.f32.mrf.mxu2 }
0x1102   : > { %v4946_v46 = vadd.f32 %v9309_v7, %v4945_v39 }
0x1104   : > { %5027 = vst.msk [vmem:[%s8859_s6 + $0xf8] sm:$0xff] %vm1497_vm4, %v4946_v46  ;;  %v5797_v11 = vsel %vm1497_vm4, %v4946_v46, 0.0  ;;  %5079 = vmatpush.msrb.mxu1 %v4946_v46 }
0x1105   : > { %v9347_v30 = vadd.f32 %v5797_v11, %v5796_v40 }
0x1106   : > { %5080 = vmatpush.msrb.mxu1 %v4943_v0 }
0x1108   : > { %5081 = vmatpush.msrb.mxu1 %v4940_v15 }
0x1109   : > { %v4948_v5 = vpop.f32.mrf.mxu2 }
0x110a   : > { %v9350_v38 = vadd.f32 %v9309_v7, %v4948_v5  ;;  %5082 = vmatpush.msrb.mxu1 %v4937_v3 }
0x110c   : > { %5028 = vst.msk [vmem:[%s8859_s6 + $0x100] sm:$0xff] %vm1497_vm4, %v9350_v38  ;;  %5083 = vmatpush.msrb.mxu1 %v9295_v33  ;;  %v5799_v29 = vsel %vm1497_vm4, %v9350_v38, 0.0 }
0x110d   : > { %v5800_v12 = vadd.f32 %v5799_v29, %v9347_v30 }
0x110e   : > { %5084 = vmatpush.msrb.mxu1 %v9281_v34 }
0x1110   : > { %5085 = vmatpush.msrb.mxu1 %v9267_v4 }
0x1111   : > { %v4951_v41 = vpop.f32.mrf.mxu2 }
0x1112   : > { %v9359_v6 = vadd.f32 %v9309_v7, %v4951_v41  ;;  %5086 = vmatpush.msrb.mxu1 %v9250_v55  ;;  %v5044_v55 = vld [vmem:[%s9654_s1] sm:$0xff] }
0x1113   : > { %5069 = vmatmul.f32.vlgmr.msra.gmra.mxu1 %v5044_v55 }
0x1114   : > { %5029 = vst.msk [vmem:[%s8859_s6 + $0x108] sm:$0xff] %vm1497_vm4, %v9359_v6  ;;  %5087 = vmatpush.msrb.mxu1 %v9230_v25  ;;  %v5801_v49 = vsel %vm1497_vm4, %v9359_v6, 0.0 }
0x1115   : > { %v5802_v43 = vadd.f32 %v5801_v49, %v5800_v12 }
0x1116   : > { %5088 = vmatpush.msrb.mxu1 %v9213_v27 }
0x1118   : > { %5089 = vmatpush.msrb.mxu1 %v9200_v57 }
0x1119   : > { %v4954_v34 = vpop.f32.mrf.mxu2 }
0x111a   : > { %v9369_v4 = vadd.f32 %v9309_v7, %v4954_v34  ;;  %5090 = vmatpush.msrb.mxu1 %v9187_v8  ;;  %v7392_v34 = vpop.eup %7391 }
0x111b   : > { %5072 = vmatmul.f32.gmra.mxu1 %v5047_v22  ;;  %vm5305_vm6 = vweird.f32 %v7392_v34 }
0x111c   : > { %5030 = vst.msk [vmem:[%s8859_s6 + $0x110] sm:$0xff] %vm1497_vm4, %v9369_v4  ;;  %5091 = vmatpush.msrb.mxu1 %v9173_v24  ;;  %v5803_v36 = vsel %vm1497_vm4, %v9369_v4, 0.0 }
0x111d   : > { %v5804_v9 = vadd.f32 %v5803_v36, %v5802_v43  ;;  %v5838_v36 = vld [vmem:[%s9655_s3] sm:$0x1]  ;;  %s9657_s3 = sld [smem:[#allocation17_spill]] }
0x111e   : > { %5092 = vmatpush.msrb.mxu1 %v9158_v42 }
0x1120   : > { %5093 = vmatpush.msrb.mxu1 %v9143_v13 }
0x1121   : > { %v4957_v27 = vpop.f32.mrf.mxu2 }
0x1122   : > { %v9379_v57 = vadd.f32 %v9309_v7, %v4957_v27  ;;  %5094 = vmatpush.msrb.mxu1 %v9128_v2 }
0x1123   : > { %5075 = vmatmul.f32.gmra.mxu1 %v5050_v10 }
0x1124   : > { %5031 = vst.msk [vmem:[%s8859_s6 + $0x118] sm:$0xff] %vm1497_vm4, %v9379_v57  ;;  %v5805_v56 = vsel %vm1497_vm4, %v9379_v57, 0.0 }
0x1125   : > { %v5806_v17 = vadd.f32 %v5805_v56, %v5804_v9  ;;  %v5052_v9 = vld [vmem:[%s9654_s1 + $0x40] sm:$0x7f] }
0x1129   : > { %v4960_v8 = vpop.f32.mrf.mxu2 }
0x112a   : > { %v9386_v25 = vadd.f32 %v9309_v7, %v4960_v8 }
0x112b   : > { %5095 = vmatmul.f32.vlgmr.msrb.gmra.mxu1 %v5045_v31 }
0x112c   : > { %5032 = vst.msk [vmem:[%s8859_s6 + $0x120] sm:$0xff] %vm1497_vm4, %v9386_v25  ;;  %v5807_v60 = vsel %vm1497_vm4, %v9386_v25, 0.0 }
0x112d   : > { %v5808_v50 = vadd.f32 %v5807_v60, %v5806_v17 }
0x1131   : > { %v4963_v13 = vpop.f32.mrf.mxu2 }
0x1132   : > { %v9392_v42 = vadd.f32 %v9309_v7, %v4963_v13 }
0x1133   : > { %5098 = vmatmul.f32.gmra.mxu1 %v5048_v35 }
0x1134   : > { %5033 = vst.msk [vmem:[%s8859_s6 + $0x128] sm:$0xff] %vm1497_vm4, %v9392_v42  ;;  %v5809_v54 = vsel %vm1497_vm4, %v9392_v42, 0.0 }
0x1135   : > { %v5810_v58 = vadd.f32 %v5809_v54, %v5808_v50  ;;  %v5442_v54 = vld [vmem:[%s9657_s3 + $0x18] sm:$0xff]  ;;  %v5441_v50 = vld [vmem:[%s9657_s3 + $0x10] sm:$0xff] }
0x1139   : > { %v4966_v2 = vpop.f32.mrf.mxu2 }
0x113a   : > { %v9398_v24 = vadd.f32 %v9309_v7, %v4966_v2 }
0x113b   : > { %5101 = vmatmul.f32.gmra.mxu1 %v5051_v52 }
0x113c   : > { %5034 = vst.msk [vmem:[%s8859_s6 + $0x130] sm:$0xff] %vm1497_vm4, %v9398_v24  ;;  %v5811_v1 = vsel %vm1497_vm4, %v9398_v24, 0.0 }
0x113d   : > { %v5812_v45 = vadd.f32 %v5811_v1, %v5810_v58 }
0x1141   : > { %v4969_v33 = vpop.f32.mrf.mxu2 }
0x1142   : > { %v9405_v53 = vadd.f32 %v9309_v7, %v4969_v33  ;;  %v5301_v33 = vmul.f32 384.0, %v7392_v34 }
0x1144   : > { %5035 = vst.msk [vmem:[%s8859_s6 + $0x138] sm:$0xff] %vm1497_vm4, %v9405_v53  ;;  %v5813_v48 = vsel %vm1497_vm4, %v9405_v53, 0.0 }
0x1145   : > { %v5814_v0 = vadd.f32 %v5813_v48, %v5812_v45  ;;  %v5439_v48 = vld [vmem:[%s9657_s3] sm:$0xff] }
0x1149   : > { %v4972_v51 = vpop.f32.mrf.mxu2 }
0x114a   : > { %v9412_v20 = vadd.f32 %v9309_v7, %v4972_v51 }
0x114c   : > { %5036 = vst.msk [vmem:[%s8859_s6 + $0x140] sm:$0xff] %vm1497_vm4, %v9412_v20  ;;  %v5815_v44 = vsel %vm1497_vm4, %v9412_v20, 0.0 }
0x114d   : > { %v5816_v23 = vadd.f32 %v5815_v44, %v5814_v0 }
0x1151   : > { %v4975_v62 = vpop.f32.mrf.mxu2 }
0x1152   : > { %v9419_v32 = vadd.f32 %v9309_v7, %v4975_v62  ;;  %v5302_v62 = vsub.f32 1.0, %v5301_v33 }
0x1154   : > { %5037 = vst.msk [vmem:[%s8859_s6 + $0x148] sm:$0xff] %vm1497_vm4, %v9419_v32  ;;  %v5817_v59 = vsel %vm1497_vm4, %v9419_v32, 0.0  ;;  %v5303_v35 = vmul.f32 %v7392_v34, %v5302_v62 }
0x1155   : > { %v5818_v40 = vadd.f32 %v5817_v59, %v5816_v23 }
0x1156   : > { %v5304_v52 = vadd.f32 %v7392_v34, %v5303_v35 }
0x1158   : > { %v5306_v12 = vsel %vm5305_vm6, %v7392_v34, %v5304_v52 }
0x1159   : > { %v4978_v47 = vpop.f32.mrf.mxu2 }
0x115a   : > { %v9426_v3 = vadd.f32 %v9309_v7, %v4978_v47 }
0x115c   : > { %5038 = vst.msk [vmem:[%s8859_s6 + $0x150] sm:$0xff] %vm1497_vm4, %v9426_v3  ;;  %v5819_v61 = vsel %vm1497_vm4, %v9426_v3, 0.0 }
0x115d   : > { %v5820_v11 = vadd.f32 %v5819_v61, %v5818_v40 }
0x1161   : > { %v4981_v28 = vpop.f32.mrf.mxu3 }
0x1162   : > { %v4982_v26 = vadd.f32 %v9309_v7, %v4981_v28 }
0x1164   : > { %5039 = vst.msk [vmem:[%s8859_s6 + $0x158] sm:$0xff] %vm1497_vm4, %v4982_v26  ;;  %v5821_v39 = vsel %vm1497_vm4, %v4982_v26, 0.0 }
0x1165   : > { %v5822_v5 = vadd.f32 %v5821_v39, %v5820_v11 }
0x1169   : > { %v4984_v14 = vpop.f32.mrf.mxu3 }
0x116a   : > { %v4985_v15 = vadd.f32 %v9309_v7, %v4984_v14  ;;  %v5444_v14 = vld [vmem:[%s9657_s3 + $0x28] sm:$0xff] }
0x116c   : > { %5040 = vst.msk [vmem:[%s8859_s6 + $0x160] sm:$0xff] %vm1497_vm4, %v4985_v15  ;;  %v5823_v30 = vsel %vm1497_vm4, %v4985_v15, 0.0 }
0x116d   : > { %v5824_v27 = vadd.f32 %v5823_v30, %v5822_v5 }
0x1171   : > { %v4987_v63 = vpop.f32.mrf.mxu3 }
0x1172   : > { %v4988_v19 = vadd.f32 %v9309_v7, %v4987_v63  ;;  %v5440_v63 = vld [vmem:[%s9657_s3 + $0x8] sm:$0xff] }
0x1174   : > { %5041 = vst.msk [vmem:[%s8859_s6 + $0x168] sm:$0xff] %vm1497_vm4, %v4988_v19  ;;  %v5825_v41 = vsel %vm1497_vm4, %v4988_v19, 0.0 }
0x1175   : > { %v5826_v13 = vadd.f32 %v5825_v41, %v5824_v27 }
0x1179   : > { %v4990_v18 = vpop.f32.mrf.mxu3 }
0x117a   : > { %v4991_v46 = vadd.f32 %v9309_v7, %v4990_v18 }
0x117c   : > { %5042 = vst.msk [vmem:[%s8859_s6 + $0x170] sm:$0xff] %vm1497_vm4, %v4991_v46  ;;  %v5827_v8 = vsel %vm1497_vm4, %v4991_v46, 0.0 }
0x117d   : > { %v5828_v22 = vadd.f32 %v5827_v8, %v5826_v13 }
0x1181   : > { %v4993_v2 = vpop.f32.mrf.mxu3 }
0x1182   : > { %v4994_v55 = vadd.f32 %v9309_v7, %v4993_v2 }
0x1184   : > { %5043 = vst.msk [vmem:[%s8859_s6 + $0x178] sm:$0xff] %vm1497_vm4, %v4994_v55  ;;  %v5829_v51 = vsel %vm1497_vm4, %v4994_v55, 0.0  ;;  %5105 = vmatpush.msra.mxu1 %v4994_v55  ;;  %s9656_s6 = sld [smem:[#allocation16_spill]] }
0x1185   : > { %v5830_v10 = vadd.f32 %v5829_v51, %v5828_v22 }
0x1186   : > { %5106 = vmatpush.msra.mxu1 %v4991_v46 }
0x1187   : > { %v5831_v31 = vrot.slane %v5830_v10, 4 }
0x1188   : > { %5107 = vmatpush.msra.mxu1 %v4988_v19 }
0x1189   : > { %v5832_v47 = vadd.f32 %v5831_v31, %v5830_v10 }
0x118a   : > { %5108 = vmatpush.msra.mxu1 %v4985_v15  ;;  %v5443_v15 = vld [vmem:[%s9657_s3 + $0x20] sm:$0xff]  ;;  %s9660_s3 = sld [smem:[#allocation18_spill]] }
0x118b   : > { %v5833_v28 = vrot.slane %v5832_v47, 2 }
0x118c   : > { %5109 = vmatpush.msra.mxu1 %v4982_v26 }
0x118d   : > { %v5834_v7 = vadd.f32 %v5833_v28, %v5832_v47 }
0x118e   : > { %5110 = vmatpush.msra.mxu1 %v9426_v3  ;;  %v5410_v3 = vld [vmem:[%s9656_s6 + $0x8] sm:$0xff] }
0x118f   : > { %v5835_v29 = vrot.slane %v5834_v7, 1 }
0x1190   : > { %5111 = vmatpush.msra.mxu1 %v9419_v32  ;;  %v5414_v32 = vld [vmem:[%s9656_s6 + $0x28] sm:$0xff] }
0x1191   : > { %v5836_v49 = vadd.f32 %v5835_v29, %v5834_v7 }
0x1192   : > { %5112 = vmatpush.msra.mxu1 %v9412_v20  ;;  %v5046_v20 = vld [vmem:[%s9654_s1 + $0x10] sm:$0xff] }
0x1193   : > { %v5837_v43 = vmul.f32 %v5836_v49, %v5306_v12 }
0x1194   : > { %5113 = vmatpush.msra.mxu1 %v9405_v53  ;;  %v5294_v53 = vrot.slane %v9339_v16, 4 }
0x1195   : > { %v5839_v26 = vsub.f32 %v5837_v43, %v5838_v36 }
0x1196   : > { %5114 = vmatpush.msra.mxu1 %v9398_v24  ;;  %v5049_v24 = vld [vmem:[%s9654_s1 + $0x28] sm:$0xff]  ;;  %s9659_s1 = sld [smem:[#allocation15_spill]] }
0x1197   : > { %5841 = vst.msk [vmem:[%s1046_s8] sm:$0x1] %vm5840_vm7, %v5839_v26  ;;  %s9658_s8 = sld [smem:[#allocation19_spill]] }
0x1198   : > { %5115 = vmatpush.msra.mxu1 %v9392_v42  ;;  %v5413_v42 = vld [vmem:[%s9656_s6 + $0x20] sm:$0xff] }
0x119a   : > { %5116 = vmatpush.msra.mxu1 %v9386_v25  ;;  %v5295_v25 = vadd.f32 %v5294_v53, %v9339_v16  ;;  %v5403_v16 = vrot.slane %v9341_v37, 4 }
0x119c   : > { %5117 = vmatpush.msra.mxu1 %v9379_v57  ;;  %v5412_v57 = vld [vmem:[%s9656_s6 + $0x18] sm:$0xff]  ;;  %v5404_v17 = vmax.f32 %v9341_v37, %v5403_v16  ;;  %v5070_v37 = vpop.f32.mrf.mxu1 }
0x119e   : > { %5118 = vmatpush.msra.mxu1 %v9369_v4  ;;  %v5411_v4 = vld [vmem:[%s9656_s6 + $0x10] sm:$0xff]  ;;  %v5405_v58 = vrot.slane %v5404_v17, 2 }
0x11a0   : > { %5119 = vmatpush.msra.mxu1 %v9359_v6  ;;  %v5296_v6 = vrot.slane %v5295_v25, 2  ;;  %v5406_v19 = vmax.f32 %v5404_v17, %v5405_v58  ;;  %v5180_v17 = vld [vmem:[%s9659_s1] sm:$0xff] }
0x11a2   : > { %5120 = vmatpush.msra.mxu1 %v9350_v38  ;;  %v5409_v38 = vld [vmem:[%s9656_s6] sm:$0xff]  ;;  %v5297_v56 = vadd.f32 %v5296_v6, %v5295_v25  ;;  %v5407_v44 = vrot.slane %v5406_v19, 1 }
0x11a3   : > { %5121 = vmatmul.f32.vlgmr.msra.gmra.mxu1 %v5046_v20 }
0x11a4   : > { %5428 = vmatpush.msrb.mxu1 %v5414_v32  ;;  %v5298_v60 = vrot.slane %v5297_v56, 1  ;;  %v5408_v0 = vmax.f32 %v5406_v19, %v5407_v44  ;;  %v5073_v59 = vpop.f32.mrf.mxu1 }
0x11a6   : > { %5429 = vmatpush.msrb.mxu1 %v5413_v42  ;;  %v5299_v1 = vadd.f32 %v5298_v60, %v5297_v56  ;;  %v5482_v42 = vld [vmem:[%s9658_s8 + $0x48] sm:$0x3] }
0x11a8   : > { %5430 = vmatpush.msrb.mxu1 %v5412_v57  ;;  %v5307_v45 = vmul.f32 %v5306_v12, %v5299_v1 }
0x11aa   : > { %5431 = vmatpush.msrb.mxu1 %v5411_v4 }
0x11ab   : > { %5124 = vmatmul.f32.gmra.mxu1 %v5049_v24  ;;  %v5473_v24 = vld [vmem:[%s9658_s8] sm:$0xff] }
0x11ac   : > { %5432 = vmatpush.msrb.mxu1 %v5410_v3  ;;  %v5076_v23 = vpop.f32.mrf.mxu1 }
0x11ae   : > { %5433 = vmatpush.msrb.mxu1 %v5409_v38 }
0x11b0   : > { %5458 = vmatpush.msra.mxu1 %v5444_v14  ;;  %v5181_v14 = vld [vmem:[%s9659_s1 + $0x8] sm:$0xff] }
0x11b2   : > { %5459 = vmatpush.msra.mxu1 %v5443_v15  ;;  %v5483_v15 = vld [vmem:[%s9658_s8 + $0x50] sm:$0x3] }
0x11b3   : > { %5127 = vmatmul.f32.gmra.mxu1 %v5052_v9  ;;  %v5474_v9 = vld [vmem:[%s9658_s8 + $0x8] sm:$0xff] }
0x11b4   : > { %5460 = vmatpush.msra.mxu1 %v5442_v54  ;;  %v5096_v61 = vpop.f32.mrf.mxu1 }
0x11b5   : > { %v5097_v21 = vadd.f32 %v5096_v61, %v5070_v37 }
0x11b6   : > { %5461 = vmatpush.msra.mxu1 %v5441_v50 }
0x11b8   : > { %5462 = vmatpush.msra.mxu1 %v5440_v63 }
0x11ba   : > { %5463 = vmatpush.msra.mxu1 %v5439_v48  ;;  %v5182_v48 = vld [vmem:[%s9659_s1 + $0x10] sm:$0x7f]  ;;  %s9611_s1 = sand.u32 1, %s7454_s23  }
0x11bb   : > { %7042 = vmatmul.msk.f32.vlgmr.msrb.gmra.mxu1 %vm1123_vm2, %v5307_v45  ;;  %s9531_s5 = scalar_lea.vmem [#allocation2], %s9611_s1 }
0x11bc   : > { %v5099_v40 = vpop.f32.mrf.mxu1  ;;  %7044 = vmatpush.msk.msrb.mxu1 %vm5494_vm9, %v5482_v42  ;;  %s5908_s1 = sshll.u32 %s9531_s5, 4  ;;  %s5909_s1 = int_to_ptr.vmem [resolvable:$true] %s5908_s1 }
0x11bd   : > { %v5100_v5 = vadd.f32 %v5099_v40, %v5073_v59 }
0x11be   : > { %5537 = vmatpush.msrb.mxu1 %v5473_v24 }
0x11c3   : > { %7043 = vmatmul.msk.f32.vlgmr.msra.gmra.mxu1 %vm1123_vm2, %v5408_v0  ;;  %vm5190_vm2 = vcmask 79872  }
0x11c4   : > { %v5102_v18 = vpop.f32.mrf.mxu1  ;;  %7046 = vmatpush.msk.msra.mxu1 %vm5494_vm9, %v5483_v15 }
0x11c5   : > { %v5103_v13 = vadd.f32 %v5102_v18, %v5076_v23 }
0x11c6   : > { %5557 = vmatpush.msra.mxu1 %v5474_v9 }
0x1220   : > { %v5122_v39 = vpop.f32.mrf.mxu1 }
0x1221   : > { %v5123_v46 = vadd.f32 %v5122_v39, %v5097_v21 }
0x1223   : > { %v5131_v11 = vmul.f32 %v5123_v46, %v5123_v46 }
0x1225   : > { %v5134_v30 = vsel %vm1497_vm4, %v5131_v11, 0.0 }
0x1226   : > { %5135 = vadd.xlane.f32.xlu0 %v5134_v30 }
0x1228   : > { %v5125_v41 = vpop.f32.mrf.mxu1 }
0x1229   : > { %v5126_v34 = vadd.f32 %v5125_v41, %v5100_v5 }
0x122b   : > { %v5132_v27 = vmul.f32 %v5126_v34, %v5126_v34 }
0x122d   : > { %v5137_v8 = vsel %vm1497_vm4, %v5132_v27, 0.0  ;;  %v5469_v27 = vld [vmem:[%s9660_s3] sm:$0x1]  ;;  %s5906_s3 = scalar_lea.hbm %s7650_s4, %s7683_s0 }
0x122e   : > { %5138 = vadd.xlane.f32.xlu1 %v5137_v8  ;;  %s5910_s6 = sshll.u32 %s5906_s3, 4  ;;  %s5911_s6 = int_to_ptr.hbm [resolvable:$true] %s5910_s6 }
0x122f   : > { %s7414_s10 = sshra.s32 %s5911_s6, 4  ;;  %s7415_s10 = int_to_ptr.hbm [resolvable:$true] %s7414_s10 }
0x1230   : > { %v5128_v2 = vpop.f32.mrf.mxu1  ;;  %s7416_s13 = scalar_lea.hbm %s7415_s10, 1  ;;  %p7421_p0 = scmp.lt.s32.totalorder %s7415_s10, %s7650_s4 }
0x1231   : > { %v5129_v55 = vadd.f32 %v5128_v2, %v5103_v13  ;;  %v5484_v2 = vld [vmem:[%s9658_s8 + $0x58] sm:$0x3]  ;;  %p7417_p11 = scmp.ne.s32.totalorder %s7415_s10, %s7416_s13 }
0x1233   : > { %v5133_v33 = vmul.f32 %v5129_v55, %v5129_v55  ;;  %v5475_v55 = vld [vmem:[%s9658_s8 + $0x10] sm:$0xff]  ;;  %p7418_p12 = pnand %p7417_p11, %p7700_p5 }
0x1235   : > { %v5141_v22 = vsel %vm5140_vm8, %v5133_v33, 0.0  ;;  %v5485_v33 = vld [vmem:[%s9658_s8 + $0x60] sm:$0x3]  ;;  %p7419_p13 = pneg %p7418_p12 }
0x1236   : > { %5142 = vadd.xlane.f32.xlu2 %v5141_v22  ;;  %v5476_v22 = vld [vmem:[%s9658_s8 + $0x18] sm:$0xff] }
0x1238   : > { %v5435_v39 = vpop.f32.mrf.mxu1 }
0x1240   : > { %v5465_v34 = vpop.f32.mrf.mxu1 }
0x1299   : > { %v5136_v51 = vpop.xlane.xlu0 %5135 }
0x129a   : > { %7393 = vrsqrt.f32 %v5136_v51  ;;  %vm5151_vm11 = vcmp.eq.f32.partialorder %v5136_v51, inf  ;;  %v5154_v16 = vand.u32 2147483648, %v5136_v51  ;;  %vm5153_vm13 = vcmp.eq.f32.partialorder %v5136_v51, 0.0 }
0x12a0   : > { %v7394_v10 = vpop.eup %7393 }
0x12a1   : > { %v5139_v62 = vpop.xlane.xlu1 %5138  ;;  %v5145_v31 = vmul.f32 %v7394_v10, %v5136_v51 }
0x12a2   : > { %7395 = vrsqrt.f32 %v5139_v62  ;;  %vm5163_vm10 = vcmp.eq.f32.partialorder %v5139_v62, inf  ;;  %v5166_v4 = vand.u32 2147483648, %v5139_v62  ;;  %vm5165_vm12 = vcmp.eq.f32.partialorder %v5139_v62, 0.0 }
0x12a3   : > { %v5146_v47 = vmul.f32 %v7394_v10, %v5145_v31  ;;  %v5478_v31 = vld [vmem:[%s9658_s8 + $0x28] sm:$0xff] }
0x12a5   : > { %v5147_v35 = vmul.f32 0.5, %v5146_v47  ;;  %v5488_v47 = vld [vmem:[%s9658_s8 + $0x78] sm:$0x3] }
0x12a7   : > { %v5148_v52 = vsub.f32 1.5, %v5147_v35  ;;  %v5479_v35 = vld [vmem:[%s9658_s8 + $0x30] sm:$0xff] }
0x12a8   : > { %v7396_v28 = vpop.eup %7395 }
0x12a9   : > { %v5157_v7 = vmul.f32 %v7396_v28, %v5139_v62  ;;  %v5143_v29 = vpop.xlane.xlu2 %5142  ;;  %v5149_v36 = vmul.f32 %v7394_v10, %v5148_v52  ;;  %v5477_v10 = vld [vmem:[%s9658_s8 + $0x20] sm:$0xff]  ;;  %v5490_v52 = vld [vmem:[%s9658_s8 + $0x88] sm:$0x3] }
0x12aa   : > { %7397 = vrsqrt.f32 %v5143_v29  ;;  %vm5175_vm15 = vcmp.eq.f32.partialorder %v5143_v29, inf  ;;  %v5178_v19 = vand.u32 2147483648, %v5143_v29  ;;  %vm5177_vm1 = vcmp.eq.f32.partialorder %v5143_v29, 0.0 }
0x12ab   : > { %v5158_v49 = vmul.f32 %v7396_v28, %v5157_v7  ;;  %v5150_v53 = vmul.f32 %v5149_v36, %v5136_v51  ;;  %v5480_v7 = vld [vmem:[%s9658_s8 + $0x38] sm:$0xff] }
0x12ad   : > { %v5159_v12 = vmul.f32 0.5, %v5158_v49  ;;  %v5152_v3 = vsel %vm5151_vm11, %v5136_v51, %v5150_v53  ;;  %v5486_v51 = vld [vmem:[%s9658_s8 + $0x68] sm:$0x3] }
0x12ae   : > { %v5155_v54 = vsel %vm5153_vm13, %v5154_v16, %v5152_v3 }
0x12af   : > { %v5160_v43 = vsub.f32 1.5, %v5159_v12  ;;  %v5183_v58 = vmul.f32 %v5180_v17, %v5155_v54 }
0x12b0   : > { %v7398_v26 = vpop.eup %7397 }
0x12b1   : > { %v5161_v20 = vmul.f32 %v7396_v28, %v5160_v43  ;;  %v5169_v32 = vmul.f32 %v7398_v26, %v5143_v29  ;;  %v5187_v37 = vsel %vm5186_vm14, %v5183_v58, 0.0  ;;  %v5489_v28 = vld [vmem:[%s9658_s8 + $0x80] sm:$0x3] }
0x12b3   : > { %v5162_v25 = vmul.f32 %v5161_v20, %v5139_v62  ;;  %v5170_v57 = vmul.f32 %v7398_v26, %v5169_v32 }
0x12b5   : > { %v5164_v6 = vsel %vm5163_vm10, %v5139_v62, %v5162_v25  ;;  %v5171_v38 = vmul.f32 0.5, %v5170_v57  ;;  %v5487_v62 = vld [vmem:[%s9658_s8 + $0x70] sm:$0x3] }
0x12b6   : > { %v5167_v56 = vsel %vm5165_vm12, %v5166_v4, %v5164_v6 }
0x12b7   : > { %v5172_v60 = vsub.f32 1.5, %v5171_v38  ;;  %v5184_v50 = vmul.f32 %v5181_v14, %v5167_v56 }
0x12b9   : > { %v5173_v1 = vmul.f32 %v7398_v26, %v5172_v60  ;;  %v5188_v45 = vsel %vm5186_vm14, %v5184_v50, 0.0 }
0x12ba   : > { %v5189_v23 = vadd.f32 %v5188_v45, %v5187_v37 }
0x12bb   : > { %v5174_v63 = vmul.f32 %v5173_v1, %v5143_v29 }
0x12bd   : > { %v5176_v44 = vsel %vm5175_vm15, %v5143_v29, %v5174_v63  ;;  %v5481_v29 = vld [vmem:[%s9658_s8 + $0x40] sm:$0xff]  ;;  %s7420_s8 = scalar_lea.hbm %s7650_s4, 2 }
0x12be   : > { %v5179_v0 = vsel %vm5177_vm1, %v5178_v19, %v5176_v44  ;;  %p7422_p1 = scmp.lt.s32.totalorder %s7420_s8, %s7416_s13 }
0x12bf   : > { %v5185_v59 = vmul.f32 %v5182_v48, %v5179_v0 }
0x12c0   : > { %p7423_p2 = por %p7422_p1, %p7421_p0 }
0x12c1   : > { %v5191_v61 = vsel %vm5190_vm2, %v5185_v59, 0.0 }
0x12c2   : > { %v5192_v40 = vadd.f32 %v5191_v61, %v5189_v23  ;;  %p7424_p3 = pnand %p7423_p2, %p7419_p13 }
0x12c4   : > { %v5193_v18 = vrot.slane %v5192_v40, 4 }
0x12c6   : > { %v5194_v21 = vadd.f32 %v5193_v18, %v5192_v40 }
0x12c8   : > { %v5195_v46 = vrot.slane %v5194_v21, 2 }
0x12ca   : > { %v5196_v11 = vadd.f32 %v5195_v46, %v5194_v21 }
0x12cc   : > { %v5197_v30 = vrot.slane %v5196_v11, 1 }
0x12ce   : > { %v5198_v5 = vadd.f32 %v5197_v30, %v5196_v11 }
0x12d0   : > { %v5438_v41 = vadd.f32 %v5435_v39, %v5198_v5 }
0x12d2   : > { %v5468_v8 = vadd.f32 %v5465_v34, %v5438_v41 }
0x12d4   : > { %v5470_v13 = vadd.f32 %v5469_v27, %v5468_v8 }
0x12d6   : > { %7045 = vmatmul.msk.f32.vlgmr.msrb.gmra.mxu1 %vm5186_vm14, %v5470_v13  ;;  %5472 = vst.msk [vmem:[%s9531_s5] sm:$0x1] %vm5471_vm3, %v5470_v13 }
0x12d7   : > { %7048 = vmatpush.msk.msrb.mxu1 %vm5494_vm9, %v5484_v2 }
0x12d9   : > { %5577 = vmatpush.msrb.mxu1 %v5475_v55 }
0x12de   : > { %7047 = vmatmul.msk.f32.vlgmr.msra.gmra.mxu1 %vm5186_vm14, %v5470_v13 }
0x12df   : > { %7050 = vmatpush.msk.msra.mxu1 %vm5494_vm9, %v5485_v33 }
0x12e1   : > { %5597 = vmatpush.msra.mxu1 %v5476_v22 }
0x12e6   : > { %7049 = vmatmul.msk.f32.vlgmr.msrb.gmra.mxu1 %vm5186_vm14, %v5470_v13 }
0x12e7   : > { %7052 = vmatpush.msk.msrb.mxu1 %vm5494_vm9, %v5486_v51 }
0x12e9   : > { %5617 = vmatpush.msrb.mxu1 %v5477_v10 }
0x12ee   : > { %7051 = vmatmul.msk.f32.vlgmr.msra.gmra.mxu1 %vm5186_vm14, %v5470_v13 }
0x12ef   : > { %7054 = vmatpush.msk.msra.mxu1 %vm5494_vm9, %v5487_v62 }
0x12f1   : > { %5637 = vmatpush.msra.mxu1 %v5478_v31 }
0x12f6   : > { %7053 = vmatmul.msk.f32.vlgmr.msrb.gmra.mxu1 %vm5186_vm14, %v5470_v13 }
0x12f7   : > { %7056 = vmatpush.msk.msrb.mxu1 %vm5494_vm9, %v5488_v47 }
0x12f9   : > { %5657 = vmatpush.msrb.mxu1 %v5479_v35 }
0x12fe   : > { %7055 = vmatmul.msk.f32.vlgmr.msra.gmra.mxu1 %vm5186_vm14, %v5470_v13 }
0x12ff   : > { %7058 = vmatpush.msk.msra.mxu1 %vm5494_vm9, %v5489_v28 }
0x1301   : > { %5677 = vmatpush.msra.mxu1 %v5480_v7 }
0x1306   : > { %7057 = vmatmul.msk.f32.vlgmr.msrb.gmra.mxu1 %vm5186_vm14, %v5470_v13 }
0x1307   : > { %7060 = vmatpush.msk.msrb.mxu1 %vm5494_vm9, %v5490_v52 }
0x1309   : > { %5697 = vmatpush.msrb.mxu1 %v5481_v29 }
0x130e   : > { %7059 = vmatmul.msk.f32.vlgmr.msra.gmra.mxu1 %vm5186_vm14, %v5470_v13 }
0x130f   : > { %7427 = shalt.err (!%p7424_p3)
}
0x1310   : > { %7215 = dma.vmem_to_hbm [thread:$0]  (%p7700_p5), %s5909_s1, 16, %s5911_s6, %s5873_s9   ;;  %vm5719_vm4 = vcmask 1042434   ;;  %vm5717_vm5 = vcmask 1040384   ;;  %vm5722_vm6 = vcmask 1044484   ;;  %vm5724_vm7 = vcmask 1046534  }
0x1311   : > { %s7214_s13 = smul.u32 9, %s7712_s18  ;;  %vm5726_vm8 = vcmask 1045508   ;;  %v5731_v14 = vlaneseq }
0x1313   : > { %s1043_s9 = scalar_lea.vmem %s7655_s12, %s7214_s13  ;;  %vm5733_vm10 = vcmp.lt.s32.totalorder %v5731_v14, 128 }
0x1316   : > { %7061 = vmatmul.msk.f32.vlgmr.msrb.gmra.mxu1 %vm5186_vm14, %v5470_v13 }
0x1353   : > { %v5539_v49 = vpop.f32.mrf.mxu1 }
0x135b   : > { %v5559_v12 = vpop.f32.mrf.mxu1 }
0x135c   : > { %v5710_v25 = vrot.slane %v5559_v12, 7 }
0x135e   : > { %v5718_v56 = vsel %vm5717_vm5, %v5539_v49, %v5710_v25 }
0x1363   : > { %v5579_v36 = vpop.f32.mrf.mxu1 }
0x1364   : > { %v5711_v42 = vrot.slane %v5579_v36, 6 }
0x136b   : > { %v5599_v43 = vpop.f32.mrf.mxu1 }
0x136c   : > { %v5712_v32 = vrot.slane %v5599_v43, 5 }
0x136e   : > { %v5720_v4 = vsel %vm5719_vm4, %v5711_v42, %v5712_v32 }
0x136f   : > { %v5721_v9 = vsel %vm5494_vm9, %v5718_v56, %v5720_v4 }
0x1373   : > { %v5619_v26 = vpop.f32.mrf.mxu1 }
0x1374   : > { %v5713_v6 = vrot.slane %v5619_v26, 4 }
0x137b   : > { %v5639_v20 = vpop.f32.mrf.mxu1 }
0x137c   : > { %v5714_v57 = vrot.slane %v5639_v20, 3 }
0x137e   : > { %v5723_v16 = vsel %vm5722_vm6, %v5713_v6, %v5714_v57 }
0x1383   : > { %v5659_v53 = vpop.f32.mrf.mxu1 }
0x1384   : > { %v5715_v3 = vrot.slane %v5659_v53, 2 }
0x138b   : > { %v5679_v24 = vpop.f32.mrf.mxu1 }
0x138c   : > { %v5716_v38 = vrot.slane %v5679_v24, 1 }
0x138e   : > { %v5725_v15 = vsel %vm5724_vm7, %v5715_v3, %v5716_v38 }
0x138f   : > { %v5727_v60 = vsel %vm5726_vm8, %v5723_v16, %v5725_v15 }
0x1390   : > { %v5728_v17 = vsel %vm1071_vm0, %v5721_v9, %v5727_v60 }
0x1391   : > { %5730 = vst [vmem:[%s1043_s9] sm:$0xff] %v5728_v17 }
0x1393   : > { %v5699_v54 = vpop.f32.mrf.mxu1 }
0x1394   : > { %5735 = vst.msk [vmem:[%s1043_s9 + $0x8] sm:$0x1] %vm5733_vm10, %v5699_v54 }
0x1395 PF: > { %p7221_p4 = scmp.ge.s32.totalorder %s7462_s28, 2  ;;  %s5976_s0 = sand.u32 1, %s7450_s22  }
0x1396   : > { %s5977_s15 = scalar_lea.sflag [#allocation3], %s5976_s0 }
0x1397   : > { %p7218_p5 = pnand %p7221_p4, %p7704_p6 }
0x1399   : > { %p7219_p7 = pneg %p7218_p5 }
0x139b   : > { %7445 = dma.done.wait (%p7219_p7), %s5977_s15, 16  }
0x139c   : > { %7447 = vsyncadd (%p7219_p7), %s5977_s15, 4294967280  ;;  %p74_p8 = scmp.ge.s32.totalorder %s7687_s2, 4   ;;  %s9662_s22 = smov %s7454_s23 }
0x139d   : > { %s9663_s23 = smov %s7458_s26  ;;  %s9664_s26 = smov %s7698_s11 }
0x139e   : > { %s9665_s28 = smov %s7687_s2  ;;  %76 = sbr.rel (!%p74_p8) target bundleno = 59 (0x3b), region = 294 }
0x13a3   :  { %5995 = vsyncpa [#allocation3], 1 }
0x13a4   :  { %5997 = vsyncpa [#allocation3 + $0x1], 1 }

</bundles_post_ra>
